<compile_context>
chip_gen: v7x
topology: tpu7x:2x2x1
jax: 0.10.0
libtpu: 0.0.40
codegen_flags: <defaults>
</compile_context>

<pallas_src>
import functools

import jax
import jax.numpy as jnp
from jax import lax
from jax.experimental import pallas as pl
from jax.experimental.pallas import tpu as pltpu

FEAT_C = 128                        # lane-dense channel width for every feature map
STAGE_STRIDES = (1, 2, 2, 2)        # static python constants (NOT in the traced pytree)
WEIGHTS = (1.0 / 32, 1.0 / 16, 1.0 / 8, 1.0 / 4, 1.0)


@functools.lru_cache(maxsize=1)
def _vmem_limit_bytes():
    # Above v5e's 16 MiB / v6e's 32 MiB scoped defaults, below v7x's 64 MiB physical.
    try:
        cap = int(pltpu.get_tpu_info().vmem_capacity_bytes)
    except Exception:
        cap = 64 * 1024 * 1024
    return int(min(100 * 1024 * 1024, cap * 3 // 4))


def _compiler_params(semantics):
    return pltpu.CompilerParams(dimension_semantics=semantics,
                                vmem_limit_bytes=_vmem_limit_bytes())


def _pick_tile_oh(oh, ow, target_m=256):
    """Output-row tile so the f32 accumulator is ~(<=256, 128): fits vregs, no spill."""
    # TODO(synk): for very wide maps (OW >> 256) the OW dim should be tiled as well.
    return max(1, min(oh, max(1, target_m // max(ow, 1))))


# ------------------------------ Pallas kernels -------------------------------

def _conv_kxk_kernel(x_ref, w_ref, b_ref, o_ref, *, KH, KW, SH, SW, OW, TILE_OH, relu):
    """Row-tiled direct conv: accumulate the KH*KW taps on the MXU in f32.

    x_ref : (1, SH*SW, Hq, Wq, Cin) bf16  stride-phase planes; full image, resident
            across the row-tile grid axis (constant block index)
    w_ref : (KH, KW, Cin, Cout)     bf16  resident weights
    b_ref : (1, Cout)               f32
    o_ref : (1, TILE_OH, OW, Cout)  bf16  per-row-tile output block
    """
    r0 = pl.program_id(1) * TILE_OH
    if TILE_OH % 8 == 0:
        r0 = pl.multiple_of(r0, 8)
    cin = x_ref.shape[-1]
    cout = o_ref.shape[-1]
    m = TILE_OH * OW
    acc = jnp.zeros((m, cout), jnp.float32)
    for j in range(KW):                                   # static unroll
        pc, dj = j % SW, j // SW
        for pr in range(SH):
            taps = [i for i in range(KH) if i % SH == pr]
            if not taps:
                continue
            di0, di1 = taps[0] // SH, taps[-1] // SH
            # hoisted column-shifted load, shared by every row tap of this (j, pr)
            blk = x_ref[0, pr * SW + pc,
                        pl.ds(r0 + di0, TILE_OH + (di1 - di0)),
                        pl.ds(dj, OW), :]
            for i in taps:
                off = i // SH - di0
                a = blk[off:off + TILE_OH].reshape(m, cin)
                acc = acc + jnp.dot(a, w_ref[i, j],
                                    preferred_element_type=jnp.float32)
    acc = acc + b_ref[...]
    if relu:
        acc = jnp.maximum(acc, 0.0)
    o_ref[0] = acc.reshape(TILE_OH, OW, cout).astype(o_ref.dtype)


def _maxpool_kernel(x_ref, o_ref, *, KH, KW, SH, SW, OW, TILE_OH):
    r0 = pl.program_id(1) * TILE_OH
    if TILE_OH % 8 == 0:
        r0 = pl.multiple_of(r0, 8)
    c = x_ref.shape[-1]
    m = jnp.full((TILE_OH, OW, c), -jnp.inf, x_ref.dtype)
    for j in range(KW):
        pc, dj = j % SW, j // SW
        for pr in range(SH):
            taps = [i for i in range(KH) if i % SH == pr]
            if not taps:
                continue
            di0, di1 = taps[0] // SH, taps[-1] // SH
            blk = x_ref[0, pr * SW + pc,
                        pl.ds(r0 + di0, TILE_OH + (di1 - di0)),
                        pl.ds(dj, OW), :]
            for i in taps:
                off = i // SH - di0
                m = jnp.maximum(m, blk[off:off + TILE_OH])
    o_ref[0] = m


def _gemm_bias_kernel(x_ref, w_ref, b_ref, *rest, relu, has_res):
    """1x1 conv as a row-tiled GEMM with fused bias / residual-add / ReLU."""
    if has_res:
        res_ref, o_ref = rest
    else:
        (o_ref,) = rest
    acc = jnp.dot(x_ref[0], w_ref[...], preferred_element_type=jnp.float32)
    acc = acc + b_ref[...]
    if has_res:
        acc = acc + res_ref[0].astype(jnp.float32)
    if relu:
        acc = jnp.maximum(acc, 0.0)
    o_ref[0] = acc.astype(o_ref.dtype)


def _l1_partial_kernel(x_ref, y_ref, o_ref, *, TILE_P, P):
    """Per-tile partial sum of |x - y| (f32), written to an (8,128)-padded slab."""
    d = jnp.abs(x_ref[0].astype(jnp.float32) - y_ref[0].astype(jnp.float32))
    if P % TILE_P != 0:                 # mask the padded tail rows of the last tile
        rows = pl.program_id(1) * TILE_P + lax.broadcasted_iota(jnp.int32, d.shape, 0)
        d = jnp.where(rows < P, d, 0.0)
    o_ref[...] = jnp.zeros(o_ref.shape, jnp.float32) + jnp.sum(d)


# -------------------------------- wrappers ------------------------------------

def _phase_planes(xpad, sh, sw, kh, kw, oh, ow, tile_oh, pad_value=0.0):
    """(N, HP, WP, C) padded input -> (N, sh*sw, Hq, Wq, C) stride-phase planes.

    Total bytes stay ~1x the input (no kh*kw im2col duplication). Only used for
    strided convs / pooling (and the 3x3 pad); stride-1 1x1 convs bypass it entirely.
    Tap (i, j) reads plane (i % sh) * sw + (j % sw) at row offset i // sh, col j // sw.
    """
    n, hp, wp, c = xpad.shape
    n_tiles = -(-oh // tile_oh)
    hq = max(n_tiles * tile_oh + (kh - 1) // sh, -(-hp // sh))
    wq = max(ow + (kw - 1) // sw, -(-wp // sw))
    planes = []
    for a in range(sh):
        for b in range(sw):
            p = xpad[:, a::sh, b::sw, :]
            p = jnp.pad(p, ((0, 0), (0, hq - p.shape[1]), (0, wq - p.shape[2]), (0, 0)),
                        constant_values=pad_value)
            planes.append(p)
    return jnp.stack(planes, axis=1)


def _conv_spatial(planes, w, b, *, KH, KW, SH, SW, OH, OW, relu, tile_oh):
    n, ph, hq, wq, cin = planes.shape
    cout = w.shape[-1]
    n_tiles = -(-OH // tile_oh)
    kern = functools.partial(_conv_kxk_kernel, KH=KH, KW=KW, SH=SH, SW=SW,
                             OW=OW, TILE_OH=tile_oh, relu=relu)
    return pl.pallas_call(
        kern,
        out_shape=jax.ShapeDtypeStruct((n, OH, OW, cout), jnp.bfloat16),
        grid=(n, n_tiles),
        in_specs=[
            # full image per grid step; constant along the row-tile axis -> resident
            pl.BlockSpec((1, ph, hq, wq, cin), lambda i, r: (i, 0, 0, 0, 0)),
            pl.BlockSpec((KH, KW, cin, cout), lambda i, r: (0, 0, 0, 0)),
            pl.BlockSpec((1, cout), lambda i, r: (0, 0)),
        ],
        out_specs=pl.BlockSpec((1, tile_oh, OW, cout), lambda i, r: (i, r, 0, 0)),
        compiler_params=_compiler_params(("parallel", "parallel")),
    )(planes, w.astype(jnp.bfloat16), b.reshape(1, cout).astype(jnp.float32))


def conv1x1(x_nhwc, w, b, *, stride=1, relu=False, residual=None, tile_m=512):
    """1x1 conv = lane-dense GEMM, row-tiled over the flattened spatial dim.

    No padding / phase / re-layout HBM copy; bias + optional residual + ReLU fused.
    """
    if stride > 1:
        x_nhwc = x_nhwc[:, ::stride, ::stride, :]
    n, h, wd, cin = x_nhwc.shape
    cout = w.shape[-1]
    p = h * wd
    tm = min(p, tile_m)
    n_tiles = -(-p // tm)
    xf = x_nhwc.reshape(n, p, cin).astype(jnp.bfloat16)
    in_specs = [
        pl.BlockSpec((1, tm, cin), lambda i, t: (i, t, 0)),
        pl.BlockSpec((cin, cout), lambda i, t: (0, 0)),
        pl.BlockSpec((1, cout), lambda i, t: (0, 0)),
    ]
    args = [xf, w.reshape(cin, cout).astype(jnp.bfloat16),
            b.reshape(1, cout).astype(jnp.float32)]
    if residual is not None:
        in_specs.append(pl.BlockSpec((1, tm, cout), lambda i, t: (i, t, 0)))
        args.append(residual.reshape(n, p, cout))
    out = pl.pallas_call(
        functools.partial(_gemm_bias_kernel, relu=relu, has_res=residual is not None),
        out_shape=jax.ShapeDtypeStruct((n, p, cout), jnp.bfloat16),
        grid=(n, n_tiles),
        in_specs=in_specs,
        out_specs=pl.BlockSpec((1, tm, cout), lambda i, t: (i, t, 0)),
        compiler_params=_compiler_params(("parallel", "parallel")),
    )(*args)
    return out.reshape(n, h, wd, cout)


def conv3x3(x_nhwc, w, b, *, stride, relu=True):
    """3x3 conv, pad=1: phase planes only carry the stride; row-tiled taps on the MXU."""
    n, h, wd, cin = x_nhwc.shape
    kh, kw, _, cout = w.shape
    pad = 1
    oh = (h + 2 * pad - kh) // stride + 1
    ow = (wd + 2 * pad - kw) // stride + 1
    xpad = jnp.pad(x_nhwc.astype(jnp.bfloat16),
                   ((0, 0), (pad, pad), (pad, pad), (0, 0)))
    tile_oh = _pick_tile_oh(oh, ow)
    planes = _phase_planes(xpad, stride, stride, kh, kw, oh, ow, tile_oh)
    return _conv_spatial(planes, w, b, KH=kh, KW=kw, SH=stride, SW=stride,
                         OH=oh, OW=ow, relu=relu, tile_oh=tile_oh)


def conv_stem(x_nhwc, w, b):
    """7x7 stride-2 pad-3 stem with the width taps folded into the contraction dim.

    A tiny in-HBM width-im2col of the Cin<=8 input gives K = 7*Cin = 56 per matmul,
    so the kernel issues 7 row-tap matmuls instead of 49 K=8 matmuls (MXU starvation).
    """
    n, h, wd, cin = x_nhwc.shape
    kh, kw, _, cout = w.shape
    s, pad = 2, 3
    oh = (h + 2 * pad - kh) // s + 1
    ow = (wd + 2 * pad - kw) // s + 1
    cin_p = -(-cin // 8) * 8
    if cin_p != cin:   # zero-padded channels + zero weights -> no numeric effect
        x_nhwc = jnp.pad(x_nhwc, ((0, 0), (0, 0), (0, 0), (0, cin_p - cin)))
        w = jnp.pad(w, ((0, 0), (0, 0), (0, cin_p - cin), (0, 0)))
        cin = cin_p
    xpad = jnp.pad(x_nhwc.astype(jnp.bfloat16),
                   ((0, 0), (pad, pad), (pad, pad), (0, 0)))
    # width im2col: output col ow reads padded cols s*ow + j, j = 0..kw-1
    cols = [xpad[:, :, j: j + (ow - 1) * s + 1: s, :] for j in range(kw)]
    xw = jnp.concatenate(cols, axis=-1)                        # (N, HP, OW, kw*cin)
    w2 = w.reshape(kh, 1, kw * cin, cout)                      # [i,0,j*cin+c,:] == w[i,j,c,:]
    tile_oh = _pick_tile_oh(oh, ow)
    planes = _phase_planes(xw, s, 1, kh, 1, oh, ow, tile_oh)   # rows only: stride (2,1)
    return _conv_spatial(planes, w2, b, KH=kh, KW=1, SH=s, SW=1,
                         OH=oh, OW=ow, relu=True, tile_oh=tile_oh)


def maxpool2d(x_nhwc, *, ksize=3, stride=2, pad=1):
    n, h, wd, c = x_nhwc.shape
    oh = (h + 2 * pad - ksize) // stride + 1
    ow = (wd + 2 * pad - ksize) // stride + 1
    xpad = jnp.pad(x_nhwc, ((0, 0), (pad, pad), (pad, pad), (0, 0)),
                   constant_values=-jnp.inf)
    tile_oh = _pick_tile_oh(oh, ow)
    planes = _phase_planes(xpad, stride, stride, ksize, ksize, oh, ow, tile_oh,
                           pad_value=-jnp.inf)
    _, ph, hq, wq, _ = planes.shape
    n_tiles = -(-oh // tile_oh)
    return pl.pallas_call(
        functools.partial(_maxpool_kernel, KH=ksize, KW=ksize, SH=stride, SW=stride,
                          OW=ow, TILE_OH=tile_oh),
        out_shape=jax.ShapeDtypeStruct((n, oh, ow, c), x_nhwc.dtype),
        grid=(n, n_tiles),
        in_specs=[pl.BlockSpec((1, ph, hq, wq, c), lambda i, r: (i, 0, 0, 0, 0))],
        out_specs=pl.BlockSpec((1, tile_oh, ow, c), lambda i, r: (i, r, 0, 0)),
        compiler_params=_compiler_params(("parallel", "parallel")),
    )(planes)


def l1_mean(x, y, *, tile_p=2048):
    """mean(|x - y|) over (N, P, C): parallel per-tile f32 partial sums, reduced outside."""
    n, p, c = x.shape
    tp = min(p, tile_p)
    t = -(-p // tp)
    part = pl.pallas_call(
        functools.partial(_l1_partial_kernel, TILE_P=tp, P=p),
        out_shape=jax.ShapeDtypeStruct((n, t, 8, 128), jnp.float32),
        grid=(n, t),
        in_specs=[pl.BlockSpec((1, tp, c), lambda i, j: (i, j, 0))] * 2,
        out_specs=pl.BlockSpec((1, 1, 8, 128), lambda i, j: (i, j, 0, 0)),
        compiler_params=_compiler_params(("parallel", "parallel")),
    )(x, y)
    return jnp.sum(part[:, :, 0, 0]) / float(n * p * c)


# ------------------------------- backbone -------------------------------------

def bottleneck(x, stage, stride):
    w1, b1 = stage["c1"]
    w2, b2 = stage["c2"]
    w3, b3 = stage["c3"]
    ws, bs = stage["sc"]
    h = conv1x1(x, w1, b1, relu=True)
    h = conv3x3(h, w2, b2, stride=stride, relu=True)
    sc = conv1x1(x, ws, bs, stride=stride, relu=False)
    # TODO(synk): tiny late stages could fuse the whole bottleneck into one kernel.
    # 1x1 c3 with the residual add + ReLU fused into its epilogue
    return conv1x1(h, w3, b3, relu=True, residual=sc)


def resnet_features(x_nhwc, params):
    feats = []
    w, b = params["stem"]
    f0 = conv_stem(x_nhwc, w, b)              # BN folded as identity
    feats.append(f0)
    h = maxpool2d(f0)
    for stage, stride in zip(params["stages"], STAGE_STRIDES):
        h = bottleneck(h, stage, stride)
        feats.append(h)
    return feats                               # 5 feature maps


def init_conv(key, kh, kw, cin, cout):
    kw_key, kb_key = jax.random.split(key)
    fan_in = kh * kw * cin
    w = jax.random.normal(kw_key, (kh, kw, cin, cout), jnp.float32) / jnp.sqrt(float(fan_in))
    b = 0.01 * jax.random.normal(kb_key, (cout,), jnp.float32)
    return w, b


def init_resnet_params(key, in_ch=3):
    keys = iter(jax.random.split(key, 32))
    params = {"stem": init_conv(next(keys), 7, 7, in_ch, FEAT_C), "stages": []}
    for _ in range(4):
        params["stages"].append({
            "c1": init_conv(next(keys), 1, 1, FEAT_C, FEAT_C),
            "c2": init_conv(next(keys), 3, 3, FEAT_C, FEAT_C),
            "c3": init_conv(next(keys), 1, 1, FEAT_C, FEAT_C),
            "sc": init_conv(next(keys), 1, 1, FEAT_C, FEAT_C),
        })
    return params


# ----------------------------- ResnetLoss forward ------------------------------

@functools.partial(jax.jit, static_argnames=("perceptual_channel",))
def resnet_loss(x_nchw, y_nchw, params, perceptual_channel):
    if perceptual_channel == 3:
        x_nchw = jnp.concatenate([x_nchw, x_nchw, x_nchw], axis=1)
        y_nchw = jnp.concatenate([y_nchw, y_nchw, y_nchw], axis=1)
    n = x_nchw.shape[0]
    # single backbone pass over [x; y]: half the weight DMA, more grid parallelism
    xy = jnp.concatenate([x_nchw, y_nchw], axis=0)
    xy = jnp.transpose(xy, (0, 2, 3, 1)).astype(jnp.bfloat16)  # NCHW->NHWC, one cast
    feats = resnet_features(xy, params)
    loss = jnp.float32(0.0)
    for wgt, f in zip(WEIGHTS, feats):
        c = f.shape[-1]
        fa = f[:n].reshape(n, -1, c)
        fb = lax.stop_gradient(f[n:]).reshape(n, -1, c)         # .detach()
        loss = loss + wgt * l1_mean(fa, fb)
    return loss


if __name__ == "__main__":
    key = jax.random.PRNGKey(0)
    kx, ky = jax.random.split(key)
    # perceptual_channel == 3 path: 1-channel inputs get tripled along dim=1
    x = jax.random.normal(kx, (2, 1, 32, 32), jnp.float32)
    y = jax.random.normal(ky, (2, 1, 32, 32), jnp.float32)
    params = init_resnet_params(jax.random.PRNGKey(42), in_ch=3)

    loss = jax.block_until_ready(resnet_loss(x, y, params, perceptual_channel=3))
    assert jnp.isfinite(loss), "loss is not finite"
    print("KERNEL_OK")
</pallas_src>

<mosaic_0001>
module attributes {stable_mosaic.version = 11 : i64} {
  func.func @_conv_kxk_kernel(%arg0: i32, %arg1: i32, %arg2: memref<1x2x19x16x56xbf16, #tpu.memory_space<vmem>>, %arg3: memref<7x1x56x128xbf16, #tpu.memory_space<vmem>>, %arg4: memref<1x128xf32, #tpu.memory_space<vmem>>, %arg5: memref<1x16x16x128xbf16, #tpu.memory_space<vmem>>) attributes {dimension_semantics = [#tpu.dimension_semantics<parallel>, #tpu.dimension_semantics<parallel>], iteration_bounds = array<i64: 4, 1>, scalar_prefetch = 0 : i64, scratch_operands = 0 : i64, tpu.core_type = #tpu.core_type<tc>, window_params = [{transform_indices = @transform_0, window_bounds = array<i64: 1, 2, 19, 16, 56>}, {pipeline_mode = #tpu.pipeline_mode<synchronous>, transform_indices = @transform_1, window_bounds = array<i64: 7, 1, 56, 128>}, {pipeline_mode = #tpu.pipeline_mode<synchronous>, transform_indices = @transform_2, window_bounds = array<i64: 1, 128>}, {transform_indices = @transform_3, window_bounds = array<i64: 1, 16, 16, 128>}]} {
    %c16_i32 = arith.constant 16 : i32
    %0 = arith.muli %arg1, %c16_i32 : i32
    %1 = tpu.assume_multiple %0, 8 : i32
    %cst = arith.constant 0.000000e+00 : f32
    %2 = vector.broadcast %cst : f32 to vector<256x128xf32>
    %c0_i32 = arith.constant 0 : i32
    %3 = arith.addi %1, %c0_i32 : i32
    %c0 = arith.constant 0 : index
    %c0_0 = arith.constant 0 : index
    %4 = arith.index_cast %3 : i32 to index
    %c0_1 = arith.constant 0 : index
    %c0_2 = arith.constant 0 : index
    %5 = vector.load %arg2[%c0, %c0_0, %4, %c0_1, %c0_2] : memref<1x2x19x16x56xbf16, #tpu.memory_space<vmem>>, vector<1x1x19x16x56xbf16>
    %6 = vector.shape_cast %5 : vector<1x1x19x16x56xbf16> to vector<19x16x56xbf16>
    %7 = vector.extract_strided_slice %6 {offsets = [0, 0, 0], sizes = [16, 16, 56], strides = [1, 1, 1]} : vector<19x16x56xbf16> to vector<16x16x56xbf16>
    %8 = vector.shape_cast %7 : vector<16x16x56xbf16> to vector<256x56xbf16>
    %c0_3 = arith.constant 0 : index
    %c0_4 = arith.constant 0 : index
    %c0_5 = arith.constant 0 : index
    %c0_6 = arith.constant 0 : index
    %9 = vector.load %arg3[%c0_3, %c0_4, %c0_5, %c0_6] : memref<7x1x56x128xbf16, #tpu.memory_space<vmem>>, vector<1x1x56x128xbf16>
    %10 = vector.shape_cast %9 : vector<1x1x56x128xbf16> to vector<56x128xbf16>
    %cst_7 = arith.constant dense<0.000000e+00> : vector<256x128xf32>
    %11 = tpu.matmul %8, %10, %cst_7 {dimension_numbers = #tpu.dot_dimension_numbers<[1], [0], [0], [1], [0, 0, 1, 1], [], []>} : vector<256x56xbf16>, vector<56x128xbf16>, vector<256x128xf32> -> vector<256x128xf32>
    %12 = arith.addf %2, %11 : vector<256x128xf32>
    %13 = vector.extract_strided_slice %6 {offsets = [1, 0, 0], sizes = [16, 16, 56], strides = [1, 1, 1]} : vector<19x16x56xbf16> to vector<16x16x56xbf16>
    %14 = vector.shape_cast %13 : vector<16x16x56xbf16> to vector<256x56xbf16>
    %c2 = arith.constant 2 : index
    %c0_8 = arith.constant 0 : index
    %c0_9 = arith.constant 0 : index
    %c0_10 = arith.constant 0 : index
    %15 = vector.load %arg3[%c2, %c0_8, %c0_9, %c0_10] : memref<7x1x56x128xbf16, #tpu.memory_space<vmem>>, vector<1x1x56x128xbf16>
    %16 = vector.shape_cast %15 : vector<1x1x56x128xbf16> to vector<56x128xbf16>
    %cst_11 = arith.constant dense<0.000000e+00> : vector<256x128xf32>
    %17 = tpu.matmul %14, %16, %cst_11 {dimension_numbers = #tpu.dot_dimension_numbers<[1], [0], [0], [1], [0, 0, 1, 1], [], []>} : vector<256x56xbf16>, vector<56x128xbf16>, vector<256x128xf32> -> vector<256x128xf32>
    %18 = arith.addf %12, %17 : vector<256x128xf32>
    %19 = vector.extract_strided_slice %6 {offsets = [2, 0, 0], sizes = [16, 16, 56], strides = [1, 1, 1]} : vector<19x16x56xbf16> to vector<16x16x56xbf16>
    %20 = vector.shape_cast %19 : vector<16x16x56xbf16> to vector<256x56xbf16>
    %c4 = arith.constant 4 : index
    %c0_12 = arith.constant 0 : index
    %c0_13 = arith.constant 0 : index
    %c0_14 = arith.constant 0 : index
    %21 = vector.load %arg3[%c4, %c0_12, %c0_13, %c0_14] : memref<7x1x56x128xbf16, #tpu.memory_space<vmem>>, vector<1x1x56x128xbf16>
    %22 = vector.shape_cast %21 : vector<1x1x56x128xbf16> to vector<56x128xbf16>
    %cst_15 = arith.constant dense<0.000000e+00> : vector<256x128xf32>
    %23 = tpu.matmul %20, %22, %cst_15 {dimension_numbers = #tpu.dot_dimension_numbers<[1], [0], [0], [1], [0, 0, 1, 1], [], []>} : vector<256x56xbf16>, vector<56x128xbf16>, vector<256x128xf32> -> vector<256x128xf32>
    %24 = arith.addf %18, %23 : vector<256x128xf32>
    %25 = vector.extract_strided_slice %6 {offsets = [3, 0, 0], sizes = [16, 16, 56], strides = [1, 1, 1]} : vector<19x16x56xbf16> to vector<16x16x56xbf16>
    %26 = vector.shape_cast %25 : vector<16x16x56xbf16> to vector<256x56xbf16>
    %c6 = arith.constant 6 : index
    %c0_16 = arith.constant 0 : index
    %c0_17 = arith.constant 0 : index
    %c0_18 = arith.constant 0 : index
    %27 = vector.load %arg3[%c6, %c0_16, %c0_17, %c0_18] : memref<7x1x56x128xbf16, #tpu.memory_space<vmem>>, vector<1x1x56x128xbf16>
    %28 = vector.shape_cast %27 : vector<1x1x56x128xbf16> to vector<56x128xbf16>
    %cst_19 = arith.constant dense<0.000000e+00> : vector<256x128xf32>
    %29 = tpu.matmul %26, %28, %cst_19 {dimension_numbers = #tpu.dot_dimension_numbers<[1], [0], [0], [1], [0, 0, 1, 1], [], []>} : vector<256x56xbf16>, vector<56x128xbf16>, vector<256x128xf32> -> vector<256x128xf32>
    %30 = arith.addf %24, %29 : vector<256x128xf32>
    %c0_i32_20 = arith.constant 0 : i32
    %31 = arith.addi %1, %c0_i32_20 : i32
    %c0_21 = arith.constant 0 : index
    %c1 = arith.constant 1 : index
    %32 = arith.index_cast %31 : i32 to index
    %c0_22 = arith.constant 0 : index
    %c0_23 = arith.constant 0 : index
    %33 = vector.load %arg2[%c0_21, %c1, %32, %c0_22, %c0_23] : memref<1x2x19x16x56xbf16, #tpu.memory_space<vmem>>, vector<1x1x18x16x56xbf16>
    %34 = vector.shape_cast %33 : vector<1x1x18x16x56xbf16> to vector<18x16x56xbf16>
    %35 = vector.extract_strided_slice %34 {offsets = [0, 0, 0], sizes = [16, 16, 56], strides = [1, 1, 1]} : vector<18x16x56xbf16> to vector<16x16x56xbf16>
    %36 = vector.shape_cast %35 : vector<16x16x56xbf16> to vector<256x56xbf16>
    %c1_24 = arith.constant 1 : index
    %c0_25 = arith.constant 0 : index
    %c0_26 = arith.constant 0 : index
    %c0_27 = arith.constant 0 : index
    %37 = vector.load %arg3[%c1_24, %c0_25, %c0_26, %c0_27] : memref<7x1x56x128xbf16, #tpu.memory_space<vmem>>, vector<1x1x56x128xbf16>
    %38 = vector.shape_cast %37 : vector<1x1x56x128xbf16> to vector<56x128xbf16>
    %cst_28 = arith.constant dense<0.000000e+00> : vector<256x128xf32>
    %39 = tpu.matmul %36, %38, %cst_28 {dimension_numbers = #tpu.dot_dimension_numbers<[1], [0], [0], [1], [0, 0, 1, 1], [], []>} : vector<256x56xbf16>, vector<56x128xbf16>, vector<256x128xf32> -> vector<256x128xf32>
    %40 = arith.addf %30, %39 : vector<256x128xf32>
    %41 = vector.extract_strided_slice %34 {offsets = [1, 0, 0], sizes = [16, 16, 56], strides = [1, 1, 1]} : vector<18x16x56xbf16> to vector<16x16x56xbf16>
    %42 = vector.shape_cast %41 : vector<16x16x56xbf16> to vector<256x56xbf16>
    %c3 = arith.constant 3 : index
    %c0_29 = arith.constant 0 : index
    %c0_30 = arith.constant 0 : index
    %c0_31 = arith.constant 0 : index
    %43 = vector.load %arg3[%c3, %c0_29, %c0_30, %c0_31] : memref<7x1x56x128xbf16, #tpu.memory_space<vmem>>, vector<1x1x56x128xbf16>
    %44 = vector.shape_cast %43 : vector<1x1x56x128xbf16> to vector<56x128xbf16>
    %cst_32 = arith.constant dense<0.000000e+00> : vector<256x128xf32>
    %45 = tpu.matmul %42, %44, %cst_32 {dimension_numbers = #tpu.dot_dimension_numbers<[1], [0], [0], [1], [0, 0, 1, 1], [], []>} : vector<256x56xbf16>, vector<56x128xbf16>, vector<256x128xf32> -> vector<256x128xf32>
    %46 = arith.addf %40, %45 : vector<256x128xf32>
    %47 = vector.extract_strided_slice %34 {offsets = [2, 0, 0], sizes = [16, 16, 56], strides = [1, 1, 1]} : vector<18x16x56xbf16> to vector<16x16x56xbf16>
    %48 = vector.shape_cast %47 : vector<16x16x56xbf16> to vector<256x56xbf16>
    %c5 = arith.constant 5 : index
    %c0_33 = arith.constant 0 : index
    %c0_34 = arith.constant 0 : index
    %c0_35 = arith.constant 0 : index
    %49 = vector.load %arg3[%c5, %c0_33, %c0_34, %c0_35] : memref<7x1x56x128xbf16, #tpu.memory_space<vmem>>, vector<1x1x56x128xbf16>
    %50 = vector.shape_cast %49 : vector<1x1x56x128xbf16> to vector<56x128xbf16>
    %cst_36 = arith.constant dense<0.000000e+00> : vector<256x128xf32>
    %51 = tpu.matmul %48, %50, %cst_36 {dimension_numbers = #tpu.dot_dimension_numbers<[1], [0], [0], [1], [0, 0, 1, 1], [], []>} : vector<256x56xbf16>, vector<56x128xbf16>, vector<256x128xf32> -> vector<256x128xf32>
    %52 = arith.addf %46, %51 : vector<256x128xf32>
    %c0_37 = arith.constant 0 : index
    %c0_38 = arith.constant 0 : index
    %53 = vector.load %arg4[%c0_37, %c0_38] : memref<1x128xf32, #tpu.memory_space<vmem>>, vector<1x128xf32>
    %54 = vector.broadcast %53 : vector<1x128xf32> to vector<256x128xf32>
    %55 = arith.addf %52, %54 : vector<256x128xf32>
    %cst_39 = arith.constant 0.000000e+00 : f32
    %56 = vector.broadcast %cst_39 : f32 to vector<256x128xf32>
    %57 = arith.maximumf %55, %56 : vector<256x128xf32>
    %58 = vector.shape_cast %57 : vector<256x128xf32> to vector<16x16x128xf32>
    %59 = arith.truncf %58 : vector<16x16x128xf32> to vector<16x16x128xbf16>
    %c0_40 = arith.constant 0 : index
    %c0_41 = arith.constant 0 : index
    %c0_42 = arith.constant 0 : index
    %c0_43 = arith.constant 0 : index
    %60 = vector.load %arg5[%c0_40, %c0_41, %c0_42, %c0_43] : memref<1x16x16x128xbf16, #tpu.memory_space<vmem>>, vector<1x16x16x128xbf16>
    %61 = vector.shape_cast %60 : vector<1x16x16x128xbf16> to vector<16x16x128xbf16>
    %62 = vector.shape_cast %59 : vector<16x16x128xbf16> to vector<1x16x16x128xbf16>
    tpu.vector_store %arg5[%c0_40, %c0_41, %c0_42, %c0_43], %62 {strides = array<i32>} : memref<1x16x16x128xbf16, #tpu.memory_space<vmem>>, vector<1x16x16x128xbf16>,
    return
  }
  func.func @transform_0(%arg0: i32, %arg1: i32) -> (i32, i32, i32, i32, i32) {
    %c0_i32 = arith.constant 0 : i32
    %c0_i32_0 = arith.constant 0 : i32
    %c0_i32_1 = arith.constant 0 : i32
    %c0_i32_2 = arith.constant 0 : i32
    %c0_i32_3 = arith.constant 0 : i32
    return %arg0, %c0_i32, %c0_i32_0, %c0_i32_1, %c0_i32_2 : i32, i32, i32, i32, i32
  }
  func.func @transform_1(%arg0: i32, %arg1: i32) -> (i32, i32, i32, i32) {
    %c0_i32 = arith.constant 0 : i32
    %c0_i32_0 = arith.constant 0 : i32
    %c0_i32_1 = arith.constant 0 : i32
    %c0_i32_2 = arith.constant 0 : i32
    %c0_i32_3 = arith.constant 0 : i32
    return %c0_i32, %c0_i32_0, %c0_i32_1, %c0_i32_2 : i32, i32, i32, i32
  }
  func.func @transform_2(%arg0: i32, %arg1: i32) -> (i32, i32) {
    %c0_i32 = arith.constant 0 : i32
    %c0_i32_0 = arith.constant 0 : i32
    %c0_i32_1 = arith.constant 0 : i32
    return %c0_i32, %c0_i32_0 : i32, i32
  }
  func.func @transform_3(%arg0: i32, %arg1: i32) -> (i32, i32, i32, i32) {
    %c0_i32 = arith.constant 0 : i32
    %c0_i32_0 = arith.constant 0 : i32
    %c0_i32_1 = arith.constant 0 : i32
    return %arg0, %arg1, %c0_i32, %c0_i32_0 : i32, i32, i32, i32
  }
}

module attributes {stable_mosaic.version = 11 : i64} {
  func.func @_maxpool_kernel(%arg0: i32, %arg1: i32, %arg2: memref<1x4x9x9x128xbf16, #tpu.memory_space<vmem>>, %arg3: memref<1x8x8x128xbf16, #tpu.memory_space<vmem>>) attributes {dimension_semantics = [#tpu.dimension_semantics<parallel>, #tpu.dimension_semantics<parallel>], iteration_bounds = array<i64: 4, 1>, scalar_prefetch = 0 : i64, scratch_operands = 0 : i64, tpu.core_type = #tpu.core_type<tc>, window_params = [{transform_indices = @transform_0, window_bounds = array<i64: 1, 4, 9, 9, 128>}, {transform_indices = @transform_1, window_bounds = array<i64: 1, 8, 8, 128>}]} {
    %c8_i32 = arith.constant 8 : i32
    %0 = arith.muli %arg1, %c8_i32 : i32
    %1 = tpu.assume_multiple %0, 8 : i32
    %cst = arith.constant 0xFF80 : bf16
    %2 = vector.broadcast %cst : bf16 to vector<8x8x128xbf16>
    %c0_i32 = arith.constant 0 : i32
    %3 = arith.addi %1, %c0_i32 : i32
    %c0 = arith.constant 0 : index
    %c0_0 = arith.constant 0 : index
    %4 = arith.index_cast %3 : i32 to index
    %c0_1 = arith.constant 0 : index
    %c0_2 = arith.constant 0 : index
    %5 = vector.load %arg2[%c0, %c0_0, %4, %c0_1, %c0_2] : memref<1x4x9x9x128xbf16, #tpu.memory_space<vmem>>, vector<1x1x9x8x128xbf16>
    %6 = vector.shape_cast %5 : vector<1x1x9x8x128xbf16> to vector<9x8x128xbf16>
    %7 = vector.extract_strided_slice %6 {offsets = [0, 0, 0], sizes = [8, 8, 128], strides = [1, 1, 1]} : vector<9x8x128xbf16> to vector<8x8x128xbf16>
    %8 = arith.maximumf %2, %7 : vector<8x8x128xbf16>
    %9 = vector.extract_strided_slice %6 {offsets = [1, 0, 0], sizes = [8, 8, 128], strides = [1, 1, 1]} : vector<9x8x128xbf16> to vector<8x8x128xbf16>
    %10 = arith.maximumf %8, %9 : vector<8x8x128xbf16>
    %c0_i32_3 = arith.constant 0 : i32
    %11 = arith.addi %1, %c0_i32_3 : i32
    %c0_4 = arith.constant 0 : index
    %c2 = arith.constant 2 : index
    %12 = arith.index_cast %11 : i32 to index
    %c0_5 = arith.constant 0 : index
    %c0_6 = arith.constant 0 : index
    %13 = vector.load %arg2[%c0_4, %c2, %12, %c0_5, %c0_6] : memref<1x4x9x9x128xbf16, #tpu.memory_space<vmem>>, vector<1x1x8x8x128xbf16>
    %14 = vector.shape_cast %13 : vector<1x1x8x8x128xbf16> to vector<8x8x128xbf16>
    %15 = arith.maximumf %10, %14 : vector<8x8x128xbf16>
    %c0_i32_7 = arith.constant 0 : i32
    %16 = arith.addi %1, %c0_i32_7 : i32
    %c0_8 = arith.constant 0 : index
    %c1 = arith.constant 1 : index
    %17 = arith.index_cast %16 : i32 to index
    %c0_9 = arith.constant 0 : index
    %c0_10 = arith.constant 0 : index
    %18 = vector.load %arg2[%c0_8, %c1, %17, %c0_9, %c0_10] : memref<1x4x9x9x128xbf16, #tpu.memory_space<vmem>>, vector<1x1x9x8x128xbf16>
    %19 = vector.shape_cast %18 : vector<1x1x9x8x128xbf16> to vector<9x8x128xbf16>
    %20 = vector.extract_strided_slice %19 {offsets = [0, 0, 0], sizes = [8, 8, 128], strides = [1, 1, 1]} : vector<9x8x128xbf16> to vector<8x8x128xbf16>
    %21 = arith.maximumf %15, %20 : vector<8x8x128xbf16>
    %22 = vector.extract_strided_slice %19 {offsets = [1, 0, 0], sizes = [8, 8, 128], strides = [1, 1, 1]} : vector<9x8x128xbf16> to vector<8x8x128xbf16>
    %23 = arith.maximumf %21, %22 : vector<8x8x128xbf16>
    %c0_i32_11 = arith.constant 0 : i32
    %24 = arith.addi %1, %c0_i32_11 : i32
    %c0_12 = arith.constant 0 : index
    %c3 = arith.constant 3 : index
    %25 = arith.index_cast %24 : i32 to index
    %c0_13 = arith.constant 0 : index
    %c0_14 = arith.constant 0 : index
    %26 = vector.load %arg2[%c0_12, %c3, %25, %c0_13, %c0_14] : memref<1x4x9x9x128xbf16, #tpu.memory_space<vmem>>, vector<1x1x8x8x128xbf16>
    %27 = vector.shape_cast %26 : vector<1x1x8x8x128xbf16> to vector<8x8x128xbf16>
    %28 = arith.maximumf %23, %27 : vector<8x8x128xbf16>
    %c0_i32_15 = arith.constant 0 : i32
    %29 = arith.addi %1, %c0_i32_15 : i32
    %c0_16 = arith.constant 0 : index
    %c0_17 = arith.constant 0 : index
    %30 = arith.index_cast %29 : i32 to index
    %c1_18 = arith.constant 1 : index
    %c0_19 = arith.constant 0 : index
    %31 = vector.load %arg2[%c0_16, %c0_17, %30, %c1_18, %c0_19] : memref<1x4x9x9x128xbf16, #tpu.memory_space<vmem>>, vector<1x1x9x8x128xbf16>
    %32 = vector.shape_cast %31 : vector<1x1x9x8x128xbf16> to vector<9x8x128xbf16>
    %33 = vector.extract_strided_slice %32 {offsets = [0, 0, 0], sizes = [8, 8, 128], strides = [1, 1, 1]} : vector<9x8x128xbf16> to vector<8x8x128xbf16>
    %34 = arith.maximumf %28, %33 : vector<8x8x128xbf16>
    %35 = vector.extract_strided_slice %32 {offsets = [1, 0, 0], sizes = [8, 8, 128], strides = [1, 1, 1]} : vector<9x8x128xbf16> to vector<8x8x128xbf16>
    %36 = arith.maximumf %34, %35 : vector<8x8x128xbf16>
    %c0_i32_20 = arith.constant 0 : i32
    %37 = arith.addi %1, %c0_i32_20 : i32
    %c0_21 = arith.constant 0 : index
    %c2_22 = arith.constant 2 : index
    %38 = arith.index_cast %37 : i32 to index
    %c1_23 = arith.constant 1 : index
    %c0_24 = arith.constant 0 : index
    %39 = vector.load %arg2[%c0_21, %c2_22, %38, %c1_23, %c0_24] : memref<1x4x9x9x128xbf16, #tpu.memory_space<vmem>>, vector<1x1x8x8x128xbf16>
    %40 = vector.shape_cast %39 : vector<1x1x8x8x128xbf16> to vector<8x8x128xbf16>
    %41 = arith.maximumf %36, %40 : vector<8x8x128xbf16>
    %c0_25 = arith.constant 0 : index
    %c0_26 = arith.constant 0 : index
    %c0_27 = arith.constant 0 : index
    %c0_28 = arith.constant 0 : index
    %42 = vector.load %arg3[%c0_25, %c0_26, %c0_27, %c0_28] : memref<1x8x8x128xbf16, #tpu.memory_space<vmem>>, vector<1x8x8x128xbf16>
    %43 = vector.shape_cast %42 : vector<1x8x8x128xbf16> to vector<8x8x128xbf16>
    %44 = vector.shape_cast %41 : vector<8x8x128xbf16> to vector<1x8x8x128xbf16>
    tpu.vector_store %arg3[%c0_25, %c0_26, %c0_27, %c0_28], %44 {strides = array<i32>} : memref<1x8x8x128xbf16, #tpu.memory_space<vmem>>, vector<1x8x8x128xbf16>,
    return
  }
  func.func @transform_0(%arg0: i32, %arg1: i32) -> (i32, i32, i32, i32, i32) {
    %c0_i32 = arith.constant 0 : i32
    %c0_i32_0 = arith.constant 0 : i32
    %c0_i32_1 = arith.constant 0 : i32
    %c0_i32_2 = arith.constant 0 : i32
    %c0_i32_3 = arith.constant 0 : i32
    return %arg0, %c0_i32, %c0_i32_0, %c0_i32_1, %c0_i32_2 : i32, i32, i32, i32, i32
  }
  func.func @transform_1(%arg0: i32, %arg1: i32) -> (i32, i32, i32, i32) {
    %c0_i32 = arith.constant 0 : i32
    %c0_i32_0 = arith.constant 0 : i32
    %c0_i32_1 = arith.constant 0 : i32
    return %arg0, %arg1, %c0_i32, %c0_i32_0 : i32, i32, i32, i32
  }
}

module attributes {stable_mosaic.version = 11 : i64} {
  func.func @_gemm_bias_kernel(%arg0: i32, %arg1: i32, %arg2: memref<1x64x128xbf16, #tpu.memory_space<vmem>>, %arg3: memref<128x128xbf16, #tpu.memory_space<vmem>>, %arg4: memref<1x128xf32, #tpu.memory_space<vmem>>, %arg5: memref<1x64x128xbf16, #tpu.memory_space<vmem>>) attributes {dimension_semantics = [#tpu.dimension_semantics<parallel>, #tpu.dimension_semantics<parallel>], iteration_bounds = array<i64: 4, 1>, scalar_prefetch = 0 : i64, scratch_operands = 0 : i64, tpu.core_type = #tpu.core_type<tc>, window_params = [{transform_indices = @transform_0, window_bounds = array<i64: 1, 64, 128>}, {pipeline_mode = #tpu.pipeline_mode<synchronous>, transform_indices = @transform_1, window_bounds = array<i64: 128, 128>}, {pipeline_mode = #tpu.pipeline_mode<synchronous>, transform_indices = @transform_2, window_bounds = array<i64: 1, 128>}, {transform_indices = @transform_3, window_bounds = array<i64: 1, 64, 128>}]} {
    %c0 = arith.constant 0 : index
    %c0_0 = arith.constant 0 : index
    %c0_1 = arith.constant 0 : index
    %0 = vector.load %arg2[%c0, %c0_0, %c0_1] : memref<1x64x128xbf16, #tpu.memory_space<vmem>>, vector<1x64x128xbf16>
    %1 = vector.shape_cast %0 : vector<1x64x128xbf16> to vector<64x128xbf16>
    %c0_2 = arith.constant 0 : index
    %c0_3 = arith.constant 0 : index
    %2 = vector.load %arg3[%c0_2, %c0_3] : memref<128x128xbf16, #tpu.memory_space<vmem>>, vector<128x128xbf16>
    %cst = arith.constant dense<0.000000e+00> : vector<64x128xf32>
    %3 = tpu.matmul %1, %2, %cst {dimension_numbers = #tpu.dot_dimension_numbers<[1], [0], [0], [1], [0, 0, 1, 1], [], []>} : vector<64x128xbf16>, vector<128x128xbf16>, vector<64x128xf32> -> vector<64x128xf32>
    %c0_4 = arith.constant 0 : index
    %c0_5 = arith.constant 0 : index
    %4 = vector.load %arg4[%c0_4, %c0_5] : memref<1x128xf32, #tpu.memory_space<vmem>>, vector<1x128xf32>
    %5 = vector.broadcast %4 : vector<1x128xf32> to vector<64x128xf32>
    %6 = arith.addf %3, %5 : vector<64x128xf32>
    %cst_6 = arith.constant 0.000000e+00 : f32
    %7 = vector.broadcast %cst_6 : f32 to vector<64x128xf32>
    %8 = arith.maximumf %6, %7 : vector<64x128xf32>
    %9 = arith.truncf %8 : vector<64x128xf32> to vector<64x128xbf16>
    %c0_7 = arith.constant 0 : index
    %c0_8 = arith.constant 0 : index
    %c0_9 = arith.constant 0 : index
    %10 = vector.load %arg5[%c0_7, %c0_8, %c0_9] : memref<1x64x128xbf16, #tpu.memory_space<vmem>>, vector<1x64x128xbf16>
    %11 = vector.shape_cast %10 : vector<1x64x128xbf16> to vector<64x128xbf16>
    %12 = vector.shape_cast %9 : vector<64x128xbf16> to vector<1x64x128xbf16>
    tpu.vector_store %arg5[%c0_7, %c0_8, %c0_9], %12 {strides = array<i32>} : memref<1x64x128xbf16, #tpu.memory_space<vmem>>, vector<1x64x128xbf16>,
    return
  }
  func.func @transform_0(%arg0: i32, %arg1: i32) -> (i32, i32, i32) {
    %c0_i32 = arith.constant 0 : i32
    %c0_i32_0 = arith.constant 0 : i32
    return %arg0, %arg1, %c0_i32 : i32, i32, i32
  }
  func.func @transform_1(%arg0: i32, %arg1: i32) -> (i32, i32) {
    %c0_i32 = arith.constant 0 : i32
    %c0_i32_0 = arith.constant 0 : i32
    %c0_i32_1 = arith.constant 0 : i32
    return %c0_i32, %c0_i32_0 : i32, i32
  }
  func.func @transform_2(%arg0: i32, %arg1: i32) -> (i32, i32) {
    %c0_i32 = arith.constant 0 : i32
    %c0_i32_0 = arith.constant 0 : i32
    %c0_i32_1 = arith.constant 0 : i32
    return %c0_i32, %c0_i32_0 : i32, i32
  }
  func.func @transform_3(%arg0: i32, %arg1: i32) -> (i32, i32, i32) {
    %c0_i32 = arith.constant 0 : i32
    %c0_i32_0 = arith.constant 0 : i32
    return %arg0, %arg1, %c0_i32 : i32, i32, i32
  }
}

module attributes {stable_mosaic.version = 11 : i64} {
  func.func @_conv_kxk_kernel(%arg0: i32, %arg1: i32, %arg2: memref<1x1x10x10x128xbf16, #tpu.memory_space<vmem>>, %arg3: memref<3x3x128x128xbf16, #tpu.memory_space<vmem>>, %arg4: memref<1x128xf32, #tpu.memory_space<vmem>>, %arg5: memref<1x8x8x128xbf16, #tpu.memory_space<vmem>>) attributes {dimension_semantics = [#tpu.dimension_semantics<parallel>, #tpu.dimension_semantics<parallel>], iteration_bounds = array<i64: 4, 1>, scalar_prefetch = 0 : i64, scratch_operands = 0 : i64, tpu.core_type = #tpu.core_type<tc>, window_params = [{transform_indices = @transform_0, window_bounds = array<i64: 1, 1, 10, 10, 128>}, {pipeline_mode = #tpu.pipeline_mode<synchronous>, transform_indices = @transform_1, window_bounds = array<i64: 3, 3, 128, 128>}, {pipeline_mode = #tpu.pipeline_mode<synchronous>, transform_indices = @transform_2, window_bounds = array<i64: 1, 128>}, {transform_indices = @transform_3, window_bounds = array<i64: 1, 8, 8, 128>}]} {
    %c8_i32 = arith.constant 8 : i32
    %0 = arith.muli %arg1, %c8_i32 : i32
    %1 = tpu.assume_multiple %0, 8 : i32
    %cst = arith.constant 0.000000e+00 : f32
    %2 = vector.broadcast %cst : f32 to vector<64x128xf32>
    %c0_i32 = arith.constant 0 : i32
    %3 = arith.addi %1, %c0_i32 : i32
    %c0 = arith.constant 0 : index
    %c0_0 = arith.constant 0 : index
    %4 = arith.index_cast %3 : i32 to index
    %c0_1 = arith.constant 0 : index
    %c0_2 = arith.constant 0 : index
    %5 = vector.load %arg2[%c0, %c0_0, %4, %c0_1, %c0_2] : memref<1x1x10x10x128xbf16, #tpu.memory_space<vmem>>, vector<1x1x10x8x128xbf16>
    %6 = vector.shape_cast %5 : vector<1x1x10x8x128xbf16> to vector<10x8x128xbf16>
    %7 = vector.extract_strided_slice %6 {offsets = [0, 0, 0], sizes = [8, 8, 128], strides = [1, 1, 1]} : vector<10x8x128xbf16> to vector<8x8x128xbf16>
    %8 = vector.shape_cast %7 : vector<8x8x128xbf16> to vector<64x128xbf16>
    %c0_3 = arith.constant 0 : index
    %c0_4 = arith.constant 0 : index
    %c0_5 = arith.constant 0 : index
    %c0_6 = arith.constant 0 : index
    %9 = vector.load %arg3[%c0_3, %c0_4, %c0_5, %c0_6] : memref<3x3x128x128xbf16, #tpu.memory_space<vmem>>, vector<1x1x128x128xbf16>
    %10 = vector.shape_cast %9 : vector<1x1x128x128xbf16> to vector<128x128xbf16>
    %cst_7 = arith.constant dense<0.000000e+00> : vector<64x128xf32>
    %11 = tpu.matmul %8, %10, %cst_7 {dimension_numbers = #tpu.dot_dimension_numbers<[1], [0], [0], [1], [0, 0, 1, 1], [], []>} : vector<64x128xbf16>, vector<128x128xbf16>, vector<64x128xf32> -> vector<64x128xf32>
    %12 = arith.addf %2, %11 : vector<64x128xf32>
    %13 = vector.extract_strided_slice %6 {offsets = [1, 0, 0], sizes = [8, 8, 128], strides = [1, 1, 1]} : vector<10x8x128xbf16> to vector<8x8x128xbf16>
    %14 = vector.shape_cast %13 : vector<8x8x128xbf16> to vector<64x128xbf16>
    %c1 = arith.constant 1 : index
    %c0_8 = arith.constant 0 : index
    %c0_9 = arith.constant 0 : index
    %c0_10 = arith.constant 0 : index
    %15 = vector.load %arg3[%c1, %c0_8, %c0_9, %c0_10] : memref<3x3x128x128xbf16, #tpu.memory_space<vmem>>, vector<1x1x128x128xbf16>
    %16 = vector.shape_cast %15 : vector<1x1x128x128xbf16> to vector<128x128xbf16>
    %cst_11 = arith.constant dense<0.000000e+00> : vector<64x128xf32>
    %17 = tpu.matmul %14, %16, %cst_11 {dimension_numbers = #tpu.dot_dimension_numbers<[1], [0], [0], [1], [0, 0, 1, 1], [], []>} : vector<64x128xbf16>, vector<128x128xbf16>, vector<64x128xf32> -> vector<64x128xf32>
    %18 = arith.addf %12, %17 : vector<64x128xf32>
    %19 = vector.extract_strided_slice %6 {offsets = [2, 0, 0], sizes = [8, 8, 128], strides = [1, 1, 1]} : vector<10x8x128xbf16> to vector<8x8x128xbf16>
    %20 = vector.shape_cast %19 : vector<8x8x128xbf16> to vector<64x128xbf16>
    %c2 = arith.constant 2 : index
    %c0_12 = arith.constant 0 : index
    %c0_13 = arith.constant 0 : index
    %c0_14 = arith.constant 0 : index
    %21 = vector.load %arg3[%c2, %c0_12, %c0_13, %c0_14] : memref<3x3x128x128xbf16, #tpu.memory_space<vmem>>, vector<1x1x128x128xbf16>
    %22 = vector.shape_cast %21 : vector<1x1x128x128xbf16> to vector<128x128xbf16>
    %cst_15 = arith.constant dense<0.000000e+00> : vector<64x128xf32>
    %23 = tpu.matmul %20, %22, %cst_15 {dimension_numbers = #tpu.dot_dimension_numbers<[1], [0], [0], [1], [0, 0, 1, 1], [], []>} : vector<64x128xbf16>, vector<128x128xbf16>, vector<64x128xf32> -> vector<64x128xf32>
    %24 = arith.addf %18, %23 : vector<64x128xf32>
    %c0_i32_16 = arith.constant 0 : i32
    %25 = arith.addi %1, %c0_i32_16 : i32
    %c0_17 = arith.constant 0 : index
    %c0_18 = arith.constant 0 : index
    %26 = arith.index_cast %25 : i32 to index
    %c1_19 = arith.constant 1 : index
    %c0_20 = arith.constant 0 : index
    %27 = vector.load %arg2[%c0_17, %c0_18, %26, %c1_19, %c0_20] : memref<1x1x10x10x128xbf16, #tpu.memory_space<vmem>>, vector<1x1x10x8x128xbf16>
    %28 = vector.shape_cast %27 : vector<1x1x10x8x128xbf16> to vector<10x8x128xbf16>
    %29 = vector.extract_strided_slice %28 {offsets = [0, 0, 0], sizes = [8, 8, 128], strides = [1, 1, 1]} : vector<10x8x128xbf16> to vector<8x8x128xbf16>
    %30 = vector.shape_cast %29 : vector<8x8x128xbf16> to vector<64x128xbf16>
    %c0_21 = arith.constant 0 : index
    %c1_22 = arith.constant 1 : index
    %c0_23 = arith.constant 0 : index
    %c0_24 = arith.constant 0 : index
    %31 = vector.load %arg3[%c0_21, %c1_22, %c0_23, %c0_24] : memref<3x3x128x128xbf16, #tpu.memory_space<vmem>>, vector<1x1x128x128xbf16>
    %32 = vector.shape_cast %31 : vector<1x1x128x128xbf16> to vector<128x128xbf16>
    %cst_25 = arith.constant dense<0.000000e+00> : vector<64x128xf32>
    %33 = tpu.matmul %30, %32, %cst_25 {dimension_numbers = #tpu.dot_dimension_numbers<[1], [0], [0], [1], [0, 0, 1, 1], [], []>} : vector<64x128xbf16>, vector<128x128xbf16>, vector<64x128xf32> -> vector<64x128xf32>
    %34 = arith.addf %24, %33 : vector<64x128xf32>
    %35 = vector.extract_strided_slice %28 {offsets = [1, 0, 0], sizes = [8, 8, 128], strides = [1, 1, 1]} : vector<10x8x128xbf16> to vector<8x8x128xbf16>
    %36 = vector.shape_cast %35 : vector<8x8x128xbf16> to vector<64x128xbf16>
    %c1_26 = arith.constant 1 : index
    %c1_27 = arith.constant 1 : index
    %c0_28 = arith.constant 0 : index
    %c0_29 = arith.constant 0 : index
    %37 = vector.load %arg3[%c1_26, %c1_27, %c0_28, %c0_29] : memref<3x3x128x128xbf16, #tpu.memory_space<vmem>>, vector<1x1x128x128xbf16>
    %38 = vector.shape_cast %37 : vector<1x1x128x128xbf16> to vector<128x128xbf16>
    %cst_30 = arith.constant dense<0.000000e+00> : vector<64x128xf32>
    %39 = tpu.matmul %36, %38, %cst_30 {dimension_numbers = #tpu.dot_dimension_numbers<[1], [0], [0], [1], [0, 0, 1, 1], [], []>} : vector<64x128xbf16>, vector<128x128xbf16>, vector<64x128xf32> -> vector<64x128xf32>
    %40 = arith.addf %34, %39 : vector<64x128xf32>
    %41 = vector.extract_strided_slice %28 {offsets = [2, 0, 0], sizes = [8, 8, 128], strides = [1, 1, 1]} : vector<10x8x128xbf16> to vector<8x8x128xbf16>
    %42 = vector.shape_cast %41 : vector<8x8x128xbf16> to vector<64x128xbf16>
    %c2_31 = arith.constant 2 : index
    %c1_32 = arith.constant 1 : index
    %c0_33 = arith.constant 0 : index
    %c0_34 = arith.constant 0 : index
    %43 = vector.load %arg3[%c2_31, %c1_32, %c0_33, %c0_34] : memref<3x3x128x128xbf16, #tpu.memory_space<vmem>>, vector<1x1x128x128xbf16>
    %44 = vector.shape_cast %43 : vector<1x1x128x128xbf16> to vector<128x128xbf16>
    %cst_35 = arith.constant dense<0.000000e+00> : vector<64x128xf32>
    %45 = tpu.matmul %42, %44, %cst_35 {dimension_numbers = #tpu.dot_dimension_numbers<[1], [0], [0], [1], [0, 0, 1, 1], [], []>} : vector<64x128xbf16>, vector<128x128xbf16>, vector<64x128xf32> -> vector<64x128xf32>
    %46 = arith.addf %40, %45 : vector<64x128xf32>
    %c0_i32_36 = arith.constant 0 : i32
    %47 = arith.addi %1, %c0_i32_36 : i32
    %c0_37 = arith.constant 0 : index
    %c0_38 = arith.constant 0 : index
    %48 = arith.index_cast %47 : i32 to index
    %c2_39 = arith.constant 2 : index
    %c0_40 = arith.constant 0 : index
    %49 = vector.load %arg2[%c0_37, %c0_38, %48, %c2_39, %c0_40] : memref<1x1x10x10x128xbf16, #tpu.memory_space<vmem>>, vector<1x1x10x8x128xbf16>
    %50 = vector.shape_cast %49 : vector<1x1x10x8x128xbf16> to vector<10x8x128xbf16>
    %51 = vector.extract_strided_slice %50 {offsets = [0, 0, 0], sizes = [8, 8, 128], strides = [1, 1, 1]} : vector<10x8x128xbf16> to vector<8x8x128xbf16>
    %52 = vector.shape_cast %51 : vector<8x8x128xbf16> to vector<64x128xbf16>
    %c0_41 = arith.constant 0 : index
    %c2_42 = arith.constant 2 : index
    %c0_43 = arith.constant 0 : index
    %c0_44 = arith.constant 0 : index
    %53 = vector.load %arg3[%c0_41, %c2_42, %c0_43, %c0_44] : memref<3x3x128x128xbf16, #tpu.memory_space<vmem>>, vector<1x1x128x128xbf16>
    %54 = vector.shape_cast %53 : vector<1x1x128x128xbf16> to vector<128x128xbf16>
    %cst_45 = arith.constant dense<0.000000e+00> : vector<64x128xf32>
    %55 = tpu.matmul %52, %54, %cst_45 {dimension_numbers = #tpu.dot_dimension_numbers<[1], [0], [0], [1], [0, 0, 1, 1], [], []>} : vector<64x128xbf16>, vector<128x128xbf16>, vector<64x128xf32> -> vector<64x128xf32>
    %56 = arith.addf %46, %55 : vector<64x128xf32>
    %57 = vector.extract_strided_slice %50 {offsets = [1, 0, 0], sizes = [8, 8, 128], strides = [1, 1, 1]} : vector<10x8x128xbf16> to vector<8x8x128xbf16>
    %58 = vector.shape_cast %57 : vector<8x8x128xbf16> to vector<64x128xbf16>
    %c1_46 = arith.constant 1 : index
    %c2_47 = arith.constant 2 : index
    %c0_48 = arith.constant 0 : index
    %c0_49 = arith.constant 0 : index
    %59 = vector.load %arg3[%c1_46, %c2_47, %c0_48, %c0_49] : memref<3x3x128x128xbf16, #tpu.memory_space<vmem>>, vector<1x1x128x128xbf16>
    %60 = vector.shape_cast %59 : vector<1x1x128x128xbf16> to vector<128x128xbf16>
    %cst_50 = arith.constant dense<0.000000e+00> : vector<64x128xf32>
    %61 = tpu.matmul %58, %60, %cst_50 {dimension_numbers = #tpu.dot_dimension_numbers<[1], [0], [0], [1], [0, 0, 1, 1], [], []>} : vector<64x128xbf16>, vector<128x128xbf16>, vector<64x128xf32> -> vector<64x128xf32>
    %62 = arith.addf %56, %61 : vector<64x128xf32>
    %63 = vector.extract_strided_slice %50 {offsets = [2, 0, 0], sizes = [8, 8, 128], strides = [1, 1, 1]} : vector<10x8x128xbf16> to vector<8x8x128xbf16>
    %64 = vector.shape_cast %63 : vector<8x8x128xbf16> to vector<64x128xbf16>
    %c2_51 = arith.constant 2 : index
    %c2_52 = arith.constant 2 : index
    %c0_53 = arith.constant 0 : index
    %c0_54 = arith.constant 0 : index
    %65 = vector.load %arg3[%c2_51, %c2_52, %c0_53, %c0_54] : memref<3x3x128x128xbf16, #tpu.memory_space<vmem>>, vector<1x1x128x128xbf16>
    %66 = vector.shape_cast %65 : vector<1x1x128x128xbf16> to vector<128x128xbf16>
    %cst_55 = arith.constant dense<0.000000e+00> : vector<64x128xf32>
    %67 = tpu.matmul %64, %66, %cst_55 {dimension_numbers = #tpu.dot_dimension_numbers<[1], [0], [0], [1], [0, 0, 1, 1], [], []>} : vector<64x128xbf16>, vector<128x128xbf16>, vector<64x128xf32> -> vector<64x128xf32>
    %68 = arith.addf %62, %67 : vector<64x128xf32>
    %c0_56 = arith.constant 0 : index
    %c0_57 = arith.constant 0 : index
    %69 = vector.load %arg4[%c0_56, %c0_57] : memref<1x128xf32, #tpu.memory_space<vmem>>, vector<1x128xf32>
    %70 = vector.broadcast %69 : vector<1x128xf32> to vector<64x128xf32>
    %71 = arith.addf %68, %70 : vector<64x128xf32>
    %cst_58 = arith.constant 0.000000e+00 : f32
    %72 = vector.broadcast %cst_58 : f32 to vector<64x128xf32>
    %73 = arith.maximumf %71, %72 : vector<64x128xf32>
    %74 = vector.shape_cast %73 : vector<64x128xf32> to vector<8x8x128xf32>
    %75 = arith.truncf %74 : vector<8x8x128xf32> to vector<8x8x128xbf16>
    %c0_59 = arith.constant 0 : index
    %c0_60 = arith.constant 0 : index
    %c0_61 = arith.constant 0 : index
    %c0_62 = arith.constant 0 : index
    %76 = vector.load %arg5[%c0_59, %c0_60, %c0_61, %c0_62] : memref<1x8x8x128xbf16, #tpu.memory_space<vmem>>, vector<1x8x8x128xbf16>
    %77 = vector.shape_cast %76 : vector<1x8x8x128xbf16> to vector<8x8x128xbf16>
    %78 = vector.shape_cast %75 : vector<8x8x128xbf16> to vector<1x8x8x128xbf16>
    tpu.vector_store %arg5[%c0_59, %c0_60, %c0_61, %c0_62], %78 {strides = array<i32>} : memref<1x8x8x128xbf16, #tpu.memory_space<vmem>>, vector<1x8x8x128xbf16>,
    return
  }
  func.func @transform_0(%arg0: i32, %arg1: i32) -> (i32, i32, i32, i32, i32) {
    %c0_i32 = arith.constant 0 : i32
    %c0_i32_0 = arith.constant 0 : i32
    %c0_i32_1 = arith.constant 0 : i32
    %c0_i32_2 = arith.constant 0 : i32
    %c0_i32_3 = arith.constant 0 : i32
    return %arg0, %c0_i32, %c0_i32_0, %c0_i32_1, %c0_i32_2 : i32, i32, i32, i32, i32
  }
  func.func @transform_1(%arg0: i32, %arg1: i32) -> (i32, i32, i32, i32) {
    %c0_i32 = arith.constant 0 : i32
    %c0_i32_0 = arith.constant 0 : i32
    %c0_i32_1 = arith.constant 0 : i32
    %c0_i32_2 = arith.constant 0 : i32
    %c0_i32_3 = arith.constant 0 : i32
    return %c0_i32, %c0_i32_0, %c0_i32_1, %c0_i32_2 : i32, i32, i32, i32
  }
  func.func @transform_2(%arg0: i32, %arg1: i32) -> (i32, i32) {
    %c0_i32 = arith.constant 0 : i32
    %c0_i32_0 = arith.constant 0 : i32
    %c0_i32_1 = arith.constant 0 : i32
    return %c0_i32, %c0_i32_0 : i32, i32
  }
  func.func @transform_3(%arg0: i32, %arg1: i32) -> (i32, i32, i32, i32) {
    %c0_i32 = arith.constant 0 : i32
    %c0_i32_0 = arith.constant 0 : i32
    %c0_i32_1 = arith.constant 0 : i32
    return %arg0, %arg1, %c0_i32, %c0_i32_0 : i32, i32, i32, i32
  }
}

module attributes {stable_mosaic.version = 11 : i64} {
  func.func @_gemm_bias_kernel(%arg0: i32, %arg1: i32, %arg2: memref<1x64x128xbf16, #tpu.memory_space<vmem>>, %arg3: memref<128x128xbf16, #tpu.memory_space<vmem>>, %arg4: memref<1x128xf32, #tpu.memory_space<vmem>>, %arg5: memref<1x64x128xbf16, #tpu.memory_space<vmem>>) attributes {dimension_semantics = [#tpu.dimension_semantics<parallel>, #tpu.dimension_semantics<parallel>], iteration_bounds = array<i64: 4, 1>, scalar_prefetch = 0 : i64, scratch_operands = 0 : i64, tpu.core_type = #tpu.core_type<tc>, window_params = [{transform_indices = @transform_0, window_bounds = array<i64: 1, 64, 128>}, {pipeline_mode = #tpu.pipeline_mode<synchronous>, transform_indices = @transform_1, window_bounds = array<i64: 128, 128>}, {pipeline_mode = #tpu.pipeline_mode<synchronous>, transform_indices = @transform_2, window_bounds = array<i64: 1, 128>}, {transform_indices = @transform_3, window_bounds = array<i64: 1, 64, 128>}]} {
    %c0 = arith.constant 0 : index
    %c0_0 = arith.constant 0 : index
    %c0_1 = arith.constant 0 : index
    %0 = vector.load %arg2[%c0, %c0_0, %c0_1] : memref<1x64x128xbf16, #tpu.memory_space<vmem>>, vector<1x64x128xbf16>
    %1 = vector.shape_cast %0 : vector<1x64x128xbf16> to vector<64x128xbf16>
    %c0_2 = arith.constant 0 : index
    %c0_3 = arith.constant 0 : index
    %2 = vector.load %arg3[%c0_2, %c0_3] : memref<128x128xbf16, #tpu.memory_space<vmem>>, vector<128x128xbf16>
    %cst = arith.constant dense<0.000000e+00> : vector<64x128xf32>
    %3 = tpu.matmul %1, %2, %cst {dimension_numbers = #tpu.dot_dimension_numbers<[1], [0], [0], [1], [0, 0, 1, 1], [], []>} : vector<64x128xbf16>, vector<128x128xbf16>, vector<64x128xf32> -> vector<64x128xf32>
    %c0_4 = arith.constant 0 : index
    %c0_5 = arith.constant 0 : index
    %4 = vector.load %arg4[%c0_4, %c0_5] : memref<1x128xf32, #tpu.memory_space<vmem>>, vector<1x128xf32>
    %5 = vector.broadcast %4 : vector<1x128xf32> to vector<64x128xf32>
    %6 = arith.addf %3, %5 : vector<64x128xf32>
    %7 = arith.truncf %6 : vector<64x128xf32> to vector<64x128xbf16>
    %c0_6 = arith.constant 0 : index
    %c0_7 = arith.constant 0 : index
    %c0_8 = arith.constant 0 : index
    %8 = vector.load %arg5[%c0_6, %c0_7, %c0_8] : memref<1x64x128xbf16, #tpu.memory_space<vmem>>, vector<1x64x128xbf16>
    %9 = vector.shape_cast %8 : vector<1x64x128xbf16> to vector<64x128xbf16>
    %10 = vector.shape_cast %7 : vector<64x128xbf16> to vector<1x64x128xbf16>
    tpu.vector_store %arg5[%c0_6, %c0_7, %c0_8], %10 {strides = array<i32>} : memref<1x64x128xbf16, #tpu.memory_space<vmem>>, vector<1x64x128xbf16>,
    return
  }
  func.func @transform_0(%arg0: i32, %arg1: i32) -> (i32, i32, i32) {
    %c0_i32 = arith.constant 0 : i32
    %c0_i32_0 = arith.constant 0 : i32
    return %arg0, %arg1, %c0_i32 : i32, i32, i32
  }
  func.func @transform_1(%arg0: i32, %arg1: i32) -> (i32, i32) {
    %c0_i32 = arith.constant 0 : i32
    %c0_i32_0 = arith.constant 0 : i32
    %c0_i32_1 = arith.constant 0 : i32
    return %c0_i32, %c0_i32_0 : i32, i32
  }
  func.func @transform_2(%arg0: i32, %arg1: i32) -> (i32, i32) {
    %c0_i32 = arith.constant 0 : i32
    %c0_i32_0 = arith.constant 0 : i32
    %c0_i32_1 = arith.constant 0 : i32
    return %c0_i32, %c0_i32_0 : i32, i32
  }
  func.func @transform_3(%arg0: i32, %arg1: i32) -> (i32, i32, i32) {
    %c0_i32 = arith.constant 0 : i32
    %c0_i32_0 = arith.constant 0 : i32
    return %arg0, %arg1, %c0_i32 : i32, i32, i32
  }
}

module attributes {stable_mosaic.version = 11 : i64} {
  func.func @_gemm_bias_kernel(%arg0: i32, %arg1: i32, %arg2: memref<1x64x128xbf16, #tpu.memory_space<vmem>>, %arg3: memref<128x128xbf16, #tpu.memory_space<vmem>>, %arg4: memref<1x128xf32, #tpu.memory_space<vmem>>, %arg5: memref<1x64x128xbf16, #tpu.memory_space<vmem>>, %arg6: memref<1x64x128xbf16, #tpu.memory_space<vmem>>) attributes {dimension_semantics = [#tpu.dimension_semantics<parallel>, #tpu.dimension_semantics<parallel>], iteration_bounds = array<i64: 4, 1>, scalar_prefetch = 0 : i64, scratch_operands = 0 : i64, tpu.core_type = #tpu.core_type<tc>, window_params = [{transform_indices = @transform_0, window_bounds = array<i64: 1, 64, 128>}, {pipeline_mode = #tpu.pipeline_mode<synchronous>, transform_indices = @transform_1, window_bounds = array<i64: 128, 128>}, {pipeline_mode = #tpu.pipeline_mode<synchronous>, transform_indices = @transform_2, window_bounds = array<i64: 1, 128>}, {transform_indices = @transform_3, window_bounds = array<i64: 1, 64, 128>}, {transform_indices = @transform_4, window_bounds = array<i64: 1, 64, 128>}]} {
    %c0 = arith.constant 0 : index
    %c0_0 = arith.constant 0 : index
    %c0_1 = arith.constant 0 : index
    %0 = vector.load %arg2[%c0, %c0_0, %c0_1] : memref<1x64x128xbf16, #tpu.memory_space<vmem>>, vector<1x64x128xbf16>
    %1 = vector.shape_cast %0 : vector<1x64x128xbf16> to vector<64x128xbf16>
    %c0_2 = arith.constant 0 : index
    %c0_3 = arith.constant 0 : index
    %2 = vector.load %arg3[%c0_2, %c0_3] : memref<128x128xbf16, #tpu.memory_space<vmem>>, vector<128x128xbf16>
    %cst = arith.constant dense<0.000000e+00> : vector<64x128xf32>
    %3 = tpu.matmul %1, %2, %cst {dimension_numbers = #tpu.dot_dimension_numbers<[1], [0], [0], [1], [0, 0, 1, 1], [], []>} : vector<64x128xbf16>, vector<128x128xbf16>, vector<64x128xf32> -> vector<64x128xf32>
    %c0_4 = arith.constant 0 : index
    %c0_5 = arith.constant 0 : index
    %4 = vector.load %arg4[%c0_4, %c0_5] : memref<1x128xf32, #tpu.memory_space<vmem>>, vector<1x128xf32>
    %5 = vector.broadcast %4 : vector<1x128xf32> to vector<64x128xf32>
    %6 = arith.addf %3, %5 : vector<64x128xf32>
    %c0_6 = arith.constant 0 : index
    %c0_7 = arith.constant 0 : index
    %c0_8 = arith.constant 0 : index
    %7 = vector.load %arg5[%c0_6, %c0_7, %c0_8] : memref<1x64x128xbf16, #tpu.memory_space<vmem>>, vector<1x64x128xbf16>
    %8 = vector.shape_cast %7 : vector<1x64x128xbf16> to vector<64x128xbf16>
    %9 = arith.extf %8 : vector<64x128xbf16> to vector<64x128xf32>
    %10 = arith.addf %6, %9 : vector<64x128xf32>
    %cst_9 = arith.constant 0.000000e+00 : f32
    %11 = vector.broadcast %cst_9 : f32 to vector<64x128xf32>
    %12 = arith.maximumf %10, %11 : vector<64x128xf32>
    %13 = arith.truncf %12 : vector<64x128xf32> to vector<64x128xbf16>
    %c0_10 = arith.constant 0 : index
    %c0_11 = arith.constant 0 : index
    %c0_12 = arith.constant 0 : index
    %14 = vector.load %arg6[%c0_10, %c0_11, %c0_12] : memref<1x64x128xbf16, #tpu.memory_space<vmem>>, vector<1x64x128xbf16>
    %15 = vector.shape_cast %14 : vector<1x64x128xbf16> to vector<64x128xbf16>
    %16 = vector.shape_cast %13 : vector<64x128xbf16> to vector<1x64x128xbf16>
    tpu.vector_store %arg6[%c0_10, %c0_11, %c0_12], %16 {strides = array<i32>} : memref<1x64x128xbf16, #tpu.memory_space<vmem>>, vector<1x64x128xbf16>,
    return
  }
  func.func @transform_0(%arg0: i32, %arg1: i32) -> (i32, i32, i32) {
    %c0_i32 = arith.constant 0 : i32
    %c0_i32_0 = arith.constant 0 : i32
    return %arg0, %arg1, %c0_i32 : i32, i32, i32
  }
  func.func @transform_1(%arg0: i32, %arg1: i32) -> (i32, i32) {
    %c0_i32 = arith.constant 0 : i32
    %c0_i32_0 = arith.constant 0 : i32
    %c0_i32_1 = arith.constant 0 : i32
    return %c0_i32, %c0_i32_0 : i32, i32
  }
  func.func @transform_2(%arg0: i32, %arg1: i32) -> (i32, i32) {
    %c0_i32 = arith.constant 0 : i32
    %c0_i32_0 = arith.constant 0 : i32
    %c0_i32_1 = arith.constant 0 : i32
    return %c0_i32, %c0_i32_0 : i32, i32
  }
  func.func @transform_3(%arg0: i32, %arg1: i32) -> (i32, i32, i32) {
    %c0_i32 = arith.constant 0 : i32
    %c0_i32_0 = arith.constant 0 : i32
    return %arg0, %arg1, %c0_i32 : i32, i32, i32
  }
  func.func @transform_4(%arg0: i32, %arg1: i32) -> (i32, i32, i32) {
    %c0_i32 = arith.constant 0 : i32
    %c0_i32_0 = arith.constant 0 : i32
    return %arg0, %arg1, %c0_i32 : i32, i32, i32
  }
}

module attributes {stable_mosaic.version = 11 : i64} {
  func.func @_conv_kxk_kernel(%arg0: i32, %arg1: i32, %arg2: memref<1x4x5x5x128xbf16, #tpu.memory_space<vmem>>, %arg3: memref<3x3x128x128xbf16, #tpu.memory_space<vmem>>, %arg4: memref<1x128xf32, #tpu.memory_space<vmem>>, %arg5: memref<1x4x4x128xbf16, #tpu.memory_space<vmem>>) attributes {dimension_semantics = [#tpu.dimension_semantics<parallel>, #tpu.dimension_semantics<parallel>], iteration_bounds = array<i64: 4, 1>, scalar_prefetch = 0 : i64, scratch_operands = 0 : i64, tpu.core_type = #tpu.core_type<tc>, window_params = [{transform_indices = @transform_0, window_bounds = array<i64: 1, 4, 5, 5, 128>}, {pipeline_mode = #tpu.pipeline_mode<synchronous>, transform_indices = @transform_1, window_bounds = array<i64: 3, 3, 128, 128>}, {pipeline_mode = #tpu.pipeline_mode<synchronous>, transform_indices = @transform_2, window_bounds = array<i64: 1, 128>}, {transform_indices = @transform_3, window_bounds = array<i64: 1, 4, 4, 128>}]} {
    %c4_i32 = arith.constant 4 : i32
    %0 = arith.muli %arg1, %c4_i32 : i32
    %cst = arith.constant 0.000000e+00 : f32
    %1 = vector.broadcast %cst : f32 to vector<16x128xf32>
    %c0_i32 = arith.constant 0 : i32
    %2 = arith.addi %0, %c0_i32 : i32
    %c0 = arith.constant 0 : index
    %c0_0 = arith.constant 0 : index
    %3 = arith.index_cast %2 : i32 to index
    %c0_1 = arith.constant 0 : index
    %c0_2 = arith.constant 0 : index
    %4 = vector.load %arg2[%c0, %c0_0, %3, %c0_1, %c0_2] : memref<1x4x5x5x128xbf16, #tpu.memory_space<vmem>>, vector<1x1x5x4x128xbf16>
    %5 = vector.shape_cast %4 : vector<1x1x5x4x128xbf16> to vector<5x4x128xbf16>
    %6 = vector.extract_strided_slice %5 {offsets = [0, 0, 0], sizes = [4, 4, 128], strides = [1, 1, 1]} : vector<5x4x128xbf16> to vector<4x4x128xbf16>
    %7 = vector.shape_cast %6 : vector<4x4x128xbf16> to vector<16x128xbf16>
    %c0_3 = arith.constant 0 : index
    %c0_4 = arith.constant 0 : index
    %c0_5 = arith.constant 0 : index
    %c0_6 = arith.constant 0 : index
    %8 = vector.load %arg3[%c0_3, %c0_4, %c0_5, %c0_6] : memref<3x3x128x128xbf16, #tpu.memory_space<vmem>>, vector<1x1x128x128xbf16>
    %9 = vector.shape_cast %8 : vector<1x1x128x128xbf16> to vector<128x128xbf16>
    %cst_7 = arith.constant dense<0.000000e+00> : vector<16x128xf32>
    %10 = tpu.matmul %7, %9, %cst_7 {dimension_numbers = #tpu.dot_dimension_numbers<[1], [0], [0], [1], [0, 0, 1, 1], [], []>} : vector<16x128xbf16>, vector<128x128xbf16>, vector<16x128xf32> -> vector<16x128xf32>
    %11 = arith.addf %1, %10 : vector<16x128xf32>
    %12 = vector.extract_strided_slice %5 {offsets = [1, 0, 0], sizes = [4, 4, 128], strides = [1, 1, 1]} : vector<5x4x128xbf16> to vector<4x4x128xbf16>
    %13 = vector.shape_cast %12 : vector<4x4x128xbf16> to vector<16x128xbf16>
    %c2 = arith.constant 2 : index
    %c0_8 = arith.constant 0 : index
    %c0_9 = arith.constant 0 : index
    %c0_10 = arith.constant 0 : index
    %14 = vector.load %arg3[%c2, %c0_8, %c0_9, %c0_10] : memref<3x3x128x128xbf16, #tpu.memory_space<vmem>>, vector<1x1x128x128xbf16>
    %15 = vector.shape_cast %14 : vector<1x1x128x128xbf16> to vector<128x128xbf16>
    %cst_11 = arith.constant dense<0.000000e+00> : vector<16x128xf32>
    %16 = tpu.matmul %13, %15, %cst_11 {dimension_numbers = #tpu.dot_dimension_numbers<[1], [0], [0], [1], [0, 0, 1, 1], [], []>} : vector<16x128xbf16>, vector<128x128xbf16>, vector<16x128xf32> -> vector<16x128xf32>
    %17 = arith.addf %11, %16 : vector<16x128xf32>
    %c0_i32_12 = arith.constant 0 : i32
    %18 = arith.addi %0, %c0_i32_12 : i32
    %c0_13 = arith.constant 0 : index
    %c2_14 = arith.constant 2 : index
    %19 = arith.index_cast %18 : i32 to index
    %c0_15 = arith.constant 0 : index
    %c0_16 = arith.constant 0 : index
    %20 = vector.load %arg2[%c0_13, %c2_14, %19, %c0_15, %c0_16] : memref<1x4x5x5x128xbf16, #tpu.memory_space<vmem>>, vector<1x1x4x4x128xbf16>
    %21 = vector.shape_cast %20 : vector<1x1x4x4x128xbf16> to vector<4x4x128xbf16>
    %22 = vector.shape_cast %21 : vector<4x4x128xbf16> to vector<16x128xbf16>
    %c1 = arith.constant 1 : index
    %c0_17 = arith.constant 0 : index
    %c0_18 = arith.constant 0 : index
    %c0_19 = arith.constant 0 : index
    %23 = vector.load %arg3[%c1, %c0_17, %c0_18, %c0_19] : memref<3x3x128x128xbf16, #tpu.memory_space<vmem>>, vector<1x1x128x128xbf16>
    %24 = vector.shape_cast %23 : vector<1x1x128x128xbf16> to vector<128x128xbf16>
    %cst_20 = arith.constant dense<0.000000e+00> : vector<16x128xf32>
    %25 = tpu.matmul %22, %24, %cst_20 {dimension_numbers = #tpu.dot_dimension_numbers<[1], [0], [0], [1], [0, 0, 1, 1], [], []>} : vector<16x128xbf16>, vector<128x128xbf16>, vector<16x128xf32> -> vector<16x128xf32>
    %26 = arith.addf %17, %25 : vector<16x128xf32>
    %c0_i32_21 = arith.constant 0 : i32
    %27 = arith.addi %0, %c0_i32_21 : i32
    %c0_22 = arith.constant 0 : index
    %c1_23 = arith.constant 1 : index
    %28 = arith.index_cast %27 : i32 to index
    %c0_24 = arith.constant 0 : index
    %c0_25 = arith.constant 0 : index
    %29 = vector.load %arg2[%c0_22, %c1_23, %28, %c0_24, %c0_25] : memref<1x4x5x5x128xbf16, #tpu.memory_space<vmem>>, vector<1x1x5x4x128xbf16>
    %30 = vector.shape_cast %29 : vector<1x1x5x4x128xbf16> to vector<5x4x128xbf16>
    %31 = vector.extract_strided_slice %30 {offsets = [0, 0, 0], sizes = [4, 4, 128], strides = [1, 1, 1]} : vector<5x4x128xbf16> to vector<4x4x128xbf16>
    %32 = vector.shape_cast %31 : vector<4x4x128xbf16> to vector<16x128xbf16>
    %c0_26 = arith.constant 0 : index
    %c1_27 = arith.constant 1 : index
    %c0_28 = arith.constant 0 : index
    %c0_29 = arith.constant 0 : index
    %33 = vector.load %arg3[%c0_26, %c1_27, %c0_28, %c0_29] : memref<3x3x128x128xbf16, #tpu.memory_space<vmem>>, vector<1x1x128x128xbf16>
    %34 = vector.shape_cast %33 : vector<1x1x128x128xbf16> to vector<128x128xbf16>
    %cst_30 = arith.constant dense<0.000000e+00> : vector<16x128xf32>
    %35 = tpu.matmul %32, %34, %cst_30 {dimension_numbers = #tpu.dot_dimension_numbers<[1], [0], [0], [1], [0, 0, 1, 1], [], []>} : vector<16x128xbf16>, vector<128x128xbf16>, vector<16x128xf32> -> vector<16x128xf32>
    %36 = arith.addf %26, %35 : vector<16x128xf32>
    %37 = vector.extract_strided_slice %30 {offsets = [1, 0, 0], sizes = [4, 4, 128], strides = [1, 1, 1]} : vector<5x4x128xbf16> to vector<4x4x128xbf16>
    %38 = vector.shape_cast %37 : vector<4x4x128xbf16> to vector<16x128xbf16>
    %c2_31 = arith.constant 2 : index
    %c1_32 = arith.constant 1 : index
    %c0_33 = arith.constant 0 : index
    %c0_34 = arith.constant 0 : index
    %39 = vector.load %arg3[%c2_31, %c1_32, %c0_33, %c0_34] : memref<3x3x128x128xbf16, #tpu.memory_space<vmem>>, vector<1x1x128x128xbf16>
    %40 = vector.shape_cast %39 : vector<1x1x128x128xbf16> to vector<128x128xbf16>
    %cst_35 = arith.constant dense<0.000000e+00> : vector<16x128xf32>
    %41 = tpu.matmul %38, %40, %cst_35 {dimension_numbers = #tpu.dot_dimension_numbers<[1], [0], [0], [1], [0, 0, 1, 1], [], []>} : vector<16x128xbf16>, vector<128x128xbf16>, vector<16x128xf32> -> vector<16x128xf32>
    %42 = arith.addf %36, %41 : vector<16x128xf32>
    %c0_i32_36 = arith.constant 0 : i32
    %43 = arith.addi %0, %c0_i32_36 : i32
    %c0_37 = arith.constant 0 : index
    %c3 = arith.constant 3 : index
    %44 = arith.index_cast %43 : i32 to index
    %c0_38 = arith.constant 0 : index
    %c0_39 = arith.constant 0 : index
    %45 = vector.load %arg2[%c0_37, %c3, %44, %c0_38, %c0_39] : memref<1x4x5x5x128xbf16, #tpu.memory_space<vmem>>, vector<1x1x4x4x128xbf16>
    %46 = vector.shape_cast %45 : vector<1x1x4x4x128xbf16> to vector<4x4x128xbf16>
    %47 = vector.shape_cast %46 : vector<4x4x128xbf16> to vector<16x128xbf16>
    %c1_40 = arith.constant 1 : index
    %c1_41 = arith.constant 1 : index
    %c0_42 = arith.constant 0 : index
    %c0_43 = arith.constant 0 : index
    %48 = vector.load %arg3[%c1_40, %c1_41, %c0_42, %c0_43] : memref<3x3x128x128xbf16, #tpu.memory_space<vmem>>, vector<1x1x128x128xbf16>
    %49 = vector.shape_cast %48 : vector<1x1x128x128xbf16> to vector<128x128xbf16>
    %cst_44 = arith.constant dense<0.000000e+00> : vector<16x128xf32>
    %50 = tpu.matmul %47, %49, %cst_44 {dimension_numbers = #tpu.dot_dimension_numbers<[1], [0], [0], [1], [0, 0, 1, 1], [], []>} : vector<16x128xbf16>, vector<128x128xbf16>, vector<16x128xf32> -> vector<16x128xf32>
    %51 = arith.addf %42, %50 : vector<16x128xf32>
    %c0_i32_45 = arith.constant 0 : i32
    %52 = arith.addi %0, %c0_i32_45 : i32
    %c0_46 = arith.constant 0 : index
    %c0_47 = arith.constant 0 : index
    %53 = arith.index_cast %52 : i32 to index
    %c1_48 = arith.constant 1 : index
    %c0_49 = arith.constant 0 : index
    %54 = vector.load %arg2[%c0_46, %c0_47, %53, %c1_48, %c0_49] : memref<1x4x5x5x128xbf16, #tpu.memory_space<vmem>>, vector<1x1x5x4x128xbf16>
    %55 = vector.shape_cast %54 : vector<1x1x5x4x128xbf16> to vector<5x4x128xbf16>
    %56 = vector.extract_strided_slice %55 {offsets = [0, 0, 0], sizes = [4, 4, 128], strides = [1, 1, 1]} : vector<5x4x128xbf16> to vector<4x4x128xbf16>
    %57 = vector.shape_cast %56 : vector<4x4x128xbf16> to vector<16x128xbf16>
    %c0_50 = arith.constant 0 : index
    %c2_51 = arith.constant 2 : index
    %c0_52 = arith.constant 0 : index
    %c0_53 = arith.constant 0 : index
    %58 = vector.load %arg3[%c0_50, %c2_51, %c0_52, %c0_53] : memref<3x3x128x128xbf16, #tpu.memory_space<vmem>>, vector<1x1x128x128xbf16>
    %59 = vector.shape_cast %58 : vector<1x1x128x128xbf16> to vector<128x128xbf16>
    %cst_54 = arith.constant dense<0.000000e+00> : vector<16x128xf32>
    %60 = tpu.matmul %57, %59, %cst_54 {dimension_numbers = #tpu.dot_dimension_numbers<[1], [0], [0], [1], [0, 0, 1, 1], [], []>} : vector<16x128xbf16>, vector<128x128xbf16>, vector<16x128xf32> -> vector<16x128xf32>
    %61 = arith.addf %51, %60 : vector<16x128xf32>
    %62 = vector.extract_strided_slice %55 {offsets = [1, 0, 0], sizes = [4, 4, 128], strides = [1, 1, 1]} : vector<5x4x128xbf16> to vector<4x4x128xbf16>
    %63 = vector.shape_cast %62 : vector<4x4x128xbf16> to vector<16x128xbf16>
    %c2_55 = arith.constant 2 : index
    %c2_56 = arith.constant 2 : index
    %c0_57 = arith.constant 0 : index
    %c0_58 = arith.constant 0 : index
    %64 = vector.load %arg3[%c2_55, %c2_56, %c0_57, %c0_58] : memref<3x3x128x128xbf16, #tpu.memory_space<vmem>>, vector<1x1x128x128xbf16>
    %65 = vector.shape_cast %64 : vector<1x1x128x128xbf16> to vector<128x128xbf16>
    %cst_59 = arith.constant dense<0.000000e+00> : vector<16x128xf32>
    %66 = tpu.matmul %63, %65, %cst_59 {dimension_numbers = #tpu.dot_dimension_numbers<[1], [0], [0], [1], [0, 0, 1, 1], [], []>} : vector<16x128xbf16>, vector<128x128xbf16>, vector<16x128xf32> -> vector<16x128xf32>
    %67 = arith.addf %61, %66 : vector<16x128xf32>
    %c0_i32_60 = arith.constant 0 : i32
    %68 = arith.addi %0, %c0_i32_60 : i32
    %c0_61 = arith.constant 0 : index
    %c2_62 = arith.constant 2 : index
    %69 = arith.index_cast %68 : i32 to index
    %c1_63 = arith.constant 1 : index
    %c0_64 = arith.constant 0 : index
    %70 = vector.load %arg2[%c0_61, %c2_62, %69, %c1_63, %c0_64] : memref<1x4x5x5x128xbf16, #tpu.memory_space<vmem>>, vector<1x1x4x4x128xbf16>
    %71 = vector.shape_cast %70 : vector<1x1x4x4x128xbf16> to vector<4x4x128xbf16>
    %72 = vector.shape_cast %71 : vector<4x4x128xbf16> to vector<16x128xbf16>
    %c1_65 = arith.constant 1 : index
    %c2_66 = arith.constant 2 : index
    %c0_67 = arith.constant 0 : index
    %c0_68 = arith.constant 0 : index
    %73 = vector.load %arg3[%c1_65, %c2_66, %c0_67, %c0_68] : memref<3x3x128x128xbf16, #tpu.memory_space<vmem>>, vector<1x1x128x128xbf16>
    %74 = vector.shape_cast %73 : vector<1x1x128x128xbf16> to vector<128x128xbf16>
    %cst_69 = arith.constant dense<0.000000e+00> : vector<16x128xf32>
    %75 = tpu.matmul %72, %74, %cst_69 {dimension_numbers = #tpu.dot_dimension_numbers<[1], [0], [0], [1], [0, 0, 1, 1], [], []>} : vector<16x128xbf16>, vector<128x128xbf16>, vector<16x128xf32> -> vector<16x128xf32>
    %76 = arith.addf %67, %75 : vector<16x128xf32>
    %c0_70 = arith.constant 0 : index
    %c0_71 = arith.constant 0 : index
    %77 = vector.load %arg4[%c0_70, %c0_71] : memref<1x128xf32, #tpu.memory_space<vmem>>, vector<1x128xf32>
    %78 = vector.broadcast %77 : vector<1x128xf32> to vector<16x128xf32>
    %79 = arith.addf %76, %78 : vector<16x128xf32>
    %cst_72 = arith.constant 0.000000e+00 : f32
    %80 = vector.broadcast %cst_72 : f32 to vector<16x128xf32>
    %81 = arith.maximumf %79, %80 : vector<16x128xf32>
    %82 = vector.shape_cast %81 : vector<16x128xf32> to vector<4x4x128xf32>
    %83 = arith.truncf %82 : vector<4x4x128xf32> to vector<4x4x128xbf16>
    %c0_73 = arith.constant 0 : index
    %c0_74 = arith.constant 0 : index
    %c0_75 = arith.constant 0 : index
    %c0_76 = arith.constant 0 : index
    %84 = vector.load %arg5[%c0_73, %c0_74, %c0_75, %c0_76] : memref<1x4x4x128xbf16, #tpu.memory_space<vmem>>, vector<1x4x4x128xbf16>
    %85 = vector.shape_cast %84 : vector<1x4x4x128xbf16> to vector<4x4x128xbf16>
    %86 = vector.shape_cast %83 : vector<4x4x128xbf16> to vector<1x4x4x128xbf16>
    tpu.vector_store %arg5[%c0_73, %c0_74, %c0_75, %c0_76], %86 {strides = array<i32>} : memref<1x4x4x128xbf16, #tpu.memory_space<vmem>>, vector<1x4x4x128xbf16>,
    return
  }
  func.func @transform_0(%arg0: i32, %arg1: i32) -> (i32, i32, i32, i32, i32) {
    %c0_i32 = arith.constant 0 : i32
    %c0_i32_0 = arith.constant 0 : i32
    %c0_i32_1 = arith.constant 0 : i32
    %c0_i32_2 = arith.constant 0 : i32
    %c0_i32_3 = arith.constant 0 : i32
    return %arg0, %c0_i32, %c0_i32_0, %c0_i32_1, %c0_i32_2 : i32, i32, i32, i32, i32
  }
  func.func @transform_1(%arg0: i32, %arg1: i32) -> (i32, i32, i32, i32) {
    %c0_i32 = arith.constant 0 : i32
    %c0_i32_0 = arith.constant 0 : i32
    %c0_i32_1 = arith.constant 0 : i32
    %c0_i32_2 = arith.constant 0 : i32
    %c0_i32_3 = arith.constant 0 : i32
    return %c0_i32, %c0_i32_0, %c0_i32_1, %c0_i32_2 : i32, i32, i32, i32
  }
  func.func @transform_2(%arg0: i32, %arg1: i32) -> (i32, i32) {
    %c0_i32 = arith.constant 0 : i32
    %c0_i32_0 = arith.constant 0 : i32
    %c0_i32_1 = arith.constant 0 : i32
    return %c0_i32, %c0_i32_0 : i32, i32
  }
  func.func @transform_3(%arg0: i32, %arg1: i32) -> (i32, i32, i32, i32) {
    %c0_i32 = arith.constant 0 : i32
    %c0_i32_0 = arith.constant 0 : i32
    %c0_i32_1 = arith.constant 0 : i32
    return %arg0, %arg1, %c0_i32, %c0_i32_0 : i32, i32, i32, i32
  }
}

module attributes {stable_mosaic.version = 11 : i64} {
  func.func @_gemm_bias_kernel(%arg0: i32, %arg1: i32, %arg2: memref<1x16x128xbf16, #tpu.memory_space<vmem>>, %arg3: memref<128x128xbf16, #tpu.memory_space<vmem>>, %arg4: memref<1x128xf32, #tpu.memory_space<vmem>>, %arg5: memref<1x16x128xbf16, #tpu.memory_space<vmem>>) attributes {dimension_semantics = [#tpu.dimension_semantics<parallel>, #tpu.dimension_semantics<parallel>], iteration_bounds = array<i64: 4, 1>, scalar_prefetch = 0 : i64, scratch_operands = 0 : i64, tpu.core_type = #tpu.core_type<tc>, window_params = [{transform_indices = @transform_0, window_bounds = array<i64: 1, 16, 128>}, {pipeline_mode = #tpu.pipeline_mode<synchronous>, transform_indices = @transform_1, window_bounds = array<i64: 128, 128>}, {pipeline_mode = #tpu.pipeline_mode<synchronous>, transform_indices = @transform_2, window_bounds = array<i64: 1, 128>}, {transform_indices = @transform_3, window_bounds = array<i64: 1, 16, 128>}]} {
    %c0 = arith.constant 0 : index
    %c0_0 = arith.constant 0 : index
    %c0_1 = arith.constant 0 : index
    %0 = vector.load %arg2[%c0, %c0_0, %c0_1] : memref<1x16x128xbf16, #tpu.memory_space<vmem>>, vector<1x16x128xbf16>
    %1 = vector.shape_cast %0 : vector<1x16x128xbf16> to vector<16x128xbf16>
    %c0_2 = arith.constant 0 : index
    %c0_3 = arith.constant 0 : index
    %2 = vector.load %arg3[%c0_2, %c0_3] : memref<128x128xbf16, #tpu.memory_space<vmem>>, vector<128x128xbf16>
    %cst = arith.constant dense<0.000000e+00> : vector<16x128xf32>
    %3 = tpu.matmul %1, %2, %cst {dimension_numbers = #tpu.dot_dimension_numbers<[1], [0], [0], [1], [0, 0, 1, 1], [], []>} : vector<16x128xbf16>, vector<128x128xbf16>, vector<16x128xf32> -> vector<16x128xf32>
    %c0_4 = arith.constant 0 : index
    %c0_5 = arith.constant 0 : index
    %4 = vector.load %arg4[%c0_4, %c0_5] : memref<1x128xf32, #tpu.memory_space<vmem>>, vector<1x128xf32>
    %5 = vector.broadcast %4 : vector<1x128xf32> to vector<16x128xf32>
    %6 = arith.addf %3, %5 : vector<16x128xf32>
    %7 = arith.truncf %6 : vector<16x128xf32> to vector<16x128xbf16>
    %c0_6 = arith.constant 0 : index
    %c0_7 = arith.constant 0 : index
    %c0_8 = arith.constant 0 : index
    %8 = vector.load %arg5[%c0_6, %c0_7, %c0_8] : memref<1x16x128xbf16, #tpu.memory_space<vmem>>, vector<1x16x128xbf16>
    %9 = vector.shape_cast %8 : vector<1x16x128xbf16> to vector<16x128xbf16>
    %10 = vector.shape_cast %7 : vector<16x128xbf16> to vector<1x16x128xbf16>
    tpu.vector_store %arg5[%c0_6, %c0_7, %c0_8], %10 {strides = array<i32>} : memref<1x16x128xbf16, #tpu.memory_space<vmem>>, vector<1x16x128xbf16>,
    return
  }
  func.func @transform_0(%arg0: i32, %arg1: i32) -> (i32, i32, i32) {
    %c0_i32 = arith.constant 0 : i32
    %c0_i32_0 = arith.constant 0 : i32
    return %arg0, %arg1, %c0_i32 : i32, i32, i32
  }
  func.func @transform_1(%arg0: i32, %arg1: i32) -> (i32, i32) {
    %c0_i32 = arith.constant 0 : i32
    %c0_i32_0 = arith.constant 0 : i32
    %c0_i32_1 = arith.constant 0 : i32
    return %c0_i32, %c0_i32_0 : i32, i32
  }
  func.func @transform_2(%arg0: i32, %arg1: i32) -> (i32, i32) {
    %c0_i32 = arith.constant 0 : i32
    %c0_i32_0 = arith.constant 0 : i32
    %c0_i32_1 = arith.constant 0 : i32
    return %c0_i32, %c0_i32_0 : i32, i32
  }
  func.func @transform_3(%arg0: i32, %arg1: i32) -> (i32, i32, i32) {
    %c0_i32 = arith.constant 0 : i32
    %c0_i32_0 = arith.constant 0 : i32
    return %arg0, %arg1, %c0_i32 : i32, i32, i32
  }
}

module attributes {stable_mosaic.version = 11 : i64} {
  func.func @_gemm_bias_kernel(%arg0: i32, %arg1: i32, %arg2: memref<1x16x128xbf16, #tpu.memory_space<vmem>>, %arg3: memref<128x128xbf16, #tpu.memory_space<vmem>>, %arg4: memref<1x128xf32, #tpu.memory_space<vmem>>, %arg5: memref<1x16x128xbf16, #tpu.memory_space<vmem>>, %arg6: memref<1x16x128xbf16, #tpu.memory_space<vmem>>) attributes {dimension_semantics = [#tpu.dimension_semantics<parallel>, #tpu.dimension_semantics<parallel>], iteration_bounds = array<i64: 4, 1>, scalar_prefetch = 0 : i64, scratch_operands = 0 : i64, tpu.core_type = #tpu.core_type<tc>, window_params = [{transform_indices = @transform_0, window_bounds = array<i64: 1, 16, 128>}, {pipeline_mode = #tpu.pipeline_mode<synchronous>, transform_indices = @transform_1, window_bounds = array<i64: 128, 128>}, {pipeline_mode = #tpu.pipeline_mode<synchronous>, transform_indices = @transform_2, window_bounds = array<i64: 1, 128>}, {transform_indices = @transform_3, window_bounds = array<i64: 1, 16, 128>}, {transform_indices = @transform_4, window_bounds = array<i64: 1, 16, 128>}]} {
    %c0 = arith.constant 0 : index
    %c0_0 = arith.constant 0 : index
    %c0_1 = arith.constant 0 : index
    %0 = vector.load %arg2[%c0, %c0_0, %c0_1] : memref<1x16x128xbf16, #tpu.memory_space<vmem>>, vector<1x16x128xbf16>
    %1 = vector.shape_cast %0 : vector<1x16x128xbf16> to vector<16x128xbf16>
    %c0_2 = arith.constant 0 : index
    %c0_3 = arith.constant 0 : index
    %2 = vector.load %arg3[%c0_2, %c0_3] : memref<128x128xbf16, #tpu.memory_space<vmem>>, vector<128x128xbf16>
    %cst = arith.constant dense<0.000000e+00> : vector<16x128xf32>
    %3 = tpu.matmul %1, %2, %cst {dimension_numbers = #tpu.dot_dimension_numbers<[1], [0], [0], [1], [0, 0, 1, 1], [], []>} : vector<16x128xbf16>, vector<128x128xbf16>, vector<16x128xf32> -> vector<16x128xf32>
    %c0_4 = arith.constant 0 : index
    %c0_5 = arith.constant 0 : index
    %4 = vector.load %arg4[%c0_4, %c0_5] : memref<1x128xf32, #tpu.memory_space<vmem>>, vector<1x128xf32>
    %5 = vector.broadcast %4 : vector<1x128xf32> to vector<16x128xf32>
    %6 = arith.addf %3, %5 : vector<16x128xf32>
    %c0_6 = arith.constant 0 : index
    %c0_7 = arith.constant 0 : index
    %c0_8 = arith.constant 0 : index
    %7 = vector.load %arg5[%c0_6, %c0_7, %c0_8] : memref<1x16x128xbf16, #tpu.memory_space<vmem>>, vector<1x16x128xbf16>
    %8 = vector.shape_cast %7 : vector<1x16x128xbf16> to vector<16x128xbf16>
    %9 = arith.extf %8 : vector<16x128xbf16> to vector<16x128xf32>
    %10 = arith.addf %6, %9 : vector<16x128xf32>
    %cst_9 = arith.constant 0.000000e+00 : f32
    %11 = vector.broadcast %cst_9 : f32 to vector<16x128xf32>
    %12 = arith.maximumf %10, %11 : vector<16x128xf32>
    %13 = arith.truncf %12 : vector<16x128xf32> to vector<16x128xbf16>
    %c0_10 = arith.constant 0 : index
    %c0_11 = arith.constant 0 : index
    %c0_12 = arith.constant 0 : index
    %14 = vector.load %arg6[%c0_10, %c0_11, %c0_12] : memref<1x16x128xbf16, #tpu.memory_space<vmem>>, vector<1x16x128xbf16>
    %15 = vector.shape_cast %14 : vector<1x16x128xbf16> to vector<16x128xbf16>
    %16 = vector.shape_cast %13 : vector<16x128xbf16> to vector<1x16x128xbf16>
    tpu.vector_store %arg6[%c0_10, %c0_11, %c0_12], %16 {strides = array<i32>} : memref<1x16x128xbf16, #tpu.memory_space<vmem>>, vector<1x16x128xbf16>,
    return
  }
  func.func @transform_0(%arg0: i32, %arg1: i32) -> (i32, i32, i32) {
    %c0_i32 = arith.constant 0 : i32
    %c0_i32_0 = arith.constant 0 : i32
    return %arg0, %arg1, %c0_i32 : i32, i32, i32
  }
  func.func @transform_1(%arg0: i32, %arg1: i32) -> (i32, i32) {
    %c0_i32 = arith.constant 0 : i32
    %c0_i32_0 = arith.constant 0 : i32
    %c0_i32_1 = arith.constant 0 : i32
    return %c0_i32, %c0_i32_0 : i32, i32
  }
  func.func @transform_2(%arg0: i32, %arg1: i32) -> (i32, i32) {
    %c0_i32 = arith.constant 0 : i32
    %c0_i32_0 = arith.constant 0 : i32
    %c0_i32_1 = arith.constant 0 : i32
    return %c0_i32, %c0_i32_0 : i32, i32
  }
  func.func @transform_3(%arg0: i32, %arg1: i32) -> (i32, i32, i32) {
    %c0_i32 = arith.constant 0 : i32
    %c0_i32_0 = arith.constant 0 : i32
    return %arg0, %arg1, %c0_i32 : i32, i32, i32
  }
  func.func @transform_4(%arg0: i32, %arg1: i32) -> (i32, i32, i32) {
    %c0_i32 = arith.constant 0 : i32
    %c0_i32_0 = arith.constant 0 : i32
    return %arg0, %arg1, %c0_i32 : i32, i32, i32
  }
}

module attributes {stable_mosaic.version = 11 : i64} {
  func.func @_gemm_bias_kernel(%arg0: i32, %arg1: i32, %arg2: memref<1x16x128xbf16, #tpu.memory_space<vmem>>, %arg3: memref<128x128xbf16, #tpu.memory_space<vmem>>, %arg4: memref<1x128xf32, #tpu.memory_space<vmem>>, %arg5: memref<1x16x128xbf16, #tpu.memory_space<vmem>>) attributes {dimension_semantics = [#tpu.dimension_semantics<parallel>, #tpu.dimension_semantics<parallel>], iteration_bounds = array<i64: 4, 1>, scalar_prefetch = 0 : i64, scratch_operands = 0 : i64, tpu.core_type = #tpu.core_type<tc>, window_params = [{transform_indices = @transform_0, window_bounds = array<i64: 1, 16, 128>}, {pipeline_mode = #tpu.pipeline_mode<synchronous>, transform_indices = @transform_1, window_bounds = array<i64: 128, 128>}, {pipeline_mode = #tpu.pipeline_mode<synchronous>, transform_indices = @transform_2, window_bounds = array<i64: 1, 128>}, {transform_indices = @transform_3, window_bounds = array<i64: 1, 16, 128>}]} {
    %c0 = arith.constant 0 : index
    %c0_0 = arith.constant 0 : index
    %c0_1 = arith.constant 0 : index
    %0 = vector.load %arg2[%c0, %c0_0, %c0_1] : memref<1x16x128xbf16, #tpu.memory_space<vmem>>, vector<1x16x128xbf16>
    %1 = vector.shape_cast %0 : vector<1x16x128xbf16> to vector<16x128xbf16>
    %c0_2 = arith.constant 0 : index
    %c0_3 = arith.constant 0 : index
    %2 = vector.load %arg3[%c0_2, %c0_3] : memref<128x128xbf16, #tpu.memory_space<vmem>>, vector<128x128xbf16>
    %cst = arith.constant dense<0.000000e+00> : vector<16x128xf32>
    %3 = tpu.matmul %1, %2, %cst {dimension_numbers = #tpu.dot_dimension_numbers<[1], [0], [0], [1], [0, 0, 1, 1], [], []>} : vector<16x128xbf16>, vector<128x128xbf16>, vector<16x128xf32> -> vector<16x128xf32>
    %c0_4 = arith.constant 0 : index
    %c0_5 = arith.constant 0 : index
    %4 = vector.load %arg4[%c0_4, %c0_5] : memref<1x128xf32, #tpu.memory_space<vmem>>, vector<1x128xf32>
    %5 = vector.broadcast %4 : vector<1x128xf32> to vector<16x128xf32>
    %6 = arith.addf %3, %5 : vector<16x128xf32>
    %cst_6 = arith.constant 0.000000e+00 : f32
    %7 = vector.broadcast %cst_6 : f32 to vector<16x128xf32>
    %8 = arith.maximumf %6, %7 : vector<16x128xf32>
    %9 = arith.truncf %8 : vector<16x128xf32> to vector<16x128xbf16>
    %c0_7 = arith.constant 0 : index
    %c0_8 = arith.constant 0 : index
    %c0_9 = arith.constant 0 : index
    %10 = vector.load %arg5[%c0_7, %c0_8, %c0_9] : memref<1x16x128xbf16, #tpu.memory_space<vmem>>, vector<1x16x128xbf16>
    %11 = vector.shape_cast %10 : vector<1x16x128xbf16> to vector<16x128xbf16>
    %12 = vector.shape_cast %9 : vector<16x128xbf16> to vector<1x16x128xbf16>
    tpu.vector_store %arg5[%c0_7, %c0_8, %c0_9], %12 {strides = array<i32>} : memref<1x16x128xbf16, #tpu.memory_space<vmem>>, vector<1x16x128xbf16>,
    return
  }
  func.func @transform_0(%arg0: i32, %arg1: i32) -> (i32, i32, i32) {
    %c0_i32 = arith.constant 0 : i32
    %c0_i32_0 = arith.constant 0 : i32
    return %arg0, %arg1, %c0_i32 : i32, i32, i32
  }
  func.func @transform_1(%arg0: i32, %arg1: i32) -> (i32, i32) {
    %c0_i32 = arith.constant 0 : i32
    %c0_i32_0 = arith.constant 0 : i32
    %c0_i32_1 = arith.constant 0 : i32
    return %c0_i32, %c0_i32_0 : i32, i32
  }
  func.func @transform_2(%arg0: i32, %arg1: i32) -> (i32, i32) {
    %c0_i32 = arith.constant 0 : i32
    %c0_i32_0 = arith.constant 0 : i32
    %c0_i32_1 = arith.constant 0 : i32
    return %c0_i32, %c0_i32_0 : i32, i32
  }
  func.func @transform_3(%arg0: i32, %arg1: i32) -> (i32, i32, i32) {
    %c0_i32 = arith.constant 0 : i32
    %c0_i32_0 = arith.constant 0 : i32
    return %arg0, %arg1, %c0_i32 : i32, i32, i32
  }
}

module attributes {stable_mosaic.version = 11 : i64} {
  func.func @_conv_kxk_kernel(%arg0: i32, %arg1: i32, %arg2: memref<1x4x3x3x128xbf16, #tpu.memory_space<vmem>>, %arg3: memref<3x3x128x128xbf16, #tpu.memory_space<vmem>>, %arg4: memref<1x128xf32, #tpu.memory_space<vmem>>, %arg5: memref<1x2x2x128xbf16, #tpu.memory_space<vmem>>) attributes {dimension_semantics = [#tpu.dimension_semantics<parallel>, #tpu.dimension_semantics<parallel>], iteration_bounds = array<i64: 4, 1>, scalar_prefetch = 0 : i64, scratch_operands = 0 : i64, tpu.core_type = #tpu.core_type<tc>, window_params = [{transform_indices = @transform_0, window_bounds = array<i64: 1, 4, 3, 3, 128>}, {pipeline_mode = #tpu.pipeline_mode<synchronous>, transform_indices = @transform_1, window_bounds = array<i64: 3, 3, 128, 128>}, {pipeline_mode = #tpu.pipeline_mode<synchronous>, transform_indices = @transform_2, window_bounds = array<i64: 1, 128>}, {transform_indices = @transform_3, window_bounds = array<i64: 1, 2, 2, 128>}]} {
    %c2_i32 = arith.constant 2 : i32
    %0 = arith.muli %arg1, %c2_i32 : i32
    %cst = arith.constant 0.000000e+00 : f32
    %1 = vector.broadcast %cst : f32 to vector<4x128xf32>
    %c0_i32 = arith.constant 0 : i32
    %2 = arith.addi %0, %c0_i32 : i32
    %c0 = arith.constant 0 : index
    %c0_0 = arith.constant 0 : index
    %3 = arith.index_cast %2 : i32 to index
    %c0_1 = arith.constant 0 : index
    %c0_2 = arith.constant 0 : index
    %4 = vector.load %arg2[%c0, %c0_0, %3, %c0_1, %c0_2] : memref<1x4x3x3x128xbf16, #tpu.memory_space<vmem>>, vector<1x1x3x2x128xbf16>
    %5 = vector.shape_cast %4 : vector<1x1x3x2x128xbf16> to vector<3x2x128xbf16>
    %6 = vector.extract_strided_slice %5 {offsets = [0, 0, 0], sizes = [2, 2, 128], strides = [1, 1, 1]} : vector<3x2x128xbf16> to vector<2x2x128xbf16>
    %7 = vector.shape_cast %6 : vector<2x2x128xbf16> to vector<4x128xbf16>
    %c0_3 = arith.constant 0 : index
    %c0_4 = arith.constant 0 : index
    %c0_5 = arith.constant 0 : index
    %c0_6 = arith.constant 0 : index
    %8 = vector.load %arg3[%c0_3, %c0_4, %c0_5, %c0_6] : memref<3x3x128x128xbf16, #tpu.memory_space<vmem>>, vector<1x1x128x128xbf16>
    %9 = vector.shape_cast %8 : vector<1x1x128x128xbf16> to vector<128x128xbf16>
    %cst_7 = arith.constant dense<0.000000e+00> : vector<4x128xf32>
    %10 = tpu.matmul %7, %9, %cst_7 {dimension_numbers = #tpu.dot_dimension_numbers<[1], [0], [0], [1], [0, 0, 1, 1], [], []>} : vector<4x128xbf16>, vector<128x128xbf16>, vector<4x128xf32> -> vector<4x128xf32>
    %11 = arith.addf %1, %10 : vector<4x128xf32>
    %12 = vector.extract_strided_slice %5 {offsets = [1, 0, 0], sizes = [2, 2, 128], strides = [1, 1, 1]} : vector<3x2x128xbf16> to vector<2x2x128xbf16>
    %13 = vector.shape_cast %12 : vector<2x2x128xbf16> to vector<4x128xbf16>
    %c2 = arith.constant 2 : index
    %c0_8 = arith.constant 0 : index
    %c0_9 = arith.constant 0 : index
    %c0_10 = arith.constant 0 : index
    %14 = vector.load %arg3[%c2, %c0_8, %c0_9, %c0_10] : memref<3x3x128x128xbf16, #tpu.memory_space<vmem>>, vector<1x1x128x128xbf16>
    %15 = vector.shape_cast %14 : vector<1x1x128x128xbf16> to vector<128x128xbf16>
    %cst_11 = arith.constant dense<0.000000e+00> : vector<4x128xf32>
    %16 = tpu.matmul %13, %15, %cst_11 {dimension_numbers = #tpu.dot_dimension_numbers<[1], [0], [0], [1], [0, 0, 1, 1], [], []>} : vector<4x128xbf16>, vector<128x128xbf16>, vector<4x128xf32> -> vector<4x128xf32>
    %17 = arith.addf %11, %16 : vector<4x128xf32>
    %c0_i32_12 = arith.constant 0 : i32
    %18 = arith.addi %0, %c0_i32_12 : i32
    %c0_13 = arith.constant 0 : index
    %c2_14 = arith.constant 2 : index
    %19 = arith.index_cast %18 : i32 to index
    %c0_15 = arith.constant 0 : index
    %c0_16 = arith.constant 0 : index
    %20 = vector.load %arg2[%c0_13, %c2_14, %19, %c0_15, %c0_16] : memref<1x4x3x3x128xbf16, #tpu.memory_space<vmem>>, vector<1x1x2x2x128xbf16>
    %21 = vector.shape_cast %20 : vector<1x1x2x2x128xbf16> to vector<2x2x128xbf16>
    %22 = vector.shape_cast %21 : vector<2x2x128xbf16> to vector<4x128xbf16>
    %c1 = arith.constant 1 : index
    %c0_17 = arith.constant 0 : index
    %c0_18 = arith.constant 0 : index
    %c0_19 = arith.constant 0 : index
    %23 = vector.load %arg3[%c1, %c0_17, %c0_18, %c0_19] : memref<3x3x128x128xbf16, #tpu.memory_space<vmem>>, vector<1x1x128x128xbf16>
    %24 = vector.shape_cast %23 : vector<1x1x128x128xbf16> to vector<128x128xbf16>
    %cst_20 = arith.constant dense<0.000000e+00> : vector<4x128xf32>
    %25 = tpu.matmul %22, %24, %cst_20 {dimension_numbers = #tpu.dot_dimension_numbers<[1], [0], [0], [1], [0, 0, 1, 1], [], []>} : vector<4x128xbf16>, vector<128x128xbf16>, vector<4x128xf32> -> vector<4x128xf32>
    %26 = arith.addf %17, %25 : vector<4x128xf32>
    %c0_i32_21 = arith.constant 0 : i32
    %27 = arith.addi %0, %c0_i32_21 : i32
    %c0_22 = arith.constant 0 : index
    %c1_23 = arith.constant 1 : index
    %28 = arith.index_cast %27 : i32 to index
    %c0_24 = arith.constant 0 : index
    %c0_25 = arith.constant 0 : index
    %29 = vector.load %arg2[%c0_22, %c1_23, %28, %c0_24, %c0_25] : memref<1x4x3x3x128xbf16, #tpu.memory_space<vmem>>, vector<1x1x3x2x128xbf16>
    %30 = vector.shape_cast %29 : vector<1x1x3x2x128xbf16> to vector<3x2x128xbf16>
    %31 = vector.extract_strided_slice %30 {offsets = [0, 0, 0], sizes = [2, 2, 128], strides = [1, 1, 1]} : vector<3x2x128xbf16> to vector<2x2x128xbf16>
    %32 = vector.shape_cast %31 : vector<2x2x128xbf16> to vector<4x128xbf16>
    %c0_26 = arith.constant 0 : index
    %c1_27 = arith.constant 1 : index
    %c0_28 = arith.constant 0 : index
    %c0_29 = arith.constant 0 : index
    %33 = vector.load %arg3[%c0_26, %c1_27, %c0_28, %c0_29] : memref<3x3x128x128xbf16, #tpu.memory_space<vmem>>, vector<1x1x128x128xbf16>
    %34 = vector.shape_cast %33 : vector<1x1x128x128xbf16> to vector<128x128xbf16>
    %cst_30 = arith.constant dense<0.000000e+00> : vector<4x128xf32>
    %35 = tpu.matmul %32, %34, %cst_30 {dimension_numbers = #tpu.dot_dimension_numbers<[1], [0], [0], [1], [0, 0, 1, 1], [], []>} : vector<4x128xbf16>, vector<128x128xbf16>, vector<4x128xf32> -> vector<4x128xf32>
    %36 = arith.addf %26, %35 : vector<4x128xf32>
    %37 = vector.extract_strided_slice %30 {offsets = [1, 0, 0], sizes = [2, 2, 128], strides = [1, 1, 1]} : vector<3x2x128xbf16> to vector<2x2x128xbf16>
    %38 = vector.shape_cast %37 : vector<2x2x128xbf16> to vector<4x128xbf16>
    %c2_31 = arith.constant 2 : index
    %c1_32 = arith.constant 1 : index
    %c0_33 = arith.constant 0 : index
    %c0_34 = arith.constant 0 : index
    %39 = vector.load %arg3[%c2_31, %c1_32, %c0_33, %c0_34] : memref<3x3x128x128xbf16, #tpu.memory_space<vmem>>, vector<1x1x128x128xbf16>
    %40 = vector.shape_cast %39 : vector<1x1x128x128xbf16> to vector<128x128xbf16>
    %cst_35 = arith.constant dense<0.000000e+00> : vector<4x128xf32>
    %41 = tpu.matmul %38, %40, %cst_35 {dimension_numbers = #tpu.dot_dimension_numbers<[1], [0], [0], [1], [0, 0, 1, 1], [], []>} : vector<4x128xbf16>, vector<128x128xbf16>, vector<4x128xf32> -> vector<4x128xf32>
    %42 = arith.addf %36, %41 : vector<4x128xf32>
    %c0_i32_36 = arith.constant 0 : i32
    %43 = arith.addi %0, %c0_i32_36 : i32
    %c0_37 = arith.constant 0 : index
    %c3 = arith.constant 3 : index
    %44 = arith.index_cast %43 : i32 to index
    %c0_38 = arith.constant 0 : index
    %c0_39 = arith.constant 0 : index
    %45 = vector.load %arg2[%c0_37, %c3, %44, %c0_38, %c0_39] : memref<1x4x3x3x128xbf16, #tpu.memory_space<vmem>>, vector<1x1x2x2x128xbf16>
    %46 = vector.shape_cast %45 : vector<1x1x2x2x128xbf16> to vector<2x2x128xbf16>
    %47 = vector.shape_cast %46 : vector<2x2x128xbf16> to vector<4x128xbf16>
    %c1_40 = arith.constant 1 : index
    %c1_41 = arith.constant 1 : index
    %c0_42 = arith.constant 0 : index
    %c0_43 = arith.constant 0 : index
    %48 = vector.load %arg3[%c1_40, %c1_41, %c0_42, %c0_43] : memref<3x3x128x128xbf16, #tpu.memory_space<vmem>>, vector<1x1x128x128xbf16>
    %49 = vector.shape_cast %48 : vector<1x1x128x128xbf16> to vector<128x128xbf16>
    %cst_44 = arith.constant dense<0.000000e+00> : vector<4x128xf32>
    %50 = tpu.matmul %47, %49, %cst_44 {dimension_numbers = #tpu.dot_dimension_numbers<[1], [0], [0], [1], [0, 0, 1, 1], [], []>} : vector<4x128xbf16>, vector<128x128xbf16>, vector<4x128xf32> -> vector<4x128xf32>
    %51 = arith.addf %42, %50 : vector<4x128xf32>
    %c0_i32_45 = arith.constant 0 : i32
    %52 = arith.addi %0, %c0_i32_45 : i32
    %c0_46 = arith.constant 0 : index
    %c0_47 = arith.constant 0 : index
    %53 = arith.index_cast %52 : i32 to index
    %c1_48 = arith.constant 1 : index
    %c0_49 = arith.constant 0 : index
    %54 = vector.load %arg2[%c0_46, %c0_47, %53, %c1_48, %c0_49] : memref<1x4x3x3x128xbf16, #tpu.memory_space<vmem>>, vector<1x1x3x2x128xbf16>
    %55 = vector.shape_cast %54 : vector<1x1x3x2x128xbf16> to vector<3x2x128xbf16>
    %56 = vector.extract_strided_slice %55 {offsets = [0, 0, 0], sizes = [2, 2, 128], strides = [1, 1, 1]} : vector<3x2x128xbf16> to vector<2x2x128xbf16>
    %57 = vector.shape_cast %56 : vector<2x2x128xbf16> to vector<4x128xbf16>
    %c0_50 = arith.constant 0 : index
    %c2_51 = arith.constant 2 : index
    %c0_52 = arith.constant 0 : index
    %c0_53 = arith.constant 0 : index
    %58 = vector.load %arg3[%c0_50, %c2_51, %c0_52, %c0_53] : memref<3x3x128x128xbf16, #tpu.memory_space<vmem>>, vector<1x1x128x128xbf16>
    %59 = vector.shape_cast %58 : vector<1x1x128x128xbf16> to vector<128x128xbf16>
    %cst_54 = arith.constant dense<0.000000e+00> : vector<4x128xf32>
    %60 = tpu.matmul %57, %59, %cst_54 {dimension_numbers = #tpu.dot_dimension_numbers<[1], [0], [0], [1], [0, 0, 1, 1], [], []>} : vector<4x128xbf16>, vector<128x128xbf16>, vector<4x128xf32> -> vector<4x128xf32>
    %61 = arith.addf %51, %60 : vector<4x128xf32>
    %62 = vector.extract_strided_slice %55 {offsets = [1, 0, 0], sizes = [2, 2, 128], strides = [1, 1, 1]} : vector<3x2x128xbf16> to vector<2x2x128xbf16>
    %63 = vector.shape_cast %62 : vector<2x2x128xbf16> to vector<4x128xbf16>
    %c2_55 = arith.constant 2 : index
    %c2_56 = arith.constant 2 : index
    %c0_57 = arith.constant 0 : index
    %c0_58 = arith.constant 0 : index
    %64 = vector.load %arg3[%c2_55, %c2_56, %c0_57, %c0_58] : memref<3x3x128x128xbf16, #tpu.memory_space<vmem>>, vector<1x1x128x128xbf16>
    %65 = vector.shape_cast %64 : vector<1x1x128x128xbf16> to vector<128x128xbf16>
    %cst_59 = arith.constant dense<0.000000e+00> : vector<4x128xf32>
    %66 = tpu.matmul %63, %65, %cst_59 {dimension_numbers = #tpu.dot_dimension_numbers<[1], [0], [0], [1], [0, 0, 1, 1], [], []>} : vector<4x128xbf16>, vector<128x128xbf16>, vector<4x128xf32> -> vector<4x128xf32>
    %67 = arith.addf %61, %66 : vector<4x128xf32>
    %c0_i32_60 = arith.constant 0 : i32
    %68 = arith.addi %0, %c0_i32_60 : i32
    %c0_61 = arith.constant 0 : index
    %c2_62 = arith.constant 2 : index
    %69 = arith.index_cast %68 : i32 to index
    %c1_63 = arith.constant 1 : index
    %c0_64 = arith.constant 0 : index
    %70 = vector.load %arg2[%c0_61, %c2_62, %69, %c1_63, %c0_64] : memref<1x4x3x3x128xbf16, #tpu.memory_space<vmem>>, vector<1x1x2x2x128xbf16>
    %71 = vector.shape_cast %70 : vector<1x1x2x2x128xbf16> to vector<2x2x128xbf16>
    %72 = vector.shape_cast %71 : vector<2x2x128xbf16> to vector<4x128xbf16>
    %c1_65 = arith.constant 1 : index
    %c2_66 = arith.constant 2 : index
    %c0_67 = arith.constant 0 : index
    %c0_68 = arith.constant 0 : index
    %73 = vector.load %arg3[%c1_65, %c2_66, %c0_67, %c0_68] : memref<3x3x128x128xbf16, #tpu.memory_space<vmem>>, vector<1x1x128x128xbf16>
    %74 = vector.shape_cast %73 : vector<1x1x128x128xbf16> to vector<128x128xbf16>
    %cst_69 = arith.constant dense<0.000000e+00> : vector<4x128xf32>
    %75 = tpu.matmul %72, %74, %cst_69 {dimension_numbers = #tpu.dot_dimension_numbers<[1], [0], [0], [1], [0, 0, 1, 1], [], []>} : vector<4x128xbf16>, vector<128x128xbf16>, vector<4x128xf32> -> vector<4x128xf32>
    %76 = arith.addf %67, %75 : vector<4x128xf32>
    %c0_70 = arith.constant 0 : index
    %c0_71 = arith.constant 0 : index
    %77 = vector.load %arg4[%c0_70, %c0_71] : memref<1x128xf32, #tpu.memory_space<vmem>>, vector<1x128xf32>
    %78 = vector.broadcast %77 : vector<1x128xf32> to vector<4x128xf32>
    %79 = arith.addf %76, %78 : vector<4x128xf32>
    %cst_72 = arith.constant 0.000000e+00 : f32
    %80 = vector.broadcast %cst_72 : f32 to vector<4x128xf32>
    %81 = arith.maximumf %79, %80 : vector<4x128xf32>
    %82 = vector.shape_cast %81 : vector<4x128xf32> to vector<2x2x128xf32>
    %83 = arith.truncf %82 : vector<2x2x128xf32> to vector<2x2x128xbf16>
    %c0_73 = arith.constant 0 : index
    %c0_74 = arith.constant 0 : index
    %c0_75 = arith.constant 0 : index
    %c0_76 = arith.constant 0 : index
    %84 = vector.load %arg5[%c0_73, %c0_74, %c0_75, %c0_76] : memref<1x2x2x128xbf16, #tpu.memory_space<vmem>>, vector<1x2x2x128xbf16>
    %85 = vector.shape_cast %84 : vector<1x2x2x128xbf16> to vector<2x2x128xbf16>
    %86 = vector.shape_cast %83 : vector<2x2x128xbf16> to vector<1x2x2x128xbf16>
    tpu.vector_store %arg5[%c0_73, %c0_74, %c0_75, %c0_76], %86 {strides = array<i32>} : memref<1x2x2x128xbf16, #tpu.memory_space<vmem>>, vector<1x2x2x128xbf16>,
    return
  }
  func.func @transform_0(%arg0: i32, %arg1: i32) -> (i32, i32, i32, i32, i32) {
    %c0_i32 = arith.constant 0 : i32
    %c0_i32_0 = arith.constant 0 : i32
    %c0_i32_1 = arith.constant 0 : i32
    %c0_i32_2 = arith.constant 0 : i32
    %c0_i32_3 = arith.constant 0 : i32
    return %arg0, %c0_i32, %c0_i32_0, %c0_i32_1, %c0_i32_2 : i32, i32, i32, i32, i32
  }
  func.func @transform_1(%arg0: i32, %arg1: i32) -> (i32, i32, i32, i32) {
    %c0_i32 = arith.constant 0 : i32
    %c0_i32_0 = arith.constant 0 : i32
    %c0_i32_1 = arith.constant 0 : i32
    %c0_i32_2 = arith.constant 0 : i32
    %c0_i32_3 = arith.constant 0 : i32
    return %c0_i32, %c0_i32_0, %c0_i32_1, %c0_i32_2 : i32, i32, i32, i32
  }
  func.func @transform_2(%arg0: i32, %arg1: i32) -> (i32, i32) {
    %c0_i32 = arith.constant 0 : i32
    %c0_i32_0 = arith.constant 0 : i32
    %c0_i32_1 = arith.constant 0 : i32
    return %c0_i32, %c0_i32_0 : i32, i32
  }
  func.func @transform_3(%arg0: i32, %arg1: i32) -> (i32, i32, i32, i32) {
    %c0_i32 = arith.constant 0 : i32
    %c0_i32_0 = arith.constant 0 : i32
    %c0_i32_1 = arith.constant 0 : i32
    return %arg0, %arg1, %c0_i32, %c0_i32_0 : i32, i32, i32, i32
  }
}

module attributes {stable_mosaic.version = 11 : i64} {
  func.func @_gemm_bias_kernel(%arg0: i32, %arg1: i32, %arg2: memref<1x4x128xbf16, #tpu.memory_space<vmem>>, %arg3: memref<128x128xbf16, #tpu.memory_space<vmem>>, %arg4: memref<1x128xf32, #tpu.memory_space<vmem>>, %arg5: memref<1x4x128xbf16, #tpu.memory_space<vmem>>) attributes {dimension_semantics = [#tpu.dimension_semantics<parallel>, #tpu.dimension_semantics<parallel>], iteration_bounds = array<i64: 4, 1>, scalar_prefetch = 0 : i64, scratch_operands = 0 : i64, tpu.core_type = #tpu.core_type<tc>, window_params = [{transform_indices = @transform_0, window_bounds = array<i64: 1, 4, 128>}, {pipeline_mode = #tpu.pipeline_mode<synchronous>, transform_indices = @transform_1, window_bounds = array<i64: 128, 128>}, {pipeline_mode = #tpu.pipeline_mode<synchronous>, transform_indices = @transform_2, window_bounds = array<i64: 1, 128>}, {transform_indices = @transform_3, window_bounds = array<i64: 1, 4, 128>}]} {
    %c0 = arith.constant 0 : index
    %c0_0 = arith.constant 0 : index
    %c0_1 = arith.constant 0 : index
    %0 = vector.load %arg2[%c0, %c0_0, %c0_1] : memref<1x4x128xbf16, #tpu.memory_space<vmem>>, vector<1x4x128xbf16>
    %1 = vector.shape_cast %0 : vector<1x4x128xbf16> to vector<4x128xbf16>
    %c0_2 = arith.constant 0 : index
    %c0_3 = arith.constant 0 : index
    %2 = vector.load %arg3[%c0_2, %c0_3] : memref<128x128xbf16, #tpu.memory_space<vmem>>, vector<128x128xbf16>
    %cst = arith.constant dense<0.000000e+00> : vector<4x128xf32>
    %3 = tpu.matmul %1, %2, %cst {dimension_numbers = #tpu.dot_dimension_numbers<[1], [0], [0], [1], [0, 0, 1, 1], [], []>} : vector<4x128xbf16>, vector<128x128xbf16>, vector<4x128xf32> -> vector<4x128xf32>
    %c0_4 = arith.constant 0 : index
    %c0_5 = arith.constant 0 : index
    %4 = vector.load %arg4[%c0_4, %c0_5] : memref<1x128xf32, #tpu.memory_space<vmem>>, vector<1x128xf32>
    %5 = vector.broadcast %4 : vector<1x128xf32> to vector<4x128xf32>
    %6 = arith.addf %3, %5 : vector<4x128xf32>
    %7 = arith.truncf %6 : vector<4x128xf32> to vector<4x128xbf16>
    %c0_6 = arith.constant 0 : index
    %c0_7 = arith.constant 0 : index
    %c0_8 = arith.constant 0 : index
    %8 = vector.load %arg5[%c0_6, %c0_7, %c0_8] : memref<1x4x128xbf16, #tpu.memory_space<vmem>>, vector<1x4x128xbf16>
    %9 = vector.shape_cast %8 : vector<1x4x128xbf16> to vector<4x128xbf16>
    %10 = vector.shape_cast %7 : vector<4x128xbf16> to vector<1x4x128xbf16>
    tpu.vector_store %arg5[%c0_6, %c0_7, %c0_8], %10 {strides = array<i32>} : memref<1x4x128xbf16, #tpu.memory_space<vmem>>, vector<1x4x128xbf16>,
    return
  }
  func.func @transform_0(%arg0: i32, %arg1: i32) -> (i32, i32, i32) {
    %c0_i32 = arith.constant 0 : i32
    %c0_i32_0 = arith.constant 0 : i32
    return %arg0, %arg1, %c0_i32 : i32, i32, i32
  }
  func.func @transform_1(%arg0: i32, %arg1: i32) -> (i32, i32) {
    %c0_i32 = arith.constant 0 : i32
    %c0_i32_0 = arith.constant 0 : i32
    %c0_i32_1 = arith.constant 0 : i32
    return %c0_i32, %c0_i32_0 : i32, i32
  }
  func.func @transform_2(%arg0: i32, %arg1: i32) -> (i32, i32) {
    %c0_i32 = arith.constant 0 : i32
    %c0_i32_0 = arith.constant 0 : i32
    %c0_i32_1 = arith.constant 0 : i32
    return %c0_i32, %c0_i32_0 : i32, i32
  }
  func.func @transform_3(%arg0: i32, %arg1: i32) -> (i32, i32, i32) {
    %c0_i32 = arith.constant 0 : i32
    %c0_i32_0 = arith.constant 0 : i32
    return %arg0, %arg1, %c0_i32 : i32, i32, i32
  }
}

module attributes {stable_mosaic.version = 11 : i64} {
  func.func @_gemm_bias_kernel(%arg0: i32, %arg1: i32, %arg2: memref<1x4x128xbf16, #tpu.memory_space<vmem>>, %arg3: memref<128x128xbf16, #tpu.memory_space<vmem>>, %arg4: memref<1x128xf32, #tpu.memory_space<vmem>>, %arg5: memref<1x4x128xbf16, #tpu.memory_space<vmem>>) attributes {dimension_semantics = [#tpu.dimension_semantics<parallel>, #tpu.dimension_semantics<parallel>], iteration_bounds = array<i64: 4, 1>, scalar_prefetch = 0 : i64, scratch_operands = 0 : i64, tpu.core_type = #tpu.core_type<tc>, window_params = [{transform_indices = @transform_0, window_bounds = array<i64: 1, 4, 128>}, {pipeline_mode = #tpu.pipeline_mode<synchronous>, transform_indices = @transform_1, window_bounds = array<i64: 128, 128>}, {pipeline_mode = #tpu.pipeline_mode<synchronous>, transform_indices = @transform_2, window_bounds = array<i64: 1, 128>}, {transform_indices = @transform_3, window_bounds = array<i64: 1, 4, 128>}]} {
    %c0 = arith.constant 0 : index
    %c0_0 = arith.constant 0 : index
    %c0_1 = arith.constant 0 : index
    %0 = vector.load %arg2[%c0, %c0_0, %c0_1] : memref<1x4x128xbf16, #tpu.memory_space<vmem>>, vector<1x4x128xbf16>
    %1 = vector.shape_cast %0 : vector<1x4x128xbf16> to vector<4x128xbf16>
    %c0_2 = arith.constant 0 : index
    %c0_3 = arith.constant 0 : index
    %2 = vector.load %arg3[%c0_2, %c0_3] : memref<128x128xbf16, #tpu.memory_space<vmem>>, vector<128x128xbf16>
    %cst = arith.constant dense<0.000000e+00> : vector<4x128xf32>
    %3 = tpu.matmul %1, %2, %cst {dimension_numbers = #tpu.dot_dimension_numbers<[1], [0], [0], [1], [0, 0, 1, 1], [], []>} : vector<4x128xbf16>, vector<128x128xbf16>, vector<4x128xf32> -> vector<4x128xf32>
    %c0_4 = arith.constant 0 : index
    %c0_5 = arith.constant 0 : index
    %4 = vector.load %arg4[%c0_4, %c0_5] : memref<1x128xf32, #tpu.memory_space<vmem>>, vector<1x128xf32>
    %5 = vector.broadcast %4 : vector<1x128xf32> to vector<4x128xf32>
    %6 = arith.addf %3, %5 : vector<4x128xf32>
    %cst_6 = arith.constant 0.000000e+00 : f32
    %7 = vector.broadcast %cst_6 : f32 to vector<4x128xf32>
    %8 = arith.maximumf %6, %7 : vector<4x128xf32>
    %9 = arith.truncf %8 : vector<4x128xf32> to vector<4x128xbf16>
    %c0_7 = arith.constant 0 : index
    %c0_8 = arith.constant 0 : index
    %c0_9 = arith.constant 0 : index
    %10 = vector.load %arg5[%c0_7, %c0_8, %c0_9] : memref<1x4x128xbf16, #tpu.memory_space<vmem>>, vector<1x4x128xbf16>
    %11 = vector.shape_cast %10 : vector<1x4x128xbf16> to vector<4x128xbf16>
    %12 = vector.shape_cast %9 : vector<4x128xbf16> to vector<1x4x128xbf16>
    tpu.vector_store %arg5[%c0_7, %c0_8, %c0_9], %12 {strides = array<i32>} : memref<1x4x128xbf16, #tpu.memory_space<vmem>>, vector<1x4x128xbf16>,
    return
  }
  func.func @transform_0(%arg0: i32, %arg1: i32) -> (i32, i32, i32) {
    %c0_i32 = arith.constant 0 : i32
    %c0_i32_0 = arith.constant 0 : i32
    return %arg0, %arg1, %c0_i32 : i32, i32, i32
  }
  func.func @transform_1(%arg0: i32, %arg1: i32) -> (i32, i32) {
    %c0_i32 = arith.constant 0 : i32
    %c0_i32_0 = arith.constant 0 : i32
    %c0_i32_1 = arith.constant 0 : i32
    return %c0_i32, %c0_i32_0 : i32, i32
  }
  func.func @transform_2(%arg0: i32, %arg1: i32) -> (i32, i32) {
    %c0_i32 = arith.constant 0 : i32
    %c0_i32_0 = arith.constant 0 : i32
    %c0_i32_1 = arith.constant 0 : i32
    return %c0_i32, %c0_i32_0 : i32, i32
  }
  func.func @transform_3(%arg0: i32, %arg1: i32) -> (i32, i32, i32) {
    %c0_i32 = arith.constant 0 : i32
    %c0_i32_0 = arith.constant 0 : i32
    return %arg0, %arg1, %c0_i32 : i32, i32, i32
  }
}

module attributes {stable_mosaic.version = 11 : i64} {
  func.func @_gemm_bias_kernel(%arg0: i32, %arg1: i32, %arg2: memref<1x4x128xbf16, #tpu.memory_space<vmem>>, %arg3: memref<128x128xbf16, #tpu.memory_space<vmem>>, %arg4: memref<1x128xf32, #tpu.memory_space<vmem>>, %arg5: memref<1x4x128xbf16, #tpu.memory_space<vmem>>, %arg6: memref<1x4x128xbf16, #tpu.memory_space<vmem>>) attributes {dimension_semantics = [#tpu.dimension_semantics<parallel>, #tpu.dimension_semantics<parallel>], iteration_bounds = array<i64: 4, 1>, scalar_prefetch = 0 : i64, scratch_operands = 0 : i64, tpu.core_type = #tpu.core_type<tc>, window_params = [{transform_indices = @transform_0, window_bounds = array<i64: 1, 4, 128>}, {pipeline_mode = #tpu.pipeline_mode<synchronous>, transform_indices = @transform_1, window_bounds = array<i64: 128, 128>}, {pipeline_mode = #tpu.pipeline_mode<synchronous>, transform_indices = @transform_2, window_bounds = array<i64: 1, 128>}, {transform_indices = @transform_3, window_bounds = array<i64: 1, 4, 128>}, {transform_indices = @transform_4, window_bounds = array<i64: 1, 4, 128>}]} {
    %c0 = arith.constant 0 : index
    %c0_0 = arith.constant 0 : index
    %c0_1 = arith.constant 0 : index
    %0 = vector.load %arg2[%c0, %c0_0, %c0_1] : memref<1x4x128xbf16, #tpu.memory_space<vmem>>, vector<1x4x128xbf16>
    %1 = vector.shape_cast %0 : vector<1x4x128xbf16> to vector<4x128xbf16>
    %c0_2 = arith.constant 0 : index
    %c0_3 = arith.constant 0 : index
    %2 = vector.load %arg3[%c0_2, %c0_3] : memref<128x128xbf16, #tpu.memory_space<vmem>>, vector<128x128xbf16>
    %cst = arith.constant dense<0.000000e+00> : vector<4x128xf32>
    %3 = tpu.matmul %1, %2, %cst {dimension_numbers = #tpu.dot_dimension_numbers<[1], [0], [0], [1], [0, 0, 1, 1], [], []>} : vector<4x128xbf16>, vector<128x128xbf16>, vector<4x128xf32> -> vector<4x128xf32>
    %c0_4 = arith.constant 0 : index
    %c0_5 = arith.constant 0 : index
    %4 = vector.load %arg4[%c0_4, %c0_5] : memref<1x128xf32, #tpu.memory_space<vmem>>, vector<1x128xf32>
    %5 = vector.broadcast %4 : vector<1x128xf32> to vector<4x128xf32>
    %6 = arith.addf %3, %5 : vector<4x128xf32>
    %c0_6 = arith.constant 0 : index
    %c0_7 = arith.constant 0 : index
    %c0_8 = arith.constant 0 : index
    %7 = vector.load %arg5[%c0_6, %c0_7, %c0_8] : memref<1x4x128xbf16, #tpu.memory_space<vmem>>, vector<1x4x128xbf16>
    %8 = vector.shape_cast %7 : vector<1x4x128xbf16> to vector<4x128xbf16>
    %9 = arith.extf %8 : vector<4x128xbf16> to vector<4x128xf32>
    %10 = arith.addf %6, %9 : vector<4x128xf32>
    %cst_9 = arith.constant 0.000000e+00 : f32
    %11 = vector.broadcast %cst_9 : f32 to vector<4x128xf32>
    %12 = arith.maximumf %10, %11 : vector<4x128xf32>
    %13 = arith.truncf %12 : vector<4x128xf32> to vector<4x128xbf16>
    %c0_10 = arith.constant 0 : index
    %c0_11 = arith.constant 0 : index
    %c0_12 = arith.constant 0 : index
    %14 = vector.load %arg6[%c0_10, %c0_11, %c0_12] : memref<1x4x128xbf16, #tpu.memory_space<vmem>>, vector<1x4x128xbf16>
    %15 = vector.shape_cast %14 : vector<1x4x128xbf16> to vector<4x128xbf16>
    %16 = vector.shape_cast %13 : vector<4x128xbf16> to vector<1x4x128xbf16>
    tpu.vector_store %arg6[%c0_10, %c0_11, %c0_12], %16 {strides = array<i32>} : memref<1x4x128xbf16, #tpu.memory_space<vmem>>, vector<1x4x128xbf16>,
    return
  }
  func.func @transform_0(%arg0: i32, %arg1: i32) -> (i32, i32, i32) {
    %c0_i32 = arith.constant 0 : i32
    %c0_i32_0 = arith.constant 0 : i32
    return %arg0, %arg1, %c0_i32 : i32, i32, i32
  }
  func.func @transform_1(%arg0: i32, %arg1: i32) -> (i32, i32) {
    %c0_i32 = arith.constant 0 : i32
    %c0_i32_0 = arith.constant 0 : i32
    %c0_i32_1 = arith.constant 0 : i32
    return %c0_i32, %c0_i32_0 : i32, i32
  }
  func.func @transform_2(%arg0: i32, %arg1: i32) -> (i32, i32) {
    %c0_i32 = arith.constant 0 : i32
    %c0_i32_0 = arith.constant 0 : i32
    %c0_i32_1 = arith.constant 0 : i32
    return %c0_i32, %c0_i32_0 : i32, i32
  }
  func.func @transform_3(%arg0: i32, %arg1: i32) -> (i32, i32, i32) {
    %c0_i32 = arith.constant 0 : i32
    %c0_i32_0 = arith.constant 0 : i32
    return %arg0, %arg1, %c0_i32 : i32, i32, i32
  }
  func.func @transform_4(%arg0: i32, %arg1: i32) -> (i32, i32, i32) {
    %c0_i32 = arith.constant 0 : i32
    %c0_i32_0 = arith.constant 0 : i32
    return %arg0, %arg1, %c0_i32 : i32, i32, i32
  }
}

module attributes {stable_mosaic.version = 11 : i64} {
  func.func @_conv_kxk_kernel(%arg0: i32, %arg1: i32, %arg2: memref<1x4x2x2x128xbf16, #tpu.memory_space<vmem>>, %arg3: memref<3x3x128x128xbf16, #tpu.memory_space<vmem>>, %arg4: memref<1x128xf32, #tpu.memory_space<vmem>>, %arg5: memref<1x1x1x128xbf16, #tpu.memory_space<vmem>>) attributes {dimension_semantics = [#tpu.dimension_semantics<parallel>, #tpu.dimension_semantics<parallel>], iteration_bounds = array<i64: 4, 1>, scalar_prefetch = 0 : i64, scratch_operands = 0 : i64, tpu.core_type = #tpu.core_type<tc>, window_params = [{transform_indices = @transform_0, window_bounds = array<i64: 1, 4, 2, 2, 128>}, {pipeline_mode = #tpu.pipeline_mode<synchronous>, transform_indices = @transform_1, window_bounds = array<i64: 3, 3, 128, 128>}, {pipeline_mode = #tpu.pipeline_mode<synchronous>, transform_indices = @transform_2, window_bounds = array<i64: 1, 128>}, {transform_indices = @transform_3, window_bounds = array<i64: 1, 1, 1, 128>}]} {
    %c1_i32 = arith.constant 1 : i32
    %0 = arith.muli %arg1, %c1_i32 : i32
    %cst = arith.constant 0.000000e+00 : f32
    %1 = vector.broadcast %cst : f32 to vector<1x128xf32>
    %c0_i32 = arith.constant 0 : i32
    %2 = arith.addi %0, %c0_i32 : i32
    %c0 = arith.constant 0 : index
    %c0_0 = arith.constant 0 : index
    %3 = arith.index_cast %2 : i32 to index
    %c0_1 = arith.constant 0 : index
    %c0_2 = arith.constant 0 : index
    %4 = vector.load %arg2[%c0, %c0_0, %3, %c0_1, %c0_2] : memref<1x4x2x2x128xbf16, #tpu.memory_space<vmem>>, vector<1x1x2x1x128xbf16>
    %5 = vector.shape_cast %4 : vector<1x1x2x1x128xbf16> to vector<2x1x128xbf16>
    %6 = vector.extract_strided_slice %5 {offsets = [0, 0, 0], sizes = [1, 1, 128], strides = [1, 1, 1]} : vector<2x1x128xbf16> to vector<1x1x128xbf16>
    %7 = vector.shape_cast %6 : vector<1x1x128xbf16> to vector<1x128xbf16>
    %c0_3 = arith.constant 0 : index
    %c0_4 = arith.constant 0 : index
    %c0_5 = arith.constant 0 : index
    %c0_6 = arith.constant 0 : index
    %8 = vector.load %arg3[%c0_3, %c0_4, %c0_5, %c0_6] : memref<3x3x128x128xbf16, #tpu.memory_space<vmem>>, vector<1x1x128x128xbf16>
    %9 = vector.shape_cast %8 : vector<1x1x128x128xbf16> to vector<128x128xbf16>
    %cst_7 = arith.constant dense<0.000000e+00> : vector<1x128xf32>
    %10 = tpu.matmul %7, %9, %cst_7 {dimension_numbers = #tpu.dot_dimension_numbers<[1], [0], [0], [1], [0, 0, 1, 1], [], []>} : vector<1x128xbf16>, vector<128x128xbf16>, vector<1x128xf32> -> vector<1x128xf32>
    %11 = arith.addf %1, %10 : vector<1x128xf32>
    %12 = vector.extract_strided_slice %5 {offsets = [1, 0, 0], sizes = [1, 1, 128], strides = [1, 1, 1]} : vector<2x1x128xbf16> to vector<1x1x128xbf16>
    %13 = vector.shape_cast %12 : vector<1x1x128xbf16> to vector<1x128xbf16>
    %c2 = arith.constant 2 : index
    %c0_8 = arith.constant 0 : index
    %c0_9 = arith.constant 0 : index
    %c0_10 = arith.constant 0 : index
    %14 = vector.load %arg3[%c2, %c0_8, %c0_9, %c0_10] : memref<3x3x128x128xbf16, #tpu.memory_space<vmem>>, vector<1x1x128x128xbf16>
    %15 = vector.shape_cast %14 : vector<1x1x128x128xbf16> to vector<128x128xbf16>
    %cst_11 = arith.constant dense<0.000000e+00> : vector<1x128xf32>
    %16 = tpu.matmul %13, %15, %cst_11 {dimension_numbers = #tpu.dot_dimension_numbers<[1], [0], [0], [1], [0, 0, 1, 1], [], []>} : vector<1x128xbf16>, vector<128x128xbf16>, vector<1x128xf32> -> vector<1x128xf32>
    %17 = arith.addf %11, %16 : vector<1x128xf32>
    %c0_i32_12 = arith.constant 0 : i32
    %18 = arith.addi %0, %c0_i32_12 : i32
    %c0_13 = arith.constant 0 : index
    %c2_14 = arith.constant 2 : index
    %19 = arith.index_cast %18 : i32 to index
    %c0_15 = arith.constant 0 : index
    %c0_16 = arith.constant 0 : index
    %20 = vector.load %arg2[%c0_13, %c2_14, %19, %c0_15, %c0_16] : memref<1x4x2x2x128xbf16, #tpu.memory_space<vmem>>, vector<1x1x1x1x128xbf16>
    %21 = vector.shape_cast %20 : vector<1x1x1x1x128xbf16> to vector<1x1x128xbf16>
    %22 = vector.shape_cast %21 : vector<1x1x128xbf16> to vector<1x128xbf16>
    %c1 = arith.constant 1 : index
    %c0_17 = arith.constant 0 : index
    %c0_18 = arith.constant 0 : index
    %c0_19 = arith.constant 0 : index
    %23 = vector.load %arg3[%c1, %c0_17, %c0_18, %c0_19] : memref<3x3x128x128xbf16, #tpu.memory_space<vmem>>, vector<1x1x128x128xbf16>
    %24 = vector.shape_cast %23 : vector<1x1x128x128xbf16> to vector<128x128xbf16>
    %cst_20 = arith.constant dense<0.000000e+00> : vector<1x128xf32>
    %25 = tpu.matmul %22, %24, %cst_20 {dimension_numbers = #tpu.dot_dimension_numbers<[1], [0], [0], [1], [0, 0, 1, 1], [], []>} : vector<1x128xbf16>, vector<128x128xbf16>, vector<1x128xf32> -> vector<1x128xf32>
    %26 = arith.addf %17, %25 : vector<1x128xf32>
    %c0_i32_21 = arith.constant 0 : i32
    %27 = arith.addi %0, %c0_i32_21 : i32
    %c0_22 = arith.constant 0 : index
    %c1_23 = arith.constant 1 : index
    %28 = arith.index_cast %27 : i32 to index
    %c0_24 = arith.constant 0 : index
    %c0_25 = arith.constant 0 : index
    %29 = vector.load %arg2[%c0_22, %c1_23, %28, %c0_24, %c0_25] : memref<1x4x2x2x128xbf16, #tpu.memory_space<vmem>>, vector<1x1x2x1x128xbf16>
    %30 = vector.shape_cast %29 : vector<1x1x2x1x128xbf16> to vector<2x1x128xbf16>
    %31 = vector.extract_strided_slice %30 {offsets = [0, 0, 0], sizes = [1, 1, 128], strides = [1, 1, 1]} : vector<2x1x128xbf16> to vector<1x1x128xbf16>
    %32 = vector.shape_cast %31 : vector<1x1x128xbf16> to vector<1x128xbf16>
    %c0_26 = arith.constant 0 : index
    %c1_27 = arith.constant 1 : index
    %c0_28 = arith.constant 0 : index
    %c0_29 = arith.constant 0 : index
    %33 = vector.load %arg3[%c0_26, %c1_27, %c0_28, %c0_29] : memref<3x3x128x128xbf16, #tpu.memory_space<vmem>>, vector<1x1x128x128xbf16>
    %34 = vector.shape_cast %33 : vector<1x1x128x128xbf16> to vector<128x128xbf16>
    %cst_30 = arith.constant dense<0.000000e+00> : vector<1x128xf32>
    %35 = tpu.matmul %32, %34, %cst_30 {dimension_numbers = #tpu.dot_dimension_numbers<[1], [0], [0], [1], [0, 0, 1, 1], [], []>} : vector<1x128xbf16>, vector<128x128xbf16>, vector<1x128xf32> -> vector<1x128xf32>
    %36 = arith.addf %26, %35 : vector<1x128xf32>
    %37 = vector.extract_strided_slice %30 {offsets = [1, 0, 0], sizes = [1, 1, 128], strides = [1, 1, 1]} : vector<2x1x128xbf16> to vector<1x1x128xbf16>
    %38 = vector.shape_cast %37 : vector<1x1x128xbf16> to vector<1x128xbf16>
    %c2_31 = arith.constant 2 : index
    %c1_32 = arith.constant 1 : index
    %c0_33 = arith.constant 0 : index
    %c0_34 = arith.constant 0 : index
    %39 = vector.load %arg3[%c2_31, %c1_32, %c0_33, %c0_34] : memref<3x3x128x128xbf16, #tpu.memory_space<vmem>>, vector<1x1x128x128xbf16>
    %40 = vector.shape_cast %39 : vector<1x1x128x128xbf16> to vector<128x128xbf16>
    %cst_35 = arith.constant dense<0.000000e+00> : vector<1x128xf32>
    %41 = tpu.matmul %38, %40, %cst_35 {dimension_numbers = #tpu.dot_dimension_numbers<[1], [0], [0], [1], [0, 0, 1, 1], [], []>} : vector<1x128xbf16>, vector<128x128xbf16>, vector<1x128xf32> -> vector<1x128xf32>
    %42 = arith.addf %36, %41 : vector<1x128xf32>
    %c0_i32_36 = arith.constant 0 : i32
    %43 = arith.addi %0, %c0_i32_36 : i32
    %c0_37 = arith.constant 0 : index
    %c3 = arith.constant 3 : index
    %44 = arith.index_cast %43 : i32 to index
    %c0_38 = arith.constant 0 : index
    %c0_39 = arith.constant 0 : index
    %45 = vector.load %arg2[%c0_37, %c3, %44, %c0_38, %c0_39] : memref<1x4x2x2x128xbf16, #tpu.memory_space<vmem>>, vector<1x1x1x1x128xbf16>
    %46 = vector.shape_cast %45 : vector<1x1x1x1x128xbf16> to vector<1x1x128xbf16>
    %47 = vector.shape_cast %46 : vector<1x1x128xbf16> to vector<1x128xbf16>
    %c1_40 = arith.constant 1 : index
    %c1_41 = arith.constant 1 : index
    %c0_42 = arith.constant 0 : index
    %c0_43 = arith.constant 0 : index
    %48 = vector.load %arg3[%c1_40, %c1_41, %c0_42, %c0_43] : memref<3x3x128x128xbf16, #tpu.memory_space<vmem>>, vector<1x1x128x128xbf16>
    %49 = vector.shape_cast %48 : vector<1x1x128x128xbf16> to vector<128x128xbf16>
    %cst_44 = arith.constant dense<0.000000e+00> : vector<1x128xf32>
    %50 = tpu.matmul %47, %49, %cst_44 {dimension_numbers = #tpu.dot_dimension_numbers<[1], [0], [0], [1], [0, 0, 1, 1], [], []>} : vector<1x128xbf16>, vector<128x128xbf16>, vector<1x128xf32> -> vector<1x128xf32>
    %51 = arith.addf %42, %50 : vector<1x128xf32>
    %c0_i32_45 = arith.constant 0 : i32
    %52 = arith.addi %0, %c0_i32_45 : i32
    %c0_46 = arith.constant 0 : index
    %c0_47 = arith.constant 0 : index
    %53 = arith.index_cast %52 : i32 to index
    %c1_48 = arith.constant 1 : index
    %c0_49 = arith.constant 0 : index
    %54 = vector.load %arg2[%c0_46, %c0_47, %53, %c1_48, %c0_49] : memref<1x4x2x2x128xbf16, #tpu.memory_space<vmem>>, vector<1x1x2x1x128xbf16>
    %55 = vector.shape_cast %54 : vector<1x1x2x1x128xbf16> to vector<2x1x128xbf16>
    %56 = vector.extract_strided_slice %55 {offsets = [0, 0, 0], sizes = [1, 1, 128], strides = [1, 1, 1]} : vector<2x1x128xbf16> to vector<1x1x128xbf16>
    %57 = vector.shape_cast %56 : vector<1x1x128xbf16> to vector<1x128xbf16>
    %c0_50 = arith.constant 0 : index
    %c2_51 = arith.constant 2 : index
    %c0_52 = arith.constant 0 : index
    %c0_53 = arith.constant 0 : index
    %58 = vector.load %arg3[%c0_50, %c2_51, %c0_52, %c0_53] : memref<3x3x128x128xbf16, #tpu.memory_space<vmem>>, vector<1x1x128x128xbf16>
    %59 = vector.shape_cast %58 : vector<1x1x128x128xbf16> to vector<128x128xbf16>
    %cst_54 = arith.constant dense<0.000000e+00> : vector<1x128xf32>
    %60 = tpu.matmul %57, %59, %cst_54 {dimension_numbers = #tpu.dot_dimension_numbers<[1], [0], [0], [1], [0, 0, 1, 1], [], []>} : vector<1x128xbf16>, vector<128x128xbf16>, vector<1x128xf32> -> vector<1x128xf32>
    %61 = arith.addf %51, %60 : vector<1x128xf32>
    %62 = vector.extract_strided_slice %55 {offsets = [1, 0, 0], sizes = [1, 1, 128], strides = [1, 1, 1]} : vector<2x1x128xbf16> to vector<1x1x128xbf16>
    %63 = vector.shape_cast %62 : vector<1x1x128xbf16> to vector<1x128xbf16>
    %c2_55 = arith.constant 2 : index
    %c2_56 = arith.constant 2 : index
    %c0_57 = arith.constant 0 : index
    %c0_58 = arith.constant 0 : index
    %64 = vector.load %arg3[%c2_55, %c2_56, %c0_57, %c0_58] : memref<3x3x128x128xbf16, #tpu.memory_space<vmem>>, vector<1x1x128x128xbf16>
    %65 = vector.shape_cast %64 : vector<1x1x128x128xbf16> to vector<128x128xbf16>
    %cst_59 = arith.constant dense<0.000000e+00> : vector<1x128xf32>
    %66 = tpu.matmul %63, %65, %cst_59 {dimension_numbers = #tpu.dot_dimension_numbers<[1], [0], [0], [1], [0, 0, 1, 1], [], []>} : vector<1x128xbf16>, vector<128x128xbf16>, vector<1x128xf32> -> vector<1x128xf32>
    %67 = arith.addf %61, %66 : vector<1x128xf32>
    %c0_i32_60 = arith.constant 0 : i32
    %68 = arith.addi %0, %c0_i32_60 : i32
    %c0_61 = arith.constant 0 : index
    %c2_62 = arith.constant 2 : index
    %69 = arith.index_cast %68 : i32 to index
    %c1_63 = arith.constant 1 : index
    %c0_64 = arith.constant 0 : index
    %70 = vector.load %arg2[%c0_61, %c2_62, %69, %c1_63, %c0_64] : memref<1x4x2x2x128xbf16, #tpu.memory_space<vmem>>, vector<1x1x1x1x128xbf16>
    %71 = vector.shape_cast %70 : vector<1x1x1x1x128xbf16> to vector<1x1x128xbf16>
    %72 = vector.shape_cast %71 : vector<1x1x128xbf16> to vector<1x128xbf16>
    %c1_65 = arith.constant 1 : index
    %c2_66 = arith.constant 2 : index
    %c0_67 = arith.constant 0 : index
    %c0_68 = arith.constant 0 : index
    %73 = vector.load %arg3[%c1_65, %c2_66, %c0_67, %c0_68] : memref<3x3x128x128xbf16, #tpu.memory_space<vmem>>, vector<1x1x128x128xbf16>
    %74 = vector.shape_cast %73 : vector<1x1x128x128xbf16> to vector<128x128xbf16>
    %cst_69 = arith.constant dense<0.000000e+00> : vector<1x128xf32>
    %75 = tpu.matmul %72, %74, %cst_69 {dimension_numbers = #tpu.dot_dimension_numbers<[1], [0], [0], [1], [0, 0, 1, 1], [], []>} : vector<1x128xbf16>, vector<128x128xbf16>, vector<1x128xf32> -> vector<1x128xf32>
    %76 = arith.addf %67, %75 : vector<1x128xf32>
    %c0_70 = arith.constant 0 : index
    %c0_71 = arith.constant 0 : index
    %77 = vector.load %arg4[%c0_70, %c0_71] : memref<1x128xf32, #tpu.memory_space<vmem>>, vector<1x128xf32>
    %78 = arith.addf %76, %77 : vector<1x128xf32>
    %cst_72 = arith.constant 0.000000e+00 : f32
    %79 = vector.broadcast %cst_72 : f32 to vector<1x128xf32>
    %80 = arith.maximumf %78, %79 : vector<1x128xf32>
    %81 = vector.shape_cast %80 : vector<1x128xf32> to vector<1x1x128xf32>
    %82 = arith.truncf %81 : vector<1x1x128xf32> to vector<1x1x128xbf16>
    %c0_73 = arith.constant 0 : index
    %c0_74 = arith.constant 0 : index
    %c0_75 = arith.constant 0 : index
    %c0_76 = arith.constant 0 : index
    %83 = vector.load %arg5[%c0_73, %c0_74, %c0_75, %c0_76] : memref<1x1x1x128xbf16, #tpu.memory_space<vmem>>, vector<1x1x1x128xbf16>
    %84 = vector.shape_cast %83 : vector<1x1x1x128xbf16> to vector<1x1x128xbf16>
    %85 = vector.shape_cast %82 : vector<1x1x128xbf16> to vector<1x1x1x128xbf16>
    tpu.vector_store %arg5[%c0_73, %c0_74, %c0_75, %c0_76], %85 {strides = array<i32>} : memref<1x1x1x128xbf16, #tpu.memory_space<vmem>>, vector<1x1x1x128xbf16>,
    return
  }
  func.func @transform_0(%arg0: i32, %arg1: i32) -> (i32, i32, i32, i32, i32) {
    %c0_i32 = arith.constant 0 : i32
    %c0_i32_0 = arith.constant 0 : i32
    %c0_i32_1 = arith.constant 0 : i32
    %c0_i32_2 = arith.constant 0 : i32
    %c0_i32_3 = arith.constant 0 : i32
    return %arg0, %c0_i32, %c0_i32_0, %c0_i32_1, %c0_i32_2 : i32, i32, i32, i32, i32
  }
  func.func @transform_1(%arg0: i32, %arg1: i32) -> (i32, i32, i32, i32) {
    %c0_i32 = arith.constant 0 : i32
    %c0_i32_0 = arith.constant 0 : i32
    %c0_i32_1 = arith.constant 0 : i32
    %c0_i32_2 = arith.constant 0 : i32
    %c0_i32_3 = arith.constant 0 : i32
    return %c0_i32, %c0_i32_0, %c0_i32_1, %c0_i32_2 : i32, i32, i32, i32
  }
  func.func @transform_2(%arg0: i32, %arg1: i32) -> (i32, i32) {
    %c0_i32 = arith.constant 0 : i32
    %c0_i32_0 = arith.constant 0 : i32
    %c0_i32_1 = arith.constant 0 : i32
    return %c0_i32, %c0_i32_0 : i32, i32
  }
  func.func @transform_3(%arg0: i32, %arg1: i32) -> (i32, i32, i32, i32) {
    %c0_i32 = arith.constant 0 : i32
    %c0_i32_0 = arith.constant 0 : i32
    %c0_i32_1 = arith.constant 0 : i32
    return %arg0, %arg1, %c0_i32, %c0_i32_0 : i32, i32, i32, i32
  }
}

module attributes {stable_mosaic.version = 11 : i64} {
  func.func @_gemm_bias_kernel(%arg0: i32, %arg1: i32, %arg2: memref<1x1x128xbf16, #tpu.memory_space<vmem>>, %arg3: memref<128x128xbf16, #tpu.memory_space<vmem>>, %arg4: memref<1x128xf32, #tpu.memory_space<vmem>>, %arg5: memref<1x1x128xbf16, #tpu.memory_space<vmem>>) attributes {dimension_semantics = [#tpu.dimension_semantics<parallel>, #tpu.dimension_semantics<parallel>], iteration_bounds = array<i64: 4, 1>, scalar_prefetch = 0 : i64, scratch_operands = 0 : i64, tpu.core_type = #tpu.core_type<tc>, window_params = [{transform_indices = @transform_0, window_bounds = array<i64: 1, 1, 128>}, {pipeline_mode = #tpu.pipeline_mode<synchronous>, transform_indices = @transform_1, window_bounds = array<i64: 128, 128>}, {pipeline_mode = #tpu.pipeline_mode<synchronous>, transform_indices = @transform_2, window_bounds = array<i64: 1, 128>}, {transform_indices = @transform_3, window_bounds = array<i64: 1, 1, 128>}]} {
    %c0 = arith.constant 0 : index
    %c0_0 = arith.constant 0 : index
    %c0_1 = arith.constant 0 : index
    %0 = vector.load %arg2[%c0, %c0_0, %c0_1] : memref<1x1x128xbf16, #tpu.memory_space<vmem>>, vector<1x1x128xbf16>
    %1 = vector.shape_cast %0 : vector<1x1x128xbf16> to vector<1x128xbf16>
    %c0_2 = arith.constant 0 : index
    %c0_3 = arith.constant 0 : index
    %2 = vector.load %arg3[%c0_2, %c0_3] : memref<128x128xbf16, #tpu.memory_space<vmem>>, vector<128x128xbf16>
    %cst = arith.constant dense<0.000000e+00> : vector<1x128xf32>
    %3 = tpu.matmul %1, %2, %cst {dimension_numbers = #tpu.dot_dimension_numbers<[1], [0], [0], [1], [0, 0, 1, 1], [], []>} : vector<1x128xbf16>, vector<128x128xbf16>, vector<1x128xf32> -> vector<1x128xf32>
    %c0_4 = arith.constant 0 : index
    %c0_5 = arith.constant 0 : index
    %4 = vector.load %arg4[%c0_4, %c0_5] : memref<1x128xf32, #tpu.memory_space<vmem>>, vector<1x128xf32>
    %5 = arith.addf %3, %4 : vector<1x128xf32>
    %6 = arith.truncf %5 : vector<1x128xf32> to vector<1x128xbf16>
    %c0_6 = arith.constant 0 : index
    %c0_7 = arith.constant 0 : index
    %c0_8 = arith.constant 0 : index
    %7 = vector.load %arg5[%c0_6, %c0_7, %c0_8] : memref<1x1x128xbf16, #tpu.memory_space<vmem>>, vector<1x1x128xbf16>
    %8 = vector.shape_cast %7 : vector<1x1x128xbf16> to vector<1x128xbf16>
    %9 = vector.shape_cast %6 : vector<1x128xbf16> to vector<1x1x128xbf16>
    tpu.vector_store %arg5[%c0_6, %c0_7, %c0_8], %9 {strides = array<i32>} : memref<1x1x128xbf16, #tpu.memory_space<vmem>>, vector<1x1x128xbf16>,
    return
  }
  func.func @transform_0(%arg0: i32, %arg1: i32) -> (i32, i32, i32) {
    %c0_i32 = arith.constant 0 : i32
    %c0_i32_0 = arith.constant 0 : i32
    return %arg0, %arg1, %c0_i32 : i32, i32, i32
  }
  func.func @transform_1(%arg0: i32, %arg1: i32) -> (i32, i32) {
    %c0_i32 = arith.constant 0 : i32
    %c0_i32_0 = arith.constant 0 : i32
    %c0_i32_1 = arith.constant 0 : i32
    return %c0_i32, %c0_i32_0 : i32, i32
  }
  func.func @transform_2(%arg0: i32, %arg1: i32) -> (i32, i32) {
    %c0_i32 = arith.constant 0 : i32
    %c0_i32_0 = arith.constant 0 : i32
    %c0_i32_1 = arith.constant 0 : i32
    return %c0_i32, %c0_i32_0 : i32, i32
  }
  func.func @transform_3(%arg0: i32, %arg1: i32) -> (i32, i32, i32) {
    %c0_i32 = arith.constant 0 : i32
    %c0_i32_0 = arith.constant 0 : i32
    return %arg0, %arg1, %c0_i32 : i32, i32, i32
  }
}

module attributes {stable_mosaic.version = 11 : i64} {
  func.func @_gemm_bias_kernel(%arg0: i32, %arg1: i32, %arg2: memref<1x1x128xbf16, #tpu.memory_space<vmem>>, %arg3: memref<128x128xbf16, #tpu.memory_space<vmem>>, %arg4: memref<1x128xf32, #tpu.memory_space<vmem>>, %arg5: memref<1x1x128xbf16, #tpu.memory_space<vmem>>, %arg6: memref<1x1x128xbf16, #tpu.memory_space<vmem>>) attributes {dimension_semantics = [#tpu.dimension_semantics<parallel>, #tpu.dimension_semantics<parallel>], iteration_bounds = array<i64: 4, 1>, scalar_prefetch = 0 : i64, scratch_operands = 0 : i64, tpu.core_type = #tpu.core_type<tc>, window_params = [{transform_indices = @transform_0, window_bounds = array<i64: 1, 1, 128>}, {pipeline_mode = #tpu.pipeline_mode<synchronous>, transform_indices = @transform_1, window_bounds = array<i64: 128, 128>}, {pipeline_mode = #tpu.pipeline_mode<synchronous>, transform_indices = @transform_2, window_bounds = array<i64: 1, 128>}, {transform_indices = @transform_3, window_bounds = array<i64: 1, 1, 128>}, {transform_indices = @transform_4, window_bounds = array<i64: 1, 1, 128>}]} {
    %c0 = arith.constant 0 : index
    %c0_0 = arith.constant 0 : index
    %c0_1 = arith.constant 0 : index
    %0 = vector.load %arg2[%c0, %c0_0, %c0_1] : memref<1x1x128xbf16, #tpu.memory_space<vmem>>, vector<1x1x128xbf16>
    %1 = vector.shape_cast %0 : vector<1x1x128xbf16> to vector<1x128xbf16>
    %c0_2 = arith.constant 0 : index
    %c0_3 = arith.constant 0 : index
    %2 = vector.load %arg3[%c0_2, %c0_3] : memref<128x128xbf16, #tpu.memory_space<vmem>>, vector<128x128xbf16>
    %cst = arith.constant dense<0.000000e+00> : vector<1x128xf32>
    %3 = tpu.matmul %1, %2, %cst {dimension_numbers = #tpu.dot_dimension_numbers<[1], [0], [0], [1], [0, 0, 1, 1], [], []>} : vector<1x128xbf16>, vector<128x128xbf16>, vector<1x128xf32> -> vector<1x128xf32>
    %c0_4 = arith.constant 0 : index
    %c0_5 = arith.constant 0 : index
    %4 = vector.load %arg4[%c0_4, %c0_5] : memref<1x128xf32, #tpu.memory_space<vmem>>, vector<1x128xf32>
    %5 = arith.addf %3, %4 : vector<1x128xf32>
    %c0_6 = arith.constant 0 : index
    %c0_7 = arith.constant 0 : index
    %c0_8 = arith.constant 0 : index
    %6 = vector.load %arg5[%c0_6, %c0_7, %c0_8] : memref<1x1x128xbf16, #tpu.memory_space<vmem>>, vector<1x1x128xbf16>
    %7 = vector.shape_cast %6 : vector<1x1x128xbf16> to vector<1x128xbf16>
    %8 = arith.extf %7 : vector<1x128xbf16> to vector<1x128xf32>
    %9 = arith.addf %5, %8 : vector<1x128xf32>
    %cst_9 = arith.constant 0.000000e+00 : f32
    %10 = vector.broadcast %cst_9 : f32 to vector<1x128xf32>
    %11 = arith.maximumf %9, %10 : vector<1x128xf32>
    %12 = arith.truncf %11 : vector<1x128xf32> to vector<1x128xbf16>
    %c0_10 = arith.constant 0 : index
    %c0_11 = arith.constant 0 : index
    %c0_12 = arith.constant 0 : index
    %13 = vector.load %arg6[%c0_10, %c0_11, %c0_12] : memref<1x1x128xbf16, #tpu.memory_space<vmem>>, vector<1x1x128xbf16>
    %14 = vector.shape_cast %13 : vector<1x1x128xbf16> to vector<1x128xbf16>
    %15 = vector.shape_cast %12 : vector<1x128xbf16> to vector<1x1x128xbf16>
    tpu.vector_store %arg6[%c0_10, %c0_11, %c0_12], %15 {strides = array<i32>} : memref<1x1x128xbf16, #tpu.memory_space<vmem>>, vector<1x1x128xbf16>,
    return
  }
  func.func @transform_0(%arg0: i32, %arg1: i32) -> (i32, i32, i32) {
    %c0_i32 = arith.constant 0 : i32
    %c0_i32_0 = arith.constant 0 : i32
    return %arg0, %arg1, %c0_i32 : i32, i32, i32
  }
  func.func @transform_1(%arg0: i32, %arg1: i32) -> (i32, i32) {
    %c0_i32 = arith.constant 0 : i32
    %c0_i32_0 = arith.constant 0 : i32
    %c0_i32_1 = arith.constant 0 : i32
    return %c0_i32, %c0_i32_0 : i32, i32
  }
  func.func @transform_2(%arg0: i32, %arg1: i32) -> (i32, i32) {
    %c0_i32 = arith.constant 0 : i32
    %c0_i32_0 = arith.constant 0 : i32
    %c0_i32_1 = arith.constant 0 : i32
    return %c0_i32, %c0_i32_0 : i32, i32
  }
  func.func @transform_3(%arg0: i32, %arg1: i32) -> (i32, i32, i32) {
    %c0_i32 = arith.constant 0 : i32
    %c0_i32_0 = arith.constant 0 : i32
    return %arg0, %arg1, %c0_i32 : i32, i32, i32
  }
  func.func @transform_4(%arg0: i32, %arg1: i32) -> (i32, i32, i32) {
    %c0_i32 = arith.constant 0 : i32
    %c0_i32_0 = arith.constant 0 : i32
    return %arg0, %arg1, %c0_i32 : i32, i32, i32
  }
}

module attributes {stable_mosaic.version = 11 : i64} {
  func.func @_l1_partial_kernel(%arg0: i32, %arg1: i32, %arg2: memref<1x1x128xbf16, #tpu.memory_space<vmem>>, %arg3: memref<1x1x128xbf16, #tpu.memory_space<vmem>>, %arg4: memref<1x1x8x128xf32, #tpu.memory_space<vmem>>) attributes {dimension_semantics = [#tpu.dimension_semantics<parallel>, #tpu.dimension_semantics<parallel>], iteration_bounds = array<i64: 2, 1>, scalar_prefetch = 0 : i64, scratch_operands = 0 : i64, tpu.core_type = #tpu.core_type<tc>, window_params = [{transform_indices = @transform_0, window_bounds = array<i64: 1, 1, 128>}, {transform_indices = @transform_1, window_bounds = array<i64: 1, 1, 128>}, {transform_indices = @transform_2, window_bounds = array<i64: 1, 1, 8, 128>}]} {
    %c0 = arith.constant 0 : index
    %c0_0 = arith.constant 0 : index
    %c0_1 = arith.constant 0 : index
    %0 = vector.load %arg2[%c0, %c0_0, %c0_1] : memref<1x1x128xbf16, #tpu.memory_space<vmem>>, vector<1x1x128xbf16>
    %1 = vector.shape_cast %0 : vector<1x1x128xbf16> to vector<1x128xbf16>
    %2 = arith.extf %1 : vector<1x128xbf16> to vector<1x128xf32>
    %c0_2 = arith.constant 0 : index
    %c0_3 = arith.constant 0 : index
    %c0_4 = arith.constant 0 : index
    %3 = vector.load %arg3[%c0_2, %c0_3, %c0_4] : memref<1x1x128xbf16, #tpu.memory_space<vmem>>, vector<1x1x128xbf16>
    %4 = vector.shape_cast %3 : vector<1x1x128xbf16> to vector<1x128xbf16>
    %5 = arith.extf %4 : vector<1x128xbf16> to vector<1x128xf32>
    %6 = arith.subf %2, %5 : vector<1x128xf32>
    %7 = math.absf %6 : vector<1x128xf32>
    %cst = arith.constant 0.000000e+00 : f32
    %8 = vector.broadcast %cst : f32 to vector<1x1x8x128xf32>
    %9 = vector.shape_cast %7 : vector<1x128xf32> to vector<1x1x128xf32>
    %cst_5 = arith.constant dense<0.000000e+00> : vector<1xf32>
    %10 = vector.multi_reduction <add>, %9, %cst_5 [1, 2] : vector<1x1x128xf32> to vector<1xf32>
    %11 = vector.shape_cast %10 : vector<1xf32> to vector<1x1x1xf32>
    %12 = vector.extract %11[0, 0, 0] : f32 from vector<1x1x1xf32>
    %13 = vector.broadcast %12 : f32 to vector<1x1x8x128xf32>
    %14 = arith.addf %8, %13 : vector<1x1x8x128xf32>
    %c0_6 = arith.constant 0 : index
    %c0_7 = arith.constant 0 : index
    %c0_8 = arith.constant 0 : index
    %c0_9 = arith.constant 0 : index
    %15 = vector.load %arg4[%c0_6, %c0_7, %c0_8, %c0_9] : memref<1x1x8x128xf32, #tpu.memory_space<vmem>>, vector<1x1x8x128xf32>
    tpu.vector_store %arg4[%c0_6, %c0_7, %c0_8, %c0_9], %14 {strides = array<i32>} : memref<1x1x8x128xf32, #tpu.memory_space<vmem>>, vector<1x1x8x128xf32>,
    return
  }
  func.func @transform_0(%arg0: i32, %arg1: i32) -> (i32, i32, i32) {
    %c0_i32 = arith.constant 0 : i32
    %c0_i32_0 = arith.constant 0 : i32
    return %arg0, %arg1, %c0_i32 : i32, i32, i32
  }
  func.func @transform_1(%arg0: i32, %arg1: i32) -> (i32, i32, i32) {
    %c0_i32 = arith.constant 0 : i32
    %c0_i32_0 = arith.constant 0 : i32
    return %arg0, %arg1, %c0_i32 : i32, i32, i32
  }
  func.func @transform_2(%arg0: i32, %arg1: i32) -> (i32, i32, i32, i32) {
    %c0_i32 = arith.constant 0 : i32
    %c0_i32_0 = arith.constant 0 : i32
    %c0_i32_1 = arith.constant 0 : i32
    return %arg0, %arg1, %c0_i32, %c0_i32_0 : i32, i32, i32, i32
  }
}

module attributes {stable_mosaic.version = 11 : i64} {
  func.func @_l1_partial_kernel(%arg0: i32, %arg1: i32, %arg2: memref<1x4x128xbf16, #tpu.memory_space<vmem>>, %arg3: memref<1x4x128xbf16, #tpu.memory_space<vmem>>, %arg4: memref<1x1x8x128xf32, #tpu.memory_space<vmem>>) attributes {dimension_semantics = [#tpu.dimension_semantics<parallel>, #tpu.dimension_semantics<parallel>], iteration_bounds = array<i64: 2, 1>, scalar_prefetch = 0 : i64, scratch_operands = 0 : i64, tpu.core_type = #tpu.core_type<tc>, window_params = [{transform_indices = @transform_0, window_bounds = array<i64: 1, 4, 128>}, {transform_indices = @transform_1, window_bounds = array<i64: 1, 4, 128>}, {transform_indices = @transform_2, window_bounds = array<i64: 1, 1, 8, 128>}]} {
    %c0 = arith.constant 0 : index
    %c0_0 = arith.constant 0 : index
    %c0_1 = arith.constant 0 : index
    %0 = vector.load %arg2[%c0, %c0_0, %c0_1] : memref<1x4x128xbf16, #tpu.memory_space<vmem>>, vector<1x4x128xbf16>
    %1 = vector.shape_cast %0 : vector<1x4x128xbf16> to vector<4x128xbf16>
    %2 = arith.extf %1 : vector<4x128xbf16> to vector<4x128xf32>
    %c0_2 = arith.constant 0 : index
    %c0_3 = arith.constant 0 : index
    %c0_4 = arith.constant 0 : index
    %3 = vector.load %arg3[%c0_2, %c0_3, %c0_4] : memref<1x4x128xbf16, #tpu.memory_space<vmem>>, vector<1x4x128xbf16>
    %4 = vector.shape_cast %3 : vector<1x4x128xbf16> to vector<4x128xbf16>
    %5 = arith.extf %4 : vector<4x128xbf16> to vector<4x128xf32>
    %6 = arith.subf %2, %5 : vector<4x128xf32>
    %7 = math.absf %6 : vector<4x128xf32>
    %cst = arith.constant 0.000000e+00 : f32
    %8 = vector.broadcast %cst : f32 to vector<1x1x8x128xf32>
    %9 = vector.shape_cast %7 : vector<4x128xf32> to vector<1x4x128xf32>
    %cst_5 = arith.constant dense<0.000000e+00> : vector<1xf32>
    %10 = vector.multi_reduction <add>, %9, %cst_5 [1, 2] : vector<1x4x128xf32> to vector<1xf32>
    %11 = vector.shape_cast %10 : vector<1xf32> to vector<1x1x1xf32>
    %12 = vector.extract %11[0, 0, 0] : f32 from vector<1x1x1xf32>
    %13 = vector.broadcast %12 : f32 to vector<1x1x8x128xf32>
    %14 = arith.addf %8, %13 : vector<1x1x8x128xf32>
    %c0_6 = arith.constant 0 : index
    %c0_7 = arith.constant 0 : index
    %c0_8 = arith.constant 0 : index
    %c0_9 = arith.constant 0 : index
    %15 = vector.load %arg4[%c0_6, %c0_7, %c0_8, %c0_9] : memref<1x1x8x128xf32, #tpu.memory_space<vmem>>, vector<1x1x8x128xf32>
    tpu.vector_store %arg4[%c0_6, %c0_7, %c0_8, %c0_9], %14 {strides = array<i32>} : memref<1x1x8x128xf32, #tpu.memory_space<vmem>>, vector<1x1x8x128xf32>,
    return
  }
  func.func @transform_0(%arg0: i32, %arg1: i32) -> (i32, i32, i32) {
    %c0_i32 = arith.constant 0 : i32
    %c0_i32_0 = arith.constant 0 : i32
    return %arg0, %arg1, %c0_i32 : i32, i32, i32
  }
  func.func @transform_1(%arg0: i32, %arg1: i32) -> (i32, i32, i32) {
    %c0_i32 = arith.constant 0 : i32
    %c0_i32_0 = arith.constant 0 : i32
    return %arg0, %arg1, %c0_i32 : i32, i32, i32
  }
  func.func @transform_2(%arg0: i32, %arg1: i32) -> (i32, i32, i32, i32) {
    %c0_i32 = arith.constant 0 : i32
    %c0_i32_0 = arith.constant 0 : i32
    %c0_i32_1 = arith.constant 0 : i32
    return %arg0, %arg1, %c0_i32, %c0_i32_0 : i32, i32, i32, i32
  }
}

module attributes {stable_mosaic.version = 11 : i64} {
  func.func @_l1_partial_kernel(%arg0: i32, %arg1: i32, %arg2: memref<1x16x128xbf16, #tpu.memory_space<vmem>>, %arg3: memref<1x16x128xbf16, #tpu.memory_space<vmem>>, %arg4: memref<1x1x8x128xf32, #tpu.memory_space<vmem>>) attributes {dimension_semantics = [#tpu.dimension_semantics<parallel>, #tpu.dimension_semantics<parallel>], iteration_bounds = array<i64: 2, 1>, scalar_prefetch = 0 : i64, scratch_operands = 0 : i64, tpu.core_type = #tpu.core_type<tc>, window_params = [{transform_indices = @transform_0, window_bounds = array<i64: 1, 16, 128>}, {transform_indices = @transform_1, window_bounds = array<i64: 1, 16, 128>}, {transform_indices = @transform_2, window_bounds = array<i64: 1, 1, 8, 128>}]} {
    %c0 = arith.constant 0 : index
    %c0_0 = arith.constant 0 : index
    %c0_1 = arith.constant 0 : index
    %0 = vector.load %arg2[%c0, %c0_0, %c0_1] : memref<1x16x128xbf16, #tpu.memory_space<vmem>>, vector<1x16x128xbf16>
    %1 = vector.shape_cast %0 : vector<1x16x128xbf16> to vector<16x128xbf16>
    %2 = arith.extf %1 : vector<16x128xbf16> to vector<16x128xf32>
    %c0_2 = arith.constant 0 : index
    %c0_3 = arith.constant 0 : index
    %c0_4 = arith.constant 0 : index
    %3 = vector.load %arg3[%c0_2, %c0_3, %c0_4] : memref<1x16x128xbf16, #tpu.memory_space<vmem>>, vector<1x16x128xbf16>
    %4 = vector.shape_cast %3 : vector<1x16x128xbf16> to vector<16x128xbf16>
    %5 = arith.extf %4 : vector<16x128xbf16> to vector<16x128xf32>
    %6 = arith.subf %2, %5 : vector<16x128xf32>
    %7 = math.absf %6 : vector<16x128xf32>
    %cst = arith.constant 0.000000e+00 : f32
    %8 = vector.broadcast %cst : f32 to vector<1x1x8x128xf32>
    %9 = vector.shape_cast %7 : vector<16x128xf32> to vector<1x16x128xf32>
    %cst_5 = arith.constant dense<0.000000e+00> : vector<1xf32>
    %10 = vector.multi_reduction <add>, %9, %cst_5 [1, 2] : vector<1x16x128xf32> to vector<1xf32>
    %11 = vector.shape_cast %10 : vector<1xf32> to vector<1x1x1xf32>
    %12 = vector.extract %11[0, 0, 0] : f32 from vector<1x1x1xf32>
    %13 = vector.broadcast %12 : f32 to vector<1x1x8x128xf32>
    %14 = arith.addf %8, %13 : vector<1x1x8x128xf32>
    %c0_6 = arith.constant 0 : index
    %c0_7 = arith.constant 0 : index
    %c0_8 = arith.constant 0 : index
    %c0_9 = arith.constant 0 : index
    %15 = vector.load %arg4[%c0_6, %c0_7, %c0_8, %c0_9] : memref<1x1x8x128xf32, #tpu.memory_space<vmem>>, vector<1x1x8x128xf32>
    tpu.vector_store %arg4[%c0_6, %c0_7, %c0_8, %c0_9], %14 {strides = array<i32>} : memref<1x1x8x128xf32, #tpu.memory_space<vmem>>, vector<1x1x8x128xf32>,
    return
  }
  func.func @transform_0(%arg0: i32, %arg1: i32) -> (i32, i32, i32) {
    %c0_i32 = arith.constant 0 : i32
    %c0_i32_0 = arith.constant 0 : i32
    return %arg0, %arg1, %c0_i32 : i32, i32, i32
  }
  func.func @transform_1(%arg0: i32, %arg1: i32) -> (i32, i32, i32) {
    %c0_i32 = arith.constant 0 : i32
    %c0_i32_0 = arith.constant 0 : i32
    return %arg0, %arg1, %c0_i32 : i32, i32, i32
  }
  func.func @transform_2(%arg0: i32, %arg1: i32) -> (i32, i32, i32, i32) {
    %c0_i32 = arith.constant 0 : i32
    %c0_i32_0 = arith.constant 0 : i32
    %c0_i32_1 = arith.constant 0 : i32
    return %arg0, %arg1, %c0_i32, %c0_i32_0 : i32, i32, i32, i32
  }
}

module attributes {stable_mosaic.version = 11 : i64} {
  func.func @_l1_partial_kernel(%arg0: i32, %arg1: i32, %arg2: memref<1x64x128xbf16, #tpu.memory_space<vmem>>, %arg3: memref<1x64x128xbf16, #tpu.memory_space<vmem>>, %arg4: memref<1x1x8x128xf32, #tpu.memory_space<vmem>>) attributes {dimension_semantics = [#tpu.dimension_semantics<parallel>, #tpu.dimension_semantics<parallel>], iteration_bounds = array<i64: 2, 1>, scalar_prefetch = 0 : i64, scratch_operands = 0 : i64, tpu.core_type = #tpu.core_type<tc>, window_params = [{transform_indices = @transform_0, window_bounds = array<i64: 1, 64, 128>}, {transform_indices = @transform_1, window_bounds = array<i64: 1, 64, 128>}, {transform_indices = @transform_2, window_bounds = array<i64: 1, 1, 8, 128>}]} {
    %c0 = arith.constant 0 : index
    %c0_0 = arith.constant 0 : index
    %c0_1 = arith.constant 0 : index
    %0 = vector.load %arg2[%c0, %c0_0, %c0_1] : memref<1x64x128xbf16, #tpu.memory_space<vmem>>, vector<1x64x128xbf16>
    %1 = vector.shape_cast %0 : vector<1x64x128xbf16> to vector<64x128xbf16>
    %2 = arith.extf %1 : vector<64x128xbf16> to vector<64x128xf32>
    %c0_2 = arith.constant 0 : index
    %c0_3 = arith.constant 0 : index
    %c0_4 = arith.constant 0 : index
    %3 = vector.load %arg3[%c0_2, %c0_3, %c0_4] : memref<1x64x128xbf16, #tpu.memory_space<vmem>>, vector<1x64x128xbf16>
    %4 = vector.shape_cast %3 : vector<1x64x128xbf16> to vector<64x128xbf16>
    %5 = arith.extf %4 : vector<64x128xbf16> to vector<64x128xf32>
    %6 = arith.subf %2, %5 : vector<64x128xf32>
    %7 = math.absf %6 : vector<64x128xf32>
    %cst = arith.constant 0.000000e+00 : f32
    %8 = vector.broadcast %cst : f32 to vector<1x1x8x128xf32>
    %9 = vector.shape_cast %7 : vector<64x128xf32> to vector<1x64x128xf32>
    %cst_5 = arith.constant dense<0.000000e+00> : vector<1xf32>
    %10 = vector.multi_reduction <add>, %9, %cst_5 [1, 2] : vector<1x64x128xf32> to vector<1xf32>
    %11 = vector.shape_cast %10 : vector<1xf32> to vector<1x1x1xf32>
    %12 = vector.extract %11[0, 0, 0] : f32 from vector<1x1x1xf32>
    %13 = vector.broadcast %12 : f32 to vector<1x1x8x128xf32>
    %14 = arith.addf %8, %13 : vector<1x1x8x128xf32>
    %c0_6 = arith.constant 0 : index
    %c0_7 = arith.constant 0 : index
    %c0_8 = arith.constant 0 : index
    %c0_9 = arith.constant 0 : index
    %15 = vector.load %arg4[%c0_6, %c0_7, %c0_8, %c0_9] : memref<1x1x8x128xf32, #tpu.memory_space<vmem>>, vector<1x1x8x128xf32>
    tpu.vector_store %arg4[%c0_6, %c0_7, %c0_8, %c0_9], %14 {strides = array<i32>} : memref<1x1x8x128xf32, #tpu.memory_space<vmem>>, vector<1x1x8x128xf32>,
    return
  }
  func.func @transform_0(%arg0: i32, %arg1: i32) -> (i32, i32, i32) {
    %c0_i32 = arith.constant 0 : i32
    %c0_i32_0 = arith.constant 0 : i32
    return %arg0, %arg1, %c0_i32 : i32, i32, i32
  }
  func.func @transform_1(%arg0: i32, %arg1: i32) -> (i32, i32, i32) {
    %c0_i32 = arith.constant 0 : i32
    %c0_i32_0 = arith.constant 0 : i32
    return %arg0, %arg1, %c0_i32 : i32, i32, i32
  }
  func.func @transform_2(%arg0: i32, %arg1: i32) -> (i32, i32, i32, i32) {
    %c0_i32 = arith.constant 0 : i32
    %c0_i32_0 = arith.constant 0 : i32
    %c0_i32_1 = arith.constant 0 : i32
    return %arg0, %arg1, %c0_i32, %c0_i32_0 : i32, i32, i32, i32
  }
}

module attributes {stable_mosaic.version = 11 : i64} {
  func.func @_l1_partial_kernel(%arg0: i32, %arg1: i32, %arg2: memref<1x256x128xbf16, #tpu.memory_space<vmem>>, %arg3: memref<1x256x128xbf16, #tpu.memory_space<vmem>>, %arg4: memref<1x1x8x128xf32, #tpu.memory_space<vmem>>) attributes {dimension_semantics = [#tpu.dimension_semantics<parallel>, #tpu.dimension_semantics<parallel>], iteration_bounds = array<i64: 2, 1>, scalar_prefetch = 0 : i64, scratch_operands = 0 : i64, tpu.core_type = #tpu.core_type<tc>, window_params = [{transform_indices = @transform_0, window_bounds = array<i64: 1, 256, 128>}, {transform_indices = @transform_1, window_bounds = array<i64: 1, 256, 128>}, {transform_indices = @transform_2, window_bounds = array<i64: 1, 1, 8, 128>}]} {
    %c0 = arith.constant 0 : index
    %c0_0 = arith.constant 0 : index
    %c0_1 = arith.constant 0 : index
    %0 = vector.load %arg2[%c0, %c0_0, %c0_1] : memref<1x256x128xbf16, #tpu.memory_space<vmem>>, vector<1x256x128xbf16>
    %1 = vector.shape_cast %0 : vector<1x256x128xbf16> to vector<256x128xbf16>
    %2 = arith.extf %1 : vector<256x128xbf16> to vector<256x128xf32>
    %c0_2 = arith.constant 0 : index
    %c0_3 = arith.constant 0 : index
    %c0_4 = arith.constant 0 : index
    %3 = vector.load %arg3[%c0_2, %c0_3, %c0_4] : memref<1x256x128xbf16, #tpu.memory_space<vmem>>, vector<1x256x128xbf16>
    %4 = vector.shape_cast %3 : vector<1x256x128xbf16> to vector<256x128xbf16>
    %5 = arith.extf %4 : vector<256x128xbf16> to vector<256x128xf32>
    %6 = arith.subf %2, %5 : vector<256x128xf32>
    %7 = math.absf %6 : vector<256x128xf32>
    %cst = arith.constant 0.000000e+00 : f32
    %8 = vector.broadcast %cst : f32 to vector<1x1x8x128xf32>
    %9 = vector.shape_cast %7 : vector<256x128xf32> to vector<1x256x128xf32>
    %cst_5 = arith.constant dense<0.000000e+00> : vector<1xf32>
    %10 = vector.multi_reduction <add>, %9, %cst_5 [1, 2] : vector<1x256x128xf32> to vector<1xf32>
    %11 = vector.shape_cast %10 : vector<1xf32> to vector<1x1x1xf32>
    %12 = vector.extract %11[0, 0, 0] : f32 from vector<1x1x1xf32>
    %13 = vector.broadcast %12 : f32 to vector<1x1x8x128xf32>
    %14 = arith.addf %8, %13 : vector<1x1x8x128xf32>
    %c0_6 = arith.constant 0 : index
    %c0_7 = arith.constant 0 : index
    %c0_8 = arith.constant 0 : index
    %c0_9 = arith.constant 0 : index
    %15 = vector.load %arg4[%c0_6, %c0_7, %c0_8, %c0_9] : memref<1x1x8x128xf32, #tpu.memory_space<vmem>>, vector<1x1x8x128xf32>
    tpu.vector_store %arg4[%c0_6, %c0_7, %c0_8, %c0_9], %14 {strides = array<i32>} : memref<1x1x8x128xf32, #tpu.memory_space<vmem>>, vector<1x1x8x128xf32>,
    return
  }
  func.func @transform_0(%arg0: i32, %arg1: i32) -> (i32, i32, i32) {
    %c0_i32 = arith.constant 0 : i32
    %c0_i32_0 = arith.constant 0 : i32
    return %arg0, %arg1, %c0_i32 : i32, i32, i32
  }
  func.func @transform_1(%arg0: i32, %arg1: i32) -> (i32, i32, i32) {
    %c0_i32 = arith.constant 0 : i32
    %c0_i32_0 = arith.constant 0 : i32
    return %arg0, %arg1, %c0_i32 : i32, i32, i32
  }
  func.func @transform_2(%arg0: i32, %arg1: i32) -> (i32, i32, i32, i32) {
    %c0_i32 = arith.constant 0 : i32
    %c0_i32_0 = arith.constant 0 : i32
    %c0_i32_1 = arith.constant 0 : i32
    return %arg0, %arg1, %c0_i32, %c0_i32_0 : i32, i32, i32, i32
  }
}

</mosaic_0001>

<bundles_post_ra>
// kernel: resnet_loss.23
= control target key start
LH: loop header
LB: loop body
LE: loop exit
PB: predicated region body
PF: predicated region fallthrough
CT: control target
= control target key end

     0   :  { %s3598_s12 = smov 0   ;;  %s3600_s13 = smov 0   ;;  %s4145_s0 = inlined_call_operand.vmem [shape: bf16[4,2,19,16,56], index: 0, kind: input, shape index: {}]   ;;  %s4146_s1 = inlined_call_operand.vmem [shape: bf16[7,1,56,128], index: 1, kind: input, shape index: {}]   ;;  %s4147_s2 = inlined_call_operand.vmem [shape: f32[1,128], index: 2, kind: input, shape index: {}]   ;;  %s4148_s3 = inlined_call_operand.vmem [shape: bf16[4,16,16,128], index: 3, kind: output, shape index: {}]  }
   0x1   :  { %s3602_s14 = smov 0  }
   0x2 LB: > { %s25_s15 = sadd.s32 1, %s3572_s13  ;;  %p2414_p0 = scmp.ge.s32.totalorder %s3576_s14, 1  ;;  %s3576_s14 = sphi %s3602_s14, %s13_s14   ;;  %s3572_s13 = sphi %s3600_s13, %s4150_s13   ;;  %s3568_s12 = sphi %s3598_s12, %s4149_s12  }
   0x3   : > { %p27_p1 = scmp.ge.s32.totalorder %s25_s15, 4  ;;  %p151_p2 = scmp.lt.s32.totalorder %s3576_s14, 5 }
   0x5   : > { %s4152_s15 = smov (%p27_p1, %s25_s15), 0  ;;  %p152_p3 = pnand %p2414_p0, %p151_p2 }
   0x6   : > { %v3489_v0 = vld [vmem:[%s4146_s1 + $0x38] sm:$0xff] (!%p152_p3)   ;;  %v3622_v1 = vld [vmem:[%s4146_s1 + $0xa8] sm:$0xff] (!%p152_p3)   ;;  %p180_p4 = scmp.lt.s32.totalorder (!%p152_p3), %s3568_s12, 3  ;;  %v3491_v2 = vld [vmem:[%s4146_s1 + $0x40] sm:$0xff] (!%p152_p3)   ;;  %vm355_vm0 = vcmask (!%p152_p3), 457728   ;;  %vm404_vm1 = vcmask (!%p152_p3), 1043456  }
   0x7   : > { %155 = sbr.rel (%p152_p3) target bundleno = 463 (0x1cf), region = 32  ;;  %2976 = vmatprep.subr.bf16.mxu1 (!%p152_p3), %v3489_v0  ;;  %3096 = vmatprep.subr.bf16.mxu0 (!%p152_p3), %v3622_v1  ;;  %v3631_v3 = vld [vmem:[%s4146_s1 + $0xb0] sm:$0xff] (!%p152_p3)   ;;  %v3493_v4 = vld [vmem:[%s4146_s1 + $0x48] sm:$0xff] (!%p152_p3)   ;;  %v3643_v5 = vld [vmem:[%s4146_s1 + $0xb8] sm:$0xff] (!%p152_p3)  }
   0x8   : > { %2977 = vmatpush3.bf16.msra.mxu1 (!%p152_p3), %v3489_v0  ;;  %3097 = vmatpush3.bf16.msra.mxu0 (!%p152_p3), %v3622_v1  ;;  %v3495_v6 = vld [vmem:[%s4146_s1 + $0x50] ss:$0 sps:$4 sm:$0xff] (!%p152_p3)   ;;  %v3652_v7 = vld [vmem:[%s4146_s1 + $0xc0] ss:$0 sps:$4 sm:$0xff] (!%p152_p3)   ;;  %v3505_v17 = vld [vmem:[%s4146_s1 + $0x24] sm:$0xff] (!%p152_p3)  }
   0x9   : > { %2978 = vmatprep.subr.bf16.mxu1 (!%p152_p3), %v3491_v2  ;;  %3098 = vmatprep.subr.bf16.mxu0 (!%p152_p3), %v3631_v3  ;;  %v406_v10 = vsel (!%p152_p3), %vm404_vm1, %v3495_v6, 0  ;;  %v3500_v11 = vld [vmem:[%s4146_s1] sm:$0xff] (!%p152_p3)   ;;  %v3681_v12 = vsel (!%p152_p3), %vm404_vm1, %v3652_v7, 0  ;;  %v3507_v18 = vld [vmem:[%s4146_s1 + $0x8] sm:$0xff] (!%p152_p3)   ;;  %v3514_v22 = vld [vmem:[%s4146_s1 + $0x10] sm:$0xff] (!%p152_p3)  }
   0xa   : > { %v3502_v13 = vld [vmem:[%s4146_s1 + $0x1c] sm:$0xff] (!%p152_p3)   ;;  %v3509_v19 = vld [vmem:[%s4146_s1 + $0x2c] sm:$0xff] (!%p152_p3)   ;;  %v3512_v23 = vld [vmem:[%s4146_s1 + $0x34] ss:$0 sps:$4 sm:$0xff] (!%p152_p3)  }
   0xb   : > { %v1425_v24 = vsel (!%p152_p3), %vm404_vm1, %v3512_v23, 0  ;;  %v3516_v25 = vld [vmem:[%s4146_s1 + $0x54] sm:$0xff] (!%p152_p3)   ;;  %v3526_v36 = vld [vmem:[%s4146_s1 + $0x5c] sm:$0xff] (!%p152_p3)   ;;  %v3535_v38 = vld [vmem:[%s4146_s1 + $0x64] sm:$0xff] (!%p152_p3)  }
   0xc   : > { %2979 = vmatpush3.bf16.msra.mxu1 (!%p152_p3), %v3491_v2  ;;  %3099 = vmatpush3.bf16.msra.mxu0 (!%p152_p3), %v3631_v3  ;;  %v3524_v28 = vld [vmem:[%s4146_s1 + $0x18] ss:$0 sps:$4 sm:$0xff] (!%p152_p3)   ;;  %v3533_v32 = vld [vmem:[%s4146_s1 + $0x70] sm:$0xff] (!%p152_p3)   ;;  %v3541_v42 = vld [vmem:[%s4146_s1 + $0x6c] ss:$0 sps:$4 sm:$0xff] (!%p152_p3)  }
   0xd   : > { %2980 = vmatprep.subr.bf16.mxu1 (!%p152_p3), %v3493_v4  ;;  %3100 = vmatprep.subr.bf16.mxu0 (!%p152_p3), %v3643_v5  ;;  %v599_v29 = vsel (!%p152_p3), %vm404_vm1, %v3524_v28, 0  ;;  %v1658_v43 = vsel (!%p152_p3), %vm404_vm1, %v3541_v42, 0  ;;  %v3545_v44 = vld [vmem:[%s4146_s1 + $0x8c] sm:$0xff] (!%p152_p3)   ;;  %v3539_v55 = vld [vmem:[%s4146_s1 + $0x78] sm:$0xff] (!%p152_p3)   ;;  %v3544_v56 = vld [vmem:[%s4146_s1 + $0x80] sm:$0xff] (!%p152_p3)  }
   0xe   : > { %s4154_s12 = smov (!%p180_p4, %s3568_s12), 3  ;;  %v3546_v59 = vld [vmem:[%s4146_s1 + $0x88] ss:$0 sps:$4 sm:$0xff]   ;;  %v3547_v0 = vld [vmem:[%s4146_s1 + $0x94] sm:$0xff]   ;;  %v3548_v2 = vld [vmem:[%s4146_s1 + $0x9c] sm:$0xff]  }
   0xf   : > { %s3464_s28 = smul.u32 304, %s4154_s12  ;;  %v800_v60 = vsel %vm404_vm1, %v3546_v59, 0  ;;  %s2708_s5 = sshll.u32 %s4154_s12, 7 }
  0x10   : > { %2981 = vmatpush3.bf16.msra.mxu1 %v3493_v4  ;;  %3101 = vmatpush3.bf16.msra.mxu0 %v3643_v5  ;;  %v3549_v4 = vld [vmem:[%s4146_s1 + $0xa4] ss:$0 sps:$4 sm:$0xff]   ;;  %s4086_s9 = scalar_lea.vmem %s4148_s3, %s2708_s5 }
  0x11   : > { %s3657_s8 = scalar_lea.vmem %s4145_s0, %s3464_s28  ;;  %3456 = vmatprep.subr.msk.bf16.mxu1 %vm404_vm1, %v3495_v6  ;;  %3459 = vmatprep.subr.msk.bf16.mxu0 %vm404_vm1, %v3652_v7  ;;  %v1891_v6 = vsel %vm404_vm1, %v3549_v4, 0 }
  0x12   : > { %v3661_v8 = vld [vmem:[%s3657_s8 + $0x8] sm:$0xff]   ;;  %v3665_v9 = vld [vmem:[%s3657_s8 + $0x18] sm:$0xff]   ;;  %v3687_v14 = vld [vmem:[%s3657_s8 + $0x10] sm:$0xff]  }
  0x13   : > { %2984 = vmatprep.mubr.msk.bf16.mxu1 %vm355_vm0, %v3661_v8  ;;  %3104 = vmatprep.mubr.msk.bf16.mxu0 %vm355_vm0, %v3665_v9  ;;  %v3690_v15 = vld [vmem:[%s3657_s8 + $0x20] sm:$0xff]   ;;  %v3694_v16 = vld [vmem:[%s3657_s8 + $0x28] sm:$0xff]   ;;  %v3714_v20 = vld [vmem:[%s3657_s8 + $0x30] sm:$0xff]  }
  0x14   : > { %2983 = vmatpush3.bf16.msra.mxu1 %v406_v10  ;;  %3103 = vmatpush3.bf16.msra.mxu0 %v3681_v12  ;;  %v3717_v21 = vld [vmem:[%s3657_s8 + $0x38] sm:$0xff]   ;;  %v3739_v26 = vld [vmem:[%s3657_s8 + $0x40] sm:$0xff]   ;;  %v3742_v27 = vld [vmem:[%s3657_s8 + $0x48] sm:$0xff]  }
  0x15   : > { %3016 = vmatprep.subr.bf16.mxu1 %v3500_v11  ;;  %3136 = vmatprep.subr.bf16.mxu0 %v3502_v13  ;;  %v3758_v30 = vld [vmem:[%s3657_s8 + $0x50] sm:$0xff]   ;;  %v3513_v31 = vld [vmem:[%s3657_s8 + $0x98] sm:$0xff]   ;;  %v3772_v33 = vld [vmem:[%s3657_s8 + $0xa0] sm:$0xff]  }
  0x16   : > { %v3775_v34 = vld [vmem:[%s3657_s8 + $0x58] sm:$0xff]   ;;  %v3778_v35 = vld [vmem:[%s3657_s8 + $0xa8] sm:$0xff]   ;;  %v3792_v37 = vld [vmem:[%s3657_s8 + $0x60] sm:$0xff]  }
  0x17   : > { %2985 = vmatmul.mubr.msk.bf16.vlgmr.msra.gmra.mrb[0].mxu1 %vm355_vm0, %v3687_v14  ;;  %3105 = vmatmul.mubr.msk.bf16.vlgmr.msra.gmra.mrb[0].mxu0 %vm355_vm0, %v3690_v15  ;;  %v3798_v39 = vld [vmem:[%s3657_s8 + $0xb0] sm:$0xff]   ;;  %v3801_v40 = vld [vmem:[%s3657_s8 + $0x68] sm:$0xff]   ;;  %v3804_v41 = vld [vmem:[%s3657_s8 + $0xb8] sm:$0xff]  }
  0x18   : > { %3017 = vmatpush3.bf16.msra.mxu1 %v3500_v11  ;;  %3137 = vmatpush3.bf16.msra.mxu0 %v3502_v13  ;;  %v3823_v45 = vld [vmem:[%s3657_s8 + $0x70] sm:$0xff]   ;;  %v3826_v46 = vld [vmem:[%s3657_s8 + $0xc0] sm:$0xff]   ;;  %v3829_v47 = vld [vmem:[%s3657_s8 + $0x78] sm:$0xff]  }
  0x19   : > { %2988 = vmatprep.mubr.msk.bf16.mxu1 %vm355_vm0, %v3665_v9  ;;  %3108 = vmatprep.mubr.msk.bf16.mxu0 %vm355_vm0, %v3694_v16  ;;  %v3832_v48 = vld [vmem:[%s3657_s8 + $0xc8] sm:$0xff]   ;;  %v3843_v49 = vld [vmem:[%s3657_s8 + $0x80] sm:$0xff]   ;;  %v3846_v50 = vld [vmem:[%s3657_s8 + $0xd0] sm:$0xff]  }
  0x1a   : > { %3138 = vmatprep.subr.bf16.mxu0 %v3505_v17  ;;  %3018 = vmatprep.subr.bf16.mxu1 %v3507_v18  ;;  %v3531_v51 = vld [vmem:[%s3657_s8] sm:$0xff]   ;;  %v3850_v52 = vld [vmem:[%s3657_s8 + $0xd8] sm:$0xff]   ;;  %v3863_v54 = vld [vmem:[%s3657_s8 + $0xe8] sm:$0xff]  }
  0x1b   : > { %v3860_v53 = vld [vmem:[%s3657_s8 + $0xe0] sm:$0xff]   ;;  %v3880_v57 = vld [vmem:[%s3657_s8 + $0xf0] sm:$0xff]   ;;  %v3883_v58 = vld [vmem:[%s3657_s8 + $0xf8] sm:$0xff]  }
  0x1c   : > { %3019 = vmatpush3.bf16.msra.mxu1 %v3507_v18  ;;  %3139 = vmatpush3.bf16.msra.mxu0 %v3505_v17  ;;  %v3899_v61 = vld [vmem:[%s3657_s8 + $0x100] sm:$0xff]   ;;  %v3902_v62 = vld [vmem:[%s3657_s8 + $0x108] sm:$0xff]   ;;  %v3914_v63 = vld [vmem:[%s3657_s8 + $0x110] sm:$0xff]  }
  0x1d   : > { %3140 = vmatprep.subr.bf16.mxu0 %v3509_v19  ;;  %3020 = vmatprep.subr.bf16.mxu1 %v3514_v22 }
  0x1f   : > { %2989 = vmatmul.mubr.msk.bf16.gmra.mrb[4].mxu1 %vm355_vm0, %v3690_v15  ;;  %3109 = vmatmul.mubr.msk.bf16.gmra.mrb[4].mxu0 %vm355_vm0, %v3714_v20 }
  0x20   : > { %2992 = vmatprep.mubr.msk.bf16.mxu1 %vm355_vm0, %v3694_v16  ;;  %3112 = vmatprep.mubr.msk.bf16.mxu0 %vm355_vm0, %v3717_v21 }
  0x21   : > { %3141 = vmatpush3.bf16.msra.mxu0 %v3509_v19  ;;  %3021 = vmatpush3.bf16.msra.mxu1 %v3514_v22 }
  0x22   : > { %3461 = vmatprep.subr.msk.bf16.mxu0 %vm404_vm1, %v3512_v23  ;;  %3457 = vmatprep.subr.msk.bf16.mxu1 %vm404_vm1, %v3524_v28 }
  0x25   : > { %3143 = vmatpush3.bf16.msra.mxu0 %v1425_v24  ;;  %3023 = vmatpush3.bf16.msra.mxu1 %v599_v29 }
  0x26   : > { %3176 = vmatprep.subr.bf16.mxu0 %v3516_v25  ;;  %3056 = vmatprep.subr.bf16.mxu1 %v3533_v32 }
  0x27   : > { %2993 = vmatmul.mubr.msk.bf16.gmra.mrb[8].mxu1 %vm355_vm0, %v3714_v20  ;;  %3113 = vmatmul.mubr.msk.bf16.gmra.mrb[8].mxu0 %vm355_vm0, %v3739_v26 }
  0x28   : > { %2996 = vmatprep.mubr.msk.bf16.mxu1 %vm355_vm0, %v3717_v21  ;;  %3116 = vmatprep.mubr.msk.bf16.mxu0 %vm355_vm0, %v3742_v27 }
  0x2f   : > { %2997 = vmatmul.mubr.msk.bf16.gmra.mrb[12].mxu1 %vm355_vm0, %v3739_v26  ;;  %3117 = vmatmul.mubr.msk.bf16.gmra.mrb[12].mxu0 %vm355_vm0, %v3758_v30 }
  0x30   : > { %3000 = vmatprep.mubr.msk.bf16.mxu1 %vm355_vm0, %v3742_v27  ;;  %3144 = vmatprep.mubr.msk.bf16.mxu0 %vm355_vm0, %v3513_v31 }
  0x37   : > { %3001 = vmatmul.mubr.msk.bf16.gmra.mrb[16].mxu1 %vm355_vm0, %v3758_v30  ;;  %3145 = vmatmul.mubr.msk.bf16.vlgmr.msra.gmra.mrb[0].mxu0 %vm355_vm0, %v3772_v33 }
  0x38   : > { %3004 = vmatprep.mubr.msk.bf16.mxu1 %vm355_vm0, %v3775_v34  ;;  %3177 = vmatpush3.bf16.msra.mxu0 %v3516_v25  ;;  %v4076_v25 = vld [vmem:[%s4147_s2] ss:$0 sm:$0xff] }
  0x39   : > { %3148 = vmatprep.mubr.msk.bf16.mxu0 %vm355_vm0, %v3778_v35  ;;  %3178 = vmatprep.subr.bf16.mxu0 %v3526_v36 }
  0x3c   : > { %3179 = vmatpush3.bf16.msra.mxu0 %v3526_v36 }
  0x3d   : > { %3180 = vmatprep.subr.bf16.mxu0 %v3535_v38 }
  0x3f   : > { %3005 = vmatmul.mubr.msk.bf16.gmra.mrb[20].mxu1 %vm355_vm0, %v3792_v37  ;;  %3149 = vmatmul.mubr.msk.bf16.gmra.mrb[4].mxu0 %vm355_vm0, %v3798_v39 }
  0x40   : > { %3008 = vmatprep.mubr.msk.bf16.mxu1 %vm355_vm0, %v3801_v40  ;;  %3152 = vmatprep.mubr.msk.bf16.mxu0 %vm355_vm0, %v3804_v41 }
  0x41   : > { %3181 = vmatpush3.bf16.msra.mxu0 %v3535_v38 }
  0x42   : > { %3462 = vmatprep.subr.msk.bf16.mxu0 %vm404_vm1, %v3541_v42 }
  0x45   : > { %3183 = vmatpush3.bf16.msra.mxu0 %v1658_v43 }
  0x46   : > { %3216 = vmatprep.subr.bf16.mxu0 %v3545_v44 }
  0x47   : > { %3009 = vmatmul.mubr.msk.bf16.gmra.mrb[24].mxu1 %vm355_vm0, %v3823_v45  ;;  %3153 = vmatmul.mubr.msk.bf16.gmra.mrb[8].mxu0 %vm355_vm0, %v3826_v46 }
  0x48   : > { %3012 = vmatprep.mubr.msk.bf16.mxu1 %vm355_vm0, %v3829_v47  ;;  %3156 = vmatprep.mubr.msk.bf16.mxu0 %vm355_vm0, %v3832_v48 }
  0x4f   : > { %3013 = vmatmul.mubr.msk.bf16.gmra.mrb[28].mxu1 %vm355_vm0, %v3843_v49  ;;  %3157 = vmatmul.mubr.msk.bf16.gmra.mrb[12].mxu0 %vm355_vm0, %v3846_v50 }
  0x50   : > { %3024 = vmatprep.mubr.msk.bf16.mxu1 %vm355_vm0, %v3531_v51  ;;  %3160 = vmatprep.mubr.msk.bf16.mxu0 %vm355_vm0, %v3850_v52 }
  0x57   : > { %3025 = vmatmul.mubr.msk.bf16.vlgmr.msra.gmra.mrb[0].mxu1 %vm355_vm0, %v3661_v8  ;;  %3161 = vmatmul.mubr.msk.bf16.gmra.mrb[16].mxu0 %vm355_vm0, %v3860_v53 }
  0x58   : > { %3057 = vmatpush3.bf16.msra.mxu1 %v3533_v32  ;;  %3028 = vmatprep.mubr.msk.bf16.mxu1 %vm355_vm0, %v3687_v14 }
  0x59   : > { %3164 = vmatprep.mubr.msk.bf16.mxu0 %vm355_vm0, %v3863_v54  ;;  %3058 = vmatprep.subr.bf16.mxu1 %v3539_v55 }
  0x5c   : > { %3059 = vmatpush3.bf16.msra.mxu1 %v3539_v55 }
  0x5d   : > { %3060 = vmatprep.subr.bf16.mxu1 %v3544_v56 }
  0x5f   : > { %3029 = vmatmul.mubr.msk.bf16.gmra.mrb[4].mxu1 %vm355_vm0, %v3665_v9  ;;  %3165 = vmatmul.mubr.msk.bf16.gmra.mrb[20].mxu0 %vm355_vm0, %v3880_v57 }
  0x60   : > { %3032 = vmatprep.mubr.msk.bf16.mxu1 %vm355_vm0, %v3690_v15  ;;  %3168 = vmatprep.mubr.msk.bf16.mxu0 %vm355_vm0, %v3883_v58 }
  0x61   : > { %3061 = vmatpush3.bf16.msra.mxu1 %v3544_v56 }
  0x62   : > { %3458 = vmatprep.subr.msk.bf16.mxu1 %vm404_vm1, %v3546_v59 }
  0x65   : > { %3063 = vmatpush3.bf16.msra.mxu1 %v800_v60 }
  0x66   : > { %3256 = vmatprep.subr.bf16.mxu1 %v3622_v1 }
  0x67   : > { %3033 = vmatmul.mubr.msk.bf16.gmra.mrb[8].mxu1 %vm355_vm0, %v3694_v16  ;;  %3169 = vmatmul.mubr.msk.bf16.gmra.mrb[24].mxu0 %vm355_vm0, %v3899_v61 }
  0x68   : > { %3036 = vmatprep.mubr.msk.bf16.mxu1 %vm355_vm0, %v3714_v20  ;;  %3172 = vmatprep.mubr.msk.bf16.mxu0 %vm355_vm0, %v3902_v62 }
  0x6f   : > { %3037 = vmatmul.mubr.msk.bf16.gmra.mrb[12].mxu1 %vm355_vm0, %v3717_v21  ;;  %3173 = vmatmul.mubr.msk.bf16.gmra.mrb[28].mxu0 %vm355_vm0, %v3914_v63 }
  0x70   : > { %3040 = vmatprep.mubr.msk.bf16.mxu1 %vm355_vm0, %v3739_v26  ;;  %3184 = vmatprep.mubr.msk.bf16.mxu0 %vm355_vm0, %v3772_v33 }
  0x77   : > { %3041 = vmatmul.mubr.msk.bf16.gmra.mrb[16].mxu1 %vm355_vm0, %v3742_v27  ;;  %3185 = vmatmul.mubr.msk.bf16.vlgmr.msra.gmra.mrb[0].mxu0 %vm355_vm0, %v3778_v35 }
  0x78   : > { %3044 = vmatprep.mubr.msk.bf16.mxu1 %vm355_vm0, %v3758_v30  ;;  %3217 = vmatpush3.bf16.msra.mxu0 %v3545_v44 }
  0x79   : > { %3188 = vmatprep.mubr.msk.bf16.mxu0 %vm355_vm0, %v3798_v39  ;;  %3218 = vmatprep.subr.bf16.mxu0 %v3547_v0 }
  0x7c   : > { %3219 = vmatpush3.bf16.msra.mxu0 %v3547_v0 }
  0x7d   : > { %3220 = vmatprep.subr.bf16.mxu0 %v3548_v2 }
  0x7f   : > { %3045 = vmatmul.mubr.msk.bf16.gmra.mrb[20].mxu1 %vm355_vm0, %v3775_v34  ;;  %3189 = vmatmul.mubr.msk.bf16.gmra.mrb[4].mxu0 %vm355_vm0, %v3804_v41 }
  0x80   : > { %3048 = vmatprep.mubr.msk.bf16.mxu1 %vm355_vm0, %v3792_v37  ;;  %3192 = vmatprep.mubr.msk.bf16.mxu0 %vm355_vm0, %v3826_v46 }
  0x81   : > { %3221 = vmatpush3.bf16.msra.mxu0 %v3548_v2 }
  0x82   : > { %3463 = vmatprep.subr.msk.bf16.mxu0 %vm404_vm1, %v3549_v4 }
  0x85   : > { %3223 = vmatpush3.bf16.msra.mxu0 %v1891_v6 }
  0x87   : > { %3049 = vmatmul.mubr.msk.bf16.gmra.mrb[24].mxu1 %vm355_vm0, %v3801_v40  ;;  %3193 = vmatmul.mubr.msk.bf16.gmra.mrb[8].mxu0 %vm355_vm0, %v3832_v48 }
  0x88   : > { %3052 = vmatprep.mubr.msk.bf16.mxu1 %vm355_vm0, %v3823_v45  ;;  %3196 = vmatprep.mubr.msk.bf16.mxu0 %vm355_vm0, %v3846_v50 }
  0x8f   : > { %3053 = vmatmul.mubr.msk.bf16.gmra.mrb[28].mxu1 %vm355_vm0, %v3829_v47  ;;  %3197 = vmatmul.mubr.msk.bf16.gmra.mrb[12].mxu0 %vm355_vm0, %v3850_v52 }
  0x90   : > { %3064 = vmatprep.mubr.msk.bf16.mxu1 %vm355_vm0, %v3687_v14  ;;  %3200 = vmatprep.mubr.msk.bf16.mxu0 %vm355_vm0, %v3860_v53 }
  0x97   : > { %3065 = vmatmul.mubr.msk.bf16.vlgmr.msra.gmra.mrb[0].mxu1 %vm355_vm0, %v3665_v9  ;;  %3201 = vmatmul.mubr.msk.bf16.gmra.mrb[16].mxu0 %vm355_vm0, %v3863_v54 }
  0x98   : > { %3260 = vmatpush3.bf16.msra.mxu1 %v3622_v1  ;;  %3068 = vmatprep.mubr.msk.bf16.mxu1 %vm355_vm0, %v3690_v15  ;;  %v3550_v1 = vld [vmem:[%s3657_s8 + $0x118] sm:$0xff]  }
  0x99   : > { %3204 = vmatprep.mubr.msk.bf16.mxu0 %vm355_vm0, %v3880_v57  ;;  %3257 = vmatprep.subr.bf16.mxu1 %v3631_v3 }
  0x9c   : > { %3261 = vmatpush3.bf16.msra.mxu1 %v3631_v3  ;;  %v3551_v3 = vld [vmem:[%s3657_s8 + $0x88] sm:$0xff]  }
  0x9d   : > { %3258 = vmatprep.subr.bf16.mxu1 %v3643_v5 }
  0x9f   : > { %3069 = vmatmul.mubr.msk.bf16.gmra.mrb[4].mxu1 %vm355_vm0, %v3694_v16  ;;  %3205 = vmatmul.mubr.msk.bf16.gmra.mrb[20].mxu0 %vm355_vm0, %v3883_v58 }
  0xa0   : > { %3072 = vmatprep.mubr.msk.bf16.mxu1 %vm355_vm0, %v3714_v20  ;;  %3208 = vmatprep.mubr.msk.bf16.mxu0 %vm355_vm0, %v3899_v61 }
  0xa1   : > { %3262 = vmatpush3.bf16.msra.mxu1 %v3643_v5  ;;  %v3552_v5 = vld [vmem:[%s3657_s8 + $0x90] sm:$0xff]  }
  0xa2   : > { %3460 = vmatprep.subr.msk.bf16.mxu1 %vm404_vm1, %v3652_v7  ;;  %v3553_v7 = vld [vmem:[%s3657_s8 + $0x120] sm:$0xff]  }
  0xa5   : > { %3263 = vmatpush3.bf16.msra.mxu1 %v3681_v12 }
  0xa7   : > { %3073 = vmatmul.mubr.msk.bf16.gmra.mrb[8].mxu1 %vm355_vm0, %v3717_v21  ;;  %3209 = vmatmul.mubr.msk.bf16.gmra.mrb[24].mxu0 %vm355_vm0, %v3902_v62 }
  0xa8   : > { %3076 = vmatprep.mubr.msk.bf16.mxu1 %vm355_vm0, %v3739_v26  ;;  %3212 = vmatprep.mubr.msk.bf16.mxu0 %vm355_vm0, %v3914_v63 }
  0xaf   : > { %3077 = vmatmul.mubr.msk.bf16.gmra.mrb[12].mxu1 %vm355_vm0, %v3742_v27  ;;  %3213 = vmatmul.mubr.msk.bf16.gmra.mrb[28].mxu0 %vm355_vm0, %v3550_v1 }
  0xb0   : > { %3080 = vmatprep.mubr.msk.bf16.mxu1 %vm355_vm0, %v3758_v30  ;;  %3224 = vmatprep.mubr.msk.bf16.mxu0 %vm355_vm0, %v3778_v35 }
  0xb7   : > { %3081 = vmatmul.mubr.msk.bf16.gmra.mrb[16].mxu1 %vm355_vm0, %v3775_v34  ;;  %3225 = vmatmul.mubr.msk.bf16.vlgmr.msra.gmra.mrb[0].mxu0 %vm355_vm0, %v3798_v39 }
  0xb8   : > { %3084 = vmatprep.mubr.msk.bf16.mxu1 %vm355_vm0, %v3792_v37  ;;  %3228 = vmatprep.mubr.msk.bf16.mxu0 %vm355_vm0, %v3804_v41 }
  0xbf   : > { %3085 = vmatmul.mubr.msk.bf16.gmra.mrb[20].mxu1 %vm355_vm0, %v3801_v40  ;;  %3229 = vmatmul.mubr.msk.bf16.gmra.mrb[4].mxu0 %vm355_vm0, %v3826_v46 }
  0xc0   : > { %3088 = vmatprep.mubr.msk.bf16.mxu1 %vm355_vm0, %v3823_v45  ;;  %3232 = vmatprep.mubr.msk.bf16.mxu0 %vm355_vm0, %v3832_v48 }
  0xc7   : > { %3089 = vmatmul.mubr.msk.bf16.gmra.mrb[24].mxu1 %vm355_vm0, %v3829_v47  ;;  %3233 = vmatmul.mubr.msk.bf16.gmra.mrb[8].mxu0 %vm355_vm0, %v3846_v50 }
  0xc8   : > { %3092 = vmatprep.mubr.msk.bf16.mxu1 %vm355_vm0, %v3843_v49  ;;  %3236 = vmatprep.mubr.msk.bf16.mxu0 %vm355_vm0, %v3850_v52 }
  0xcf   : > { %3093 = vmatmul.mubr.msk.bf16.gmra.mrb[28].mxu1 %vm355_vm0, %v3551_v3  ;;  %3237 = vmatmul.mubr.msk.bf16.gmra.mrb[12].mxu0 %vm355_vm0, %v3860_v53 }
  0xd0   : > { %3120 = vmatprep.mubr.msk.bf16.mxu1 %vm355_vm0, %v3775_v34  ;;  %3240 = vmatprep.mubr.msk.bf16.mxu0 %vm355_vm0, %v3863_v54 }
  0xd7   : > { %3121 = vmatmul.mubr.msk.bf16.vlgmr.msra.gmra.mrb[16].mxu1 %vm355_vm0, %v3792_v37  ;;  %3241 = vmatmul.mubr.msk.bf16.gmra.mrb[16].mxu0 %vm355_vm0, %v3880_v57 }
  0xd8   : > { %3124 = vmatprep.mubr.msk.bf16.mxu1 %vm355_vm0, %v3801_v40  ;;  %3244 = vmatprep.mubr.msk.bf16.mxu0 %vm355_vm0, %v3883_v58 }
  0xdf   : > { %3125 = vmatmul.mubr.msk.bf16.gmra.mrb[20].mxu1 %vm355_vm0, %v3823_v45  ;;  %3245 = vmatmul.mubr.msk.bf16.gmra.mrb[20].mxu0 %vm355_vm0, %v3899_v61 }
  0xe0   : > { %3128 = vmatprep.mubr.msk.bf16.mxu1 %vm355_vm0, %v3829_v47  ;;  %3248 = vmatprep.mubr.msk.bf16.mxu0 %vm355_vm0, %v3902_v62 }
  0xe7   : > { %3129 = vmatmul.mubr.msk.bf16.gmra.mrb[24].mxu1 %vm355_vm0, %v3843_v49  ;;  %3249 = vmatmul.mubr.msk.bf16.gmra.mrb[24].mxu0 %vm355_vm0, %v3914_v63 }
  0xe8   : > { %3132 = vmatprep.mubr.msk.bf16.mxu1 %vm355_vm0, %v3551_v3  ;;  %3252 = vmatprep.mubr.msk.bf16.mxu0 %vm355_vm0, %v3550_v1 }
  0xef   : > { %3133 = vmatmul.mubr.msk.bf16.gmra.mrb[28].mxu1 %vm355_vm0, %v3552_v5  ;;  %3253 = vmatmul.mubr.msk.bf16.gmra.mrb[28].mxu0 %vm355_vm0, %v3553_v7 }
 0x16a   : > { %v3066_v8 = vpop.f32.mrb[0].mxu1 }
 0x16b   : > { %v836_v9 = vpop.f32.mrb[1].mxu1 }
 0x16c   : > { %v3067_v10 = vpop.f32.mrb[2].mxu1 }
 0x16d   : > { %v839_v11 = vpop.f32.mrb[3].mxu1 }
 0x172   : > { %v3070_v12 = vpop.f32.mrb[4].mxu1 }
 0x173   : > { %v852_v13 = vpop.f32.mrb[5].mxu1 }
 0x174   : > { %v3071_v14 = vpop.f32.mrb[6].mxu1 }
 0x175   : > { %v855_v15 = vpop.f32.mrb[7].mxu1 }
 0x17a   : > { %v3074_v16 = vpop.f32.mrb[8].mxu1 }
 0x17b   : > { %v868_v17 = vpop.f32.mrb[9].mxu1 }
 0x17c   : > { %v3075_v18 = vpop.f32.mrb[10].mxu1 }
 0x17d   : > { %v871_v19 = vpop.f32.mrb[11].mxu1 }
 0x182   : > { %v4065_v20 = vpop.f32.mrb[12].mxu1 }
 0x183   : > { %v4067_v21 = vpop.f32.mrb[13].mxu1 }
 0x184   : > { %v4069_v22 = vpop.f32.mrb[14].mxu1 }
 0x185   : > { %v4071_v23 = vpop.f32.mrb[15].mxu1 }
 0x18a   : > { %v3226_v24 = vpop.f32.mrb[0].mxu0 }
 0x18b   : > { %v3264_v26 = vadd.f32 %v3226_v24, %v3066_v8  ;;  %v1927_v27 = vpop.f32.mrb[1].mxu0 }
 0x18c   : > { %v3265_v28 = vadd.f32 %v1927_v27, %v836_v9  ;;  %v3227_v29 = vpop.f32.mrb[2].mxu0 }
 0x18d   : > { %v2095_v30 = vadd.f32 %v3264_v26, %v4076_v25  ;;  %v3266_v31 = vadd.f32 %v3227_v29, %v3067_v10  ;;  %v1930_v32 = vpop.f32.mrb[3].mxu0 }
 0x18e   : > { %v2093_v33 = vadd.f32 %v3265_v28, %v4076_v25  ;;  %v3267_v34 = vadd.f32 %v1930_v32, %v839_v11 }
 0x18f   : > { %v2096_v35 = vadd.f32 %v3266_v31, %v4076_v25  ;;  %v2127_v37 = vmax.f32 %v2095_v30, 0.0 }
 0x190   : > { %v2094_v36 = vadd.f32 %v3267_v34, %v4076_v25  ;;  %v2125_v39 = vmax.f32 %v2093_v33, 0.0 }
 0x191   : > { %v2128_v38 = vmax.f32 %v2096_v35, 0.0 }
 0x192   : > { %v2126_v40 = vmax.f32 %v2094_v36, 0.0  ;;  %v3230_v41 = vpop.f32.mrb[4].mxu0 }
 0x193   : > { %v2749_v42 = vpack.c.bf16 %v2128_v38, %v2127_v37  ;;  %v3268_v43 = vadd.f32 %v3230_v41, %v3070_v12  ;;  %v1943_v44 = vpop.f32.mrb[5].mxu0 }
 0x194   : > { %v2744_v45 = vpack.c.bf16 %v2126_v40, %v2125_v39  ;;  %v3269_v46 = vadd.f32 %v1943_v44, %v852_v13  ;;  %v3231_v47 = vpop.f32.mrb[6].mxu0 }
 0x195   : > { %2821 = vst [vmem:[%s4086_s9 + $0x8] sm:$0xff] %v2749_v42   ;;  %v2099_v48 = vadd.f32 %v3268_v43, %v4076_v25  ;;  %v3270_v49 = vadd.f32 %v3231_v47, %v3071_v14  ;;  %v1946_v50 = vpop.f32.mrb[7].mxu0 }
 0x196   : > { %2745 = vst [vmem:[%s4086_s9] sm:$0xff] %v2744_v45   ;;  %v2097_v51 = vadd.f32 %v3269_v46, %v4076_v25  ;;  %v3271_v52 = vadd.f32 %v1946_v50, %v855_v15 }
 0x197   : > { %v2100_v53 = vadd.f32 %v3270_v49, %v4076_v25  ;;  %v2131_v55 = vmax.f32 %v2099_v48, 0.0 }
 0x198   : > { %v2098_v54 = vadd.f32 %v3271_v52, %v4076_v25  ;;  %v2129_v57 = vmax.f32 %v2097_v51, 0.0 }
 0x199   : > { %v2132_v56 = vmax.f32 %v2100_v53, 0.0 }
 0x19a   : > { %v2130_v58 = vmax.f32 %v2098_v54, 0.0  ;;  %v3234_v59 = vpop.f32.mrb[8].mxu0 }
 0x19b   : > { %v2759_v60 = vpack.c.bf16 %v2132_v56, %v2131_v55  ;;  %v3272_v61 = vadd.f32 %v3234_v59, %v3074_v16  ;;  %v1959_v62 = vpop.f32.mrb[9].mxu0 }
 0x19c   : > { %v2754_v63 = vpack.c.bf16 %v2130_v58, %v2129_v57  ;;  %v3273_v0 = vadd.f32 %v1959_v62, %v868_v17  ;;  %v3235_v2 = vpop.f32.mrb[10].mxu0 }
 0x19d   : > { %2823 = vst [vmem:[%s4086_s9 + $0x18] sm:$0xff] %v2759_v60   ;;  %v2103_v4 = vadd.f32 %v3272_v61, %v4076_v25  ;;  %v3274_v6 = vadd.f32 %v3235_v2, %v3075_v18  ;;  %v1962_v1 = vpop.f32.mrb[11].mxu0 }
 0x19e   : > { %2822 = vst [vmem:[%s4086_s9 + $0x10] sm:$0xff] %v2754_v63   ;;  %v2101_v3 = vadd.f32 %v3273_v0, %v4076_v25  ;;  %v3275_v5 = vadd.f32 %v1962_v1, %v871_v19 }
 0x19f   : > { %v2104_v7 = vadd.f32 %v3274_v6, %v4076_v25  ;;  %v2135_v9 = vmax.f32 %v2103_v4, 0.0 }
 0x1a0   : > { %v2102_v8 = vadd.f32 %v3275_v5, %v4076_v25  ;;  %v2133_v11 = vmax.f32 %v2101_v3, 0.0 }
 0x1a1   : > { %v2136_v10 = vmax.f32 %v2104_v7, 0.0 }
 0x1a2   : > { %v2134_v12 = vmax.f32 %v2102_v8, 0.0  ;;  %v3238_v13 = vpop.f32.mrb[12].mxu0 }
 0x1a3   : > { %v2769_v14 = vpack.c.bf16 %v2136_v10, %v2135_v9  ;;  %v3276_v15 = vadd.f32 %v3238_v13, %v4065_v20  ;;  %v1975_v16 = vpop.f32.mrb[13].mxu0 }
 0x1a4   : > { %v2764_v17 = vpack.c.bf16 %v2134_v12, %v2133_v11  ;;  %v3277_v18 = vadd.f32 %v1975_v16, %v4067_v21  ;;  %v3239_v24 = vpop.f32.mrb[14].mxu0 }
 0x1a5   : > { %2825 = vst [vmem:[%s4086_s9 + $0x28] sm:$0xff] %v2769_v14   ;;  %v2107_v19 = vadd.f32 %v3276_v15, %v4076_v25  ;;  %v3278_v26 = vadd.f32 %v3239_v24, %v4069_v22  ;;  %v1978_v27 = vpop.f32.mrb[15].mxu0 }
 0x1a6   : > { %2824 = vst [vmem:[%s4086_s9 + $0x20] sm:$0xff] %v2764_v17   ;;  %v2105_v28 = vadd.f32 %v3277_v18, %v4076_v25  ;;  %v3279_v29 = vadd.f32 %v1978_v27, %v4071_v23 }
 0x1a7   : > { %v2108_v30 = vadd.f32 %v3278_v26, %v4076_v25  ;;  %v2139_v31 = vmax.f32 %v2107_v19, 0.0 }
 0x1a8   : > { %v2106_v20 = vadd.f32 %v3279_v29, %v4076_v25  ;;  %v2137_v33 = vmax.f32 %v2105_v28, 0.0 }
 0x1a9   : > { %v2140_v32 = vmax.f32 %v2108_v30, 0.0 }
 0x1aa   : > { %v3122_v21 = vpop.f32.mrb[16].mxu1  ;;  %v2138_v34 = vmax.f32 %v2106_v20, 0.0  ;;  %v3242_v35 = vpop.f32.mrb[16].mxu0 }
 0x1ab   : > { %v1133_v36 = vpop.f32.mrb[17].mxu1  ;;  %v2779_v22 = vpack.c.bf16 %v2140_v32, %v2139_v31  ;;  %v3280_v37 = vadd.f32 %v3242_v35, %v3122_v21  ;;  %v1991_v38 = vpop.f32.mrb[17].mxu0 }
 0x1ac   : > { %v3123_v39 = vpop.f32.mrb[18].mxu1  ;;  %v2774_v40 = vpack.c.bf16 %v2138_v34, %v2137_v33  ;;  %v3281_v41 = vadd.f32 %v1991_v38, %v1133_v36  ;;  %v3243_v23 = vpop.f32.mrb[18].mxu0 }
 0x1ad   : > { %v1136_v42 = vpop.f32.mrb[19].mxu1  ;;  %2827 = vst [vmem:[%s4086_s9 + $0x38] sm:$0xff] %v2779_v22   ;;  %v2111_v43 = vadd.f32 %v3280_v37, %v4076_v25  ;;  %v3282_v44 = vadd.f32 %v3243_v23, %v3123_v39  ;;  %v1994_v45 = vpop.f32.mrb[19].mxu0 }
 0x1ae   : > { %2826 = vst [vmem:[%s4086_s9 + $0x30] sm:$0xff] %v2774_v40   ;;  %v2109_v46 = vadd.f32 %v3281_v41, %v4076_v25  ;;  %v3283_v47 = vadd.f32 %v1994_v45, %v1136_v42 }
 0x1af   : > { %v2112_v48 = vadd.f32 %v3282_v44, %v4076_v25  ;;  %v2143_v50 = vmax.f32 %v2111_v43, 0.0 }
 0x1b0   : > { %v2110_v49 = vadd.f32 %v3283_v47, %v4076_v25  ;;  %v2141_v53 = vmax.f32 %v2109_v46, 0.0 }
 0x1b1   : > { %v2144_v51 = vmax.f32 %v2112_v48, 0.0 }
 0x1b2   : > { %v3126_v52 = vpop.f32.mrb[20].mxu1  ;;  %v2142_v54 = vmax.f32 %v2110_v49, 0.0  ;;  %v3246_v55 = vpop.f32.mrb[20].mxu0 }
 0x1b3   : > { %v1149_v56 = vpop.f32.mrb[21].mxu1  ;;  %v2789_v57 = vpack.c.bf16 %v2144_v51, %v2143_v50  ;;  %v3284_v58 = vadd.f32 %v3246_v55, %v3126_v52  ;;  %v2007_v59 = vpop.f32.mrb[21].mxu0 }
 0x1b4   : > { %v3127_v60 = vpop.f32.mrb[22].mxu1  ;;  %v2784_v61 = vpack.c.bf16 %v2142_v54, %v2141_v53  ;;  %v3285_v62 = vadd.f32 %v2007_v59, %v1149_v56  ;;  %v3247_v63 = vpop.f32.mrb[22].mxu0 }
 0x1b5   : > { %v1152_v0 = vpop.f32.mrb[23].mxu1  ;;  %2829 = vst [vmem:[%s4086_s9 + $0x48] sm:$0xff] %v2789_v57   ;;  %v2115_v2 = vadd.f32 %v3284_v58, %v4076_v25  ;;  %v3286_v4 = vadd.f32 %v3247_v63, %v3127_v60  ;;  %v2010_v6 = vpop.f32.mrb[23].mxu0 }
 0x1b6   : > { %2828 = vst [vmem:[%s4086_s9 + $0x40] sm:$0xff] %v2784_v61   ;;  %v2113_v1 = vadd.f32 %v3285_v62, %v4076_v25  ;;  %v3287_v3 = vadd.f32 %v2010_v6, %v1152_v0 }
 0x1b7   : > { %v2116_v5 = vadd.f32 %v3286_v4, %v4076_v25  ;;  %v2147_v8 = vmax.f32 %v2115_v2, 0.0 }
 0x1b8   : > { %v2114_v7 = vadd.f32 %v3287_v3, %v4076_v25  ;;  %v2145_v11 = vmax.f32 %v2113_v1, 0.0 }
 0x1b9   : > { %v2148_v9 = vmax.f32 %v2116_v5, 0.0 }
 0x1ba   : > { %v3130_v10 = vpop.f32.mrb[24].mxu1  ;;  %v2146_v12 = vmax.f32 %v2114_v7, 0.0  ;;  %v3250_v13 = vpop.f32.mrb[24].mxu0 }
 0x1bb   : > { %v1165_v14 = vpop.f32.mrb[25].mxu1  ;;  %v2799_v15 = vpack.c.bf16 %v2148_v9, %v2147_v8  ;;  %v3288_v16 = vadd.f32 %v3250_v13, %v3130_v10  ;;  %v2023_v17 = vpop.f32.mrb[25].mxu0 }
 0x1bc   : > { %v3131_v18 = vpop.f32.mrb[26].mxu1  ;;  %v2794_v24 = vpack.c.bf16 %v2146_v12, %v2145_v11  ;;  %v3289_v19 = vadd.f32 %v2023_v17, %v1165_v14  ;;  %v3251_v26 = vpop.f32.mrb[26].mxu0 }
 0x1bd   : > { %v1168_v27 = vpop.f32.mrb[27].mxu1  ;;  %2831 = vst [vmem:[%s4086_s9 + $0x58] sm:$0xff] %v2799_v15   ;;  %v2119_v28 = vadd.f32 %v3288_v16, %v4076_v25  ;;  %v3290_v29 = vadd.f32 %v3251_v26, %v3131_v18  ;;  %v2026_v30 = vpop.f32.mrb[27].mxu0 }
 0x1be   : > { %2830 = vst [vmem:[%s4086_s9 + $0x50] sm:$0xff] %v2794_v24   ;;  %v2117_v20 = vadd.f32 %v3289_v19, %v4076_v25  ;;  %v3291_v31 = vadd.f32 %v2026_v30, %v1168_v27 }
 0x1bf   : > { %v2120_v32 = vadd.f32 %v3290_v29, %v4076_v25  ;;  %v2151_v33 = vmax.f32 %v2119_v28, 0.0 }
 0x1c0   : > { %v2118_v21 = vadd.f32 %v3291_v31, %v4076_v25  ;;  %v2149_v36 = vmax.f32 %v2117_v20, 0.0 }
 0x1c1   : > { %v2152_v34 = vmax.f32 %v2120_v32, 0.0 }
 0x1c2   : > { %v3134_v35 = vpop.f32.mrb[28].mxu1  ;;  %v2150_v22 = vmax.f32 %v2118_v21, 0.0  ;;  %v3254_v37 = vpop.f32.mrb[28].mxu0 }
 0x1c3   : > { %v1181_v38 = vpop.f32.mrb[29].mxu1  ;;  %v2809_v39 = vpack.c.bf16 %v2152_v34, %v2151_v33  ;;  %v3292_v40 = vadd.f32 %v3254_v37, %v3134_v35  ;;  %v2039_v41 = vpop.f32.mrb[29].mxu0 }
 0x1c4   : > { %v3135_v23 = vpop.f32.mrb[30].mxu1  ;;  %v2804_v42 = vpack.c.bf16 %v2150_v22, %v2149_v36  ;;  %v3293_v43 = vadd.f32 %v2039_v41, %v1181_v38  ;;  %v3255_v44 = vpop.f32.mrb[30].mxu0 }
 0x1c5   : > { %v1184_v45 = vpop.f32.mrb[31].mxu1  ;;  %2833 = vst [vmem:[%s4086_s9 + $0x68] sm:$0xff] %v2809_v39   ;;  %v2123_v46 = vadd.f32 %v3292_v40, %v4076_v25  ;;  %v3294_v47 = vadd.f32 %v3255_v44, %v3135_v23  ;;  %v2042_v48 = vpop.f32.mrb[31].mxu0 }
 0x1c6   : > { %2832 = vst [vmem:[%s4086_s9 + $0x60] sm:$0xff] %v2804_v42   ;;  %v2121_v49 = vadd.f32 %v3293_v43, %v4076_v25  ;;  %v3295_v50 = vadd.f32 %v2042_v48, %v1184_v45 }
 0x1c7   : > { %v2124_v51 = vadd.f32 %v3294_v47, %v4076_v25  ;;  %v2155_v53 = vmax.f32 %v2123_v46, 0.0 }
 0x1c8   : > { %v2122_v52 = vadd.f32 %v3295_v50, %v4076_v25  ;;  %v2153_v55 = vmax.f32 %v2121_v49, 0.0 }
 0x1c9   : > { %v2156_v54 = vmax.f32 %v2124_v51, 0.0 }
 0x1ca   : > { %v2154_v56 = vmax.f32 %v2122_v52, 0.0 }
 0x1cb   : > { %v2819_v57 = vpack.c.bf16 %v2156_v54, %v2155_v53 }
 0x1cc   : > { %v2814_v58 = vpack.c.bf16 %v2154_v56, %v2153_v55 }
 0x1cd   : > { %2835 = vst [vmem:[%s4086_s9 + $0x78] sm:$0xff] %v2819_v57  }
 0x1ce   : > { %2834 = vst [vmem:[%s4086_s9 + $0x70] sm:$0xff] %v2814_v58  }
 0x1cf PF: > { %s13_s14 = sadd.s32 1, %s3576_s14   ;;  %s4149_s12 = smov %s3572_s13 }
 0x1d0   : > { %p10_p5 = scmp.ge.s32.totalorder %s13_s14, 6   ;;  %s4150_s13 = smov %s4152_s15 }
 0x1d2   :  { %12 = sbr.rel (!%p10_p5) target bundleno = 2 (0x2), region = 70 }

// kernel: resnet_loss.24
= control target key start
LH: loop header
LB: loop body
LE: loop exit
PB: predicated region body
PF: predicated region fallthrough
CT: control target
= control target key end

     0   :  { %s759_s6 = smov 0   ;;  %s761_s7 = smov 0   ;;  %s1140_s0 = inlined_call_operand.vmem [shape: bf16[4,4,9,9,128], index: 0, kind: input, shape index: {}]   ;;  %s1141_s1 = inlined_call_operand.vmem [shape: bf16[4,8,8,128], index: 1, kind: output, shape index: {}]  }
   0x1   :  { %s763_s8 = smov 0  }
   0x2 LB: > { %s23_s9 = sadd.s32 1, %s743_s7  ;;  %p633_p0 = scmp.ge.s32.totalorder %s747_s8, 1  ;;  %s747_s8 = sphi %s763_s8, %s11_s8   ;;  %s743_s7 = sphi %s761_s7, %s1146_s7   ;;  %s739_s6 = sphi %s759_s6, %s1145_s6  }
   0x3   : > { %p25_p1 = scmp.ge.s32.totalorder %s23_s9, 4  ;;  %p101_p2 = scmp.lt.s32.totalorder %s747_s8, 5 }
   0x5   : > { %s1148_s9 = smov (%p25_p1, %s23_s9), 0  ;;  %p102_p3 = pnand %p633_p0, %p101_p2 }
   0x6   : > { %p125_p4 = scmp.lt.s32.totalorder (!%p102_p3), %s739_s6, 3  ;;  %vm236_vm0 = vsmask.f32 (!%p102_p3), 3328  ;;  %vm237_vm1 = vsmask.f32 (!%p102_p3), 7440 }
   0x7   : > { %105 = sbr.rel (%p102_p3) target bundleno = 82 (0x52), region = 24  ;;  %vm941_vm2 = vmor (!%p102_p3), %vm236_vm0, %vm237_vm1 }
   0xe   : > { %s1150_s6 = smov (!%p125_p4, %s739_s6), 3 }
   0xf   : > { %s700_s10 = smul.u32 288, %s1150_s6  ;;  %s672_s14 = sshll.u32 %s1150_s6, 5 }
  0x10   : > { %s138_s17 = scalar_lea.vmem %s1141_s1, %s672_s14 }
  0x11   : > { %s783_s13 = scalar_lea.vmem %s1140_s0, %s700_s10 }
  0x12   : > { %v786_v0 = vld [vmem:[%s783_s13] sm:$0xf]  ;;  %v789_v1 = vld [vmem:[%s783_s13 + $0x8] sm:$0xf]  ;;  %v792_v2 = vld [vmem:[%s783_s13 + $0x10] sm:$0xf] }
  0x13   : > { %v795_v3 = vld [vmem:[%s783_s13 + $0x18] sm:$0xf]  ;;  %v798_v4 = vld [vmem:[%s783_s13 + $0x20] sm:$0xf]  ;;  %v801_v5 = vld [vmem:[%s783_s13 + $0x28] sm:$0xf]  ;;  %v153_v6 = vmax.bf16 %v789_v1, %v786_v0  ;;  %v154_v7 = vmax.bf16 %v792_v2, %v789_v1 }
  0x14   : > { %v808_v8 = vld [vmem:[%s783_s13 + $0x30] sm:$0xf]  ;;  %v811_v9 = vld [vmem:[%s783_s13 + $0x38] sm:$0xf]  ;;  %v814_v10 = vld [vmem:[%s783_s13 + $0x40] sm:$0xf]  ;;  %v155_v11 = vmax.bf16 %v795_v3, %v792_v2  ;;  %v156_v12 = vmax.bf16 %v798_v4, %v795_v3  ;;  %v157_v13 = vmax.bf16 %v801_v5, %v798_v4 }
  0x15   : > { %v158_v14 = vmax.bf16 %v808_v8, %v801_v5  ;;  %v159_v15 = vmax.bf16 %v811_v9, %v808_v8  ;;  %v160_v16 = vmax.bf16 %v814_v10, %v811_v9  ;;  %v829_v17 = vld [vmem:[%s783_s13 + $0x90] sm:$0xf]  ;;  %v832_v18 = vld [vmem:[%s783_s13 + $0x98] sm:$0xf]  ;;  %v835_v19 = vld [vmem:[%s783_s13 + $0xa0] sm:$0xf] }
  0x16   : > { %v838_v20 = vld [vmem:[%s783_s13 + $0xa8] sm:$0xf]  ;;  %v841_v21 = vld [vmem:[%s783_s13 + $0xb0] sm:$0xf]  ;;  %v844_v22 = vld [vmem:[%s783_s13 + $0xb8] sm:$0xf]  ;;  %v172_v23 = vmax.bf16 %v829_v17, %v153_v6  ;;  %v173_v24 = vmax.bf16 %v832_v18, %v154_v7  ;;  %v174_v25 = vmax.bf16 %v835_v19, %v155_v11 }
  0x17   : > { %v850_v26 = vld [vmem:[%s783_s13 + $0xc0] sm:$0xf]  ;;  %v853_v27 = vld [vmem:[%s783_s13 + $0xc8] sm:$0xf]  ;;  %v175_v28 = vmax.bf16 %v838_v20, %v156_v12  ;;  %v176_v29 = vmax.bf16 %v841_v21, %v157_v13  ;;  %v177_v30 = vmax.bf16 %v844_v22, %v158_v14  ;;  %v646_v34 = vld [vmem:[%s783_s13 + $0x50] sm:$0xf] }
  0x18   : > { %v645_v31 = vld [vmem:[%s783_s13 + $0x48] sm:$0xf]  ;;  %v178_v32 = vmax.bf16 %v850_v26, %v159_v15  ;;  %v179_v33 = vmax.bf16 %v853_v27, %v160_v16  ;;  %v647_v35 = vld [vmem:[%s783_s13 + $0x58] sm:$0xf]  ;;  %v648_v36 = vld [vmem:[%s783_s13 + $0x60] sm:$0xf]  ;;  %v193_v41 = vmax.bf16 %v646_v34, %v173_v24 }
  0x19   : > { %v192_v37 = vmax.bf16 %v645_v31, %v172_v23  ;;  %v649_v38 = vld [vmem:[%s783_s13 + $0x68] sm:$0xf]  ;;  %v650_v39 = vld [vmem:[%s783_s13 + $0x70] sm:$0xf]  ;;  %v651_v40 = vld [vmem:[%s783_s13 + $0x78] sm:$0xf]  ;;  %v194_v42 = vmax.bf16 %v647_v35, %v174_v25  ;;  %v195_v43 = vmax.bf16 %v648_v36, %v175_v28 }
  0x1a   : > { %v652_v44 = vld [vmem:[%s783_s13 + $0x80] sm:$0xf]  ;;  %v653_v45 = vld [vmem:[%s783_s13 + $0x88] sm:$0xf]  ;;  %v196_v46 = vmax.bf16 %v649_v38, %v176_v29  ;;  %v197_v47 = vmax.bf16 %v650_v39, %v177_v30  ;;  %v198_v48 = vmax.bf16 %v651_v40, %v178_v32  ;;  %v872_v50 = vld [vmem:[%s783_s13 + $0xd8] sm:$0xf]  ;;  %v874_v52 = vmax.bf16 %v647_v35, %v193_v41 }
  0x1b   : > { %v869_v49 = vmax.bf16 %v646_v34, %v192_v37  ;;  %v199_v51 = vmax.bf16 %v652_v44, %v179_v33  ;;  %v876_v53 = vmax.bf16 %v648_v36, %v194_v42  ;;  %v878_v54 = vmax.bf16 %v649_v38, %v195_v43  ;;  %v881_v55 = vld [vmem:[%s783_s13 + $0xe0] sm:$0xf]  ;;  %v884_v56 = vld [vmem:[%s783_s13 + $0xe8] sm:$0xf]  ;;  %v887_v57 = vld [vmem:[%s783_s13 + $0xf0] sm:$0xf] }
  0x1c   : > { %v889_v58 = vmax.bf16 %v650_v39, %v196_v46  ;;  %v891_v59 = vmax.bf16 %v651_v40, %v197_v47  ;;  %v893_v60 = vmax.bf16 %v652_v44, %v198_v48  ;;  %v896_v61 = vld [vmem:[%s783_s13 + $0xf8] sm:$0xf]  ;;  %v899_v62 = vld [vmem:[%s783_s13 + $0x100] sm:$0xf]  ;;  %v902_v63 = vld [vmem:[%s783_s13 + $0x108] sm:$0xf]  ;;  %v220_v12 = vmax.bf16 %v881_v55, %v874_v52 }
  0x1d   : > { %v227_v6 = vld [vmem:[%s783_s13 + $0x4] sm:$0x1]  ;;  %v905_v7 = vmax.bf16 %v653_v45, %v199_v51  ;;  %v219_v11 = vmax.bf16 %v872_v50, %v869_v49  ;;  %v221_v13 = vmax.bf16 %v884_v56, %v876_v53  ;;  %v228_v14 = vld [vmem:[%s783_s13 + $0xc] sm:$0x1]  ;;  %v222_v15 = vmax.bf16 %v887_v57, %v878_v54  ;;  %v229_v31 = vld [vmem:[%s783_s13 + $0x14] sm:$0x1] }
  0x1e   : > { %v223_v16 = vmax.bf16 %v896_v61, %v889_v58  ;;  %v224_v23 = vmax.bf16 %v899_v62, %v891_v59  ;;  %v225_v24 = vmax.bf16 %v902_v63, %v893_v60  ;;  %v240_v25 = vshrl.u32 %v786_v0, 16  ;;  %v230_v36 = vld [vmem:[%s783_s13 + $0x1c] sm:$0x1]  ;;  %v933_v44 = vld [vmem:[%s783_s13 + $0x110] sm:$0xf] }
  0x1f   : > { %v243_v28 = vshll.u32 %v786_v0, 16  ;;  %v249_v29 = vshll.u32 %v227_v6, 16  ;;  %v254_v30 = vshrl.u32 %v789_v1, 16  ;;  %v257_v32 = vshll.u32 %v789_v1, 16 }
  0x20   : > { %v263_v33 = vshll.u32 %v228_v14, 16  ;;  %v268_v34 = vshrl.u32 %v792_v2, 16  ;;  %v271_v35 = vshll.u32 %v792_v2, 16  ;;  %v242_v37 = vrot.slane %v240_v25, 4  ;;  %v231_v2 = vld [vmem:[%s783_s13 + $0x24] sm:$0x1] }
  0x21   : > { %v245_v38 = vrot.slane %v243_v28, 5  ;;  %v930_v39 = vrot.slane %v249_v29, 5  ;;  %v256_v40 = vrot.slane %v254_v30, 4  ;;  %v259_v0 = vrot.slane %v257_v32, 5  ;;  %v232_v32 = vld [vmem:[%s783_s13 + $0x2c] sm:$0x1] }
  0x22   : > { %v265_v41 = vrot.slane %v263_v33, 5  ;;  %v270_v42 = vrot.slane %v268_v34, 4  ;;  %v273_v43 = vrot.slane %v271_v35, 5  ;;  %v277_v45 = vshll.u32 %v229_v31, 16 }
  0x23   : > { %v246_v1 = vor.u32 %v245_v38, %v242_v37  ;;  %v282_v46 = vshrl.u32 %v795_v3, 16  ;;  %v285_v47 = vshll.u32 %v795_v3, 16  ;;  %v260_v48 = vor.u32 %v259_v0, %v256_v40  ;;  %v233_v0 = vld [vmem:[%s783_s13 + $0x34] sm:$0x1] }
  0x24   : > { %v274_v51 = vor.u32 %v273_v43, %v270_v42  ;;  %v291_v6 = vshll.u32 %v230_v36, 16  ;;  %v296_v14 = vshrl.u32 %v798_v4, 16  ;;  %v279_v29 = vrot.slane %v277_v45, 5 }
  0x25   : > { %v247_v28 = vrot.slane %v246_v1, 4  ;;  %v284_v30 = vrot.slane %v282_v46, 4  ;;  %v287_v31 = vrot.slane %v285_v47, 5  ;;  %v261_v33 = vrot.slane %v260_v48, 4  ;;  %v234_v48 = vld [vmem:[%s783_s13 + $0x3c] sm:$0x1] }
  0x26   : > { %v275_v34 = vrot.slane %v274_v51, 4  ;;  %v293_v35 = vrot.slane %v291_v6, 5  ;;  %v298_v37 = vrot.slane %v296_v14, 4  ;;  %v299_v38 = vshll.u32 %v798_v4, 16 }
  0x27   : > { %v288_v36 = vor.u32 %v287_v31, %v284_v30  ;;  %v305_v40 = vshll.u32 %v231_v2, 16  ;;  %v252_v42 = vsel %vm941_vm2, %v247_v28, %v930_v39  ;;  %v955_v43 = vsel %vm941_vm2, %v261_v33, %v265_v41 }
  0x28   : > { %v310_v1 = vshrl.u32 %v801_v5, 16  ;;  %v313_v45 = vshll.u32 %v801_v5, 16  ;;  %v961_v46 = vsel %vm941_vm2, %v275_v34, %v279_v29  ;;  %v301_v4 = vrot.slane %v299_v38, 5 }
  0x29   : > { %v289_v47 = vrot.slane %v288_v36, 4  ;;  %v319_v2 = vshll.u32 %v232_v32, 16  ;;  %v324_v39 = vshrl.u32 %v808_v8, 16  ;;  %v327_v14 = vshll.u32 %v808_v8, 16 }
  0x2a   : > { %v312_v51 = vrot.slane %v310_v1, 4  ;;  %v315_v6 = vrot.slane %v313_v45, 5  ;;  %v302_v41 = vor.u32 %v301_v4, %v298_v37  ;;  %v307_v28 = vrot.slane %v305_v40, 5  ;;  %v235_v40 = vld [vmem:[%s783_s13 + $0x44] sm:$0x1] }
  0x2b   : > { %v321_v30 = vrot.slane %v319_v2, 5  ;;  %v333_v31 = vshll.u32 %v233_v0, 16  ;;  %v326_v33 = vrot.slane %v324_v39, 4  ;;  %v329_v3 = vrot.slane %v327_v14, 5 }
  0x2c   : > { %v316_v5 = vor.u32 %v315_v6, %v312_v51  ;;  %v338_v29 = vshrl.u32 %v811_v9, 16  ;;  %v969_v32 = vsel %vm941_vm2, %v289_v47, %v293_v35  ;;  %v303_v34 = vrot.slane %v302_v41, 4 }
  0x2d   : > { %v341_v36 = vshll.u32 %v811_v9, 16  ;;  %v347_v38 = vshll.u32 %v234_v48, 16  ;;  %v330_v8 = vor.u32 %v329_v3, %v326_v33  ;;  %v335_v37 = vrot.slane %v333_v31, 5  ;;  %v664_v33 = vld [vmem:[%s783_s13 + $0xa4] sm:$0x1] }
  0x2e   : > { %v317_v1 = vrot.slane %v316_v5, 4  ;;  %v340_v45 = vrot.slane %v338_v29, 4  ;;  %v975_v0 = vsel %vm941_vm2, %v303_v34, %v307_v28  ;;  %v980_v35 = vmax.bf16 %v252_v42, %v219_v11 }
  0x2f   : > { %v343_v4 = vrot.slane %v341_v36, 5  ;;  %v349_v2 = vrot.slane %v347_v38, 5  ;;  %v331_v47 = vrot.slane %v330_v8, 4  ;;  %v990_v3 = vmax.bf16 %v955_v43, %v220_v12  ;;  %v665_v36 = vld [vmem:[%s783_s13 + $0xac] sm:$0x1] }
  0x30   : > { %v984_v9 = vsel %vm941_vm2, %v317_v1, %v321_v30  ;;  %v996_v48 = vmax.bf16 %v961_v46, %v221_v13  ;;  %v1002_v50 = vmax.bf16 %v969_v32, %v222_v15  ;;  %v1008_v52 = vmax.bf16 %v975_v0, %v223_v16  ;;  %v662_v15 = vld [vmem:[%s783_s13 + $0x94] sm:$0x1] }
  0x31   : > { %v344_v49 = vor.u32 %v343_v4, %v340_v45  ;;  %v368_v55 = vshrl.u32 %v814_v10, 16  ;;  %v1013_v53 = vsel %vm941_vm2, %v331_v47, %v335_v37  ;;  %v1019_v54 = vmax.bf16 %v984_v9, %v224_v23  ;;  %v663_v23 = vld [vmem:[%s783_s13 + $0x9c] sm:$0x1] }
  0x32   : > { %v371_v56 = vshll.u32 %v814_v10, 16  ;;  %v377_v57 = vshll.u32 %v235_v40, 16  ;;  %v1026_v61 = vmax.bf16 %v1013_v53, %v225_v24  ;;  %v382_v12 = vmax.bf16 %v980_v35, %v955_v43 }
  0x33   : > { %v345_v58 = vrot.slane %v344_v49, 4  ;;  %v370_v11 = vrot.slane %v368_v55, 4  ;;  %v383_v62 = vmax.bf16 %v990_v3, %v961_v46  ;;  %v384_v10 = vmax.bf16 %v996_v48, %v969_v32 }
  0x34   : > { %v373_v13 = vrot.slane %v371_v56, 5  ;;  %v1030_v59 = vrot.slane %v377_v57, 5  ;;  %v385_v63 = vmax.bf16 %v1002_v50, %v975_v0  ;;  %v386_v16 = vmax.bf16 %v1008_v52, %v984_v9 }
  0x35   : > { %v1039_v60 = vsel %vm941_vm2, %v345_v58, %v349_v2  ;;  %v399_v24 = vshrl.u32 %v829_v17, 16  ;;  %v1144_v42 = vmax.bf16 %v933_v44, %v905_v7  ;;  %v387_v39 = vmax.bf16 %v1019_v54, %v1013_v53 }
  0x36   : > { %v374_v6 = vor.u32 %v373_v13, %v370_v11  ;;  %v402_v14 = vshll.u32 %v829_v17, 16  ;;  %v408_v28 = vshll.u32 %v662_v15, 16  ;;  %v413_v30 = vshrl.u32 %v832_v18, 16 }
  0x37   : > { %v1051_v51 = vmax.bf16 %v1039_v60, %v1144_v42  ;;  %v401_v41 = vrot.slane %v399_v24, 4  ;;  %v416_v31 = vshll.u32 %v832_v18, 16  ;;  %v422_v7 = vshll.u32 %v663_v23, 16  ;;  %v667_v23 = vld [vmem:[%s783_s13 + $0xbc] sm:$0x1] }
  0x38   : > { %v1058_v5 = vrot.slane %v374_v6, 4  ;;  %v404_v29 = vrot.slane %v402_v14, 5  ;;  %v427_v44 = vshrl.u32 %v835_v19, 16  ;;  %v388_v34 = vmax.bf16 %v1026_v61, %v1039_v60 }
  0x39   : > { %v415_v38 = vrot.slane %v413_v30, 4  ;;  %v418_v17 = vrot.slane %v416_v31, 5  ;;  %v430_v1 = vshll.u32 %v835_v19, 16  ;;  %v410_v37 = vrot.slane %v408_v28, 5  ;;  %v666_v19 = vld [vmem:[%s783_s13 + $0xb4] sm:$0x1] }
  0x3a   : > { %v380_v18 = vsel %vm941_vm2, %v1058_v5, %v1030_v59  ;;  %v405_v8 = vor.u32 %v404_v29, %v401_v41  ;;  %v429_v45 = vrot.slane %v427_v44, 4  ;;  %v424_v4 = vrot.slane %v422_v7, 5  ;;  %v668_v44 = vld [vmem:[%s783_s13 + $0xc4] sm:$0x1] }
  0x3b   : > { %v419_v40 = vor.u32 %v418_v17, %v415_v38  ;;  %v432_v2 = vrot.slane %v430_v1, 5  ;;  %v436_v47 = vshll.u32 %v664_v33, 16  ;;  %v441_v55 = vshrl.u32 %v838_v20, 16 }
  0x3c   : > { %v406_v49 = vrot.slane %v405_v8, 4  ;;  %v444_v56 = vshll.u32 %v838_v20, 16  ;;  %v450_v57 = vshll.u32 %v665_v36, 16  ;;  %v455_v15 = vshrl.u32 %v841_v21, 16  ;;  %v669_v8 = vld [vmem:[%s783_s13 + $0xcc] sm:$0x1] }
  0x3d   : > { %v420_v58 = vrot.slane %v419_v40, 4  ;;  %v433_v11 = vor.u32 %v432_v2, %v429_v45  ;;  %v438_v13 = vrot.slane %v436_v47, 5  ;;  %v443_v42 = vrot.slane %v441_v55, 4 }
  0x3e   : > { %v411_v24 = vsel %vm941_vm2, %v406_v49, %v410_v37  ;;  %v446_v6 = vrot.slane %v444_v56, 5  ;;  %v452_v14 = vrot.slane %v450_v57, 5  ;;  %v457_v28 = vrot.slane %v455_v15, 4 }
  0x3f   : > { %v425_v41 = vsel %vm941_vm2, %v420_v58, %v424_v4  ;;  %v434_v20 = vrot.slane %v433_v11, 4  ;;  %v458_v30 = vshll.u32 %v841_v21, 16  ;;  %v464_v33 = vshll.u32 %v666_v19, 16 }
  0x40   : > { %v447_v31 = vor.u32 %v446_v6, %v443_v42  ;;  %v469_v29 = vshrl.u32 %v844_v22, 16  ;;  %v472_v7 = vshll.u32 %v844_v22, 16  ;;  %v478_v17 = vshll.u32 %v667_v23, 16 }
  0x41   : > { %v439_v36 = vsel %vm941_vm2, %v434_v20, %v438_v13  ;;  %v460_v38 = vrot.slane %v458_v30, 5  ;;  %v483_v1 = vshrl.u32 %v850_v26, 16  ;;  %v466_v45 = vrot.slane %v464_v33, 5 }
  0x42   : > { %v448_v37 = vrot.slane %v447_v31, 4  ;;  %v471_v40 = vrot.slane %v469_v29, 4  ;;  %v474_v21 = vrot.slane %v472_v7, 5  ;;  %v480_v2 = vrot.slane %v478_v17, 5 }
  0x43   : > { %v461_v4 = vor.u32 %v460_v38, %v457_v28  ;;  %v485_v47 = vrot.slane %v483_v1, 4  ;;  %v486_v49 = vshll.u32 %v850_v26, 16  ;;  %v492_v56 = vshll.u32 %v668_v44, 16 }
  0x44   : > { %v453_v22 = vsel %vm941_vm2, %v448_v37, %v452_v14  ;;  %v475_v55 = vor.u32 %v474_v21, %v471_v40  ;;  %v497_v57 = vshrl.u32 %v853_v27, 16  ;;  %v500_v11 = vshll.u32 %v853_v27, 16 }
  0x45   : > { %v462_v19 = vrot.slane %v461_v4, 4  ;;  %v488_v58 = vrot.slane %v486_v49, 5  ;;  %v506_v13 = vshll.u32 %v669_v8, 16  ;;  %v494_v23 = vrot.slane %v492_v56, 5 }
  0x46   : > { %v476_v15 = vrot.slane %v475_v55, 4  ;;  %v499_v42 = vrot.slane %v497_v57, 4  ;;  %v518_v26 = vmax.bf16 %v411_v24, %v382_v12  ;;  %v502_v20 = vrot.slane %v500_v11, 5 }
  0x47   : > { %v467_v6 = vsel %vm941_vm2, %v462_v19, %v466_v45  ;;  %v489_v14 = vor.u32 %v488_v58, %v485_v47  ;;  %v508_v28 = vrot.slane %v506_v13, 5  ;;  %v519_v27 = vmax.bf16 %v425_v41, %v383_v62 }
  0x48   : > { %v481_v30 = vsel %vm941_vm2, %v476_v15, %v480_v2  ;;  %v520_v31 = vmax.bf16 %v439_v36, %v384_v10  ;;  %v521_v43 = vmax.bf16 %v453_v22, %v385_v63  ;;  %v503_v12 = vor.u32 %v502_v20, %v499_v42 }
  0x49   : > { %v490_v35 = vrot.slane %v489_v14, 4  ;;  %v522_v24 = vmax.bf16 %v467_v6, %v386_v16  ;;  %v523_v46 = vmax.bf16 %v481_v30, %v387_v39  ;;  %v389_v32 = vmax.bf16 %v380_v18, %v1051_v51 }
  0x4a   : > { %v693_v0 = vcombine.low %v518_v26, %v519_v27  ;;  %v694_v3 = vcombine.low %v520_v31, %v521_v43  ;;  %v504_v50 = vrot.slane %v503_v12, 4 }
  0x4b   : > { %v495_v48 = vsel %vm941_vm2, %v490_v35, %v494_v23  ;;  %v696_v62 = vcombine.low %v522_v24, %v523_v46 }
  0x4c   : > { %v524_v9 = vmax.bf16 %v495_v48, %v388_v34  ;;  %677 = vst [vmem:[%s138_s17] sm:$0xff] %v693_v0   ;;  %695 = vst [vmem:[%s138_s17 + $0x8] sm:$0xff] %v694_v3   ;;  %v509_v52 = vsel %vm941_vm2, %v504_v50, %v508_v28 }
  0x4d   : > { %697 = vst [vmem:[%s138_s17 + $0x10] sm:$0xff] %v696_v62   ;;  %v525_v53 = vmax.bf16 %v509_v52, %v389_v32 }
  0x4f   : > { %v698_v54 = vcombine.low %v524_v9, %v525_v53 }
  0x51   : > { %699 = vst [vmem:[%s138_s17 + $0x18] sm:$0xff] %v698_v54  }
  0x52 PF: > { %s11_s8 = sadd.s32 1, %s747_s8   ;;  %s1145_s6 = smov %s743_s7 }
  0x53   : > { %p8_p5 = scmp.ge.s32.totalorder %s11_s8, 6   ;;  %s1146_s7 = smov %s1148_s9 }
  0x55   :  { %10 = sbr.rel (!%p8_p5) target bundleno = 2 (0x2), region = 58 }

// kernel: resnet_loss.25
= control target key start
LH: loop header
LB: loop body
LE: loop exit
PB: predicated region body
PF: predicated region fallthrough
CT: control target
= control target key end

     0   :  { %s711_s12 = smov 0   ;;  %s713_s13 = smov 0   ;;  %s784_s0 = inlined_call_operand.vmem [shape: bf16[4,64,128], index: 0, kind: input, shape index: {}]   ;;  %s785_s1 = inlined_call_operand.vmem [shape: bf16[128,128], index: 1, kind: input, shape index: {}]   ;;  %s786_s2 = inlined_call_operand.vmem [shape: f32[1,128], index: 2, kind: input, shape index: {}]   ;;  %s787_s3 = inlined_call_operand.vmem [shape: bf16[4,64,128], index: 3, kind: output, shape index: {}]  }
   0x1   :  { %s715_s14 = smov 0  }
   0x2 LB: > { %s25_s15 = sadd.s32 1, %s685_s13  ;;  %p518_p0 = scmp.ge.s32.totalorder %s689_s14, 1  ;;  %s689_s14 = sphi %s715_s14, %s13_s14   ;;  %s685_s13 = sphi %s713_s13, %s789_s13   ;;  %s681_s12 = sphi %s711_s12, %s788_s12  }
   0x3   : > { %p27_p1 = scmp.ge.s32.totalorder %s25_s15, 4  ;;  %p158_p2 = scmp.lt.s32.totalorder %s689_s14, 5 }
   0x5   : > { %s791_s15 = smov (%p27_p1, %s25_s15), 0  ;;  %p159_p3 = pnand %p518_p0, %p158_p2 }
   0x6   : > { %v655_v0 = vld [vmem:[%s785_s1] sm:$0xff] (!%p159_p3)   ;;  %p191_p4 = scmp.lt.s32.totalorder (!%p159_p3), %s681_s12, 3  ;;  %v656_v1 = vld [vmem:[%s785_s1 + $0x8] sm:$0xff] (!%p159_p3)   ;;  %v657_v2 = vld [vmem:[%s785_s1 + $0x10] sm:$0xff] (!%p159_p3)  }
   0x7   : > { %162 = sbr.rel (%p159_p3) target bundleno = 261 (0x105), region = 32  ;;  %591 = vmatprep.subr.bf16.mxu0 (!%p159_p3), %v655_v0  ;;  %615 = vmatprep.subr.bf16.mxu1 (!%p159_p3), %v655_v0  ;;  %v658_v3 = vld [vmem:[%s785_s1 + $0x18] sm:$0xff] (!%p159_p3)   ;;  %v659_v6 = vld [vmem:[%s785_s1 + $0x20] sm:$0xff] (!%p159_p3)   ;;  %v660_v7 = vld [vmem:[%s785_s1 + $0x28] sm:$0xff] (!%p159_p3)  }
   0x8   : > { %592 = vmatpush3.bf16.msra.mxu0 (!%p159_p3), %v655_v0  ;;  %623 = vmatpush3.bf16.msra.mxu1 (!%p159_p3), %v655_v0  ;;  %v661_v8 = vld [vmem:[%s785_s1 + $0x30] sm:$0xff] (!%p159_p3)   ;;  %v662_v9 = vld [vmem:[%s785_s1 + $0x38] sm:$0xff] (!%p159_p3)   ;;  %v523_v12 = vld [vmem:[%s786_s2] ss:$0 sm:$0xff] (!%p159_p3) }
   0x9   : > { %593 = vmatprep.subr.bf16.mxu0 (!%p159_p3), %v656_v1  ;;  %616 = vmatprep.subr.bf16.mxu1 (!%p159_p3), %v656_v1 }
   0xc   : > { %594 = vmatpush3.bf16.msra.mxu0 (!%p159_p3), %v656_v1  ;;  %624 = vmatpush3.bf16.msra.mxu1 (!%p159_p3), %v656_v1 }
   0xd   : > { %595 = vmatprep.subr.bf16.mxu0 (!%p159_p3), %v657_v2  ;;  %617 = vmatprep.subr.bf16.mxu1 (!%p159_p3), %v657_v2 }
   0xe   : > { %s793_s12 = smov (!%p191_p4, %s681_s12), 3 }
   0xf   : > { %s546_s22 = sshll.u32 %s793_s12, 5 }
  0x10   : > { %s746_s25 = scalar_lea.vmem %s784_s0, %s546_s22  ;;  %596 = vmatpush3.bf16.msra.mxu0 %v657_v2  ;;  %625 = vmatpush3.bf16.msra.mxu1 %v657_v2  ;;  %s208_s17 = scalar_lea.vmem %s787_s3, %s546_s22 }
  0x11   : > { %v663_v4 = vld [vmem:[%s746_s25] sm:$0xff]   ;;  %v664_v5 = vld [vmem:[%s746_s25 + $0x10] sm:$0xff]   ;;  %597 = vmatprep.subr.bf16.mxu0 %v658_v3  ;;  %618 = vmatprep.subr.bf16.mxu1 %v658_v3  ;;  %v665_v10 = vld [vmem:[%s746_s25 + $0x8] sm:$0xff]  }
  0x12   : > { %607 = vmatprep.mubr.bf16.mxu0 %v663_v4  ;;  %611 = vmatprep.mubr.bf16.mxu1 %v664_v5  ;;  %v666_v11 = vld [vmem:[%s746_s25 + $0x18] sm:$0xff]  }
  0x14   : > { %598 = vmatpush3.bf16.msra.mxu0 %v658_v3  ;;  %626 = vmatpush3.bf16.msra.mxu1 %v658_v3 }
  0x15   : > { %599 = vmatprep.subr.bf16.mxu0 %v659_v6  ;;  %619 = vmatprep.subr.bf16.mxu1 %v659_v6 }
  0x18   : > { %600 = vmatpush3.bf16.msra.mxu0 %v659_v6  ;;  %627 = vmatpush3.bf16.msra.mxu1 %v659_v6 }
  0x19   : > { %601 = vmatprep.subr.bf16.mxu0 %v660_v7  ;;  %620 = vmatprep.subr.bf16.mxu1 %v660_v7 }
  0x1c   : > { %602 = vmatpush3.bf16.msra.mxu0 %v660_v7  ;;  %628 = vmatpush3.bf16.msra.mxu1 %v660_v7 }
  0x1d   : > { %603 = vmatprep.subr.bf16.mxu0 %v661_v8  ;;  %621 = vmatprep.subr.bf16.mxu1 %v661_v8 }
  0x20   : > { %604 = vmatpush3.bf16.msra.mxu0 %v661_v8  ;;  %629 = vmatpush3.bf16.msra.mxu1 %v661_v8 }
  0x21   : > { %605 = vmatprep.subr.bf16.mxu0 %v662_v9  ;;  %622 = vmatprep.subr.bf16.mxu1 %v662_v9 }
  0x24   : > { %606 = vmatpush3.bf16.msra.mxu0 %v662_v9  ;;  %630 = vmatpush3.bf16.msra.mxu1 %v662_v9 }
  0x27   : > { %608 = vmatmul.mubr.bf16.vlgmr.msra.gmra.mrb[0].mxu0 %v665_v10  ;;  %612 = vmatmul.mubr.bf16.vlgmr.msra.gmra.mrb[0].mxu1 %v666_v11 }
  0xfa   : > { %v609_v13 = vpop.f32.mrb[0].mxu0  ;;  %v613_v14 = vpop.f32.mrb[0].mxu1 }
  0xfb   : > { %v357_v15 = vadd.f32 %v609_v13, %v523_v12  ;;  %v373_v16 = vadd.f32 %v613_v14, %v523_v12  ;;  %v348_v17 = vpop.f32.mrb[1].mxu0  ;;  %v364_v18 = vpop.f32.mrb[1].mxu1 }
  0xfc   : > { %v349_v19 = vadd.f32 %v523_v12, %v348_v17  ;;  %v365_v20 = vadd.f32 %v523_v12, %v364_v18  ;;  %v610_v21 = vpop.f32.mrb[2].mxu0  ;;  %v614_v22 = vpop.f32.mrb[2].mxu1 }
  0xfd   : > { %v360_v23 = vadd.f32 %v610_v21, %v523_v12  ;;  %v376_v24 = vadd.f32 %v614_v22, %v523_v12  ;;  %v351_v25 = vpop.f32.mrb[3].mxu0  ;;  %v367_v26 = vpop.f32.mrb[3].mxu1  ;;  %v381_v29 = vmax.f32 %v357_v15, 0.0  ;;  %v385_v30 = vmax.f32 %v373_v16, 0.0 }
  0xfe   : > { %v352_v27 = vadd.f32 %v523_v12, %v351_v25  ;;  %v368_v28 = vadd.f32 %v523_v12, %v367_v26  ;;  %v379_v33 = vmax.f32 %v349_v19, 0.0  ;;  %v383_v34 = vmax.f32 %v365_v20, 0.0 }
  0xff   : > { %v382_v31 = vmax.f32 %v360_v23, 0.0  ;;  %v386_v32 = vmax.f32 %v376_v24, 0.0 }
 0x100   : > { %v380_v35 = vmax.f32 %v352_v27, 0.0  ;;  %v384_v36 = vmax.f32 %v368_v28, 0.0 }
 0x101   : > { %v564_v37 = vpack.c.bf16 %v382_v31, %v381_v29  ;;  %v574_v38 = vpack.c.bf16 %v386_v32, %v385_v30 }
 0x102   : > { %v559_v39 = vpack.c.bf16 %v380_v35, %v379_v33  ;;  %v569_v40 = vpack.c.bf16 %v384_v36, %v383_v34 }
 0x103   : > { %576 = vst [vmem:[%s208_s17 + $0x8] sm:$0xff] %v564_v37   ;;  %578 = vst [vmem:[%s208_s17 + $0x18] sm:$0xff] %v574_v38  }
 0x104   : > { %560 = vst [vmem:[%s208_s17] sm:$0xff] %v559_v39   ;;  %577 = vst [vmem:[%s208_s17 + $0x10] sm:$0xff] %v569_v40  }
 0x105 PF: > { %s13_s14 = sadd.s32 1, %s689_s14   ;;  %s788_s12 = smov %s685_s13 }
 0x106   : > { %p10_p5 = scmp.ge.s32.totalorder %s13_s14, 6   ;;  %s789_s13 = smov %s791_s15 }
 0x108   :  { %12 = sbr.rel (!%p10_p5) target bundleno = 2 (0x2), region = 62 }

// kernel: resnet_loss.27
= control target key start
LH: loop header
LB: loop body
LE: loop exit
PB: predicated region body
PF: predicated region fallthrough
CT: control target
= control target key end

     0   :  { %s703_s12 = smov 0   ;;  %s705_s13 = smov 0   ;;  %s776_s0 = inlined_call_operand.vmem [shape: bf16[4,64,128], index: 0, kind: input, shape index: {}]   ;;  %s777_s1 = inlined_call_operand.vmem [shape: bf16[128,128], index: 1, kind: input, shape index: {}]   ;;  %s778_s2 = inlined_call_operand.vmem [shape: f32[1,128], index: 2, kind: input, shape index: {}]   ;;  %s779_s3 = inlined_call_operand.vmem [shape: bf16[4,64,128], index: 3, kind: output, shape index: {}]  }
   0x1   :  { %s707_s14 = smov 0  }
   0x2 LB: > { %s25_s15 = sadd.s32 1, %s677_s13  ;;  %p510_p0 = scmp.ge.s32.totalorder %s681_s14, 1  ;;  %s681_s14 = sphi %s707_s14, %s13_s14   ;;  %s677_s13 = sphi %s705_s13, %s781_s13   ;;  %s673_s12 = sphi %s703_s12, %s780_s12  }
   0x3   : > { %p27_p1 = scmp.ge.s32.totalorder %s25_s15, 4  ;;  %p158_p2 = scmp.lt.s32.totalorder %s681_s14, 5 }
   0x5   : > { %s783_s15 = smov (%p27_p1, %s25_s15), 0  ;;  %p159_p3 = pnand %p510_p0, %p158_p2 }
   0x6   : > { %v647_v0 = vld [vmem:[%s777_s1] sm:$0xff] (!%p159_p3)   ;;  %p191_p4 = scmp.lt.s32.totalorder (!%p159_p3), %s673_s12, 3  ;;  %v648_v1 = vld [vmem:[%s777_s1 + $0x8] sm:$0xff] (!%p159_p3)   ;;  %v649_v2 = vld [vmem:[%s777_s1 + $0x10] sm:$0xff] (!%p159_p3)  }
   0x7   : > { %162 = sbr.rel (%p159_p3) target bundleno = 259 (0x103), region = 32  ;;  %583 = vmatprep.subr.bf16.mxu0 (!%p159_p3), %v647_v0  ;;  %607 = vmatprep.subr.bf16.mxu1 (!%p159_p3), %v647_v0  ;;  %v650_v3 = vld [vmem:[%s777_s1 + $0x18] sm:$0xff] (!%p159_p3)   ;;  %v651_v6 = vld [vmem:[%s777_s1 + $0x20] sm:$0xff] (!%p159_p3)   ;;  %v652_v7 = vld [vmem:[%s777_s1 + $0x28] sm:$0xff] (!%p159_p3)  }
   0x8   : > { %584 = vmatpush3.bf16.msra.mxu0 (!%p159_p3), %v647_v0  ;;  %615 = vmatpush3.bf16.msra.mxu1 (!%p159_p3), %v647_v0  ;;  %v653_v8 = vld [vmem:[%s777_s1 + $0x30] sm:$0xff] (!%p159_p3)   ;;  %v654_v9 = vld [vmem:[%s777_s1 + $0x38] sm:$0xff] (!%p159_p3)   ;;  %v515_v13 = vld [vmem:[%s778_s2] ss:$0 sm:$0xff] (!%p159_p3) }
   0x9   : > { %585 = vmatprep.subr.bf16.mxu0 (!%p159_p3), %v648_v1  ;;  %608 = vmatprep.subr.bf16.mxu1 (!%p159_p3), %v648_v1 }
   0xc   : > { %586 = vmatpush3.bf16.msra.mxu0 (!%p159_p3), %v648_v1  ;;  %616 = vmatpush3.bf16.msra.mxu1 (!%p159_p3), %v648_v1 }
   0xd   : > { %587 = vmatprep.subr.bf16.mxu0 (!%p159_p3), %v649_v2  ;;  %609 = vmatprep.subr.bf16.mxu1 (!%p159_p3), %v649_v2 }
   0xe   : > { %s785_s12 = smov (!%p191_p4, %s673_s12), 3 }
   0xf   : > { %s538_s22 = sshll.u32 %s785_s12, 5 }
  0x10   : > { %s738_s25 = scalar_lea.vmem %s776_s0, %s538_s22  ;;  %588 = vmatpush3.bf16.msra.mxu0 %v649_v2  ;;  %617 = vmatpush3.bf16.msra.mxu1 %v649_v2  ;;  %s208_s17 = scalar_lea.vmem %s779_s3, %s538_s22 }
  0x11   : > { %v655_v4 = vld [vmem:[%s738_s25] sm:$0xff]   ;;  %v656_v5 = vld [vmem:[%s738_s25 + $0x10] sm:$0xff]   ;;  %589 = vmatprep.subr.bf16.mxu0 %v650_v3  ;;  %610 = vmatprep.subr.bf16.mxu1 %v650_v3  ;;  %v657_v10 = vld [vmem:[%s738_s25 + $0x8] sm:$0xff]  }
  0x12   : > { %599 = vmatprep.mubr.bf16.mxu0 %v655_v4  ;;  %603 = vmatprep.mubr.bf16.mxu1 %v656_v5  ;;  %v658_v11 = vld [vmem:[%s738_s25 + $0x18] sm:$0xff]  }
  0x14   : > { %590 = vmatpush3.bf16.msra.mxu0 %v650_v3  ;;  %618 = vmatpush3.bf16.msra.mxu1 %v650_v3 }
  0x15   : > { %591 = vmatprep.subr.bf16.mxu0 %v651_v6  ;;  %611 = vmatprep.subr.bf16.mxu1 %v651_v6 }
  0x18   : > { %592 = vmatpush3.bf16.msra.mxu0 %v651_v6  ;;  %619 = vmatpush3.bf16.msra.mxu1 %v651_v6 }
  0x19   : > { %593 = vmatprep.subr.bf16.mxu0 %v652_v7  ;;  %612 = vmatprep.subr.bf16.mxu1 %v652_v7 }
  0x1c   : > { %594 = vmatpush3.bf16.msra.mxu0 %v652_v7  ;;  %620 = vmatpush3.bf16.msra.mxu1 %v652_v7 }
  0x1d   : > { %595 = vmatprep.subr.bf16.mxu0 %v653_v8  ;;  %613 = vmatprep.subr.bf16.mxu1 %v653_v8 }
  0x20   : > { %596 = vmatpush3.bf16.msra.mxu0 %v653_v8  ;;  %621 = vmatpush3.bf16.msra.mxu1 %v653_v8 }
  0x21   : > { %597 = vmatprep.subr.bf16.mxu0 %v654_v9  ;;  %614 = vmatprep.subr.bf16.mxu1 %v654_v9 }
  0x24   : > { %598 = vmatpush3.bf16.msra.mxu0 %v654_v9  ;;  %622 = vmatpush3.bf16.msra.mxu1 %v654_v9 }
  0x27   : > { %600 = vmatmul.mubr.bf16.vlgmr.msra.gmra.mrb[0].mxu0 %v657_v10  ;;  %604 = vmatmul.mubr.bf16.vlgmr.msra.gmra.mrb[0].mxu1 %v658_v11 }
  0xfa   : > { %v601_v12 = vpop.f32.mrb[0].mxu0  ;;  %v605_v14 = vpop.f32.mrb[0].mxu1 }
  0xfb   : > { %v348_v15 = vpop.f32.mrb[1].mxu0  ;;  %v364_v16 = vpop.f32.mrb[1].mxu1  ;;  %v357_v19 = vadd.f32 %v601_v12, %v515_v13  ;;  %v373_v20 = vadd.f32 %v605_v14, %v515_v13 }
  0xfc   : > { %v602_v17 = vpop.f32.mrb[2].mxu0  ;;  %v606_v18 = vpop.f32.mrb[2].mxu1  ;;  %v349_v25 = vadd.f32 %v515_v13, %v348_v15  ;;  %v365_v26 = vadd.f32 %v515_v13, %v364_v16 }
  0xfd   : > { %v360_v21 = vadd.f32 %v602_v17, %v515_v13  ;;  %v376_v22 = vadd.f32 %v606_v18, %v515_v13  ;;  %v351_v23 = vpop.f32.mrb[3].mxu0  ;;  %v367_v24 = vpop.f32.mrb[3].mxu1 }
  0xfe   : > { %v352_v27 = vadd.f32 %v515_v13, %v351_v23  ;;  %v368_v28 = vadd.f32 %v515_v13, %v367_v24 }
  0xff   : > { %v556_v29 = vpack.c.bf16 %v360_v21, %v357_v19  ;;  %v566_v30 = vpack.c.bf16 %v376_v22, %v373_v20 }
 0x100   : > { %v551_v31 = vpack.c.bf16 %v352_v27, %v349_v25  ;;  %v561_v32 = vpack.c.bf16 %v368_v28, %v365_v26 }
 0x101   : > { %568 = vst [vmem:[%s208_s17 + $0x8] sm:$0xff] %v556_v29   ;;  %570 = vst [vmem:[%s208_s17 + $0x18] sm:$0xff] %v566_v30  }
 0x102   : > { %552 = vst [vmem:[%s208_s17] sm:$0xff] %v551_v31   ;;  %569 = vst [vmem:[%s208_s17 + $0x10] sm:$0xff] %v561_v32  }
 0x103 PF: > { %s13_s14 = sadd.s32 1, %s681_s14   ;;  %s780_s12 = smov %s677_s13 }
 0x104   : > { %p10_p5 = scmp.ge.s32.totalorder %s13_s14, 6   ;;  %s781_s13 = smov %s783_s15 }
 0x106   :  { %12 = sbr.rel (!%p10_p5) target bundleno = 2 (0x2), region = 62 }

// kernel: resnet_loss.28
= control target key start
LH: loop header
LB: loop body
LE: loop exit
PB: predicated region body
PF: predicated region fallthrough
CT: control target
= control target key end

     0   :  { %s843_s15 = smov 0   ;;  %s845_s16 = smov 0   ;;  %s917_s0 = inlined_call_operand.vmem [shape: bf16[4,64,128], index: 0, kind: input, shape index: {}]   ;;  %s918_s1 = inlined_call_operand.vmem [shape: bf16[128,128], index: 1, kind: input, shape index: {}]   ;;  %s919_s2 = inlined_call_operand.vmem [shape: f32[1,128], index: 2, kind: input, shape index: {}]   ;;  %s920_s3 = inlined_call_operand.vmem [shape: bf16[4,64,128], index: 3, kind: input, shape index: {}]   ;;  %s921_s4 = inlined_call_operand.vmem [shape: bf16[4,64,128], index: 4, kind: output, shape index: {}]  }
   0x1   :  { %s847_s17 = smov 0  }
   0x2 LB: > { %s26_s18 = sadd.s32 1, %s812_s16  ;;  %p623_p0 = scmp.ge.s32.totalorder %s816_s17, 1  ;;  %s816_s17 = sphi %s847_s17, %s14_s17   ;;  %s812_s16 = sphi %s845_s16, %s923_s16   ;;  %s808_s15 = sphi %s843_s15, %s922_s15  }
   0x3   : > { %p28_p1 = scmp.ge.s32.totalorder %s26_s18, 4  ;;  %p200_p2 = scmp.lt.s32.totalorder %s816_s17, 5 }
   0x5   : > { %s925_s18 = smov (%p28_p1, %s26_s18), 0  ;;  %p201_p3 = pnand %p623_p0, %p200_p2 }
   0x6   : > { %v782_v0 = vld [vmem:[%s918_s1] sm:$0xff] (!%p201_p3)   ;;  %p244_p4 = scmp.lt.s32.totalorder (!%p201_p3), %s808_s15, 3  ;;  %v783_v1 = vld [vmem:[%s918_s1 + $0x8] sm:$0xff] (!%p201_p3)   ;;  %v784_v2 = vld [vmem:[%s918_s1 + $0x10] sm:$0xff] (!%p201_p3)  }
   0x7   : > { %204 = sbr.rel (%p201_p3) target bundleno = 263 (0x107), region = 36  ;;  %718 = vmatprep.subr.bf16.mxu0 (!%p201_p3), %v782_v0  ;;  %742 = vmatprep.subr.bf16.mxu1 (!%p201_p3), %v782_v0  ;;  %v785_v3 = vld [vmem:[%s918_s1 + $0x18] sm:$0xff] (!%p201_p3)   ;;  %v786_v6 = vld [vmem:[%s918_s1 + $0x20] sm:$0xff] (!%p201_p3)   ;;  %v787_v7 = vld [vmem:[%s918_s1 + $0x28] sm:$0xff] (!%p201_p3)  }
   0x8   : > { %719 = vmatpush3.bf16.msra.mxu0 (!%p201_p3), %v782_v0  ;;  %750 = vmatpush3.bf16.msra.mxu1 (!%p201_p3), %v782_v0  ;;  %v788_v8 = vld [vmem:[%s918_s1 + $0x30] sm:$0xff] (!%p201_p3)   ;;  %v789_v9 = vld [vmem:[%s918_s1 + $0x38] sm:$0xff] (!%p201_p3)   ;;  %v630_v16 = vld [vmem:[%s919_s2] ss:$0 sm:$0xff] (!%p201_p3) }
   0x9   : > { %720 = vmatprep.subr.bf16.mxu0 (!%p201_p3), %v783_v1  ;;  %743 = vmatprep.subr.bf16.mxu1 (!%p201_p3), %v783_v1 }
   0xc   : > { %721 = vmatpush3.bf16.msra.mxu0 (!%p201_p3), %v783_v1  ;;  %751 = vmatpush3.bf16.msra.mxu1 (!%p201_p3), %v783_v1 }
   0xd   : > { %722 = vmatprep.subr.bf16.mxu0 (!%p201_p3), %v784_v2  ;;  %744 = vmatprep.subr.bf16.mxu1 (!%p201_p3), %v784_v2 }
   0xe   : > { %s927_s15 = smov (!%p244_p4, %s808_s15), 3 }
   0xf   : > { %s870_s25 = sshll.u32 %s927_s15, 5 }
  0x10   : > { %s876_s28 = scalar_lea.vmem %s917_s0, %s870_s25  ;;  %723 = vmatpush3.bf16.msra.mxu0 %v784_v2  ;;  %752 = vmatpush3.bf16.msra.mxu1 %v784_v2  ;;  %s261_s15 = scalar_lea.vmem %s920_s3, %s870_s25 }
  0x11   : > { %v790_v4 = vld [vmem:[%s876_s28] sm:$0xff]   ;;  %v791_v5 = vld [vmem:[%s876_s28 + $0x10] sm:$0xff]   ;;  %724 = vmatprep.subr.bf16.mxu0 %v785_v3  ;;  %745 = vmatprep.subr.bf16.mxu1 %v785_v3  ;;  %v792_v10 = vld [vmem:[%s876_s28 + $0x8] sm:$0xff]   ;;  %s271_s23 = scalar_lea.vmem %s921_s4, %s870_s25 }
  0x12   : > { %734 = vmatprep.mubr.bf16.mxu0 %v790_v4  ;;  %738 = vmatprep.mubr.bf16.mxu1 %v791_v5  ;;  %v793_v11 = vld [vmem:[%s876_s28 + $0x18] sm:$0xff]   ;;  %v700_v12 = vld [vmem:[%s261_s15 + $0x8] sm:$0xff]   ;;  %v665_v14 = vld [vmem:[%s261_s15] sm:$0xff]  }
  0x13   : > { %v702_v13 = vld [vmem:[%s261_s15 + $0x18] sm:$0xff]   ;;  %v701_v15 = vld [vmem:[%s261_s15 + $0x10] sm:$0xff]   ;;  %v670_v17 = vunpack.c.l.bf16 %v700_v12  ;;  %v666_v21 = vunpack.c.l.bf16 %v665_v14  ;;  %v671_v27 = vunpack.c.h.bf16 %v700_v12  ;;  %v667_v33 = vunpack.c.h.bf16 %v665_v14 }
  0x14   : > { %725 = vmatpush3.bf16.msra.mxu0 %v785_v3  ;;  %753 = vmatpush3.bf16.msra.mxu1 %v785_v3  ;;  %v678_v18 = vunpack.c.l.bf16 %v702_v13  ;;  %v674_v22 = vunpack.c.l.bf16 %v701_v15  ;;  %v679_v28 = vunpack.c.h.bf16 %v702_v13  ;;  %v675_v34 = vunpack.c.h.bf16 %v701_v15 }
  0x15   : > { %726 = vmatprep.subr.bf16.mxu0 %v786_v6  ;;  %746 = vmatprep.subr.bf16.mxu1 %v786_v6 }
  0x18   : > { %727 = vmatpush3.bf16.msra.mxu0 %v786_v6  ;;  %754 = vmatpush3.bf16.msra.mxu1 %v786_v6 }
  0x19   : > { %728 = vmatprep.subr.bf16.mxu0 %v787_v7  ;;  %747 = vmatprep.subr.bf16.mxu1 %v787_v7 }
  0x1c   : > { %729 = vmatpush3.bf16.msra.mxu0 %v787_v7  ;;  %755 = vmatpush3.bf16.msra.mxu1 %v787_v7 }
  0x1d   : > { %730 = vmatprep.subr.bf16.mxu0 %v788_v8  ;;  %748 = vmatprep.subr.bf16.mxu1 %v788_v8 }
  0x20   : > { %731 = vmatpush3.bf16.msra.mxu0 %v788_v8  ;;  %756 = vmatpush3.bf16.msra.mxu1 %v788_v8 }
  0x21   : > { %732 = vmatprep.subr.bf16.mxu0 %v789_v9  ;;  %749 = vmatprep.subr.bf16.mxu1 %v789_v9 }
  0x24   : > { %733 = vmatpush3.bf16.msra.mxu0 %v789_v9  ;;  %757 = vmatpush3.bf16.msra.mxu1 %v789_v9 }
  0x27   : > { %735 = vmatmul.mubr.bf16.vlgmr.msra.gmra.mrb[0].mxu0 %v792_v10  ;;  %739 = vmatmul.mubr.bf16.vlgmr.msra.gmra.mrb[0].mxu1 %v793_v11 }
  0xfa   : > { %v736_v19 = vpop.f32.mrb[0].mxu0  ;;  %v740_v20 = vpop.f32.mrb[0].mxu1 }
  0xfb   : > { %v420_v23 = vadd.f32 %v736_v19, %v630_v16  ;;  %v436_v24 = vadd.f32 %v740_v20, %v630_v16  ;;  %v411_v25 = vpop.f32.mrb[1].mxu0  ;;  %v427_v26 = vpop.f32.mrb[1].mxu1 }
  0xfc   : > { %v412_v29 = vadd.f32 %v630_v16, %v411_v25  ;;  %v428_v30 = vadd.f32 %v630_v16, %v427_v26  ;;  %v737_v31 = vpop.f32.mrb[2].mxu0  ;;  %v741_v32 = vpop.f32.mrb[2].mxu1 }
  0xfd   : > { %v460_v35 = vadd.f32 %v670_v17, %v420_v23  ;;  %v464_v36 = vadd.f32 %v678_v18, %v436_v24  ;;  %v423_v37 = vadd.f32 %v737_v31, %v630_v16  ;;  %v439_v38 = vadd.f32 %v741_v32, %v630_v16  ;;  %v414_v39 = vpop.f32.mrb[3].mxu0  ;;  %v430_v40 = vpop.f32.mrb[3].mxu1 }
  0xfe   : > { %v458_v41 = vadd.f32 %v666_v21, %v412_v29  ;;  %v462_v42 = vadd.f32 %v674_v22, %v428_v30  ;;  %v415_v43 = vadd.f32 %v630_v16, %v414_v39  ;;  %v431_v44 = vadd.f32 %v630_v16, %v430_v40 }
  0xff   : > { %v461_v45 = vadd.f32 %v671_v27, %v423_v37  ;;  %v465_v46 = vadd.f32 %v679_v28, %v439_v38  ;;  %v468_v49 = vmax.f32 %v460_v35, 0.0  ;;  %v472_v50 = vmax.f32 %v464_v36, 0.0 }
 0x100   : > { %v459_v47 = vadd.f32 %v667_v33, %v415_v43  ;;  %v463_v48 = vadd.f32 %v675_v34, %v431_v44  ;;  %v466_v53 = vmax.f32 %v458_v41, 0.0  ;;  %v470_v54 = vmax.f32 %v462_v42, 0.0 }
 0x101   : > { %v469_v51 = vmax.f32 %v461_v45, 0.0  ;;  %v473_v52 = vmax.f32 %v465_v46, 0.0 }
 0x102   : > { %v467_v55 = vmax.f32 %v459_v47, 0.0  ;;  %v471_v56 = vmax.f32 %v463_v48, 0.0 }
 0x103   : > { %v688_v57 = vpack.c.bf16 %v469_v51, %v468_v49  ;;  %v698_v58 = vpack.c.bf16 %v473_v52, %v472_v50 }
 0x104   : > { %v683_v59 = vpack.c.bf16 %v467_v55, %v466_v53  ;;  %v693_v60 = vpack.c.bf16 %v471_v56, %v470_v54 }
 0x105   : > { %703 = vst [vmem:[%s271_s23 + $0x8] sm:$0xff] %v688_v57   ;;  %705 = vst [vmem:[%s271_s23 + $0x18] sm:$0xff] %v698_v58  }
 0x106   : > { %684 = vst [vmem:[%s271_s23] sm:$0xff] %v683_v59   ;;  %704 = vst [vmem:[%s271_s23 + $0x10] sm:$0xff] %v693_v60  }
 0x107 PF: > { %s14_s17 = sadd.s32 1, %s816_s17   ;;  %s922_s15 = smov %s812_s16 }
 0x108   : > { %p11_p5 = scmp.ge.s32.totalorder %s14_s17, 6   ;;  %s923_s16 = smov %s925_s18 }
 0x10a   :  { %13 = sbr.rel (!%p11_p5) target bundleno = 2 (0x2), region = 69 }

// kernel: resnet_loss.26
= control target key start
LH: loop header
LB: loop body
LE: loop exit
PB: predicated region body
PF: predicated region fallthrough
CT: control target
= control target key end

     0   :  { %s2712_s12 = smov 0   ;;  %s2714_s13 = smov 0   ;;  %s3229_s0 = inlined_call_operand.vmem [shape: bf16[4,1,10,10,128], index: 0, kind: input, shape index: {}]   ;;  %s3230_s1 = inlined_call_operand.vmem [shape: bf16[3,3,128,128], index: 1, kind: input, shape index: {}]   ;;  %s3231_s2 = inlined_call_operand.vmem [shape: f32[1,128], index: 2, kind: input, shape index: {}]   ;;  %s3232_s3 = inlined_call_operand.vmem [shape: bf16[4,8,8,128], index: 3, kind: output, shape index: {}]  }
   0x1   :  { %s2716_s14 = smov 0  }
   0x2 LB: > { %s25_s15 = sadd.s32 1, %s2686_s13  ;;  %p1890_p0 = scmp.ge.s32.totalorder %s2690_s14, 1  ;;  %s2690_s14 = sphi %s2716_s14, %s13_s14   ;;  %s2686_s13 = sphi %s2714_s13, %s3238_s13   ;;  %s2682_s12 = sphi %s2712_s12, %s3237_s12  }
   0x3   : > { %p27_p1 = scmp.ge.s32.totalorder %s25_s15, 4  ;;  %p151_p2 = scmp.lt.s32.totalorder %s2690_s14, 5 }
   0x5   : > { %s3240_s15 = smov (%p27_p1, %s25_s15), 0  ;;  %p152_p3 = pnand %p1890_p0, %p151_p2 }
   0x6   : > { %v2587_v0 = vld [vmem:[%s3230_s1 + $0xc0] sm:$0xff] (!%p152_p3)   ;;  %v2589_v2 = vld [vmem:[%s3230_s1 + $0xc8] sm:$0xff] (!%p152_p3)   ;;  %p179_p4 = scmp.lt.s32.totalorder (!%p152_p3), %s2682_s12, 3  ;;  %v2591_v4 = vld [vmem:[%s3230_s1 + $0xd0] sm:$0xff] (!%p152_p3)   ;;  %vm664_vm0 = vsmask.f32 (!%p152_p3), 3328 }
   0x7   : > { %155 = sbr.rel (%p152_p3) target bundleno = 393 (0x189), region = 32  ;;  %v2588_v1 = vld [vmem:[%s3230_s1 + $0x100] sm:$0xff] (!%p152_p3)   ;;  %2266 = vmatprep.subr.bf16.mxu1 (!%p152_p3), %v2587_v0  ;;  %v2590_v3 = vld [vmem:[%s3230_s1 + $0x108] sm:$0xff] (!%p152_p3)   ;;  %v2592_v5 = vld [vmem:[%s3230_s1 + $0x110] sm:$0xff] (!%p152_p3)   ;;  %vm665_vm1 = vsmask.f32 (!%p152_p3), 7440 }
   0x8   : > { %2362 = vmatprep.subr.bf16.mxu0 (!%p152_p3), %v2588_v1  ;;  %2267 = vmatpush3.bf16.msra.mxu1 (!%p152_p3), %v2587_v0  ;;  %v2593_v6 = vld [vmem:[%s3230_s1 + $0xd8] sm:$0xff] (!%p152_p3)   ;;  %v2595_v8 = vld [vmem:[%s3230_s1 + $0xe0] sm:$0xff] (!%p152_p3)   ;;  %v2597_v10 = vld [vmem:[%s3230_s1 + $0xe8] sm:$0xff] (!%p152_p3)   ;;  %vm1275_vm3 = vcmask (!%p152_p3), 1042432   ;;  %vm1276_vm4 = vcmask (!%p152_p3), 1046532  }
   0x9   : > { %2363 = vmatpush3.bf16.msra.mxu0 (!%p152_p3), %v2588_v1  ;;  %2268 = vmatprep.subr.bf16.mxu1 (!%p152_p3), %v2589_v2  ;;  %v2594_v7 = vld [vmem:[%s3230_s1 + $0x118] sm:$0xff] (!%p152_p3)   ;;  %v2596_v9 = vld [vmem:[%s3230_s1 + $0x120] sm:$0xff] (!%p152_p3)   ;;  %v2598_v13 = vld [vmem:[%s3230_s1 + $0x128] sm:$0xff] (!%p152_p3)  }
   0xa   : > { %2364 = vmatprep.subr.bf16.mxu0 (!%p152_p3), %v2590_v3  ;;  %v2599_v15 = vld [vmem:[%s3230_s1 + $0xf0] sm:$0xff] (!%p152_p3)   ;;  %v2601_v34 = vld [vmem:[%s3230_s1 + $0xf8] sm:$0xff] (!%p152_p3)   ;;  %v2606_v44 = vld [vmem:[%s3230_s1] sm:$0xff] (!%p152_p3)  }
   0xb   : > { %v2600_v17 = vld [vmem:[%s3230_s1 + $0x130] sm:$0xff] (!%p152_p3)   ;;  %v2602_v38 = vld [vmem:[%s3230_s1 + $0x138] sm:$0xff] (!%p152_p3)   ;;  %vm2821_vm2 = vmor (!%p152_p3), %vm664_vm0, %vm665_vm1 }
   0xc   : > { %2269 = vmatpush3.bf16.msra.mxu1 (!%p152_p3), %v2589_v2  ;;  %v2607_v59 = vld [vmem:[%s3230_s1 + $0x1c0] sm:$0xff] (!%p152_p3)   ;;  %vm2984_vm5 = vmor (!%p152_p3), %vm1275_vm3, %vm1276_vm4 }
   0xd   : > { %2365 = vmatpush3.bf16.msra.mxu0 (!%p152_p3), %v2590_v3  ;;  %2270 = vmatprep.subr.bf16.mxu1 (!%p152_p3), %v2591_v4 }
   0xe   : > { %s3242_s12 = smov (!%p179_p4, %s2682_s12), 3  ;;  %2366 = vmatprep.subr.bf16.mxu0 %v2592_v5 }
   0xf   : > { %s2562_s5 = smul.u32 80, %s3242_s12  ;;  %s2134_s4 = sshll.u32 %s3242_s12, 5 }
  0x10   : > { %2271 = vmatpush3.bf16.msra.mxu1 %v2591_v4  ;;  %s192_s7 = scalar_lea.vmem %s3232_s3, %s2134_s4 }
  0x11   : > { %2367 = vmatpush3.bf16.msra.mxu0 %v2592_v5  ;;  %2272 = vmatprep.subr.bf16.mxu1 %v2593_v6  ;;  %s2766_s16 = scalar_lea.vmem %s3229_s0, %s2562_s5 }
  0x12   : > { %2368 = vmatprep.subr.bf16.mxu0 %v2594_v7  ;;  %v2772_v11 = vld [vmem:[%s2766_s16 + $0x8] sm:$0xf]  ;;  %v2775_v12 = vld [vmem:[%s2766_s16 + $0x10] sm:$0xf]  ;;  %v644_v16 = vld [vmem:[%s2766_s16] sm:$0xf] }
  0x13   : > { %v1910_v14 = vcombine.low %v2772_v11, %v2775_v12  ;;  %v646_v18 = vld [vmem:[%s2766_s16 + $0x8] sm:$0xf]  ;;  %v2791_v19 = vld [vmem:[%s2766_s16 + $0xc] sm:$0x1]  ;;  %v2794_v20 = vld [vmem:[%s2766_s16 + $0x4] sm:$0x1] }
  0x14   : > { %2273 = vmatpush3.bf16.msra.mxu1 %v2593_v6  ;;  %v648_v21 = vld [vmem:[%s2766_s16 + $0x10] sm:$0xf]  ;;  %v2798_v22 = vld [vmem:[%s2766_s16 + $0x14] sm:$0x1]  ;;  %v668_v23 = vshrl.u32 %v644_v16, 16  ;;  %v671_v24 = vshll.u32 %v644_v16, 16 }
  0x15   : > { %2369 = vmatpush3.bf16.msra.mxu0 %v2594_v7  ;;  %2274 = vmatprep.subr.bf16.mxu1 %v2595_v8  ;;  %v650_v25 = vld [vmem:[%s2766_s16 + $0x18] sm:$0xf]  ;;  %v677_v26 = vshll.u32 %v2794_v20, 16  ;;  %v682_v27 = vshrl.u32 %v646_v18, 16  ;;  %v685_v28 = vshll.u32 %v646_v18, 16  ;;  %v691_v29 = vshll.u32 %v2791_v19, 16 }
  0x16   : > { %2370 = vmatprep.subr.bf16.mxu0 %v2596_v9  ;;  %2282 = vmatprep.mubr.bf16.mxu1 %v1910_v14  ;;  %v670_v30 = vrot.slane %v668_v23, 4  ;;  %v673_v31 = vrot.slane %v671_v24, 5  ;;  %v696_v32 = vshrl.u32 %v648_v21, 16  ;;  %v699_v33 = vshll.u32 %v648_v21, 16  ;;  %v2810_v39 = vld [vmem:[%s2766_s16 + $0x18] sm:$0xf] }
  0x17   : > { %v679_v35 = vrot.slane %v677_v26, 5  ;;  %v684_v36 = vrot.slane %v682_v27, 4  ;;  %v687_v37 = vrot.slane %v685_v28, 5  ;;  %v705_v43 = vshll.u32 %v2798_v22, 16  ;;  %v2817_v45 = vld [vmem:[%s2766_s16 + $0x1c] sm:$0x1] }
  0x18   : > { %2275 = vmatpush3.bf16.msra.mxu1 %v2595_v8  ;;  %v674_v40 = vor.u32 %v673_v31, %v670_v30  ;;  %v698_v41 = vrot.slane %v696_v32, 4  ;;  %v701_v42 = vrot.slane %v699_v33, 5  ;;  %v693_v47 = vrot.slane %v691_v29, 5  ;;  %v2826_v54 = vld [vmem:[%s2766_s16 + $0x20] sm:$0xf]  ;;  %v2611_v18 = vld [vmem:[%s3230_s1 + $0x10] sm:$0xff]  }
  0x19   : > { %2371 = vmatpush3.bf16.msra.mxu0 %v2596_v9  ;;  %2276 = vmatprep.subr.bf16.mxu1 %v2597_v10  ;;  %v688_v46 = vor.u32 %v687_v37, %v684_v36  ;;  %v710_v48 = vshrl.u32 %v650_v25, 16  ;;  %v713_v49 = vshll.u32 %v650_v25, 16  ;;  %v707_v53 = vrot.slane %v705_v43, 5  ;;  %v652_v55 = vld [vmem:[%s2766_s16 + $0x20] sm:$0xf]  ;;  %v2609_v9 = vld [vmem:[%s3230_s1 + $0x8] sm:$0xff]  }
  0x1a   : > { %2372 = vmatprep.subr.bf16.mxu0 %v2598_v13  ;;  %v675_v51 = vrot.slane %v674_v40, 4  ;;  %v702_v52 = vor.u32 %v701_v42, %v698_v41  ;;  %v719_v62 = vshll.u32 %v2817_v45, 16  ;;  %v2836_v63 = vld [vmem:[%s2766_s16 + $0x24] sm:$0x1]  ;;  %v1911_v2 = vcombine.low %v2810_v39, %v2826_v54  ;;  %v2610_v24 = vld [vmem:[%s3230_s1 + $0x1c8] sm:$0xff]   ;;  %v2613_v28 = vld [vmem:[%s3230_s1 + $0x18] sm:$0xff]  }
  0x1b   : > { %v689_v56 = vrot.slane %v688_v46, 4  ;;  %v712_v57 = vrot.slane %v710_v48, 4  ;;  %v715_v58 = vrot.slane %v713_v49, 5  ;;  %v724_v5 = vshrl.u32 %v652_v55, 16  ;;  %v2864_v25 = vld [vmem:[%s2766_s16 + $0x28] sm:$0xf] }
  0x1c   : > { %2277 = vmatpush3.bf16.msra.mxu1 %v2597_v10  ;;  %v680_v60 = vsel %vm2821_vm2, %v675_v51, %v679_v35  ;;  %v703_v61 = vrot.slane %v702_v52, 4  ;;  %v727_v7 = vshll.u32 %v652_v55, 16  ;;  %v733_v8 = vshll.u32 %v2836_v63, 16  ;;  %v2867_v26 = vld [vmem:[%s2766_s16 + $0x30] sm:$0xf]  ;;  %v2615_v42 = vld [vmem:[%s3230_s1 + $0x20] sm:$0xff]  }
  0x1d   : > { %2373 = vmatpush3.bf16.msra.mxu0 %v2598_v13  ;;  %2278 = vmatprep.subr.bf16.mxu1 %v2599_v15  ;;  %v694_v0 = vsel %vm2821_vm2, %v689_v56, %v693_v47  ;;  %v716_v1 = vor.u32 %v715_v58, %v712_v57  ;;  %v721_v10 = vrot.slane %v719_v62, 5  ;;  %v726_v13 = vrot.slane %v724_v5, 4  ;;  %v654_v30 = vld [vmem:[%s2766_s16 + $0x28] sm:$0xf]  ;;  %v199_v31 = vld [vmem:[%s2766_s16] sm:$0xf] }
  0x1e   : > { %2374 = vmatprep.subr.bf16.mxu0 %v2600_v17  ;;  %v2844_v3 = vsel %vm2821_vm2, %v703_v61, %v707_v53  ;;  %v2846_v4 = vcombine.low %v680_v60, %v694_v0  ;;  %v1912_v29 = vcombine.low %v2864_v25, %v2867_v26  ;;  %v2883_v33 = vld [vmem:[%s2766_s16 + $0x2c] sm:$0x1]  ;;  %v2887_v35 = vld [vmem:[%s2766_s16 + $0x34] sm:$0x1]  ;;  %v738_v36 = vshrl.u32 %v654_v30, 16 }
  0x1f   : > { %v2003_v6 = vcombine.low %v694_v0, %v2844_v3  ;;  %v717_v14 = vrot.slane %v716_v1, 4  ;;  %v741_v37 = vshll.u32 %v654_v30, 16  ;;  %v2612_v41 = vld [vmem:[%s3230_s1 + $0x1d0] sm:$0xff]   ;;  %v2898_v51 = vld [vmem:[%s2766_s16 + $0x38] sm:$0xf]  ;;  %v1922_v57 = vcombine.low %v199_v31, %v2772_v11  ;;  %v2617_v0 = vld [vmem:[%s3230_s1 + $0x28] sm:$0xff]  }
  0x20   : > { %2279 = vmatpush3.bf16.msra.mxu1 %v2599_v15  ;;  %v729_v15 = vrot.slane %v727_v7, 5  ;;  %v740_v46 = vrot.slane %v738_v36, 4  ;;  %v2901_v55 = vld [vmem:[%s2766_s16 + $0x40] sm:$0xf]  ;;  %v658_v56 = vld [vmem:[%s2766_s16 + $0x38] sm:$0xf] }
  0x21   : > { %2375 = vmatpush3.bf16.msra.mxu0 %v2600_v17  ;;  %2280 = vmatprep.subr.bf16.mxu1 %v2601_v34  ;;  %v735_v17 = vrot.slane %v733_v8, 5  ;;  %v2858_v21 = vsel %vm2821_vm2, %v717_v14, %v721_v10  ;;  %v743_v47 = vrot.slane %v741_v37, 5  ;;  %v2908_v60 = vld [vmem:[%s2766_s16 + $0x3c] sm:$0x1]  ;;  %v660_v61 = vld [vmem:[%s2766_s16 + $0x40] sm:$0xf] }
  0x22   : > { %2376 = vmatprep.subr.bf16.mxu0 %v2602_v38  ;;  %2378 = vmatprep.mubr.bf16.mxu0 %v2003_v6  ;;  %v730_v16 = vor.u32 %v729_v15, %v726_v13  ;;  %v2912_v62 = vld [vmem:[%s2766_s16 + $0x44] sm:$0x1]  ;;  %v769_v5 = vshll.u32 %v658_v56, 16  ;;  %v775_v6 = vshll.u32 %v2908_v60, 16  ;;  %v934_v7 = vshrl.u32 %v660_v61, 16  ;;  %v2614_v10 = vld [vmem:[%s3230_s1 + $0x1d8] sm:$0xff]  }
  0x23   : > { %v744_v58 = vor.u32 %v743_v47, %v740_v46  ;;  %v937_v8 = vshll.u32 %v660_v61, 16  ;;  %v2625_v46 = vld [vmem:[%s3230_s1 + $0x180] sm:$0xff]   ;;  %v1251_v47 = vld [vmem:[%s2766_s16 + $0x10] sm:$0xe] }
  0x24   : > { %2281 = vmatpush3.bf16.msra.mxu1 %v2601_v34  ;;  %v731_v23 = vrot.slane %v730_v16, 4  ;;  %v656_v34 = vld [vmem:[%s2766_s16 + $0x30] sm:$0xf]  ;;  %v771_v15 = vrot.slane %v769_v5, 5  ;;  %v1249_v5 = vld [vmem:[%s2766_s16] sm:$0xe] }
  0x25   : > { %2377 = vmatpush3.bf16.msra.mxu0 %v2602_v38  ;;  %2290 = vmatprep.subr.bf16.mxu1 %v2606_v44  ;;  %v747_v38 = vshll.u32 %v2883_v33, 16  ;;  %v752_v40 = vshrl.u32 %v656_v34, 16  ;;  %v755_v43 = vshll.u32 %v656_v34, 16  ;;  %v745_v11 = vrot.slane %v744_v58, 4  ;;  %v2616_v34 = vld [vmem:[%s3230_s1 + $0x1e0] sm:$0xff]  }
  0x26   : > { %2386 = vmatprep.subr.bf16.mxu0 %v2607_v59  ;;  %v2871_v27 = vsel %vm2821_vm2, %v731_v23, %v735_v17  ;;  %v777_v17 = vrot.slane %v775_v6, 5  ;;  %v939_v23 = vrot.slane %v937_v8, 5  ;;  %v1288_v58 = vrot.slane %v2798_v22, 5  ;;  %v2626_v22 = vld [vmem:[%s3230_s1 + $0x80] sm:$0xff]  }
  0x27   : > { %2283 = vmatmul.mubr.bf16.vlgmr.msra.gmra.mrb[0].mxu1 %v1911_v2  ;;  %v2004_v32 = vcombine.low %v2858_v21, %v2871_v27  ;;  %v749_v48 = vrot.slane %v747_v38, 5  ;;  %v754_v49 = vrot.slane %v752_v40, 4  ;;  %v757_v52 = vrot.slane %v755_v43, 5  ;;  %v2618_v43 = vld [vmem:[%s3230_s1 + $0x1e8] sm:$0xff]  }
  0x28   : > { %2291 = vmatpush3.bf16.msra.mxu1 %v2606_v44  ;;  %2286 = vmatprep.mubr.bf16.mxu1 %v1912_v29  ;;  %v761_v44 = vshll.u32 %v2887_v35, 16  ;;  %v766_v2 = vshrl.u32 %v658_v56, 16  ;;  %v2620_v29 = vld [vmem:[%s3230_s1 + $0x30] sm:$0xff]   ;;  %v3001_v6 = vcombine.low %v2867_v26, %v2898_v51 }
  0x29   : > { %2292 = vmatprep.subr.bf16.mxu1 %v2609_v9  ;;  %2379 = vmatmul.mubr.bf16.vlgmr.msra.gmra.mrb[0].mxu0 %v2004_v32  ;;  %v758_v1 = vor.u32 %v757_v52, %v754_v49  ;;  %v2924_v16 = vsel %vm2821_vm2, %v745_v11, %v749_v48  ;;  %v2624_v48 = vld [vmem:[%s3230_s1 + $0x1f8] sm:$0xff]   ;;  %v2973_v49 = vcombine.low %v2826_v54, %v2864_v25  ;;  %v2627_v52 = vld [vmem:[%s3230_s1 + $0x188] sm:$0xff]   ;;  %v2042_v25 = vrot.slane %v1251_v47, 9 }
  0x2a   : > { %2387 = vmatpush3.bf16.msra.mxu0 %v2607_v59  ;;  %v763_v53 = vrot.slane %v761_v44, 5  ;;  %v1913_v59 = vcombine.low %v2898_v51, %v2901_v55  ;;  %v768_v14 = vrot.slane %v766_v2, 4  ;;  %v1250_v11 = vld [vmem:[%s2766_s16 + $0x8] sm:$0xe] }
  0x2b   : > { %2388 = vmatprep.subr.bf16.mxu0 %v2610_v24  ;;  %v759_v13 = vrot.slane %v758_v1, 4  ;;  %v1292_v1 = vrot.slane %v2817_v45, 5  ;;  %v3007_v8 = vsel %vm2984_vm5, %v2042_v25, %v1288_v58  ;;  %v3011_v45 = vcombine.low %v2871_v27, %v2924_v16  ;;  %v1258_v47 = vld [vmem:[%s2766_s16 + $0x48] sm:$0xe]  ;;  %v2642_v58 = vld [vmem:[%s3230_s1 + $0xb8] sm:$0xff]  }
  0x2c   : > { %2293 = vmatpush3.bf16.msra.mxu1 %v2609_v9  ;;  %v943_v9 = vshll.u32 %v2912_v62, 16  ;;  %v1280_v27 = vrot.slane %v2794_v20, 5  ;;  %v2633_v20 = vld [vmem:[%s3230_s1 + $0x1a0] sm:$0xff]   ;;  %v2645_v25 = vld [vmem:[%s3230_s1 + $0x48] sm:$0xff]  }
  0x2d   : > { %2294 = vmatprep.subr.bf16.mxu1 %v2611_v18  ;;  %v2653_v54 = vld [vmem:[%s3230_s1 + $0x68] sm:$0xff]  }
  0x2e   : > { %2389 = vmatpush3.bf16.msra.mxu0 %v2610_v24  ;;  %v2928_v24 = vsel %vm2821_vm2, %v759_v13, %v763_v53  ;;  %v945_v32 = vrot.slane %v943_v9, 5  ;;  %v662_v53 = vld [vmem:[%s2766_s16 + $0x48] sm:$0xf]  ;;  %v2631_v9 = vld [vmem:[%s3230_s1 + $0x198] sm:$0xff]  }
  0x2f   : > { %2390 = vmatprep.subr.bf16.mxu0 %v2612_v41  ;;  %2287 = vmatmul.mubr.bf16.gmra.mrb[4].mxu1 %v1913_v59  ;;  %v2005_v30 = vcombine.low %v2924_v16, %v2928_v24  ;;  %v1098_v56 = vshll.u32 %v662_v53, 16  ;;  %v2628_v13 = vld [vmem:[%s3230_s1 + $0x88] sm:$0xff]   ;;  %v2040_v16 = vrot.slane %v1249_v5, 9  ;;  %v2649_v5 = vld [vmem:[%s3230_s1 + $0x58] sm:$0xff]  }
  0x30   : > { %2295 = vmatpush3.bf16.msra.mxu1 %v2611_v18  ;;  %v936_v18 = vrot.slane %v934_v7, 4  ;;  %2306 = vmatprep.mubr.bf16.mxu1 %v1922_v57  ;;  %v1284_v57 = vrot.slane %v2791_v19, 5  ;;  %v2629_v19 = vld [vmem:[%s3230_s1 + $0x190] sm:$0xff]   ;;  %v1252_v7 = vld [vmem:[%s2766_s16 + $0x18] sm:$0xe] }
  0x31   : > { %2296 = vmatprep.subr.bf16.mxu1 %v2613_v28  ;;  %2382 = vmatprep.mubr.bf16.mxu0 %v2005_v30  ;;  %v1100_v61 = vrot.slane %v1098_v56, 5  ;;  %v2635_v30 = vld [vmem:[%s3230_s1 + $0x1a8] sm:$0xff]  }
  0x32   : > { %2391 = vmatpush3.bf16.msra.mxu0 %v2612_v41  ;;  %v940_v31 = vor.u32 %v939_v23, %v936_v18  ;;  %v2623_v41 = vld [vmem:[%s3230_s1 + $0x38] sm:$0xff]  }
  0x33   : > { %2392 = vmatprep.subr.bf16.mxu0 %v2614_v10 }
  0x34   : > { %2297 = vmatpush3.bf16.msra.mxu1 %v2613_v28  ;;  %v772_v28 = vor.u32 %v771_v15, %v768_v14  ;;  %v941_v37 = vrot.slane %v940_v31, 4  ;;  %v1296_v31 = vrot.slane %v2836_v63, 5 }
  0x35   : > { %2298 = vmatprep.subr.bf16.mxu1 %v2615_v42 }
  0x36   : > { %v773_v36 = vrot.slane %v772_v28, 4  ;;  %2393 = vmatpush3.bf16.msra.mxu0 %v2614_v10  ;;  %v2944_v40 = vsel %vm2821_vm2, %v941_v37, %v945_v32  ;;  %v2043_v10 = vrot.slane %v1252_v7, 9  ;;  %v1281_v28 = vsel %vm2984_vm5, %v2040_v16, %v1280_v27  ;;  %v2632_v32 = vld [vmem:[%s3230_s1 + $0x98] sm:$0xff]  }
  0x37   : > { %2394 = vmatprep.subr.bf16.mxu0 %v2616_v34  ;;  %v2650_v27 = vld [vmem:[%s3230_s1 + $0x158] sm:$0xff]  }
  0x38   : > { %2299 = vmatpush3.bf16.msra.mxu1 %v2615_v42  ;;  %v2940_v38 = vsel %vm2821_vm2, %v773_v36, %v777_v17  ;;  %v2951_v42 = vcombine.low %v2844_v3, %v2858_v21  ;;  %v2621_v3 = vld [vmem:[%s3230_s1 + $0x1f0] sm:$0xff]   ;;  %v1923_v21 = vcombine.low %v2775_v12, %v2810_v39  ;;  %v2980_v12 = vld [vmem:[%s2766_s16 + $0x4c] sm:$0x1]  ;;  %v1095_v39 = vshrl.u32 %v662_v53, 16  ;;  %v1253_v36 = vld [vmem:[%s2766_s16 + $0x20] sm:$0xe] }
  0x39   : > { %2300 = vmatprep.subr.bf16.mxu1 %v2617_v0  ;;  %v2006_v44 = vcombine.low %v2940_v38, %v2944_v40  ;;  %v3021_v14 = vcombine.low %v2928_v24, %v2940_v38  ;;  %v3026_v15 = vsel %vm2984_vm5, %v2043_v10, %v1292_v1  ;;  %v2041_v17 = vrot.slane %v1250_v11, 9  ;;  %v2630_v24 = vld [vmem:[%s3230_s1 + $0x90] sm:$0xff]   ;;  %v2644_v1 = vld [vmem:[%s3230_s1 + $0x140] sm:$0xff]   ;;  %v2646_v10 = vld [vmem:[%s3230_s1 + $0x148] sm:$0xff]  }
  0x3a   : > { %2395 = vmatpush3.bf16.msra.mxu0 %v2616_v34  ;;  %v1097_v59 = vrot.slane %v1095_v39, 4  ;;  %v3031_v18 = vcombine.low %v3007_v8, %v3026_v15  ;;  %v2044_v37 = vrot.slane %v1253_v36, 9  ;;  %v2638_v38 = vld [vmem:[%s3230_s1 + $0x1b0] sm:$0xff]   ;;  %v1304_v11 = vrot.slane %v2887_v35, 5  ;;  %v2651_v35 = vld [vmem:[%s3230_s1 + $0x60] sm:$0xff]  }
  0x3b   : > { %2383 = vmatmul.mubr.bf16.gmra.mrb[4].mxu0 %v2006_v44  ;;  %2396 = vmatprep.subr.bf16.mxu0 %v2618_v43  ;;  %v2641_v44 = vld [vmem:[%s3230_s1 + $0x1b8] sm:$0xff]   ;;  %v2639_v39 = vld [vmem:[%s3230_s1 + $0xb0] sm:$0xff]  }
  0x3c   : > { %2301 = vmatpush3.bf16.msra.mxu1 %v2617_v0  ;;  %2402 = vmatprep.mubr.bf16.mxu0 %v2951_v42  ;;  %v1104_v0 = vshll.u32 %v2980_v12, 16  ;;  %v1101_v2 = vor.u32 %v1100_v61, %v1097_v59  ;;  %v3064_v63 = vsel %vm2984_vm5, %v2044_v37, %v1296_v31  ;;  %v1300_v61 = vrot.slane %v2883_v33, 5 }
  0x3d   : > { %2302 = vmatprep.subr.bf16.mxu1 %v2620_v29 }
  0x3e   : > { %2397 = vmatpush3.bf16.msra.mxu0 %v2618_v43  ;;  %v1102_v26 = vrot.slane %v1101_v2, 4  ;;  %v1106_v51 = vrot.slane %v1104_v0, 5  ;;  %v1468_v43 = vrot.slane %v2912_v62, 5  ;;  %v2643_v62 = vld [vmem:[%s3230_s1 + $0x40] sm:$0xff]   ;;  %v2647_v0 = vld [vmem:[%s3230_s1 + $0x50] sm:$0xff]  }
  0x3f   : > { %2398 = vmatprep.subr.bf16.mxu0 %v2621_v3 }
  0x40   : > { %2303 = vmatpush3.bf16.msra.mxu1 %v2620_v29  ;;  %v1107_v23 = vsel %vm2821_vm2, %v1102_v26, %v1106_v51  ;;  %v3047_v29 = vsel %vm2984_vm5, %v2041_v17, %v1284_v57  ;;  %v1254_v57 = vld [vmem:[%s2766_s16 + $0x28] sm:$0xe]  ;;  %v2648_v51 = vld [vmem:[%s3230_s1 + $0x150] sm:$0xff]   ;;  %v2652_v17 = vld [vmem:[%s3230_s1 + $0x160] sm:$0xff]  }
  0x41   : > { %2304 = vmatprep.subr.bf16.mxu1 %v2623_v41  ;;  %v2031_v50 = vcombine.low %v2944_v40, %v1107_v23  ;;  %v2064_v34 = vcombine.low %v1281_v28, %v3047_v29  ;;  %v2634_v40 = vld [vmem:[%s3230_s1 + $0xa0] sm:$0xff]   ;;  %v2045_v59 = vrot.slane %v1254_v57, 9  ;;  %v2093_v16 = vcombine.low %v3047_v29, %v3007_v8  ;;  %v2658_v8 = vld [vmem:[%s3230_s1 + $0x78] sm:$0xff]   ;;  %v2661_v28 = vld [vmem:[%s3230_s1 + $0x208] sm:$0xff]  }
  0x42   : > { %2399 = vmatpush3.bf16.msra.mxu0 %v2621_v3  ;;  %v2636_v3 = vld [vmem:[%s3230_s1 + $0xa8] sm:$0xff]   ;;  %v2660_v23 = vld [vmem:[%s3230_s1 + $0x200] sm:$0xff]   ;;  %v2659_v29 = vld [vmem:[%s3230_s1 + $0x178] sm:$0xff]  }
  0x43   : > { %2400 = vmatprep.subr.bf16.mxu0 %v2624_v48  ;;  %v3118_v33 = vsel %vm2984_vm5, %v2045_v59, %v1300_v61 }
  0x44   : > { %2305 = vmatpush3.bf16.msra.mxu1 %v2623_v41  ;;  %v2094_v41 = vcombine.low %v3026_v15, %v3064_v63  ;;  %v2666_v15 = vld [vmem:[%s3230_s1 + $0x230] sm:$0xff]  }
  0x45   : > { %2314 = vmatprep.subr.bf16.mxu1 %v2625_v46 }
  0x46   : > { %2401 = vmatpush3.bf16.msra.mxu0 %v2624_v48 }
  0x47   : > { %2307 = vmatmul.mubr.bf16.vlgmr.msra.gmra.mrb[0].mxu1 %v1923_v21  ;;  %2410 = vmatprep.subr.bf16.mxu0 %v2626_v22 }
  0x48   : > { %2315 = vmatpush3.bf16.msra.mxu1 %v2625_v46  ;;  %2310 = vmatprep.mubr.bf16.mxu1 %v2973_v49  ;;  %v1621_v46 = vrot.slane %v2980_v12, 5 }
  0x49   : > { %2316 = vmatprep.subr.bf16.mxu1 %v2627_v52  ;;  %2403 = vmatmul.mubr.bf16.vlgmr.msra.gmra.mrb[0].mxu0 %v3011_v45 }
  0x4a   : > { %2411 = vmatpush3.bf16.msra.mxu0 %v2626_v22  ;;  %2406 = vmatprep.mubr.bf16.mxu0 %v3021_v14  ;;  %v1255_v22 = vld [vmem:[%s2766_s16 + $0x30] sm:$0xe] }
  0x4b   : > { %2412 = vmatprep.subr.bf16.mxu0 %v2628_v13 }
  0x4c   : > { %2317 = vmatpush3.bf16.msra.mxu1 %v2627_v52  ;;  %v2105_v52 = vrot.slane %v1258_v47, 9 }
  0x4d   : > { %2318 = vmatprep.subr.bf16.mxu1 %v2629_v19 }
  0x4e   : > { %2413 = vmatpush3.bf16.msra.mxu0 %v2628_v13  ;;  %v3090_v12 = vsel %vm2984_vm5, %v2105_v52, %v1621_v46 }
  0x4f   : > { %2311 = vmatmul.mubr.bf16.gmra.mrb[4].mxu1 %v3001_v6  ;;  %2414 = vmatprep.subr.bf16.mxu0 %v2630_v24 }
  0x50   : > { %2319 = vmatpush3.bf16.msra.mxu1 %v2629_v19  ;;  %2330 = vmatprep.mubr.bf16.mxu1 %v1923_v21  ;;  %v1257_v21 = vld [vmem:[%s2766_s16 + $0x40] sm:$0xe]  ;;  %v208_v19 = vld [vmem:[%s2766_s16 + $0x48] sm:$0xf] }
  0x51   : > { %2320 = vmatprep.subr.bf16.mxu1 %v2631_v9  ;;  %2407 = vmatmul.mubr.bf16.gmra.mrb[4].mxu0 %v2031_v50  ;;  %v2076_v48 = vrot.slane %v1257_v21, 9  ;;  %v1950_v2 = vcombine.low %v2901_v55, %v208_v19  ;;  %v3131_v55 = vcombine.low %v3064_v63, %v3118_v33  ;;  %v2662_v50 = vld [vmem:[%s3230_s1 + $0x210] sm:$0xff]  }
  0x52   : > { %2415 = vmatpush3.bf16.msra.mxu0 %v2630_v24  ;;  %2426 = vmatprep.mubr.bf16.mxu0 %v2064_v34  ;;  %v2657_v24 = vld [vmem:[%s3230_s1 + $0x170] sm:$0xff]  }
  0x53   : > { %2416 = vmatprep.subr.bf16.mxu0 %v2632_v32  ;;  %v3086_v53 = vsel %vm2984_vm5, %v2076_v48, %v1468_v43 }
  0x54   : > { %2321 = vmatpush3.bf16.msra.mxu1 %v2631_v9  ;;  %v2122_v56 = vcombine.low %v3086_v53, %v3090_v12  ;;  %v1308_v9 = vrot.slane %v2908_v60, 5 }
  0x55   : > { %2322 = vmatprep.subr.bf16.mxu1 %v2633_v20 }
  0x56   : > { %2417 = vmatpush3.bf16.msra.mxu0 %v2632_v32  ;;  %v2667_v32 = vld [vmem:[%s3230_s1 + $0x238] sm:$0xff]  }
  0x57   : > { %2418 = vmatprep.subr.bf16.mxu0 %v2634_v40 }
  0x58   : > { %2323 = vmatpush3.bf16.msra.mxu1 %v2633_v20  ;;  %v2654_v20 = vld [vmem:[%s3230_s1 + $0x168] sm:$0xff]  }
  0x59   : > { %2324 = vmatprep.subr.bf16.mxu1 %v2635_v30 }
  0x5a   : > { %2419 = vmatpush3.bf16.msra.mxu0 %v2634_v40 }
  0x5b   : > { %2420 = vmatprep.subr.bf16.mxu0 %v2636_v3 }
  0x5c   : > { %2325 = vmatpush3.bf16.msra.mxu1 %v2635_v30 }
  0x5d   : > { %2326 = vmatprep.subr.bf16.mxu1 %v2638_v38 }
  0x5e   : > { %2421 = vmatpush3.bf16.msra.mxu0 %v2636_v3 }
  0x5f   : > { %2422 = vmatprep.subr.bf16.mxu0 %v2639_v39 }
  0x60   : > { %2327 = vmatpush3.bf16.msra.mxu1 %v2638_v38 }
  0x61   : > { %2328 = vmatprep.subr.bf16.mxu1 %v2641_v44 }
  0x62   : > { %2423 = vmatpush3.bf16.msra.mxu0 %v2639_v39 }
  0x63   : > { %2424 = vmatprep.subr.bf16.mxu0 %v2642_v58 }
  0x64   : > { %2329 = vmatpush3.bf16.msra.mxu1 %v2641_v44 }
  0x65   : > { %2338 = vmatprep.subr.bf16.mxu1 %v2643_v62 }
  0x66   : > { %2425 = vmatpush3.bf16.msra.mxu0 %v2642_v58 }
  0x67   : > { %2331 = vmatmul.mubr.bf16.vlgmr.msra.gmra.mrb[0].mxu1 %v2973_v49  ;;  %v1256_v49 = vld [vmem:[%s2766_s16 + $0x38] sm:$0xe]  ;;  %2434 = vmatprep.subr.bf16.mxu0 %v2644_v1 }
  0x68   : > { %2339 = vmatpush3.bf16.msra.mxu1 %v2643_v62  ;;  %2334 = vmatprep.mubr.bf16.mxu1 %v3001_v6  ;;  %v2046_v6 = vrot.slane %v1255_v22, 9  ;;  %v2047_v7 = vrot.slane %v1256_v49, 9  ;;  %v2131_v62 = vld [vmem:[%s3231_s2] ss:$0 sm:$0xff] }
  0x69   : > { %2340 = vmatprep.subr.bf16.mxu1 %v2645_v25  ;;  %2427 = vmatmul.mubr.bf16.vlgmr.msra.gmra.mrb[0].mxu0 %v3031_v18 }
  0x6a   : > { %2435 = vmatpush3.bf16.msra.mxu0 %v2644_v1  ;;  %v1305_v60 = vsel %vm2984_vm5, %v2046_v6, %v1304_v11  ;;  %v3141_v26 = vsel %vm2984_vm5, %v2047_v7, %v1308_v9  ;;  %2430 = vmatprep.mubr.bf16.mxu0 %v3131_v55 }
  0x6b   : > { %2436 = vmatprep.subr.bf16.mxu0 %v2646_v10  ;;  %v2067_v13 = vcombine.low %v1305_v60, %v3141_v26  ;;  %v2095_v30 = vcombine.low %v3118_v33, %v1305_v60  ;;  %v2096_v31 = vcombine.low %v3141_v26, %v3086_v53 }
  0x6c   : > { %2341 = vmatpush3.bf16.msra.mxu1 %v2645_v25 }
  0x6d   : > { %2342 = vmatprep.subr.bf16.mxu1 %v2647_v0 }
  0x6e   : > { %2437 = vmatpush3.bf16.msra.mxu0 %v2646_v10 }
  0x6f   : > { %2335 = vmatmul.mubr.bf16.gmra.mrb[4].mxu1 %v1950_v2  ;;  %2438 = vmatprep.subr.bf16.mxu0 %v2648_v51 }
  0x70   : > { %2343 = vmatpush3.bf16.msra.mxu1 %v2647_v0  ;;  %2354 = vmatprep.mubr.bf16.mxu1 %v2846_v4  ;;  %v2656_v4 = vld [vmem:[%s3230_s1 + $0x70] sm:$0xff]  }
  0x71   : > { %2344 = vmatprep.subr.bf16.mxu1 %v2649_v5  ;;  %2431 = vmatmul.mubr.bf16.gmra.mrb[4].mxu0 %v2067_v13 }
  0x72   : > { %2439 = vmatpush3.bf16.msra.mxu0 %v2648_v51  ;;  %2450 = vmatprep.mubr.bf16.mxu0 %v2093_v16 }
  0x73   : > { %2440 = vmatprep.subr.bf16.mxu0 %v2650_v27 }
  0x74   : > { %2345 = vmatpush3.bf16.msra.mxu1 %v2649_v5 }
  0x75   : > { %2346 = vmatprep.subr.bf16.mxu1 %v2651_v35 }
  0x76   : > { %2441 = vmatpush3.bf16.msra.mxu0 %v2650_v27 }
  0x77   : > { %2442 = vmatprep.subr.bf16.mxu0 %v2652_v17 }
  0x78   : > { %2347 = vmatpush3.bf16.msra.mxu1 %v2651_v35 }
  0x79   : > { %2348 = vmatprep.subr.bf16.mxu1 %v2653_v54 }
  0x7a   : > { %2443 = vmatpush3.bf16.msra.mxu0 %v2652_v17 }
  0x7b   : > { %2444 = vmatprep.subr.bf16.mxu0 %v2654_v20 }
  0x7c   : > { %2349 = vmatpush3.bf16.msra.mxu1 %v2653_v54 }
  0x7d   : > { %2350 = vmatprep.subr.bf16.mxu1 %v2656_v4 }
  0x7e   : > { %2445 = vmatpush3.bf16.msra.mxu0 %v2654_v20 }
  0x7f   : > { %2446 = vmatprep.subr.bf16.mxu0 %v2657_v24 }
  0x80   : > { %2351 = vmatpush3.bf16.msra.mxu1 %v2656_v4 }
  0x81   : > { %2352 = vmatprep.subr.bf16.mxu1 %v2658_v8 }
  0x82   : > { %2447 = vmatpush3.bf16.msra.mxu0 %v2657_v24 }
  0x83   : > { %2448 = vmatprep.subr.bf16.mxu0 %v2659_v29 }
  0x84   : > { %2353 = vmatpush3.bf16.msra.mxu1 %v2658_v8 }
  0x85   : > { %2482 = vmatprep.subr.bf16.mxu1 %v2660_v23 }
  0x86   : > { %2449 = vmatpush3.bf16.msra.mxu0 %v2659_v29 }
  0x87   : > { %2355 = vmatmul.mubr.bf16.vlgmr.msra.gmra.mrb[0].mxu1 %v2951_v42  ;;  %2458 = vmatprep.subr.bf16.mxu0 %v2660_v23  ;;  %v2663_v42 = vld [vmem:[%s3230_s1 + $0x218] sm:$0xff]  }
  0x88   : > { %2490 = vmatpush3.bf16.msra.mxu1 %v2660_v23  ;;  %2358 = vmatprep.mubr.bf16.mxu1 %v3011_v45  ;;  %v2664_v45 = vld [vmem:[%s3230_s1 + $0x220] sm:$0xff]  }
  0x89   : > { %2483 = vmatprep.subr.bf16.mxu1 %v2661_v28  ;;  %2451 = vmatmul.mubr.bf16.vlgmr.msra.gmra.mrb[0].mxu0 %v2094_v41 }
  0x8a   : > { %2459 = vmatpush3.bf16.msra.mxu0 %v2660_v23  ;;  %2454 = vmatprep.mubr.bf16.mxu0 %v2095_v30 }
  0x8b   : > { %2460 = vmatprep.subr.bf16.mxu0 %v2661_v28 }
  0x8c   : > { %2491 = vmatpush3.bf16.msra.mxu1 %v2661_v28 }
  0x8d   : > { %2484 = vmatprep.subr.bf16.mxu1 %v2662_v50 }
  0x8e   : > { %2461 = vmatpush3.bf16.msra.mxu0 %v2661_v28 }
  0x8f   : > { %2359 = vmatmul.mubr.bf16.gmra.mrb[4].mxu1 %v3021_v14  ;;  %v2665_v14 = vld [vmem:[%s3230_s1 + $0x228] sm:$0xff]   ;;  %2462 = vmatprep.subr.bf16.mxu0 %v2662_v50 }
  0x90   : > { %2492 = vmatpush3.bf16.msra.mxu1 %v2662_v50  ;;  %2478 = vmatprep.mubr.bf16.mxu1 %v2067_v13 }
  0x91   : > { %2485 = vmatprep.subr.bf16.mxu1 %v2663_v42  ;;  %2455 = vmatmul.mubr.bf16.gmra.mrb[4].mxu0 %v2096_v31 }
  0x92   : > { %2463 = vmatpush3.bf16.msra.mxu0 %v2662_v50  ;;  %2474 = vmatprep.mubr.bf16.mxu0 %v3031_v18 }
  0x93   : > { %2464 = vmatprep.subr.bf16.mxu0 %v2663_v42 }
  0x94   : > { %2493 = vmatpush3.bf16.msra.mxu1 %v2663_v42 }
  0x95   : > { %2486 = vmatprep.subr.bf16.mxu1 %v2664_v45 }
  0x96   : > { %2465 = vmatpush3.bf16.msra.mxu0 %v2663_v42 }
  0x97   : > { %2466 = vmatprep.subr.bf16.mxu0 %v2664_v45 }
  0x98   : > { %2494 = vmatpush3.bf16.msra.mxu1 %v2664_v45 }
  0x99   : > { %2487 = vmatprep.subr.bf16.mxu1 %v2665_v14 }
  0x9a   : > { %2467 = vmatpush3.bf16.msra.mxu0 %v2664_v45 }
  0x9b   : > { %2468 = vmatprep.subr.bf16.mxu0 %v2665_v14 }
  0x9c   : > { %2495 = vmatpush3.bf16.msra.mxu1 %v2665_v14 }
  0x9d   : > { %2488 = vmatprep.subr.bf16.mxu1 %v2666_v15 }
  0x9e   : > { %2469 = vmatpush3.bf16.msra.mxu0 %v2665_v14 }
  0x9f   : > { %2470 = vmatprep.subr.bf16.mxu0 %v2666_v15 }
  0xa0   : > { %2496 = vmatpush3.bf16.msra.mxu1 %v2666_v15 }
  0xa1   : > { %2489 = vmatprep.subr.bf16.mxu1 %v2667_v32 }
  0xa2   : > { %2471 = vmatpush3.bf16.msra.mxu0 %v2666_v15 }
  0xa3   : > { %2472 = vmatprep.subr.bf16.mxu0 %v2667_v32 }
  0xa4   : > { %2497 = vmatpush3.bf16.msra.mxu1 %v2667_v32 }
  0xa6   : > { %2473 = vmatpush3.bf16.msra.mxu0 %v2667_v32 }
  0xa7   : > { %2479 = vmatmul.mubr.bf16.vlgmr.msra.gmra.mrb[8].mxu1 %v2122_v56 }
  0xa9   : > { %2475 = vmatmul.mubr.bf16.vlgmr.msra.gmra.mrb[0].mxu0 %v3131_v55 }
 0x15a   : > { %v2356_v18 = vpop.f32.mrb[0].mxu1 }
 0x15b   : > { %v894_v34 = vpop.f32.mrb[1].mxu1 }
 0x15c   : > { %v2357_v36 = vpop.f32.mrb[2].mxu1 }
 0x15d   : > { %v897_v37 = vpop.f32.mrb[3].mxu1 }
 0x162   : > { %v2360_v38 = vpop.f32.mrb[4].mxu1 }
 0x163   : > { %v910_v63 = vpop.f32.mrb[5].mxu1 }
 0x164   : > { %v2361_v40 = vpop.f32.mrb[6].mxu1  ;;  %v2456_v43 = vpop.f32.mrb[4].mxu0 }
 0x165   : > { %v913_v41 = vpop.f32.mrb[7].mxu1  ;;  %v2502_v44 = vadd.f32 %v2456_v43, %v2360_v38  ;;  %v1594_v46 = vpop.f32.mrb[5].mxu0 }
 0x166   : > { %v2504_v3 = vadd.f32 %v1594_v46, %v910_v63  ;;  %v2457_v21 = vpop.f32.mrb[6].mxu0 }
 0x167   : > { %v2506_v47 = vadd.f32 %v2457_v21, %v2361_v40  ;;  %v1597_v48 = vpop.f32.mrb[7].mxu0 }
 0x168   : > { %v2508_v52 = vadd.f32 %v1597_v48, %v913_v41 }
 0x17a   : > { %v2480_v53 = vpop.f32.mrb[8].mxu1 }
 0x17b   : > { %v2503_v12 = vadd.f32 %v2502_v44, %v2480_v53  ;;  %v1741_v39 = vpop.f32.mrb[9].mxu1 }
 0x17c   : > { %v2505_v56 = vadd.f32 %v2504_v3, %v1741_v39  ;;  %v2481_v57 = vpop.f32.mrb[10].mxu1  ;;  %v2476_v5 = vpop.f32.mrb[0].mxu0 }
 0x17d   : > { %v1777_v25 = vadd.f32 %v2503_v12, %v2131_v62  ;;  %v2507_v58 = vadd.f32 %v2506_v47, %v2481_v57  ;;  %v1744_v59 = vpop.f32.mrb[11].mxu1  ;;  %v2498_v11 = vadd.f32 %v2476_v5, %v2356_v18  ;;  %v1725_v7 = vpop.f32.mrb[1].mxu0 }
 0x17e   : > { %v1775_v61 = vadd.f32 %v2505_v56, %v2131_v62  ;;  %v2509_v19 = vadd.f32 %v2508_v52, %v1744_v59  ;;  %v2499_v10 = vadd.f32 %v1725_v7, %v894_v34  ;;  %v2477_v55 = vpop.f32.mrb[2].mxu0 }
 0x17f   : > { %v1778_v0 = vadd.f32 %v2507_v58, %v2131_v62  ;;  %v1785_v22 = vmax.f32 %v1777_v25, 0.0  ;;  %v1773_v35 = vadd.f32 %v2498_v11, %v2131_v62  ;;  %v2500_v60 = vadd.f32 %v2477_v55, %v2357_v36  ;;  %v1728_v26 = vpop.f32.mrb[3].mxu0 }
 0x180   : > { %v1776_v1 = vadd.f32 %v2509_v19, %v2131_v62  ;;  %v1783_v33 = vmax.f32 %v1775_v61, 0.0  ;;  %v1771_v51 = vadd.f32 %v2499_v10, %v2131_v62  ;;  %v2501_v13 = vadd.f32 %v1728_v26, %v897_v37 }
 0x181   : > { %v1786_v49 = vmax.f32 %v1778_v0, 0.0  ;;  %v1774_v54 = vadd.f32 %v2500_v60, %v2131_v62  ;;  %v1781_v16 = vmax.f32 %v1773_v35, 0.0 }
 0x182   : > { %v1784_v2 = vmax.f32 %v1776_v1, 0.0  ;;  %v1772_v27 = vadd.f32 %v2501_v13, %v2131_v62  ;;  %v1779_v17 = vmax.f32 %v1771_v51, 0.0 }
 0x183   : > { %v2153_v6 = vpack.c.bf16 %v1786_v49, %v1785_v22  ;;  %v1782_v4 = vmax.f32 %v1774_v54, 0.0 }
 0x184   : > { %v2148_v9 = vpack.c.bf16 %v1784_v2, %v1783_v33  ;;  %v1780_v8 = vmax.f32 %v1772_v27, 0.0 }
 0x185   : > { %2157 = vst [vmem:[%s192_s7 + $0x18] sm:$0xff] %v2153_v6   ;;  %v2143_v20 = vpack.c.bf16 %v1782_v4, %v1781_v16 }
 0x186   : > { %2156 = vst [vmem:[%s192_s7 + $0x10] sm:$0xff] %v2148_v9   ;;  %v2138_v23 = vpack.c.bf16 %v1780_v8, %v1779_v17 }
 0x187   : > { %2155 = vst [vmem:[%s192_s7 + $0x8] sm:$0xff] %v2143_v20  }
 0x188   : > { %2139 = vst [vmem:[%s192_s7] sm:$0xff] %v2138_v23  }
 0x189 PF: > { %s13_s14 = sadd.s32 1, %s2690_s14   ;;  %s3237_s12 = smov %s2686_s13 }
 0x18a   : > { %p10_p5 = scmp.ge.s32.totalorder %s13_s14, 6   ;;  %s3238_s13 = smov %s3240_s15 }
 0x18c   :  { %12 = sbr.rel (!%p10_p5) target bundleno = 2 (0x2), region = 71 }

// kernel: resnet_loss.31
= control target key start
LH: loop header
LB: loop body
LE: loop exit
PB: predicated region body
PF: predicated region fallthrough
CT: control target
= control target key end

     0   :  { %s570_s12 = smov 0   ;;  %s572_s13 = smov 0   ;;  %s633_s0 = inlined_call_operand.vmem [shape: bf16[4,16,128], index: 0, kind: input, shape index: {}]   ;;  %s634_s1 = inlined_call_operand.vmem [shape: bf16[128,128], index: 1, kind: input, shape index: {}]   ;;  %s635_s2 = inlined_call_operand.vmem [shape: f32[1,128], index: 2, kind: input, shape index: {}]   ;;  %s636_s3 = inlined_call_operand.vmem [shape: bf16[4,16,128], index: 3, kind: output, shape index: {}]  }
   0x1   :  { %s574_s14 = smov 0  }
   0x2 LB: > { %s25_s15 = sadd.s32 1, %s542_s13  ;;  %p432_p0 = scmp.ge.s32.totalorder %s546_s14, 1  ;;  %s546_s14 = sphi %s574_s14, %s13_s14   ;;  %s542_s13 = sphi %s572_s13, %s638_s13   ;;  %s538_s12 = sphi %s570_s12, %s637_s12  }
   0x3   : > { %p27_p1 = scmp.ge.s32.totalorder %s25_s15, 4  ;;  %p158_p2 = scmp.lt.s32.totalorder %s546_s14, 5 }
   0x5   : > { %s640_s15 = smov (%p27_p1, %s25_s15), 0  ;;  %p159_p3 = pnand %p432_p0, %p158_p2 }
   0x6   : > { %v515_v0 = vld [vmem:[%s634_s1] sm:$0xff] (!%p159_p3)   ;;  %v548_v1 = vmov (!%p159_p3), 0.0   ;;  %v516_v2 = vld [vmem:[%s634_s1 + $0x8] sm:$0xff] (!%p159_p3)   ;;  %vm549_vm0 = vmmov (!%p159_p3), 0   ;;  %p191_p4 = scmp.lt.s32.totalorder (!%p159_p3), %s538_s12, 3  ;;  %v517_v3 = vld [vmem:[%s634_s1 + $0x10] sm:$0xff] (!%p159_p3)  }
   0x7   : > { %162 = sbr.rel (%p159_p3) target bundleno = 258 (0x102), region = 32  ;;  %469 = vmatprep.subr.bf16.mxu0 (!%p159_p3), %v548_v1  ;;  %485 = vmatprep.mubr.msk.bf16.mxu0 (!%p159_p3), %vm549_vm0, %v548_v1  ;;  %v518_v4 = vld [vmem:[%s634_s1 + $0x18] sm:$0xff] (!%p159_p3)   ;;  %v519_v5 = vld [vmem:[%s634_s1 + $0x20] sm:$0xff] (!%p159_p3)   ;;  %v520_v6 = vld [vmem:[%s634_s1 + $0x28] sm:$0xff] (!%p159_p3)  }
   0x8   : > { %470 = vmatpush3.bf16.msra.mxu0 (!%p159_p3), %v515_v0  ;;  %v521_v7 = vld [vmem:[%s634_s1 + $0x30] sm:$0xff] (!%p159_p3)   ;;  %v522_v8 = vld [vmem:[%s634_s1 + $0x38] sm:$0xff] (!%p159_p3)   ;;  %v437_v10 = vld [vmem:[%s635_s2] ss:$0 sm:$0xff] (!%p159_p3) }
   0x9   : > { %471 = vmatprep.subr.bf16.mxu0 (!%p159_p3), %v548_v1 }
   0xc   : > { %472 = vmatpush3.bf16.msra.mxu0 (!%p159_p3), %v516_v2 }
   0xd   : > { %473 = vmatprep.subr.bf16.mxu0 (!%p159_p3), %v548_v1 }
   0xe   : > { %s642_s12 = smov (!%p191_p4, %s538_s12), 3 }
   0xf   : > { %s451_s22 = sshll.u32 %s642_s12, 3 }
  0x10   : > { %s198_s25 = scalar_lea.vmem %s633_s0, %s451_s22  ;;  %474 = vmatpush3.bf16.msra.mxu0 %v517_v3  ;;  %s208_s16 = scalar_lea.vmem %s636_s3, %s451_s22 }
  0x11   : > { %475 = vmatprep.subr.bf16.mxu0 %v548_v1  ;;  %v523_v9 = vld [vmem:[%s198_s25] sm:$0xff]  }
  0x14   : > { %476 = vmatpush3.bf16.msra.mxu0 %v518_v4 }
  0x15   : > { %477 = vmatprep.subr.bf16.mxu0 %v548_v1 }
  0x18   : > { %478 = vmatpush3.bf16.msra.mxu0 %v519_v5 }
  0x19   : > { %479 = vmatprep.subr.bf16.mxu0 %v548_v1 }
  0x1c   : > { %480 = vmatpush3.bf16.msra.mxu0 %v520_v6 }
  0x1d   : > { %481 = vmatprep.subr.bf16.mxu0 %v548_v1 }
  0x20   : > { %482 = vmatpush3.bf16.msra.mxu0 %v521_v7 }
  0x21   : > { %483 = vmatprep.subr.bf16.mxu0 %v548_v1 }
  0x24   : > { %484 = vmatpush3.bf16.msra.mxu0 %v522_v8 }
  0x27   : > { %486 = vmatmul.mubr.bf16.vlgmr.msra.gmra.mrb[0].mxu0 %v523_v9 }
  0xfa   : > { %v324_v11 = vpop.f32.mrb[0].mxu0 }
  0xfb   : > { %v487_v12 = vpop.f32.mrb[1].mxu0  ;;  %v325_v14 = vadd.f32 %v437_v10, %v324_v11 }
  0xfc   : > { %v327_v13 = vpop.f32.mrb[2].mxu0 }
  0xfd   : > { %v328_v15 = vadd.f32 %v437_v10, %v327_v13  ;;  %v488_v16 = vpop.f32.mrb[3].mxu0 }
  0xff   : > { %v458_v17 = vpack.c.bf16 %v328_v15, %v325_v14 }
 0x101   : > { %459 = vst [vmem:[%s208_s16] sm:$0xff] %v458_v17  }
 0x102 PF: > { %s13_s14 = sadd.s32 1, %s546_s14   ;;  %s637_s12 = smov %s542_s13 }
 0x103   : > { %p10_p5 = scmp.ge.s32.totalorder %s13_s14, 6   ;;  %s638_s13 = smov %s640_s15 }
 0x105   :  { %12 = sbr.rel (!%p10_p5) target bundleno = 2 (0x2), region = 62 }

// kernel: resnet_loss.32
= control target key start
LH: loop header
LB: loop body
LE: loop exit
PB: predicated region body
PF: predicated region fallthrough
CT: control target
= control target key end

     0   :  { %s671_s15 = smov 0   ;;  %s673_s16 = smov 0   ;;  %s739_s0 = inlined_call_operand.vmem [shape: bf16[4,16,128], index: 0, kind: input, shape index: {}]   ;;  %s740_s1 = inlined_call_operand.vmem [shape: bf16[128,128], index: 1, kind: input, shape index: {}]   ;;  %s741_s2 = inlined_call_operand.vmem [shape: f32[1,128], index: 2, kind: input, shape index: {}]   ;;  %s742_s3 = inlined_call_operand.vmem [shape: bf16[4,16,128], index: 3, kind: input, shape index: {}]   ;;  %s743_s4 = inlined_call_operand.vmem [shape: bf16[4,16,128], index: 4, kind: output, shape index: {}]  }
   0x1   :  { %s675_s17 = smov 0  }
   0x2 LB: > { %s26_s18 = sadd.s32 1, %s638_s16  ;;  %p521_p0 = scmp.ge.s32.totalorder %s642_s17, 1  ;;  %s642_s17 = sphi %s675_s17, %s14_s17   ;;  %s638_s16 = sphi %s673_s16, %s745_s16   ;;  %s634_s15 = sphi %s671_s15, %s744_s15  }
   0x3   : > { %p28_p1 = scmp.ge.s32.totalorder %s26_s18, 4  ;;  %p200_p2 = scmp.lt.s32.totalorder %s642_s17, 5 }
   0x5   : > { %s747_s18 = smov (%p28_p1, %s26_s18), 0  ;;  %p201_p3 = pnand %p521_p0, %p200_p2 }
   0x6   : > { %v611_v0 = vld [vmem:[%s740_s1] sm:$0xff] (!%p201_p3)   ;;  %v644_v1 = vmov (!%p201_p3), 0.0   ;;  %v612_v2 = vld [vmem:[%s740_s1 + $0x8] sm:$0xff] (!%p201_p3)   ;;  %vm645_vm0 = vmmov (!%p201_p3), 0   ;;  %p244_p4 = scmp.lt.s32.totalorder (!%p201_p3), %s634_s15, 3  ;;  %v613_v3 = vld [vmem:[%s740_s1 + $0x10] sm:$0xff] (!%p201_p3)  }
   0x7   : > { %204 = sbr.rel (%p201_p3) target bundleno = 262 (0x106), region = 36  ;;  %565 = vmatprep.subr.bf16.mxu0 (!%p201_p3), %v644_v1  ;;  %581 = vmatprep.mubr.msk.bf16.mxu0 (!%p201_p3), %vm645_vm0, %v644_v1  ;;  %v614_v4 = vld [vmem:[%s740_s1 + $0x18] sm:$0xff] (!%p201_p3)   ;;  %v615_v5 = vld [vmem:[%s740_s1 + $0x20] sm:$0xff] (!%p201_p3)   ;;  %v616_v6 = vld [vmem:[%s740_s1 + $0x28] sm:$0xff] (!%p201_p3)  }
   0x8   : > { %566 = vmatpush3.bf16.msra.mxu0 (!%p201_p3), %v611_v0  ;;  %v617_v7 = vld [vmem:[%s740_s1 + $0x30] sm:$0xff] (!%p201_p3)   ;;  %v618_v8 = vld [vmem:[%s740_s1 + $0x38] sm:$0xff] (!%p201_p3)   ;;  %v528_v11 = vld [vmem:[%s741_s2] ss:$0 sm:$0xff] (!%p201_p3) }
   0x9   : > { %567 = vmatprep.subr.bf16.mxu0 (!%p201_p3), %v644_v1 }
   0xc   : > { %568 = vmatpush3.bf16.msra.mxu0 (!%p201_p3), %v612_v2 }
   0xd   : > { %569 = vmatprep.subr.bf16.mxu0 (!%p201_p3), %v644_v1 }
   0xe   : > { %s749_s15 = smov (!%p244_p4, %s634_s15), 3 }
   0xf   : > { %s698_s25 = sshll.u32 %s749_s15, 3 }
  0x10   : > { %s251_s28 = scalar_lea.vmem %s739_s0, %s698_s25  ;;  %570 = vmatpush3.bf16.msra.mxu0 %v613_v3  ;;  %s261_s15 = scalar_lea.vmem %s742_s3, %s698_s25 }
  0x11   : > { %571 = vmatprep.subr.bf16.mxu0 %v644_v1  ;;  %v619_v9 = vld [vmem:[%s251_s28] sm:$0xff]   ;;  %s271_s23 = scalar_lea.vmem %s743_s4, %s698_s25 }
  0x12   : > { %v548_v10 = vld [vmem:[%s261_s15] sm:$0xff]  }
  0x13   : > { %v549_v12 = vunpack.c.l.bf16 %v548_v10  ;;  %v550_v16 = vunpack.c.h.bf16 %v548_v10 }
  0x14   : > { %572 = vmatpush3.bf16.msra.mxu0 %v614_v4 }
  0x15   : > { %573 = vmatprep.subr.bf16.mxu0 %v644_v1 }
  0x18   : > { %574 = vmatpush3.bf16.msra.mxu0 %v615_v5 }
  0x19   : > { %575 = vmatprep.subr.bf16.mxu0 %v644_v1 }
  0x1c   : > { %576 = vmatpush3.bf16.msra.mxu0 %v616_v6 }
  0x1d   : > { %577 = vmatprep.subr.bf16.mxu0 %v644_v1 }
  0x20   : > { %578 = vmatpush3.bf16.msra.mxu0 %v617_v7 }
  0x21   : > { %579 = vmatprep.subr.bf16.mxu0 %v644_v1 }
  0x24   : > { %580 = vmatpush3.bf16.msra.mxu0 %v618_v8 }
  0x27   : > { %582 = vmatmul.mubr.bf16.vlgmr.msra.gmra.mrb[0].mxu0 %v619_v9 }
  0xfa   : > { %v387_v13 = vpop.f32.mrb[0].mxu0 }
  0xfb   : > { %v388_v14 = vadd.f32 %v528_v11, %v387_v13  ;;  %v583_v15 = vpop.f32.mrb[1].mxu0 }
  0xfc   : > { %v390_v17 = vpop.f32.mrb[2].mxu0 }
  0xfd   : > { %v398_v18 = vadd.f32 %v549_v12, %v388_v14  ;;  %v391_v19 = vadd.f32 %v528_v11, %v390_v17  ;;  %v584_v20 = vpop.f32.mrb[3].mxu0 }
  0xff   : > { %v399_v21 = vadd.f32 %v550_v16, %v391_v19  ;;  %v400_v22 = vmax.f32 %v398_v18, 0.0 }
 0x101   : > { %v401_v23 = vmax.f32 %v399_v21, 0.0 }
 0x103   : > { %v554_v24 = vpack.c.bf16 %v401_v23, %v400_v22 }
 0x105   : > { %555 = vst [vmem:[%s271_s23] sm:$0xff] %v554_v24  }
 0x106 PF: > { %s14_s17 = sadd.s32 1, %s642_s17   ;;  %s744_s15 = smov %s638_s16 }
 0x107   : > { %p11_p5 = scmp.ge.s32.totalorder %s14_s17, 6   ;;  %s745_s16 = smov %s747_s18 }
 0x109   :  { %13 = sbr.rel (!%p11_p5) target bundleno = 2 (0x2), region = 69 }

// kernel: resnet_loss.33
= control target key start
LH: loop header
LB: loop body
LE: loop exit
PB: predicated region body
PF: predicated region fallthrough
CT: control target
= control target key end

     0   :  { %s572_s12 = smov 0   ;;  %s574_s13 = smov 0   ;;  %s639_s0 = inlined_call_operand.vmem [shape: bf16[4,16,128], index: 0, kind: input, shape index: {}]   ;;  %s640_s1 = inlined_call_operand.vmem [shape: bf16[128,128], index: 1, kind: input, shape index: {}]   ;;  %s641_s2 = inlined_call_operand.vmem [shape: f32[1,128], index: 2, kind: input, shape index: {}]   ;;  %s642_s3 = inlined_call_operand.vmem [shape: bf16[4,16,128], index: 3, kind: output, shape index: {}]  }
   0x1   :  { %s576_s14 = smov 0  }
   0x2 LB: > { %s25_s15 = sadd.s32 1, %s544_s13  ;;  %p434_p0 = scmp.ge.s32.totalorder %s548_s14, 1  ;;  %s548_s14 = sphi %s576_s14, %s13_s14   ;;  %s544_s13 = sphi %s574_s13, %s644_s13   ;;  %s540_s12 = sphi %s572_s12, %s643_s12  }
   0x3   : > { %p27_p1 = scmp.ge.s32.totalorder %s25_s15, 4  ;;  %p158_p2 = scmp.lt.s32.totalorder %s548_s14, 5 }
   0x5   : > { %s646_s15 = smov (%p27_p1, %s25_s15), 0  ;;  %p159_p3 = pnand %p434_p0, %p158_p2 }
   0x6   : > { %v517_v0 = vld [vmem:[%s640_s1] sm:$0xff] (!%p159_p3)   ;;  %v550_v1 = vmov (!%p159_p3), 0.0   ;;  %v518_v2 = vld [vmem:[%s640_s1 + $0x8] sm:$0xff] (!%p159_p3)   ;;  %vm551_vm0 = vmmov (!%p159_p3), 0   ;;  %p191_p4 = scmp.lt.s32.totalorder (!%p159_p3), %s540_s12, 3  ;;  %v519_v3 = vld [vmem:[%s640_s1 + $0x10] sm:$0xff] (!%p159_p3)  }
   0x7   : > { %162 = sbr.rel (%p159_p3) target bundleno = 260 (0x104), region = 32  ;;  %471 = vmatprep.subr.bf16.mxu0 (!%p159_p3), %v550_v1  ;;  %487 = vmatprep.mubr.msk.bf16.mxu0 (!%p159_p3), %vm551_vm0, %v550_v1  ;;  %v520_v4 = vld [vmem:[%s640_s1 + $0x18] sm:$0xff] (!%p159_p3)   ;;  %v521_v5 = vld [vmem:[%s640_s1 + $0x20] sm:$0xff] (!%p159_p3)   ;;  %v522_v6 = vld [vmem:[%s640_s1 + $0x28] sm:$0xff] (!%p159_p3)  }
   0x8   : > { %472 = vmatpush3.bf16.msra.mxu0 (!%p159_p3), %v517_v0  ;;  %v523_v7 = vld [vmem:[%s640_s1 + $0x30] sm:$0xff] (!%p159_p3)   ;;  %v524_v8 = vld [vmem:[%s640_s1 + $0x38] sm:$0xff] (!%p159_p3)   ;;  %v439_v10 = vld [vmem:[%s641_s2] ss:$0 sm:$0xff] (!%p159_p3) }
   0x9   : > { %473 = vmatprep.subr.bf16.mxu0 (!%p159_p3), %v550_v1 }
   0xc   : > { %474 = vmatpush3.bf16.msra.mxu0 (!%p159_p3), %v518_v2 }
   0xd   : > { %475 = vmatprep.subr.bf16.mxu0 (!%p159_p3), %v550_v1 }
   0xe   : > { %s648_s12 = smov (!%p191_p4, %s540_s12), 3 }
   0xf   : > { %s453_s22 = sshll.u32 %s648_s12, 3 }
  0x10   : > { %s198_s25 = scalar_lea.vmem %s639_s0, %s453_s22  ;;  %476 = vmatpush3.bf16.msra.mxu0 %v519_v3  ;;  %s208_s17 = scalar_lea.vmem %s642_s3, %s453_s22 }
  0x11   : > { %477 = vmatprep.subr.bf16.mxu0 %v550_v1  ;;  %v525_v9 = vld [vmem:[%s198_s25] sm:$0xff]  }
  0x14   : > { %478 = vmatpush3.bf16.msra.mxu0 %v520_v4 }
  0x15   : > { %479 = vmatprep.subr.bf16.mxu0 %v550_v1 }
  0x18   : > { %480 = vmatpush3.bf16.msra.mxu0 %v521_v5 }
  0x19   : > { %481 = vmatprep.subr.bf16.mxu0 %v550_v1 }
  0x1c   : > { %482 = vmatpush3.bf16.msra.mxu0 %v522_v6 }
  0x1d   : > { %483 = vmatprep.subr.bf16.mxu0 %v550_v1 }
  0x20   : > { %484 = vmatpush3.bf16.msra.mxu0 %v523_v7 }
  0x21   : > { %485 = vmatprep.subr.bf16.mxu0 %v550_v1 }
  0x24   : > { %486 = vmatpush3.bf16.msra.mxu0 %v524_v8 }
  0x27   : > { %488 = vmatmul.mubr.bf16.vlgmr.msra.gmra.mrb[0].mxu0 %v525_v9 }
  0xfa   : > { %v324_v11 = vpop.f32.mrb[0].mxu0 }
  0xfb   : > { %v325_v12 = vadd.f32 %v439_v10, %v324_v11  ;;  %v489_v13 = vpop.f32.mrb[1].mxu0 }
  0xfc   : > { %v327_v14 = vpop.f32.mrb[2].mxu0 }
  0xfd   : > { %v328_v15 = vadd.f32 %v439_v10, %v327_v14  ;;  %v490_v16 = vpop.f32.mrb[3].mxu0  ;;  %v331_v17 = vmax.f32 %v325_v12, 0.0 }
  0xff   : > { %v332_v18 = vmax.f32 %v328_v15, 0.0 }
 0x101   : > { %v460_v19 = vpack.c.bf16 %v332_v18, %v331_v17 }
 0x103   : > { %461 = vst [vmem:[%s208_s17] sm:$0xff] %v460_v19  }
 0x104 PF: > { %s13_s14 = sadd.s32 1, %s548_s14   ;;  %s643_s12 = smov %s544_s13 }
 0x105   : > { %p10_p5 = scmp.ge.s32.totalorder %s13_s14, 6   ;;  %s644_s13 = smov %s646_s15 }
 0x107   :  { %12 = sbr.rel (!%p10_p5) target bundleno = 2 (0x2), region = 62 }

// kernel: resnet_loss.30
= control target key start
LH: loop header
LB: loop body
LE: loop exit
PB: predicated region body
PF: predicated region fallthrough
CT: control target
= control target key end

     0   :  { %s2377_s12 = smov 0   ;;  %s2379_s13 = smov 0   ;;  %s2813_s0 = inlined_call_operand.vmem [shape: bf16[4,4,5,5,128], index: 0, kind: input, shape index: {}]   ;;  %s2814_s1 = inlined_call_operand.vmem [shape: bf16[3,3,128,128], index: 1, kind: input, shape index: {}]   ;;  %s2815_s2 = inlined_call_operand.vmem [shape: f32[1,128], index: 2, kind: input, shape index: {}]   ;;  %s2816_s3 = inlined_call_operand.vmem [shape: bf16[4,4,4,128], index: 3, kind: output, shape index: {}]  }
   0x1   :  { %s2381_s14 = smov 0  }
   0x2 LB: > { %s25_s15 = sadd.s32 1, %s2348_s13  ;;  %p1719_p0 = scmp.ge.s32.totalorder %s2352_s14, 1  ;;  %s2352_s14 = sphi %s2381_s14, %s13_s14   ;;  %s2348_s13 = sphi %s2379_s13, %s2824_s13   ;;  %s2344_s12 = sphi %s2377_s12, %s2823_s12  }
   0x3   : > { %p27_p1 = scmp.ge.s32.totalorder %s25_s15, 4  ;;  %p151_p2 = scmp.lt.s32.totalorder %s2352_s14, 5 }
   0x5   : > { %s2826_s15 = smov (%p27_p1, %s25_s15), 0  ;;  %p152_p3 = pnand %p1719_p0, %p151_p2 }
   0x6   : > { %v2242_v0 = vld [vmem:[%s2814_s1 + $0x180] sm:$0xff] (!%p152_p3)   ;;  %v2354_v1 = vmov (!%p152_p3), 0.0   ;;  %v2244_v3 = vld [vmem:[%s2814_s1 + $0x188] sm:$0xff] (!%p152_p3)   ;;  %vm2355_vm0 = vmmov (!%p152_p3), 0   ;;  %p179_p4 = scmp.lt.s32.totalorder (!%p152_p3), %s2344_s12, 3  ;;  %v2246_v5 = vld [vmem:[%s2814_s1 + $0x190] sm:$0xff] (!%p152_p3)   ;;  %v245_v9 = vlaneseq (!%p152_p3) }
   0x7   : > { %155 = sbr.rel (%p152_p3) target bundleno = 392 (0x188), region = 32  ;;  %2034 = vmatprep.subr.bf16.mxu0 (!%p152_p3), %v2354_v1  ;;  %2054 = vmatprep.subr.bf16.mxu1 (!%p152_p3), %v2354_v1  ;;  %v2243_v2 = vld [vmem:[%s2814_s1] sm:$0xff] (!%p152_p3)   ;;  %v2245_v4 = vld [vmem:[%s2814_s1 + $0x8] sm:$0xff] (!%p152_p3)   ;;  %v2247_v6 = vld [vmem:[%s2814_s1 + $0x10] sm:$0xff] (!%p152_p3)   ;;  %v2356_v19 = vmov (!%p152_p3), 1983009808  }
   0x8   : > { %2035 = vmatpush3.bf16.msra.mxu0 (!%p152_p3), %v2242_v0  ;;  %2050 = vmatprep.mubr.msk.bf16.mxu0 (!%p152_p3), %vm2355_vm0, %v2354_v1  ;;  %v2248_v7 = vld [vmem:[%s2814_s1 + $0x198] sm:$0xff] (!%p152_p3)   ;;  %v2250_v10 = vld [vmem:[%s2814_s1 + $0x1a0] sm:$0xff] (!%p152_p3)   ;;  %v2252_v12 = vld [vmem:[%s2814_s1 + $0x1a8] sm:$0xff] (!%p152_p3)   ;;  %v246_v14 = vshrl.u32 (!%p152_p3), %v245_v9, 7  ;;  %v243_v20 = vunpack.c.l.s4 (!%p152_p3), %v2356_v19  ;;  %vm1035_vm1 = vsmask.f32 (!%p152_p3), 1280 }
   0x9   : > { %2055 = vmatpush3.bf16.msra.mxu1 (!%p152_p3), %v2243_v2  ;;  %2036 = vmatprep.subr.bf16.mxu0 (!%p152_p3), %v2354_v1  ;;  %v2249_v8 = vld [vmem:[%s2814_s1 + $0x18] sm:$0xff] (!%p152_p3)   ;;  %v2251_v11 = vld [vmem:[%s2814_s1 + $0x20] sm:$0xff] (!%p152_p3)   ;;  %v2253_v15 = vld [vmem:[%s2814_s1 + $0x28] sm:$0xff] (!%p152_p3)   ;;  %vm1036_vm2 = vsmask.f32 (!%p152_p3), 3336 }
   0xa   : > { %2056 = vmatprep.subr.bf16.mxu1 (!%p152_p3), %v2354_v1  ;;  %2070 = vmatprep.mubr.msk.bf16.mxu1 (!%p152_p3), %vm2355_vm0, %v2354_v1  ;;  %v244_v22 = vunpack.c.0.s8 (!%p152_p3), %v243_v20  ;;  %v2254_v25 = vld [vmem:[%s2814_s1 + $0x1b0] sm:$0xff] (!%p152_p3)   ;;  %v2256_v32 = vld [vmem:[%s2814_s1 + $0x1b8] sm:$0xff] (!%p152_p3)   ;;  %v2262_v38 = vld [vmem:[%s2814_s1 + $0xc0] sm:$0xff] (!%p152_p3)   ;;  %vm1038_vm3 = vsmask.f32 (!%p152_p3), 5392 }
   0xb   : > { %v2255_v29 = vld [vmem:[%s2814_s1 + $0x30] sm:$0xff] (!%p152_p3)   ;;  %v2257_v35 = vld [vmem:[%s2814_s1 + $0x38] sm:$0xff] (!%p152_p3)   ;;  %v2263_v39 = vld [vmem:[%s2814_s1 + $0x40] sm:$0xff] (!%p152_p3)   ;;  %vm1040_vm6 = vsmask.f32 (!%p152_p3), 7448 }
   0xc   : > { %2037 = vmatpush3.bf16.msra.mxu0 (!%p152_p3), %v2244_v3  ;;  %v2463_v26 = vsub.s32 (!%p152_p3), %v244_v22, %v246_v14  ;;  %v2264_v40 = vld [vmem:[%s2814_s1 + $0xc8] sm:$0xff] (!%p152_p3)   ;;  %v2266_v42 = vld [vmem:[%s2814_s1 + $0xd0] sm:$0xff] (!%p152_p3)   ;;  %v2268_v44 = vld [vmem:[%s2814_s1 + $0xd8] sm:$0xff] (!%p152_p3)  }
   0xd   : > { %2057 = vmatpush3.bf16.msra.mxu1 (!%p152_p3), %v2245_v4  ;;  %2038 = vmatprep.subr.bf16.mxu0 (!%p152_p3), %v2354_v1  ;;  %v2265_v41 = vld [vmem:[%s2814_s1 + $0x48] sm:$0xff] (!%p152_p3)   ;;  %v2267_v43 = vld [vmem:[%s2814_s1 + $0x50] sm:$0xff] (!%p152_p3)   ;;  %v2269_v45 = vld [vmem:[%s2814_s1 + $0x58] sm:$0xff] (!%p152_p3)  }
   0xe   : > { %s2828_s12 = smov (!%p179_p4, %s2344_s12), 3  ;;  %2058 = vmatprep.subr.bf16.mxu1 %v2354_v1  ;;  %v2270_v46 = vld [vmem:[%s2814_s1 + $0xe0] sm:$0xff]   ;;  %v2272_v48 = vld [vmem:[%s2814_s1 + $0xe8] sm:$0xff]   ;;  %v2274_v54 = vld [vmem:[%s2814_s1 + $0xf0] sm:$0xff]  }
   0xf   : > { %s2214_s28 = smul.u32 80, %s2828_s12  ;;  %v2271_v47 = vld [vmem:[%s2814_s1 + $0x60] sm:$0xff]   ;;  %v2273_v49 = vld [vmem:[%s2814_s1 + $0x68] sm:$0xff]   ;;  %v2275_v57 = vld [vmem:[%s2814_s1 + $0x70] sm:$0xff]   ;;  %s1952_s5 = sshll.u32 %s2828_s12, 3 }
  0x10   : > { %2039 = vmatpush3.bf16.msra.mxu0 %v2246_v5  ;;  %v2276_v60 = vld [vmem:[%s2814_s1 + $0xf8] sm:$0xff]   ;;  %v2280_v2 = vld [vmem:[%s2814_s1 + $0x1c0] sm:$0xff]   ;;  %v2284_v5 = vld [vmem:[%s2814_s1 + $0x1c8] sm:$0xff]   ;;  %s192_s9 = scalar_lea.vmem %s2816_s3, %s1952_s5 }
  0x11   : > { %2059 = vmatpush3.bf16.msra.mxu1 %v2247_v6  ;;  %2040 = vmatprep.subr.bf16.mxu0 %v2354_v1  ;;  %s2437_s8 = scalar_lea.vmem %s2813_s0, %s2214_s28  ;;  %v2277_v63 = vld [vmem:[%s2814_s1 + $0x78] sm:$0xff]   ;;  %v2283_v4 = vld [vmem:[%s2814_s1 + $0x100] sm:$0xff]   ;;  %v2285_v6 = vld [vmem:[%s2814_s1 + $0x108] sm:$0xff]  }
  0x12   : > { %2060 = vmatprep.subr.bf16.mxu1 %v2354_v1  ;;  %v199_v13 = vld [vmem:[%s2437_s8 + $0x4] sm:$0x3]  ;;  %v200_v16 = vld [vmem:[%s2437_s8 + $0x8] sm:$0x3]  ;;  %v201_v17 = vld [vmem:[%s2437_s8 + $0xc] sm:$0x3] }
  0x13   : > { %v202_v18 = vld [vmem:[%s2437_s8 + $0x10] sm:$0x3]  ;;  %v198_v21 = vld [vmem:[%s2437_s8] sm:$0x3]  ;;  %v240_v23 = vcombine.low %v199_v13, %v200_v16  ;;  %v349_v28 = vcombine.low %v200_v16, %v201_v17  ;;  %v1783_v50 = vld [vmem:[%s2437_s8 + $0x14] sm:$0x3] }
  0x14   : > { %2041 = vmatpush3.bf16.msra.mxu0 %v2248_v7  ;;  %v241_v24 = vcombine.low %v201_v17, %v202_v18  ;;  %v348_v27 = vcombine.low %v198_v21, %v199_v13  ;;  %v2534_v51 = vld [vmem:[%s2437_s8 + $0x18] sm:$0x3]  ;;  %v2537_v52 = vld [vmem:[%s2437_s8 + $0x1c] sm:$0x3]  ;;  %v2541_v53 = vld [vmem:[%s2437_s8 + $0x20] sm:$0x3] }
  0x15   : > { %2061 = vmatpush3.bf16.msra.mxu1 %v2249_v8  ;;  %2042 = vmatprep.subr.bf16.mxu0 %v2354_v1  ;;  %v248_v30 = vrot.slane %v240_v23, %v2463_v26  ;;  %v363_v34 = vrot.slane %v349_v28, %v2463_v26  ;;  %v2326_v55 = vld.sshfl [vmem:[%s2437_s8 + $0x28] sm:$0xf pattern:$0x76325410]  ;;  %v621_v58 = vcombine.low %v1783_v50, %v2534_v51  ;;  %v2286_v7 = vld [vmem:[%s2814_s1 + $0x1d0] sm:$0xff]   ;;  %v2288_v9 = vld [vmem:[%s2814_s1 + $0x1d8] sm:$0xff]  }
  0x16   : > { %2062 = vmatprep.subr.bf16.mxu1 %v2354_v1  ;;  %v255_v31 = vrot.slane %v241_v24, %v2463_v26  ;;  %v356_v33 = vrot.slane %v348_v27, %v2463_v26  ;;  %v2327_v56 = vld.sshfl [vmem:[%s2437_s8 + $0x30] sm:$0xf pattern:$0x76325410]  ;;  %v622_v59 = vcombine.low %v2537_v52, %v2541_v53  ;;  %v2292_v13 = vld [vmem:[%s2814_s1 + $0x1e8] sm:$0xff]   ;;  %v748_v17 = vcombine.low %v2534_v51, %v2537_v52  ;;  %v2296_v24 = vld [vmem:[%s2814_s1 + $0x1f8] sm:$0xff]  }
  0x17   : > { %v629_v61 = vrot.slane %v621_v58, %v2463_v26  ;;  %v499_v0 = vcombine.low %v2326_v55, %v2327_v56  ;;  %v2287_v8 = vld [vmem:[%s2814_s1 + $0x110] sm:$0xff]   ;;  %v1787_v14 = vld [vmem:[%s2437_s8 + $0x24] sm:$0x3]  ;;  %vm2678_vm4 = vmor %vm1035_vm1, %vm1036_vm2 }
  0x18   : > { %2043 = vmatpush3.bf16.msra.mxu0 %v2250_v10  ;;  %v256_v36 = vcombine.low %v248_v30, %v255_v31  ;;  %v364_v37 = vcombine.low %v356_v33, %v363_v34  ;;  %v636_v62 = vrot.slane %v622_v59, %v2463_v26  ;;  %v2289_v10 = vld [vmem:[%s2814_s1 + $0x118] sm:$0xff]   ;;  %v2294_v16 = vld [vmem:[%s2814_s1 + $0x1f0] sm:$0xff]   ;;  %v749_v18 = vcombine.low %v2541_v53, %v1787_v14  ;;  %v2329_v20 = vld.sshfl [vmem:[%s2437_s8 + $0x44] sm:$0xf pattern:$0x76325410] }
  0x19   : > { %2063 = vmatpush3.bf16.msra.mxu1 %v2251_v11  ;;  %2044 = vmatprep.subr.bf16.mxu0 %v2354_v1  ;;  %v2290_v11 = vld [vmem:[%s2814_s1 + $0x1e0] sm:$0xff]   ;;  %v2295_v21 = vld [vmem:[%s2814_s1 + $0x130] sm:$0xff]   ;;  %v756_v22 = vrot.slane %v748_v17, %v2463_v26  ;;  %v1867_v34 = vld.sshfl [vmem:[%s2437_s8 + $0xc] sm:$0x13 pattern:$0x76325410] }
  0x1a   : > { %2064 = vmatprep.subr.bf16.mxu1 %v2354_v1  ;;  %v637_v3 = vcombine.low %v629_v61, %v636_v62  ;;  %v2328_v19 = vld.sshfl [vmem:[%s2437_s8 + $0x3c] sm:$0xf pattern:$0x76325410]  ;;  %v763_v23 = vrot.slane %v749_v18, %v2463_v26  ;;  %v1034_v51 = vcombine.high %v1867_v34, %v1867_v34  ;;  %v2306_v56 = vld [vmem:[%s2814_s1 + $0x90] sm:$0xff]   ;;  %vm2693_vm5 = vmor %vm2678_vm4, %vm1038_vm3 }
  0x1b   : > { %v1864_v27 = vld.sshfl [vmem:[%s2437_s8] sm:$0x13 pattern:$0x76325410]  ;;  %v901_v31 = vcombine.low %v2328_v19, %v2329_v20  ;;  %v2307_v61 = vld [vmem:[%s2814_s1 + $0x210] sm:$0xff]   ;;  %vm2706_vm7 = vmor %vm2693_vm5, %vm1040_vm6 }
  0x1c   : > { %2045 = vmatpush3.bf16.msra.mxu0 %v2252_v12  ;;  %v2291_v12 = vld [vmem:[%s2814_s1 + $0x120] sm:$0xff]   ;;  %v764_v28 = vcombine.low %v756_v22, %v763_v23 }
  0x1d   : > { %2065 = vmatpush3.bf16.msra.mxu1 %v2253_v15  ;;  %2046 = vmatprep.subr.bf16.mxu0 %v2354_v1  ;;  %v2293_v15 = vld [vmem:[%s2814_s1 + $0x128] sm:$0xff]   ;;  %v2300_v30 = vld [vmem:[%s2814_s1 + $0x80] sm:$0xff]  }
  0x1e   : > { %2066 = vmatprep.subr.bf16.mxu1 %v2354_v1  ;;  %v2303_v33 = vld [vmem:[%s2814_s1 + $0x200] sm:$0xff]  }
  0x1f   : > { %v2310_v20 = vld [vmem:[%s2814_s1 + $0xa0] sm:$0xff]  }
  0x20   : > { %2047 = vmatpush3.bf16.msra.mxu0 %v2254_v25  ;;  %v2297_v25 = vld [vmem:[%s2814_s1 + $0x138] sm:$0xff]  }
  0x21   : > { %2067 = vmatpush3.bf16.msra.mxu1 %v2255_v29  ;;  %2048 = vmatprep.subr.bf16.mxu0 %v2354_v1  ;;  %v1865_v29 = vld.sshfl [vmem:[%s2437_s8 + $0x4] sm:$0x13 pattern:$0x76325410] }
  0x22   : > { %2068 = vmatprep.subr.bf16.mxu1 %v2354_v1 }
  0x24   : > { %2049 = vmatpush3.bf16.msra.mxu0 %v2256_v32  ;;  %v1866_v32 = vld.sshfl [vmem:[%s2437_s8 + $0x8] sm:$0x13 pattern:$0x76325410] }
  0x25   : > { %2069 = vmatpush3.bf16.msra.mxu1 %v2257_v35  ;;  %2074 = vmatprep.subr.bf16.mxu0 %v2354_v1  ;;  %v1892_v35 = vld.sshfl [vmem:[%s2437_s8 + $0x10] sm:$0x13 pattern:$0x76325410]  ;;  %v1026_v50 = vcombine.high %v1866_v32, %v1866_v32 }
  0x26   : > { %2094 = vmatprep.subr.bf16.mxu1 %v2354_v1  ;;  %v1232_v62 = vcombine.high %v1892_v35, %v1892_v35 }
  0x27   : > { %2051 = vmatmul.mubr.bf16.vlgmr.msra.gmra.mrb[0].mxu0 %v256_v36  ;;  %v1043_v36 = vshrl.u32 %v1864_v27, 16 }
  0x28   : > { %2071 = vmatmul.mubr.bf16.vlgmr.msra.gmra.mrb[0].mxu1 %v364_v37  ;;  %2075 = vmatpush3.bf16.msra.mxu0 %v2262_v38  ;;  %v1046_v37 = vshll.u32 %v1864_v27, 16  ;;  %v1057_v38 = vshrl.u32 %v1865_v29, 16  ;;  %v1243_v14 = vshll.u32 %v1232_v62, 16 }
  0x29   : > { %2095 = vmatpush3.bf16.msra.mxu1 %v2263_v39  ;;  %2076 = vmatprep.subr.bf16.mxu0 %v2354_v1  ;;  %v1060_v39 = vshll.u32 %v1865_v29, 16  ;;  %v1045_v52 = vrot.slane %v1043_v36, 6 }
  0x2a   : > { %2096 = vmatprep.subr.bf16.mxu1 %v2354_v1  ;;  %2090 = vmatprep.mubr.msk.bf16.mxu0 %vm2355_vm0, %v2354_v1  ;;  %v1048_v53 = vrot.slane %v1046_v37, 7 }
  0x2b   : > { %2110 = vmatprep.mubr.msk.bf16.mxu1 %vm2355_vm0, %v2354_v1  ;;  %v1062_v55 = vrot.slane %v1060_v39, 7  ;;  %v2314_v39 = vld [vmem:[%s2814_s1 + $0xb0] sm:$0xff]  }
  0x2c   : > { %2077 = vmatpush3.bf16.msra.mxu0 %v2264_v40  ;;  %v2304_v40 = vld [vmem:[%s2814_s1 + $0x88] sm:$0xff]  }
  0x2d   : > { %2097 = vmatpush3.bf16.msra.mxu1 %v2265_v41  ;;  %2078 = vmatprep.subr.bf16.mxu0 %v2354_v1  ;;  %v1071_v41 = vshrl.u32 %v1866_v32, 16 }
  0x2e   : > { %2098 = vmatprep.subr.bf16.mxu1 %v2354_v1 }
  0x30   : > { %2079 = vmatpush3.bf16.msra.mxu0 %v2266_v42  ;;  %v1074_v42 = vshll.u32 %v1866_v32, 16 }
  0x31   : > { %2099 = vmatpush3.bf16.msra.mxu1 %v2267_v43  ;;  %2080 = vmatprep.subr.bf16.mxu0 %v2354_v1  ;;  %v1085_v43 = vshrl.u32 %v1867_v34, 16 }
  0x32   : > { %2100 = vmatprep.subr.bf16.mxu1 %v2354_v1  ;;  %v1076_v58 = vrot.slane %v1074_v42, 7  ;;  %v2315_v42 = vld [vmem:[%s2814_s1 + $0x230] sm:$0xff]  }
  0x33   : > { %v1087_v59 = vrot.slane %v1085_v43, 6 }
  0x34   : > { %2081 = vmatpush3.bf16.msra.mxu0 %v2268_v44  ;;  %v1088_v44 = vshll.u32 %v1867_v34, 16 }
  0x35   : > { %2101 = vmatpush3.bf16.msra.mxu1 %v2269_v45  ;;  %2082 = vmatprep.subr.bf16.mxu0 %v2354_v1  ;;  %v2305_v45 = vld [vmem:[%s2814_s1 + $0x208] sm:$0xff]  }
  0x36   : > { %2102 = vmatprep.subr.bf16.mxu1 %v2354_v1 }
  0x38   : > { %2083 = vmatpush3.bf16.msra.mxu0 %v2270_v46  ;;  %v1010_v46 = vcombine.high %v1864_v27, %v1864_v27  ;;  %v2325_v27 = vld [vmem:[%s2814_s1 + $0x178] sm:$0xff]  }
  0x39   : > { %2103 = vmatpush3.bf16.msra.mxu1 %v2271_v47  ;;  %2084 = vmatprep.subr.bf16.mxu0 %v2354_v1  ;;  %v1234_v47 = vshrl.u32 %v1892_v35, 16 }
  0x3a   : > { %2104 = vmatprep.subr.bf16.mxu1 %v2354_v1 }
  0x3c   : > { %2085 = vmatpush3.bf16.msra.mxu0 %v2272_v48  ;;  %v1237_v48 = vshll.u32 %v1892_v35, 16  ;;  %v2313_v35 = vld [vmem:[%s2814_s1 + $0x228] sm:$0xff]  }
  0x3d   : > { %2105 = vmatpush3.bf16.msra.mxu1 %v2273_v49  ;;  %2086 = vmatprep.subr.bf16.mxu0 %v2354_v1  ;;  %v1018_v49 = vcombine.high %v1865_v29, %v1865_v29  ;;  %v1245_v29 = vrot.slane %v1243_v14, 7 }
  0x3e   : > { %2106 = vmatprep.subr.bf16.mxu1 %v2354_v1 }
  0x40   : > { %2087 = vmatpush3.bf16.msra.mxu0 %v2274_v54  ;;  %v1059_v54 = vrot.slane %v1057_v38, 6 }
  0x41   : > { %2107 = vmatpush3.bf16.msra.mxu1 %v2275_v57  ;;  %2088 = vmatprep.subr.bf16.mxu0 %v2354_v1  ;;  %v1073_v57 = vrot.slane %v1071_v41, 6 }
  0x42   : > { %2108 = vmatprep.subr.bf16.mxu1 %v2354_v1 }
  0x44   : > { %2089 = vmatpush3.bf16.msra.mxu0 %v2276_v60  ;;  %v1090_v60 = vrot.slane %v1088_v44, 7 }
  0x45   : > { %2109 = vmatpush3.bf16.msra.mxu1 %v2277_v63  ;;  %2114 = vmatprep.subr.bf16.mxu0 %v2354_v1  ;;  %v1236_v63 = vrot.slane %v1234_v47, 6 }
  0x46   : > { %2134 = vmatprep.subr.bf16.mxu1 %v2354_v1 }
  0x47   : > { %2091 = vmatmul.mubr.bf16.vlgmr.msra.gmra.mrb[4].mxu0 %v499_v0  ;;  %v1239_v0 = vrot.slane %v1237_v48, 7  ;;  %v2317_v48 = vld [vmem:[%s2814_s1 + $0x238] sm:$0xff]  }
  0x48   : > { %2115 = vmatpush3.bf16.msra.mxu0 %v2280_v2  ;;  %2111 = vmatmul.mubr.bf16.vlgmr.msra.gmra.mrb[4].mxu1 %v637_v3  ;;  %v1049_v3 = vor.u32 %v1048_v53, %v1045_v52  ;;  %v2318_v52 = vld [vmem:[%s2814_s1 + $0x140] sm:$0xff]  }
  0x49   : > { %2135 = vmatpush3.bf16.msra.mxu1 %v2283_v4  ;;  %2116 = vmatprep.subr.bf16.mxu0 %v2354_v1  ;;  %v1052_v4 = vshll.u32 %v1010_v46, 16 }
  0x4a   : > { %2136 = vmatprep.subr.bf16.mxu1 %v2354_v1  ;;  %2130 = vmatprep.mubr.msk.bf16.mxu0 %vm2355_vm0, %v2354_v1 }
  0x4b   : > { %2150 = vmatprep.mubr.msk.bf16.mxu1 %vm2355_vm0, %v2354_v1  ;;  %v1054_v17 = vrot.slane %v1052_v4, 7 }
  0x4c   : > { %2117 = vmatpush3.bf16.msra.mxu0 %v2284_v5  ;;  %v1066_v5 = vshll.u32 %v1018_v49, 16  ;;  %v1921_v49 = vld.sshfl [vmem:[%s2437_s8 + $0x28] sm:$0x13 pattern:$0x76325410] }
  0x4d   : > { %2137 = vmatpush3.bf16.msra.mxu1 %v2285_v6  ;;  %2118 = vmatprep.subr.bf16.mxu0 %v2354_v1  ;;  %v1080_v6 = vshll.u32 %v1026_v50, 16  ;;  %v1388_v2 = vcombine.high %v1921_v49, %v1921_v49 }
  0x4e   : > { %2138 = vmatprep.subr.bf16.mxu1 %v2354_v1  ;;  %v1068_v18 = vrot.slane %v1066_v5, 7 }
  0x4f   : > { %v1082_v19 = vrot.slane %v1080_v6, 7 }
  0x50   : > { %2119 = vmatpush3.bf16.msra.mxu0 %v2286_v7  ;;  %v2308_v7 = vld [vmem:[%s2814_s1 + $0x98] sm:$0xff]  }
  0x51   : > { %2139 = vmatpush3.bf16.msra.mxu1 %v2287_v8  ;;  %2120 = vmatprep.subr.bf16.mxu0 %v2354_v1  ;;  %v1063_v8 = vor.u32 %v1062_v55, %v1059_v54  ;;  %v1923_v54 = vld.sshfl [vmem:[%s2437_s8 + $0x30] sm:$0x13 pattern:$0x76325410] }
  0x52   : > { %2140 = vmatprep.subr.bf16.mxu1 %v2354_v1  ;;  %v1924_v55 = vld.sshfl [vmem:[%s2437_s8 + $0x34] sm:$0x13 pattern:$0x76325410]  ;;  %v1445_v62 = vshll.u32 %v1923_v54, 16  ;;  %v1404_v4 = vcombine.high %v1923_v54, %v1923_v54 }
  0x53   : > { %v1412_v6 = vcombine.high %v1924_v55, %v1924_v55 }
  0x54   : > { %2121 = vmatpush3.bf16.msra.mxu0 %v2288_v9  ;;  %v1077_v9 = vor.u32 %v1076_v58, %v1073_v57  ;;  %v1417_v57 = vshll.u32 %v1921_v49, 16 }
  0x55   : > { %2141 = vmatpush3.bf16.msra.mxu1 %v2289_v10  ;;  %2122 = vmatprep.subr.bf16.mxu0 %v2354_v1  ;;  %v1091_v10 = vor.u32 %v1090_v60, %v1087_v59  ;;  %v2319_v60 = vld [vmem:[%s2814_s1 + $0x148] sm:$0xff]  }
  0x56   : > { %2142 = vmatprep.subr.bf16.mxu1 %v2354_v1  ;;  %v1078_v22 = vrot.slane %v1077_v9, 2 }
  0x57   : > { %v1092_v23 = vrot.slane %v1091_v10, 2  ;;  %v2320_v10 = vld [vmem:[%s2814_s1 + $0x150] sm:$0xff]  }
  0x58   : > { %2123 = vmatpush3.bf16.msra.mxu0 %v2290_v11  ;;  %v1094_v11 = vshll.u32 %v1034_v51, 16  ;;  %v1922_v51 = vld.sshfl [vmem:[%s2437_s8 + $0x2c] sm:$0x13 pattern:$0x76325410] }
  0x59   : > { %2143 = vmatpush3.bf16.msra.mxu1 %v2291_v12  ;;  %2124 = vmatprep.subr.bf16.mxu0 %v2354_v1  ;;  %v2309_v12 = vld [vmem:[%s2814_s1 + $0x218] sm:$0xff]   ;;  %v1428_v58 = vshrl.u32 %v1922_v51, 16  ;;  %v1431_v59 = vshll.u32 %v1922_v51, 16 }
  0x5a   : > { %2144 = vmatprep.subr.bf16.mxu1 %v2354_v1 }
  0x5b   : > { %v1433_v9 = vrot.slane %v1431_v59, 7 }
  0x5c   : > { %2125 = vmatpush3.bf16.msra.mxu0 %v2292_v13  ;;  %v1240_v13 = vor.u32 %v1239_v0, %v1236_v63  ;;  %v1456_v63 = vshrl.u32 %v1924_v55, 16  ;;  %v1459_v0 = vshll.u32 %v1924_v55, 16 }
  0x5d   : > { %2145 = vmatpush3.bf16.msra.mxu1 %v2293_v15  ;;  %2126 = vmatprep.subr.bf16.mxu0 %v2354_v1 }
  0x5e   : > { %2146 = vmatprep.subr.bf16.mxu1 %v2354_v1  ;;  %v1461_v14 = vrot.slane %v1459_v0, 7 }
  0x60   : > { %2127 = vmatpush3.bf16.msra.mxu0 %v2294_v16  ;;  %v1050_v16 = vrot.slane %v1049_v3, 2  ;;  %v1396_v3 = vcombine.high %v1922_v51, %v1922_v51 }
  0x61   : > { %2147 = vmatpush3.bf16.msra.mxu1 %v2295_v21  ;;  %2128 = vmatprep.subr.bf16.mxu0 %v2354_v1  ;;  %v1064_v21 = vrot.slane %v1063_v8, 2  ;;  %v1430_v8 = vrot.slane %v1428_v58, 6 }
  0x62   : > { %2148 = vmatprep.subr.bf16.mxu1 %v2354_v1 }
  0x63   : > { %v1069_v32 = vsel %vm2706_vm7, %v1064_v21, %v1068_v18  ;;  %v1451_v18 = vshll.u32 %v1404_v4, 16 }
  0x64   : > { %2129 = vmatpush3.bf16.msra.mxu0 %v2296_v24  ;;  %v1096_v24 = vrot.slane %v1094_v11, 7 }
  0x65   : > { %2149 = vmatpush3.bf16.msra.mxu1 %v2297_v25  ;;  %2154 = vmatprep.subr.bf16.mxu0 %v2354_v1  ;;  %v2311_v25 = vld [vmem:[%s2814_s1 + $0x220] sm:$0xff]  }
  0x66   : > { %2174 = vmatprep.subr.bf16.mxu1 %v2354_v1  ;;  %v1097_v34 = vsel %vm2706_vm7, %v1092_v23, %v1096_v24  ;;  %v1465_v23 = vshll.u32 %v1412_v6, 16 }
  0x67   : > { %2131 = vmatmul.mubr.bf16.vlgmr.msra.gmra.mrb[8].mxu0 %v764_v28  ;;  %v1241_v28 = vrot.slane %v1240_v13, 2  ;;  %v1458_v13 = vrot.slane %v1456_v63, 6 }
  0x68   : > { %2155 = vmatpush3.bf16.msra.mxu0 %v2300_v30  ;;  %2151 = vmatmul.mubr.bf16.vlgmr.msra.gmra.mrb[8].mxu1 %v901_v31  ;;  %v2312_v30 = vld [vmem:[%s2814_s1 + $0xa8] sm:$0xff]   ;;  %v1055_v31 = vsel %vm2706_vm7, %v1050_v16, %v1054_v17  ;;  %v1423_v16 = vshll.u32 %v1388_v2, 16  ;;  %v1437_v17 = vshll.u32 %v1396_v3, 16 }
  0x69   : > { %2175 = vmatpush3.bf16.msra.mxu1 %v2303_v33  ;;  %2156 = vmatprep.subr.bf16.mxu0 %v2354_v1  ;;  %v1083_v33 = vsel %vm2706_vm7, %v1078_v22, %v1082_v19  ;;  %v1246_v36 = vsel %vm2706_vm7, %v1241_v28, %v1245_v29  ;;  %v1115_v37 = vcombine.low %v1055_v31, %v1069_v32  ;;  %v2321_v19 = vld [vmem:[%s2814_s1 + $0x158] sm:$0xff]   ;;  %v1453_v29 = vrot.slane %v1451_v18, 7 }
  0x6a   : > { %2176 = vmatprep.subr.bf16.mxu1 %v2354_v1  ;;  %2170 = vmatprep.mubr.msk.bf16.mxu0 %vm2355_vm0, %v2354_v1  ;;  %v1116_v38 = vcombine.low %v1083_v33, %v1097_v34  ;;  %v1265_v41 = vcombine.low %v1097_v34, %v1246_v36  ;;  %v1462_v22 = vor.u32 %v1461_v14, %v1458_v13  ;;  %v1439_v28 = vrot.slane %v1437_v17, 7 }
  0x6b   : > { %2190 = vmatprep.mubr.msk.bf16.mxu1 %vm2355_vm0, %v2354_v1  ;;  %v1123_v43 = vrot.slane %v1115_v37, %v2463_v26  ;;  %v1467_v34 = vrot.slane %v1465_v23, 7 }
  0x6c   : > { %2157 = vmatpush3.bf16.msra.mxu0 %v2304_v40  ;;  %v1264_v40 = vcombine.low %v1069_v32, %v1083_v33  ;;  %v1130_v44 = vrot.slane %v1116_v38, %v2463_v26  ;;  %v1279_v47 = vrot.slane %v1265_v41, %v2463_v26  ;;  %v1463_v33 = vrot.slane %v1462_v22, 2 }
  0x6d   : > { %2177 = vmatpush3.bf16.msra.mxu1 %v2305_v45  ;;  %2158 = vmatprep.subr.bf16.mxu0 %v2354_v1  ;;  %v2316_v45 = vld [vmem:[%s2814_s1 + $0xb8] sm:$0xff]  }
  0x6e   : > { %2178 = vmatprep.subr.bf16.mxu1 %v2354_v1  ;;  %v1272_v46 = vrot.slane %v1264_v40, %v2463_v26  ;;  %v1131_v50 = vcombine.low %v1123_v43, %v1130_v44 }
  0x70   : > { %2159 = vmatpush3.bf16.msra.mxu0 %v2306_v56  ;;  %v1280_v53 = vcombine.low %v1272_v46, %v1279_v47  ;;  %v1414_v56 = vshrl.u32 %v1921_v49, 16 }
  0x71   : > { %2179 = vmatpush3.bf16.msra.mxu1 %v2307_v61  ;;  %2160 = vmatprep.subr.bf16.mxu0 %v2354_v1  ;;  %v1442_v61 = vshrl.u32 %v1923_v54, 16 }
  0x72   : > { %2180 = vmatprep.subr.bf16.mxu1 %v2354_v1  ;;  %v1416_v5 = vrot.slane %v1414_v56, 6 }
  0x73   : > { %v1444_v11 = vrot.slane %v1442_v61, 6 }
  0x74   : > { %2161 = vmatpush3.bf16.msra.mxu0 %v2308_v7  ;;  %v1419_v7 = vrot.slane %v1417_v57, 7 }
  0x75   : > { %2181 = vmatpush3.bf16.msra.mxu1 %v2309_v12  ;;  %2162 = vmatprep.subr.bf16.mxu0 %v2354_v1  ;;  %v1447_v12 = vrot.slane %v1445_v62, 7 }
  0x76   : > { %2182 = vmatprep.subr.bf16.mxu1 %v2354_v1  ;;  %v1420_v15 = vor.u32 %v1419_v7, %v1416_v5 }
  0x77   : > { %v1448_v21 = vor.u32 %v1447_v12, %v1444_v11 }
  0x78   : > { %2163 = vmatpush3.bf16.msra.mxu0 %v2310_v20  ;;  %v1434_v20 = vor.u32 %v1433_v9, %v1430_v8  ;;  %v1421_v24 = vrot.slane %v1420_v15, 2 }
  0x79   : > { %2183 = vmatpush3.bf16.msra.mxu1 %v2311_v25  ;;  %2164 = vmatprep.subr.bf16.mxu0 %v2354_v1  ;;  %v1425_v25 = vrot.slane %v1423_v16, 7  ;;  %v1449_v32 = vrot.slane %v1448_v21, 2 }
  0x7a   : > { %2184 = vmatprep.subr.bf16.mxu1 %v2354_v1  ;;  %v1435_v31 = vrot.slane %v1434_v20, 2 }
  0x7b   : > { %v1426_v36 = vsel %vm2706_vm7, %v1421_v24, %v1425_v25  ;;  %v1454_v38 = vsel %vm2706_vm7, %v1449_v32, %v1453_v29 }
  0x7c   : > { %2165 = vmatpush3.bf16.msra.mxu0 %v2312_v30  ;;  %v2322_v30 = vld [vmem:[%s2814_s1 + $0x160] sm:$0xff]   ;;  %v1440_v37 = vsel %vm2706_vm7, %v1435_v31, %v1439_v28 }
  0x7d   : > { %2185 = vmatpush3.bf16.msra.mxu1 %v2313_v35  ;;  %2166 = vmatprep.subr.bf16.mxu0 %v2354_v1  ;;  %v2323_v35 = vld [vmem:[%s2814_s1 + $0x168] sm:$0xff]   ;;  %v1486_v40 = vcombine.low %v1426_v36, %v1440_v37 }
  0x7e   : > { %2186 = vmatprep.subr.bf16.mxu1 %v2354_v1 }
  0x7f   : > { %v1494_v43 = vrot.slane %v1486_v40, %v2463_v26 }
  0x80   : > { %2167 = vmatpush3.bf16.msra.mxu0 %v2314_v39  ;;  %v1468_v39 = vsel %vm2706_vm7, %v1463_v33, %v1467_v34 }
  0x81   : > { %2187 = vmatpush3.bf16.msra.mxu1 %v2315_v42  ;;  %2168 = vmatprep.subr.bf16.mxu0 %v2354_v1  ;;  %v1487_v41 = vcombine.low %v1454_v38, %v1468_v39  ;;  %v2324_v42 = vld [vmem:[%s2814_s1 + $0x170] sm:$0xff]  }
  0x82   : > { %2188 = vmatprep.subr.bf16.mxu1 %v2354_v1 }
  0x83   : > { %v1501_v44 = vrot.slane %v1487_v41, %v2463_v26 }
  0x84   : > { %2169 = vmatpush3.bf16.msra.mxu0 %v2316_v45 }
  0x85   : > { %2189 = vmatpush3.bf16.msra.mxu1 %v2317_v48  ;;  %2194 = vmatprep.subr.bf16.mxu0 %v2354_v1  ;;  %v1502_v45 = vcombine.low %v1494_v43, %v1501_v44 }
  0x87   : > { %2171 = vmatmul.mubr.bf16.vlgmr.msra.gmra.mrb[12].mxu0 %v1131_v50 }
  0x88   : > { %2195 = vmatpush3.bf16.msra.mxu0 %v2318_v52  ;;  %2191 = vmatmul.mubr.bf16.vlgmr.msra.gmra.mrb[12].mxu1 %v1280_v53 }
  0x89   : > { %2196 = vmatprep.subr.bf16.mxu0 %v2354_v1  ;;  %2210 = vmatprep.mubr.msk.bf16.mxu0 %vm2355_vm0, %v2354_v1 }
  0x8c   : > { %2197 = vmatpush3.bf16.msra.mxu0 %v2319_v60 }
  0x8d   : > { %2198 = vmatprep.subr.bf16.mxu0 %v2354_v1 }
  0x90   : > { %2199 = vmatpush3.bf16.msra.mxu0 %v2320_v10 }
  0x91   : > { %2200 = vmatprep.subr.bf16.mxu0 %v2354_v1 }
  0x94   : > { %2201 = vmatpush3.bf16.msra.mxu0 %v2321_v19 }
  0x95   : > { %2202 = vmatprep.subr.bf16.mxu0 %v2354_v1 }
  0x98   : > { %2203 = vmatpush3.bf16.msra.mxu0 %v2322_v30  ;;  %v1949_v30 = vld [vmem:[%s2815_s2] ss:$0 sm:$0xff] }
  0x99   : > { %2204 = vmatprep.subr.bf16.mxu0 %v2354_v1 }
  0x9c   : > { %2205 = vmatpush3.bf16.msra.mxu0 %v2323_v35 }
  0x9d   : > { %2206 = vmatprep.subr.bf16.mxu0 %v2354_v1 }
  0xa0   : > { %2207 = vmatpush3.bf16.msra.mxu0 %v2324_v42 }
  0xa1   : > { %2208 = vmatprep.subr.bf16.mxu0 %v2354_v1 }
  0xa4   : > { %2209 = vmatpush3.bf16.msra.mxu0 %v2325_v27 }
  0xa7   : > { %2211 = vmatmul.mubr.bf16.vlgmr.msra.gmra.mrb[16].mxu0 %v1502_v45 }
  0xfa   : > { %v340_v46 = vpop.f32.mrb[0].mxu0 }
  0xfb   : > { %v448_v47 = vpop.f32.mrb[0].mxu1  ;;  %v2052_v48 = vpop.f32.mrb[1].mxu0 }
  0xfc   : > { %v449_v49 = vadd.f32 %v448_v47, %v340_v46  ;;  %v2072_v50 = vpop.f32.mrb[1].mxu1  ;;  %v343_v51 = vpop.f32.mrb[2].mxu0 }
  0xfd   : > { %v451_v52 = vpop.f32.mrb[2].mxu1  ;;  %v2053_v53 = vpop.f32.mrb[3].mxu0 }
  0xfe   : > { %v452_v54 = vadd.f32 %v451_v52, %v343_v51  ;;  %v2073_v26 = vpop.f32.mrb[3].mxu1 }
 0x11a   : > { %v583_v55 = vpop.f32.mrb[4].mxu0 }
 0x11b   : > { %v590_v56 = vadd.f32 %v583_v55, %v449_v49  ;;  %v2092_v57 = vpop.f32.mrb[5].mxu0  ;;  %v721_v58 = vpop.f32.mrb[4].mxu1 }
 0x11c   : > { %v586_v59 = vpop.f32.mrb[6].mxu0  ;;  %v2112_v60 = vpop.f32.mrb[5].mxu1 }
 0x11d   : > { %v591_v1 = vadd.f32 %v586_v59, %v452_v54  ;;  %v728_v61 = vadd.f32 %v721_v58, %v590_v56  ;;  %v2093_v62 = vpop.f32.mrb[7].mxu0  ;;  %v724_v63 = vpop.f32.mrb[6].mxu1 }
 0x11e   : > { %v2113_v0 = vpop.f32.mrb[7].mxu1 }
 0x11f   : > { %v729_v2 = vadd.f32 %v724_v63, %v591_v1 }
 0x13a   : > { %v848_v3 = vpop.f32.mrb[8].mxu0 }
 0x13b   : > { %v855_v4 = vadd.f32 %v848_v3, %v728_v61  ;;  %v2132_v5 = vpop.f32.mrb[9].mxu0  ;;  %v985_v6 = vpop.f32.mrb[8].mxu1 }
 0x13c   : > { %v851_v7 = vpop.f32.mrb[10].mxu0  ;;  %v2152_v8 = vpop.f32.mrb[9].mxu1 }
 0x13d   : > { %v856_v9 = vadd.f32 %v851_v7, %v729_v2  ;;  %v992_v10 = vadd.f32 %v985_v6, %v855_v4  ;;  %v2133_v11 = vpop.f32.mrb[11].mxu0  ;;  %v988_v12 = vpop.f32.mrb[10].mxu1 }
 0x13e   : > { %v2153_v13 = vpop.f32.mrb[11].mxu1 }
 0x13f   : > { %v993_v14 = vadd.f32 %v988_v12, %v856_v9 }
 0x15a   : > { %v1215_v15 = vpop.f32.mrb[12].mxu0 }
 0x15b   : > { %v1222_v16 = vadd.f32 %v1215_v15, %v992_v10  ;;  %v2172_v17 = vpop.f32.mrb[13].mxu0  ;;  %v1364_v18 = vpop.f32.mrb[12].mxu1 }
 0x15c   : > { %v1218_v19 = vpop.f32.mrb[14].mxu0  ;;  %v2192_v20 = vpop.f32.mrb[13].mxu1 }
 0x15d   : > { %v1223_v21 = vadd.f32 %v1218_v19, %v993_v14  ;;  %v1371_v22 = vadd.f32 %v1364_v18, %v1222_v16  ;;  %v2173_v23 = vpop.f32.mrb[15].mxu0  ;;  %v1367_v24 = vpop.f32.mrb[14].mxu1 }
 0x15e   : > { %v2193_v25 = vpop.f32.mrb[15].mxu1 }
 0x15f   : > { %v1372_v28 = vadd.f32 %v1367_v24, %v1223_v21 }
 0x17a   : > { %v1586_v29 = vpop.f32.mrb[16].mxu0 }
 0x17b   : > { %v1593_v31 = vadd.f32 %v1586_v29, %v1371_v22  ;;  %v2212_v32 = vpop.f32.mrb[17].mxu0 }
 0x17c   : > { %v1589_v33 = vpop.f32.mrb[18].mxu0 }
 0x17d   : > { %v1602_v34 = vadd.f32 %v1949_v30, %v1593_v31  ;;  %v1594_v35 = vadd.f32 %v1589_v33, %v1372_v28  ;;  %v2213_v36 = vpop.f32.mrb[19].mxu0 }
 0x17f   : > { %v1604_v37 = vmax.f32 %v1602_v34, 0.0  ;;  %v1603_v38 = vadd.f32 %v1949_v30, %v1594_v35 }
 0x181   : > { %v1608_v39 = vcombine.high %v1604_v37, %v1604_v37  ;;  %v1612_v40 = vpack.c.bf16 %v1604_v37, %v1604_v37  ;;  %v1605_v41 = vmax.f32 %v1603_v38, 0.0 }
 0x183   : > { %v1613_v42 = vpack.c.bf16 %v1608_v39, %v1608_v39  ;;  %1616 = vst [vmem:[%s192_s9] sm:$0x3] %v1612_v40  ;;  %v1609_v43 = vcombine.high %v1605_v41, %v1605_v41  ;;  %v1614_v44 = vpack.c.bf16 %v1605_v41, %v1605_v41 }
 0x185   : > { %1617 = vst [vmem:[%s192_s9 + $0x2] sm:$0x3] %v1613_v42  ;;  %v1615_v27 = vpack.c.bf16 %v1609_v43, %v1609_v43  ;;  %1618 = vst [vmem:[%s192_s9 + $0x4] sm:$0x3] %v1614_v44 }
 0x187   : > { %1619 = vst [vmem:[%s192_s9 + $0x6] sm:$0x3] %v1615_v27 }
 0x188 PF: > { %s13_s14 = sadd.s32 1, %s2352_s14   ;;  %s2823_s12 = smov %s2348_s13 }
 0x189   : > { %p10_p5 = scmp.ge.s32.totalorder %s13_s14, 6   ;;  %s2824_s13 = smov %s2826_s15 }
 0x18b   :  { %12 = sbr.rel (!%p10_p5) target bundleno = 2 (0x2), region = 74 }

// kernel: resnet_loss.35
= control target key start
LH: loop header
LB: loop body
LE: loop exit
PB: predicated region body
PF: predicated region fallthrough
CT: control target
= control target key end

     0   :  { %s513_s12 = smov 0   ;;  %s515_s13 = smov 0   ;;  %s577_s0 = inlined_call_operand.vmem [shape: bf16[4,4,128], index: 0, kind: input, shape index: {}]   ;;  %s578_s1 = inlined_call_operand.vmem [shape: bf16[128,128], index: 1, kind: input, shape index: {}]   ;;  %s579_s2 = inlined_call_operand.vmem [shape: f32[1,128], index: 2, kind: input, shape index: {}]   ;;  %s580_s3 = inlined_call_operand.vmem [shape: bf16[4,4,128], index: 3, kind: output, shape index: {}]  }
   0x1   :  { %s517_s14 = smov 0  }
   0x2 LB: > { %s25_s15 = sadd.s32 1, %s485_s13  ;;  %p390_p0 = scmp.ge.s32.totalorder %s489_s14, 1  ;;  %s489_s14 = sphi %s517_s14, %s13_s14   ;;  %s485_s13 = sphi %s515_s13, %s582_s13   ;;  %s481_s12 = sphi %s513_s12, %s581_s12  }
   0x3   : > { %p27_p1 = scmp.ge.s32.totalorder %s25_s15, 4  ;;  %p155_p2 = scmp.lt.s32.totalorder %s489_s14, 5 }
   0x5   : > { %s584_s15 = smov (%p27_p1, %s25_s15), 0  ;;  %p156_p3 = pnand %p390_p0, %p155_p2 }
   0x6   : > { %v459_v0 = vld [vmem:[%s578_s1] sm:$0xff] (!%p156_p3)   ;;  %v491_v1 = vmov (!%p156_p3), 0.0   ;;  %v460_v2 = vld [vmem:[%s578_s1 + $0x8] sm:$0xff] (!%p156_p3)   ;;  %vm492_vm0 = vmmov (!%p156_p3), 0   ;;  %v461_v3 = vld [vmem:[%s578_s1 + $0x10] sm:$0xff] (!%p156_p3)   ;;  %p183_p4 = scmp.lt.s32.totalorder (!%p156_p3), %s481_s12, 3 }
   0x7   : > { %159 = sbr.rel (%p156_p3) target bundleno = 256 (0x100), region = 32  ;;  %413 = vmatprep.subr.bf16.mxu0 (!%p156_p3), %v491_v1  ;;  %429 = vmatprep.mubr.msk.bf16.mxu0 (!%p156_p3), %vm492_vm0, %v491_v1  ;;  %v462_v4 = vld [vmem:[%s578_s1 + $0x18] sm:$0xff] (!%p156_p3)   ;;  %v463_v5 = vld [vmem:[%s578_s1 + $0x20] sm:$0xff] (!%p156_p3)   ;;  %v464_v6 = vld [vmem:[%s578_s1 + $0x28] sm:$0xff] (!%p156_p3)  }
   0x8   : > { %414 = vmatpush3.bf16.msra.mxu0 (!%p156_p3), %v459_v0  ;;  %v465_v7 = vld [vmem:[%s578_s1 + $0x30] sm:$0xff] (!%p156_p3)   ;;  %v466_v8 = vld [vmem:[%s578_s1 + $0x38] sm:$0xff] (!%p156_p3)   ;;  %v393_v10 = vld [vmem:[%s579_s2] ss:$0 sm:$0xff] (!%p156_p3) }
   0x9   : > { %415 = vmatprep.subr.bf16.mxu0 (!%p156_p3), %v491_v1 }
   0xc   : > { %416 = vmatpush3.bf16.msra.mxu0 (!%p156_p3), %v460_v2 }
   0xd   : > { %417 = vmatprep.subr.bf16.mxu0 (!%p156_p3), %v491_v1 }
   0xe   : > { %s586_s12 = smov (!%p183_p4, %s481_s12), 3 }
   0xf   : > { %s391_s30 = sshll.u32 %s586_s12, 1 }
  0x10   : > { %418 = vmatpush3.bf16.msra.mxu0 %v461_v3  ;;  %s189_s8 = scalar_lea.vmem %s577_s0, %s391_s30  ;;  %s196_s16 = scalar_lea.vmem %s580_s3, %s391_s30 }
  0x11   : > { %419 = vmatprep.subr.bf16.mxu0 %v491_v1  ;;  %v198_v9 = vld [vmem:[%s189_s8] sm:$0x3] }
  0x14   : > { %420 = vmatpush3.bf16.msra.mxu0 %v462_v4 }
  0x15   : > { %421 = vmatprep.subr.bf16.mxu0 %v491_v1 }
  0x18   : > { %422 = vmatpush3.bf16.msra.mxu0 %v463_v5 }
  0x19   : > { %423 = vmatprep.subr.bf16.mxu0 %v491_v1 }
  0x1c   : > { %424 = vmatpush3.bf16.msra.mxu0 %v464_v6 }
  0x1d   : > { %425 = vmatprep.subr.bf16.mxu0 %v491_v1 }
  0x20   : > { %426 = vmatpush3.bf16.msra.mxu0 %v465_v7 }
  0x21   : > { %427 = vmatprep.subr.bf16.mxu0 %v491_v1 }
  0x24   : > { %428 = vmatpush3.bf16.msra.mxu0 %v466_v8 }
  0x27   : > { %430 = vmatmul.mubr.bf16.vlgmr.msra.gmra.mrb[0].mxu0 %v198_v9 }
  0xfa   : > { %v304_v11 = vpop.f32.mrb[0].mxu0 }
  0xfb   : > { %v305_v12 = vadd.f32 %v393_v10, %v304_v11  ;;  %v431_v13 = vpop.f32.mrb[1].mxu0 }
  0xfc   : > { %v307_v14 = vpop.f32.mrb[2].mxu0 }
  0xfd   : > { %v310_v15 = vpack.c.bf16 %v305_v12, %v305_v12  ;;  %v432_v16 = vpop.f32.mrb[3].mxu0 }
  0xff   : > { %311 = vst [vmem:[%s196_s16] sm:$0x3] %v310_v15 }
 0x100 PF: > { %s13_s14 = sadd.s32 1, %s489_s14   ;;  %s581_s12 = smov %s485_s13 }
 0x101   : > { %p10_p5 = scmp.ge.s32.totalorder %s13_s14, 6   ;;  %s582_s13 = smov %s584_s15 }
 0x103   :  { %12 = sbr.rel (!%p10_p5) target bundleno = 2 (0x2), region = 62 }

// kernel: resnet_loss.37
= control target key start
LH: loop header
LB: loop body
LE: loop exit
PB: predicated region body
PF: predicated region fallthrough
CT: control target
= control target key end

     0   :  { %s514_s12 = smov 0   ;;  %s516_s13 = smov 0   ;;  %s578_s0 = inlined_call_operand.vmem [shape: bf16[4,4,128], index: 0, kind: input, shape index: {}]   ;;  %s579_s1 = inlined_call_operand.vmem [shape: bf16[128,128], index: 1, kind: input, shape index: {}]   ;;  %s580_s2 = inlined_call_operand.vmem [shape: f32[1,128], index: 2, kind: input, shape index: {}]   ;;  %s581_s3 = inlined_call_operand.vmem [shape: bf16[4,4,128], index: 3, kind: output, shape index: {}]  }
   0x1   :  { %s518_s14 = smov 0  }
   0x2 LB: > { %s25_s15 = sadd.s32 1, %s486_s13  ;;  %p391_p0 = scmp.ge.s32.totalorder %s490_s14, 1  ;;  %s490_s14 = sphi %s518_s14, %s13_s14   ;;  %s486_s13 = sphi %s516_s13, %s583_s13   ;;  %s482_s12 = sphi %s514_s12, %s582_s12  }
   0x3   : > { %p27_p1 = scmp.ge.s32.totalorder %s25_s15, 4  ;;  %p155_p2 = scmp.lt.s32.totalorder %s490_s14, 5 }
   0x5   : > { %s585_s15 = smov (%p27_p1, %s25_s15), 0  ;;  %p156_p3 = pnand %p391_p0, %p155_p2 }
   0x6   : > { %v460_v0 = vld [vmem:[%s579_s1] sm:$0xff] (!%p156_p3)   ;;  %v492_v1 = vmov (!%p156_p3), 0.0   ;;  %v461_v2 = vld [vmem:[%s579_s1 + $0x8] sm:$0xff] (!%p156_p3)   ;;  %vm493_vm0 = vmmov (!%p156_p3), 0   ;;  %v462_v3 = vld [vmem:[%s579_s1 + $0x10] sm:$0xff] (!%p156_p3)   ;;  %p183_p4 = scmp.lt.s32.totalorder (!%p156_p3), %s482_s12, 3 }
   0x7   : > { %159 = sbr.rel (%p156_p3) target bundleno = 258 (0x102), region = 32  ;;  %414 = vmatprep.subr.bf16.mxu0 (!%p156_p3), %v492_v1  ;;  %430 = vmatprep.mubr.msk.bf16.mxu0 (!%p156_p3), %vm493_vm0, %v492_v1  ;;  %v463_v4 = vld [vmem:[%s579_s1 + $0x18] sm:$0xff] (!%p156_p3)   ;;  %v464_v5 = vld [vmem:[%s579_s1 + $0x20] sm:$0xff] (!%p156_p3)   ;;  %v465_v6 = vld [vmem:[%s579_s1 + $0x28] sm:$0xff] (!%p156_p3)  }
   0x8   : > { %415 = vmatpush3.bf16.msra.mxu0 (!%p156_p3), %v460_v0  ;;  %v466_v7 = vld [vmem:[%s579_s1 + $0x30] sm:$0xff] (!%p156_p3)   ;;  %v467_v8 = vld [vmem:[%s579_s1 + $0x38] sm:$0xff] (!%p156_p3)   ;;  %v394_v10 = vld [vmem:[%s580_s2] ss:$0 sm:$0xff] (!%p156_p3) }
   0x9   : > { %416 = vmatprep.subr.bf16.mxu0 (!%p156_p3), %v492_v1 }
   0xc   : > { %417 = vmatpush3.bf16.msra.mxu0 (!%p156_p3), %v461_v2 }
   0xd   : > { %418 = vmatprep.subr.bf16.mxu0 (!%p156_p3), %v492_v1 }
   0xe   : > { %s587_s12 = smov (!%p183_p4, %s482_s12), 3 }
   0xf   : > { %s392_s30 = sshll.u32 %s587_s12, 1 }
  0x10   : > { %419 = vmatpush3.bf16.msra.mxu0 %v462_v3  ;;  %s189_s8 = scalar_lea.vmem %s578_s0, %s392_s30  ;;  %s196_s16 = scalar_lea.vmem %s581_s3, %s392_s30 }
  0x11   : > { %420 = vmatprep.subr.bf16.mxu0 %v492_v1  ;;  %v198_v9 = vld [vmem:[%s189_s8] sm:$0x3] }
  0x14   : > { %421 = vmatpush3.bf16.msra.mxu0 %v463_v4 }
  0x15   : > { %422 = vmatprep.subr.bf16.mxu0 %v492_v1 }
  0x18   : > { %423 = vmatpush3.bf16.msra.mxu0 %v464_v5 }
  0x19   : > { %424 = vmatprep.subr.bf16.mxu0 %v492_v1 }
  0x1c   : > { %425 = vmatpush3.bf16.msra.mxu0 %v465_v6 }
  0x1d   : > { %426 = vmatprep.subr.bf16.mxu0 %v492_v1 }
  0x20   : > { %427 = vmatpush3.bf16.msra.mxu0 %v466_v7 }
  0x21   : > { %428 = vmatprep.subr.bf16.mxu0 %v492_v1 }
  0x24   : > { %429 = vmatpush3.bf16.msra.mxu0 %v467_v8 }
  0x27   : > { %431 = vmatmul.mubr.bf16.vlgmr.msra.gmra.mrb[0].mxu0 %v198_v9 }
  0xfa   : > { %v304_v11 = vpop.f32.mrb[0].mxu0 }
  0xfb   : > { %v305_v12 = vadd.f32 %v394_v10, %v304_v11  ;;  %v432_v13 = vpop.f32.mrb[1].mxu0 }
  0xfc   : > { %v307_v14 = vpop.f32.mrb[2].mxu0 }
  0xfd   : > { %v310_v15 = vmax.f32 %v305_v12, 0.0  ;;  %v433_v16 = vpop.f32.mrb[3].mxu0 }
  0xff   : > { %v311_v17 = vpack.c.bf16 %v310_v15, %v310_v15 }
 0x101   : > { %312 = vst [vmem:[%s196_s16] sm:$0x3] %v311_v17 }
 0x102 PF: > { %s13_s14 = sadd.s32 1, %s490_s14   ;;  %s582_s12 = smov %s486_s13 }
 0x103   : > { %p10_p5 = scmp.ge.s32.totalorder %s13_s14, 6   ;;  %s583_s13 = smov %s585_s15 }
 0x105   :  { %12 = sbr.rel (!%p10_p5) target bundleno = 2 (0x2), region = 62 }

// kernel: resnet_loss.36
= control target key start
LH: loop header
LB: loop body
LE: loop exit
PB: predicated region body
PF: predicated region fallthrough
CT: control target
= control target key end

     0   :  { %s593_s15 = smov 0   ;;  %s595_s16 = smov 0   ;;  %s660_s0 = inlined_call_operand.vmem [shape: bf16[4,4,128], index: 0, kind: input, shape index: {}]   ;;  %s661_s1 = inlined_call_operand.vmem [shape: bf16[128,128], index: 1, kind: input, shape index: {}]   ;;  %s662_s2 = inlined_call_operand.vmem [shape: f32[1,128], index: 2, kind: input, shape index: {}]   ;;  %s663_s3 = inlined_call_operand.vmem [shape: bf16[4,4,128], index: 3, kind: input, shape index: {}]   ;;  %s664_s4 = inlined_call_operand.vmem [shape: bf16[4,4,128], index: 4, kind: output, shape index: {}]  }
   0x1   :  { %s597_s17 = smov 0  }
   0x2 LB: > { %s26_s18 = sadd.s32 1, %s560_s16  ;;  %p464_p0 = scmp.ge.s32.totalorder %s564_s17, 1  ;;  %s564_s17 = sphi %s597_s17, %s14_s17   ;;  %s560_s16 = sphi %s595_s16, %s666_s16   ;;  %s556_s15 = sphi %s593_s15, %s665_s15  }
   0x3   : > { %p28_p1 = scmp.ge.s32.totalorder %s26_s18, 4  ;;  %p194_p2 = scmp.lt.s32.totalorder %s564_s17, 5 }
   0x5   : > { %s668_s18 = smov (%p28_p1, %s26_s18), 0  ;;  %p195_p3 = pnand %p464_p0, %p194_p2 }
   0x6   : > { %v534_v0 = vld [vmem:[%s661_s1] sm:$0xff] (!%p195_p3)   ;;  %v566_v1 = vmov (!%p195_p3), 0.0   ;;  %v535_v2 = vld [vmem:[%s661_s1 + $0x8] sm:$0xff] (!%p195_p3)   ;;  %vm567_vm0 = vmmov (!%p195_p3), 0   ;;  %v536_v3 = vld [vmem:[%s661_s1 + $0x10] sm:$0xff] (!%p195_p3)   ;;  %p231_p4 = scmp.lt.s32.totalorder (!%p195_p3), %s556_s15, 3 }
   0x7   : > { %198 = sbr.rel (%p195_p3) target bundleno = 260 (0x104), region = 36  ;;  %488 = vmatprep.subr.bf16.mxu0 (!%p195_p3), %v566_v1  ;;  %504 = vmatprep.mubr.msk.bf16.mxu0 (!%p195_p3), %vm567_vm0, %v566_v1  ;;  %v537_v4 = vld [vmem:[%s661_s1 + $0x18] sm:$0xff] (!%p195_p3)   ;;  %v538_v5 = vld [vmem:[%s661_s1 + $0x20] sm:$0xff] (!%p195_p3)   ;;  %v539_v6 = vld [vmem:[%s661_s1 + $0x28] sm:$0xff] (!%p195_p3)  }
   0x8   : > { %489 = vmatpush3.bf16.msra.mxu0 (!%p195_p3), %v534_v0  ;;  %v540_v7 = vld [vmem:[%s661_s1 + $0x30] sm:$0xff] (!%p195_p3)   ;;  %v541_v8 = vld [vmem:[%s661_s1 + $0x38] sm:$0xff] (!%p195_p3)   ;;  %v468_v11 = vld [vmem:[%s662_s2] ss:$0 sm:$0xff] (!%p195_p3) }
   0x9   : > { %490 = vmatprep.subr.bf16.mxu0 (!%p195_p3), %v566_v1 }
   0xc   : > { %491 = vmatpush3.bf16.msra.mxu0 (!%p195_p3), %v535_v2 }
   0xd   : > { %492 = vmatprep.subr.bf16.mxu0 (!%p195_p3), %v566_v1 }
   0xe   : > { %s670_s15 = smov (!%p231_p4, %s556_s15), 3 }
   0xf   : > { %s465_s7 = sshll.u32 %s670_s15, 1 }
  0x10   : > { %493 = vmatpush3.bf16.msra.mxu0 %v536_v3  ;;  %s237_s12 = scalar_lea.vmem %s660_s0, %s465_s7  ;;  %s244_s19 = scalar_lea.vmem %s663_s3, %s465_s7 }
  0x11   : > { %494 = vmatprep.subr.bf16.mxu0 %v566_v1  ;;  %v253_v9 = vld [vmem:[%s237_s12] sm:$0x3]  ;;  %s251_s23 = scalar_lea.vmem %s664_s4, %s465_s7 }
  0x12   : > { %v365_v10 = vld [vmem:[%s244_s19] sm:$0x3] }
  0x13   : > { %v366_v12 = vunpack.c.l.bf16 %v365_v10 }
  0x14   : > { %495 = vmatpush3.bf16.msra.mxu0 %v537_v4 }
  0x15   : > { %496 = vmatprep.subr.bf16.mxu0 %v566_v1 }
  0x18   : > { %497 = vmatpush3.bf16.msra.mxu0 %v538_v5 }
  0x19   : > { %498 = vmatprep.subr.bf16.mxu0 %v566_v1 }
  0x1c   : > { %499 = vmatpush3.bf16.msra.mxu0 %v539_v6 }
  0x1d   : > { %500 = vmatprep.subr.bf16.mxu0 %v566_v1 }
  0x20   : > { %501 = vmatpush3.bf16.msra.mxu0 %v540_v7 }
  0x21   : > { %502 = vmatprep.subr.bf16.mxu0 %v566_v1 }
  0x24   : > { %503 = vmatpush3.bf16.msra.mxu0 %v541_v8 }
  0x27   : > { %505 = vmatmul.mubr.bf16.vlgmr.msra.gmra.mrb[0].mxu0 %v253_v9 }
  0xfa   : > { %v359_v13 = vpop.f32.mrb[0].mxu0 }
  0xfb   : > { %v360_v14 = vadd.f32 %v468_v11, %v359_v13  ;;  %v506_v15 = vpop.f32.mrb[1].mxu0 }
  0xfc   : > { %v362_v16 = vpop.f32.mrb[2].mxu0 }
  0xfd   : > { %v367_v17 = vadd.f32 %v366_v12, %v360_v14  ;;  %v507_v18 = vpop.f32.mrb[3].mxu0 }
  0xff   : > { %v368_v19 = vmax.f32 %v367_v17, 0.0 }
 0x101   : > { %v369_v20 = vpack.c.bf16 %v368_v19, %v368_v19 }
 0x103   : > { %370 = vst [vmem:[%s251_s23] sm:$0x3] %v369_v20 }
 0x104 PF: > { %s14_s17 = sadd.s32 1, %s564_s17   ;;  %s665_s15 = smov %s560_s16 }
 0x105   : > { %p11_p5 = scmp.ge.s32.totalorder %s14_s17, 6   ;;  %s666_s16 = smov %s668_s18 }
 0x107   :  { %13 = sbr.rel (!%p11_p5) target bundleno = 2 (0x2), region = 69 }

// kernel: resnet_loss.34
= control target key start
LH: loop header
LB: loop body
LE: loop exit
PB: predicated region body
PF: predicated region fallthrough
CT: control target
= control target key end

     0   :  { %s2182_s12 = smov 0   ;;  %s2184_s13 = smov 0   ;;  %s2587_s0 = inlined_call_operand.vmem [shape: bf16[4,4,3,3,128], index: 0, kind: input, shape index: {}]   ;;  %s2588_s1 = inlined_call_operand.vmem [shape: bf16[3,3,128,128], index: 1, kind: input, shape index: {}]   ;;  %s2589_s2 = inlined_call_operand.vmem [shape: f32[1,128], index: 2, kind: input, shape index: {}]   ;;  %s2590_s3 = inlined_call_operand.vmem [shape: bf16[4,2,2,128], index: 3, kind: output, shape index: {}]  }
   0x1   :  { %s2186_s14 = smov 0  }
   0x2 LB: > { %s25_s15 = sadd.s32 1, %s2152_s13  ;;  %p1547_p0 = scmp.ge.s32.totalorder %s2156_s14, 1  ;;  %s2156_s14 = sphi %s2186_s14, %s13_s14   ;;  %s2152_s13 = sphi %s2184_s13, %s2594_s13   ;;  %s2148_s12 = sphi %s2182_s12, %s2593_s12  }
   0x3   : > { %p27_p1 = scmp.ge.s32.totalorder %s25_s15, 4  ;;  %p151_p2 = scmp.lt.s32.totalorder %s2156_s14, 5 }
   0x5   : > { %s2596_s15 = smov (%p27_p1, %s25_s15), 0  ;;  %p152_p3 = pnand %p1547_p0, %p151_p2 }
   0x6   : > { %v2062_v0 = vld [vmem:[%s2588_s1 + $0x180] sm:$0xff] (!%p152_p3)   ;;  %v2158_v1 = vmov (!%p152_p3), 0.0   ;;  %v2064_v3 = vld [vmem:[%s2588_s1 + $0x188] sm:$0xff] (!%p152_p3)   ;;  %vm2159_vm0 = vmmov (!%p152_p3), 0   ;;  %p178_p4 = scmp.lt.s32.totalorder (!%p152_p3), %s2148_s12, 3  ;;  %v2066_v5 = vld [vmem:[%s2588_s1 + $0x190] sm:$0xff] (!%p152_p3)   ;;  %v238_v9 = vlaneseq (!%p152_p3) }
   0x7   : > { %155 = sbr.rel (%p152_p3) target bundleno = 392 (0x188), region = 32  ;;  %1853 = vmatprep.subr.bf16.mxu0 (!%p152_p3), %v2158_v1  ;;  %1873 = vmatprep.subr.bf16.mxu1 (!%p152_p3), %v2158_v1  ;;  %v2063_v2 = vld [vmem:[%s2588_s1] sm:$0xff] (!%p152_p3)   ;;  %v2065_v4 = vld [vmem:[%s2588_s1 + $0x8] sm:$0xff] (!%p152_p3)   ;;  %v2067_v6 = vld [vmem:[%s2588_s1 + $0x10] sm:$0xff] (!%p152_p3)   ;;  %v2160_v16 = vmov (!%p152_p3), 1966171168  }
   0x8   : > { %1854 = vmatpush3.bf16.msra.mxu0 (!%p152_p3), %v2062_v0  ;;  %1869 = vmatprep.mubr.msk.bf16.mxu0 (!%p152_p3), %vm2159_vm0, %v2158_v1  ;;  %v2068_v7 = vld [vmem:[%s2588_s1 + $0x198] sm:$0xff] (!%p152_p3)   ;;  %v2070_v10 = vld [vmem:[%s2588_s1 + $0x1a0] sm:$0xff] (!%p152_p3)   ;;  %v2072_v12 = vld [vmem:[%s2588_s1 + $0x1a8] sm:$0xff] (!%p152_p3)   ;;  %v2255_v13 = vshrl.u32 (!%p152_p3), %v238_v9, 7  ;;  %v236_v17 = vunpack.c.l.s4 (!%p152_p3), %v2160_v16  ;;  %vm975_vm1 = vsmask.f32 (!%p152_p3), 256 }
   0x9   : > { %1874 = vmatpush3.bf16.msra.mxu1 (!%p152_p3), %v2063_v2  ;;  %1855 = vmatprep.subr.bf16.mxu0 (!%p152_p3), %v2158_v1  ;;  %v2069_v8 = vld [vmem:[%s2588_s1 + $0x18] sm:$0xff] (!%p152_p3)   ;;  %v2071_v11 = vld [vmem:[%s2588_s1 + $0x20] sm:$0xff] (!%p152_p3)   ;;  %v2073_v14 = vld [vmem:[%s2588_s1 + $0x28] sm:$0xff] (!%p152_p3)   ;;  %vm976_vm2 = vsmask.f32 (!%p152_p3), 1284 }
   0xa   : > { %1875 = vmatprep.subr.bf16.mxu1 (!%p152_p3), %v2158_v1  ;;  %1889 = vmatprep.mubr.msk.bf16.mxu1 (!%p152_p3), %vm2159_vm0, %v2158_v1  ;;  %v237_v19 = vunpack.c.0.s8 (!%p152_p3), %v236_v17  ;;  %v2074_v23 = vld [vmem:[%s2588_s1 + $0x1b0] sm:$0xff] (!%p152_p3)   ;;  %v2076_v27 = vld [vmem:[%s2588_s1 + $0x1b8] sm:$0xff] (!%p152_p3)   ;;  %v2078_v32 = vld [vmem:[%s2588_s1 + $0xc0] sm:$0xff] (!%p152_p3)   ;;  %vm978_vm4 = vsmask.f32 (!%p152_p3), 2312 }
   0xb   : > { %v2075_v25 = vld [vmem:[%s2588_s1 + $0x30] sm:$0xff] (!%p152_p3)   ;;  %v2077_v29 = vld [vmem:[%s2588_s1 + $0x38] sm:$0xff] (!%p152_p3)   ;;  %v2079_v33 = vld [vmem:[%s2588_s1 + $0x40] sm:$0xff] (!%p152_p3)   ;;  %vm980_vm6 = vsmask.f32 (!%p152_p3), 3340 }
   0xc   : > { %1856 = vmatpush3.bf16.msra.mxu0 (!%p152_p3), %v2064_v3  ;;  %v2266_v22 = vsub.s32 (!%p152_p3), %v237_v19, %v2255_v13  ;;  %v2080_v34 = vld [vmem:[%s2588_s1 + $0xc8] sm:$0xff] (!%p152_p3)   ;;  %v2082_v36 = vld [vmem:[%s2588_s1 + $0xd0] sm:$0xff] (!%p152_p3)   ;;  %v2084_v38 = vld [vmem:[%s2588_s1 + $0xd8] sm:$0xff] (!%p152_p3)   ;;  %vm982_vm8 = vsmask.f32 (!%p152_p3), 4368 }
   0xd   : > { %1876 = vmatpush3.bf16.msra.mxu1 (!%p152_p3), %v2065_v4  ;;  %1857 = vmatprep.subr.bf16.mxu0 (!%p152_p3), %v2158_v1  ;;  %v2081_v35 = vld [vmem:[%s2588_s1 + $0x48] sm:$0xff] (!%p152_p3)   ;;  %v2083_v37 = vld [vmem:[%s2588_s1 + $0x50] sm:$0xff] (!%p152_p3)   ;;  %v2085_v39 = vld [vmem:[%s2588_s1 + $0x58] sm:$0xff] (!%p152_p3)   ;;  %vm984_vm10 = vsmask.f32 (!%p152_p3), 5396 }
   0xe   : > { %s2598_s12 = smov (!%p178_p4, %s2148_s12), 3  ;;  %1877 = vmatprep.subr.bf16.mxu1 %v2158_v1  ;;  %v2086_v40 = vld [vmem:[%s2588_s1 + $0xe0] sm:$0xff]   ;;  %v2088_v42 = vld [vmem:[%s2588_s1 + $0xe8] sm:$0xff]   ;;  %v2090_v49 = vld [vmem:[%s2588_s1 + $0xf0] sm:$0xff]   ;;  %vm986_vm12 = vsmask.f32 6424 }
   0xf   : > { %s2033_s30 = smul.u32 24, %s2598_s12  ;;  %v2087_v41 = vld [vmem:[%s2588_s1 + $0x60] sm:$0xff]   ;;  %v2089_v43 = vld [vmem:[%s2588_s1 + $0x68] sm:$0xff]   ;;  %v2091_v51 = vld [vmem:[%s2588_s1 + $0x70] sm:$0xff]   ;;  %vm988_vm14 = vsmask.f32 7452 }
  0x10   : > { %1858 = vmatpush3.bf16.msra.mxu0 %v2066_v5  ;;  %v2092_v53 = vld [vmem:[%s2588_s1 + $0xf8] sm:$0xff]   ;;  %v2094_v57 = vld [vmem:[%s2588_s1 + $0x1c0] sm:$0xff]   ;;  %v2096_v60 = vld [vmem:[%s2588_s1 + $0x1c8] sm:$0xff]   ;;  %s1549_s5 = sshll.u32 %s2598_s12, 1 }
  0x11   : > { %1878 = vmatpush3.bf16.msra.mxu1 %v2067_v6  ;;  %1859 = vmatprep.subr.bf16.mxu0 %v2158_v1  ;;  %s2245_s10 = scalar_lea.vmem %s2587_s0, %s2033_s30  ;;  %v2093_v55 = vld [vmem:[%s2588_s1 + $0x78] sm:$0xff]   ;;  %v2095_v59 = vld [vmem:[%s2588_s1 + $0x100] sm:$0xff]   ;;  %v2097_v61 = vld [vmem:[%s2588_s1 + $0x108] sm:$0xff]   ;;  %s190_s8 = scalar_lea.vmem %s2590_s3, %s1549_s5 }
  0x12   : > { %1879 = vmatprep.subr.bf16.mxu1 %v2158_v1  ;;  %v197_v15 = vld [vmem:[%s2245_s10 + $0x2] sm:$0x1]  ;;  %v198_v18 = vld [vmem:[%s2245_s10 + $0x4] sm:$0x1]  ;;  %v196_v20 = vld [vmem:[%s2245_s10] sm:$0x1] }
  0x13   : > { %v234_v21 = vcombine.low %v197_v15, %v198_v18  ;;  %v339_v24 = vcombine.low %v196_v20, %v197_v15  ;;  %v1582_v44 = vld [vmem:[%s2245_s10 + $0xc] sm:$0x1]  ;;  %v1583_v45 = vld [vmem:[%s2245_s10 + $0xe] sm:$0x1]  ;;  %v1608_v46 = vld [vmem:[%s2245_s10 + $0x6] sm:$0x1] }
  0x14   : > { %1860 = vmatpush3.bf16.msra.mxu0 %v2068_v7  ;;  %v2343_v47 = vld [vmem:[%s2245_s10 + $0x8] sm:$0x1]  ;;  %v467_v48 = vcombine.low %v1582_v44, %v1583_v45  ;;  %v2098_v62 = vld [vmem:[%s2588_s1 + $0x1d0] sm:$0xff]   ;;  %v2100_v0 = vld [vmem:[%s2588_s1 + $0x1d8] sm:$0xff]  }
  0x15   : > { %1880 = vmatpush3.bf16.msra.mxu1 %v2069_v8  ;;  %1861 = vmatprep.subr.bf16.mxu0 %v2158_v1  ;;  %v241_v26 = vrot.slane %v234_v21, %v2266_v22  ;;  %v346_v28 = vrot.slane %v339_v24, %v2266_v22  ;;  %v597_v50 = vcombine.low %v1608_v46, %v2343_v47  ;;  %v2099_v63 = vld [vmem:[%s2588_s1 + $0x110] sm:$0xff]   ;;  %v2101_v2 = vld [vmem:[%s2588_s1 + $0x118] sm:$0xff]   ;;  %v2102_v3 = vld [vmem:[%s2588_s1 + $0x1e0] sm:$0xff]  }
  0x16   : > { %1881 = vmatprep.subr.bf16.mxu1 %v2158_v1  ;;  %v474_v52 = vrot.slane %v467_v48, %v2266_v22  ;;  %v2103_v4 = vld [vmem:[%s2588_s1 + $0x120] sm:$0xff]   ;;  %v2104_v5 = vld [vmem:[%s2588_s1 + $0x1e8] sm:$0xff]   ;;  %v1659_v8 = vld [vmem:[%s2245_s10 + $0x12] sm:$0x1] }
  0x17   : > { %v248_v30 = vrot.slane %v241_v26, %v2266_v22  ;;  %v353_v31 = vrot.slane %v346_v28, %v2266_v22  ;;  %v604_v54 = vrot.slane %v597_v50, %v2266_v22  ;;  %v1610_v6 = vld [vmem:[%s2245_s10 + $0xa] sm:$0x1]  ;;  %v1660_v9 = vld [vmem:[%s2245_s10 + $0x14] sm:$0x1]  ;;  %v2108_v16 = vld [vmem:[%s2588_s1 + $0x1f8] sm:$0xff]  }
  0x18   : > { %1862 = vmatpush3.bf16.msra.mxu0 %v2070_v10  ;;  %v481_v56 = vrot.slane %v474_v52, %v2266_v22  ;;  %v2105_v7 = vld [vmem:[%s2588_s1 + $0x128] sm:$0xff]   ;;  %v720_v10 = vcombine.low %v2343_v47, %v1610_v6  ;;  %v2109_v18 = vld [vmem:[%s2588_s1 + $0x138] sm:$0xff]   ;;  %vm977_vm3 = vmor %vm975_vm1, %vm976_vm2 }
  0x19   : > { %1882 = vmatpush3.bf16.msra.mxu1 %v2071_v11  ;;  %1863 = vmatprep.subr.bf16.mxu0 %v2158_v1  ;;  %v611_v58 = vrot.slane %v604_v54, %v2266_v22  ;;  %v2106_v11 = vld [vmem:[%s2588_s1 + $0x1f0] sm:$0xff]   ;;  %v2110_v20 = vld [vmem:[%s2588_s1 + $0x80] sm:$0xff]   ;;  %vm979_vm5 = vmor %vm977_vm3, %vm978_vm4 }
  0x1a   : > { %1883 = vmatprep.subr.bf16.mxu1 %v2158_v1  ;;  %v727_v15 = vrot.slane %v720_v10, %v2266_v22  ;;  %v2112_v24 = vld [vmem:[%s2588_s1 + $0x88] sm:$0xff]   ;;  %vm981_vm7 = vmor %vm979_vm5, %vm980_vm6  ;;  %v2114_v26 = vld [vmem:[%s2588_s1 + $0x90] sm:$0xff]  }
  0x1b   : > { %vm983_vm9 = vmor %vm981_vm7, %vm982_vm8  ;;  %v2115_v28 = vld [vmem:[%s2588_s1 + $0x210] sm:$0xff]   ;;  %v2120_v45 = vld [vmem:[%s2588_s1 + $0xa8] sm:$0xff]  }
  0x1c   : > { %1864 = vmatpush3.bf16.msra.mxu0 %v2072_v12  ;;  %v849_v12 = vcombine.low %v1659_v8, %v1660_v9  ;;  %v734_v19 = vrot.slane %v727_v15, %v2266_v22  ;;  %vm985_vm11 = vmor %vm983_vm9, %vm984_vm10  ;;  %v2121_v48 = vld [vmem:[%s2588_s1 + $0x228] sm:$0xff]   ;;  %v2132_v15 = vld [vmem:[%s2588_s1 + $0x170] sm:$0xff]  }
  0x1d   : > { %1884 = vmatpush3.bf16.msra.mxu1 %v2073_v14  ;;  %1865 = vmatprep.subr.bf16.mxu0 %v2158_v1  ;;  %v2107_v14 = vld [vmem:[%s2588_s1 + $0x130] sm:$0xff]   ;;  %vm987_vm13 = vmor %vm985_vm11, %vm986_vm12  ;;  %v2131_v10 = vld [vmem:[%s2588_s1 + $0x168] sm:$0xff]  }
  0x1e   : > { %1885 = vmatprep.subr.bf16.mxu1 %v2158_v1  ;;  %v856_v17 = vrot.slane %v849_v12, %v2266_v22  ;;  %vm2489_vm15 = vmor %vm987_vm13, %vm988_vm14 }
  0x20   : > { %1866 = vmatpush3.bf16.msra.mxu0 %v2074_v23  ;;  %v863_v21 = vrot.slane %v856_v17, %v2266_v22  ;;  %v2111_v23 = vld [vmem:[%s2588_s1 + $0x200] sm:$0xff]   ;;  %v2133_v17 = vld [vmem:[%s2588_s1 + $0x178] sm:$0xff]  }
  0x21   : > { %1886 = vmatpush3.bf16.msra.mxu1 %v2075_v25  ;;  %1867 = vmatprep.subr.bf16.mxu0 %v2158_v1  ;;  %v2113_v25 = vld [vmem:[%s2588_s1 + $0x208] sm:$0xff]  }
  0x22   : > { %1887 = vmatprep.subr.bf16.mxu1 %v2158_v1 }
  0x24   : > { %1868 = vmatpush3.bf16.msra.mxu0 %v2076_v27  ;;  %v1685_v27 = vld.sshfl [vmem:[%s2245_s10] sm:$0x11 pattern:$0x75316420] }
  0x25   : > { %1888 = vmatpush3.bf16.msra.mxu1 %v2077_v29  ;;  %1893 = vmatprep.subr.bf16.mxu0 %v2158_v1  ;;  %v1686_v29 = vld.sshfl [vmem:[%s2245_s10 + $0x2] sm:$0x11 pattern:$0x75316420] }
  0x26   : > { %1913 = vmatprep.subr.bf16.mxu1 %v2158_v1 }
  0x27   : > { %1870 = vmatmul.mubr.bf16.vlgmr.msra.gmra.mrb[0].mxu0 %v248_v30  ;;  %v1713_v30 = vld.sshfl [vmem:[%s2245_s10 + $0x4] sm:$0x11 pattern:$0x75316420] }
  0x28   : > { %1890 = vmatmul.mubr.bf16.vlgmr.msra.gmra.mrb[0].mxu1 %v353_v31  ;;  %1894 = vmatpush3.bf16.msra.mxu0 %v2078_v32  ;;  %v2116_v31 = vld [vmem:[%s2588_s1 + $0x98] sm:$0xff]   ;;  %v966_v32 = vcombine.high %v1685_v27, %v1685_v27 }
  0x29   : > { %1914 = vmatpush3.bf16.msra.mxu1 %v2079_v33  ;;  %1895 = vmatprep.subr.bf16.mxu0 %v2158_v1  ;;  %v974_v33 = vcombine.high %v1686_v29, %v1686_v29 }
  0x2a   : > { %1915 = vmatprep.subr.bf16.mxu1 %v2158_v1  ;;  %1909 = vmatprep.mubr.msk.bf16.mxu0 %vm2159_vm0, %v2158_v1 }
  0x2b   : > { %1929 = vmatprep.mubr.msk.bf16.mxu1 %vm2159_vm0, %v2158_v1 }
  0x2c   : > { %1896 = vmatpush3.bf16.msra.mxu0 %v2080_v34  ;;  %v2117_v34 = vld [vmem:[%s2588_s1 + $0x218] sm:$0xff]  }
  0x2d   : > { %1916 = vmatpush3.bf16.msra.mxu1 %v2081_v35  ;;  %1897 = vmatprep.subr.bf16.mxu0 %v2158_v1  ;;  %v1138_v35 = vcombine.high %v1713_v30, %v1713_v30 }
  0x2e   : > { %1917 = vmatprep.subr.bf16.mxu1 %v2158_v1 }
  0x2f   : > { %v1145_v44 = vshll.u32 %v1138_v35, 16 }
  0x30   : > { %1898 = vmatpush3.bf16.msra.mxu0 %v2082_v36  ;;  %v2118_v36 = vld [vmem:[%s2588_s1 + $0xa0] sm:$0xff]  }
  0x31   : > { %1918 = vmatpush3.bf16.msra.mxu1 %v2083_v37  ;;  %1899 = vmatprep.subr.bf16.mxu0 %v2158_v1  ;;  %v991_v37 = vshrl.u32 %v1685_v27, 16 }
  0x32   : > { %1919 = vmatprep.subr.bf16.mxu1 %v2158_v1 }
  0x34   : > { %1900 = vmatpush3.bf16.msra.mxu0 %v2084_v38  ;;  %v996_v38 = vshll.u32 %v966_v32, 16 }
  0x35   : > { %1920 = vmatpush3.bf16.msra.mxu1 %v2085_v39  ;;  %1901 = vmatprep.subr.bf16.mxu0 %v2158_v1  ;;  %v1000_v39 = vshrl.u32 %v1686_v29, 16 }
  0x36   : > { %1921 = vmatprep.subr.bf16.mxu1 %v2158_v1  ;;  %v998_v46 = vsel %vm2489_vm15, %v991_v37, %v996_v38 }
  0x38   : > { %1902 = vmatpush3.bf16.msra.mxu0 %v2086_v40  ;;  %v1005_v40 = vshll.u32 %v974_v33, 16 }
  0x39   : > { %1922 = vmatpush3.bf16.msra.mxu1 %v2087_v41  ;;  %1903 = vmatprep.subr.bf16.mxu0 %v2158_v1  ;;  %v2119_v41 = vld [vmem:[%s2588_s1 + $0x220] sm:$0xff]  }
  0x3a   : > { %1923 = vmatprep.subr.bf16.mxu1 %v2158_v1  ;;  %v1007_v47 = vsel %vm2489_vm15, %v1000_v39, %v1005_v40 }
  0x3b   : > { %v1025_v50 = vcombine.low %v998_v46, %v1007_v47 }
  0x3c   : > { %1904 = vmatpush3.bf16.msra.mxu0 %v2088_v42 }
  0x3d   : > { %1924 = vmatpush3.bf16.msra.mxu1 %v2089_v43  ;;  %1905 = vmatprep.subr.bf16.mxu0 %v2158_v1  ;;  %v1140_v43 = vshrl.u32 %v1713_v30, 16  ;;  %v1032_v54 = vrot.slane %v1025_v50, %v2266_v22 }
  0x3e   : > { %1925 = vmatprep.subr.bf16.mxu1 %v2158_v1 }
  0x40   : > { %1906 = vmatpush3.bf16.msra.mxu0 %v2090_v49  ;;  %v1147_v49 = vsel %vm2489_vm15, %v1140_v43, %v1145_v44 }
  0x41   : > { %1926 = vmatpush3.bf16.msra.mxu1 %v2091_v51  ;;  %1907 = vmatprep.subr.bf16.mxu0 %v2158_v1  ;;  %v2122_v51 = vld [vmem:[%s2588_s1 + $0xb0] sm:$0xff]   ;;  %v1165_v52 = vcombine.low %v1007_v47, %v1147_v49 }
  0x42   : > { %1927 = vmatprep.subr.bf16.mxu1 %v2158_v1 }
  0x44   : > { %1908 = vmatpush3.bf16.msra.mxu0 %v2092_v53  ;;  %v2123_v53 = vld [vmem:[%s2588_s1 + $0x230] sm:$0xff]  }
  0x45   : > { %1928 = vmatpush3.bf16.msra.mxu1 %v2093_v55  ;;  %1933 = vmatprep.subr.bf16.mxu0 %v2158_v1  ;;  %v2124_v55 = vld [vmem:[%s2588_s1 + $0xb8] sm:$0xff]  }
  0x46   : > { %1953 = vmatprep.subr.bf16.mxu1 %v2158_v1 }
  0x47   : > { %1910 = vmatmul.mubr.bf16.vlgmr.msra.gmra.mrb[4].mxu0 %v481_v56  ;;  %v1172_v56 = vrot.slane %v1165_v52, %v2266_v22 }
  0x48   : > { %1934 = vmatpush3.bf16.msra.mxu0 %v2094_v57  ;;  %1930 = vmatmul.mubr.bf16.vlgmr.msra.gmra.mrb[4].mxu1 %v611_v58  ;;  %v2125_v57 = vld [vmem:[%s2588_s1 + $0x238] sm:$0xff]   ;;  %v1039_v58 = vrot.slane %v1032_v54, %v2266_v22 }
  0x49   : > { %1954 = vmatpush3.bf16.msra.mxu1 %v2095_v59  ;;  %1935 = vmatprep.subr.bf16.mxu0 %v2158_v1  ;;  %v2126_v59 = vld [vmem:[%s2588_s1 + $0x140] sm:$0xff]  }
  0x4a   : > { %1955 = vmatprep.subr.bf16.mxu1 %v2158_v1  ;;  %1949 = vmatprep.mubr.msk.bf16.mxu0 %vm2159_vm0, %v2158_v1 }
  0x4b   : > { %1969 = vmatprep.mubr.msk.bf16.mxu1 %vm2159_vm0, %v2158_v1 }
  0x4c   : > { %1936 = vmatpush3.bf16.msra.mxu0 %v2096_v60  ;;  %v1179_v60 = vrot.slane %v1172_v56, %v2266_v22 }
  0x4d   : > { %1956 = vmatpush3.bf16.msra.mxu1 %v2097_v61  ;;  %1937 = vmatprep.subr.bf16.mxu0 %v2158_v1  ;;  %v2127_v61 = vld [vmem:[%s2588_s1 + $0x148] sm:$0xff]  }
  0x4e   : > { %1957 = vmatprep.subr.bf16.mxu1 %v2158_v1 }
  0x50   : > { %1938 = vmatpush3.bf16.msra.mxu0 %v2098_v62  ;;  %v2128_v62 = vld [vmem:[%s2588_s1 + $0x150] sm:$0xff]  }
  0x51   : > { %1958 = vmatpush3.bf16.msra.mxu1 %v2099_v63  ;;  %1939 = vmatprep.subr.bf16.mxu0 %v2158_v1  ;;  %v1741_v63 = vld.sshfl [vmem:[%s2245_s10 + $0xc] sm:$0x11 pattern:$0x75316420] }
  0x52   : > { %1959 = vmatprep.subr.bf16.mxu1 %v2158_v1  ;;  %v1291_v6 = vshrl.u32 %v1741_v63, 16 }
  0x54   : > { %1940 = vmatpush3.bf16.msra.mxu0 %v2100_v0  ;;  %v1742_v0 = vld.sshfl [vmem:[%s2245_s10 + $0xe] sm:$0x11 pattern:$0x75316420] }
  0x55   : > { %1960 = vmatpush3.bf16.msra.mxu1 %v2101_v2  ;;  %1941 = vmatprep.subr.bf16.mxu0 %v2158_v1  ;;  %v2129_v2 = vld [vmem:[%s2588_s1 + $0x158] sm:$0xff]   ;;  %v1300_v8 = vshrl.u32 %v1742_v0, 16 }
  0x56   : > { %1961 = vmatprep.subr.bf16.mxu1 %v2158_v1 }
  0x58   : > { %1942 = vmatpush3.bf16.msra.mxu0 %v2102_v3  ;;  %v1281_v3 = vcombine.high %v1741_v63, %v1741_v63 }
  0x59   : > { %1962 = vmatpush3.bf16.msra.mxu1 %v2103_v4  ;;  %1943 = vmatprep.subr.bf16.mxu0 %v2158_v1  ;;  %v1289_v4 = vcombine.high %v1742_v0, %v1742_v0 }
  0x5a   : > { %1963 = vmatprep.subr.bf16.mxu1 %v2158_v1 }
  0x5b   : > { %v1305_v9 = vshll.u32 %v1289_v4, 16 }
  0x5c   : > { %1944 = vmatpush3.bf16.msra.mxu0 %v2104_v5  ;;  %v2130_v5 = vld [vmem:[%s2588_s1 + $0x160] sm:$0xff]  }
  0x5d   : > { %1964 = vmatpush3.bf16.msra.mxu1 %v2105_v7  ;;  %1945 = vmatprep.subr.bf16.mxu0 %v2158_v1  ;;  %v1296_v7 = vshll.u32 %v1281_v3, 16  ;;  %v1307_v12 = vsel %vm2489_vm15, %v1300_v8, %v1305_v9 }
  0x5e   : > { %1965 = vmatprep.subr.bf16.mxu1 %v2158_v1 }
  0x60   : > { %1946 = vmatpush3.bf16.msra.mxu0 %v2106_v11  ;;  %v1298_v11 = vsel %vm2489_vm15, %v1291_v6, %v1296_v7 }
  0x61   : > { %1966 = vmatpush3.bf16.msra.mxu1 %v2107_v14  ;;  %1947 = vmatprep.subr.bf16.mxu0 %v2158_v1  ;;  %v1325_v14 = vcombine.low %v1298_v11, %v1307_v12 }
  0x62   : > { %1967 = vmatprep.subr.bf16.mxu1 %v2158_v1 }
  0x64   : > { %1948 = vmatpush3.bf16.msra.mxu0 %v2108_v16  ;;  %v1332_v16 = vrot.slane %v1325_v14, %v2266_v22 }
  0x65   : > { %1968 = vmatpush3.bf16.msra.mxu1 %v2109_v18  ;;  %1973 = vmatprep.subr.bf16.mxu0 %v2158_v1 }
  0x66   : > { %1993 = vmatprep.subr.bf16.mxu1 %v2158_v1  ;;  %v1339_v18 = vrot.slane %v1332_v16, %v2266_v22 }
  0x67   : > { %1950 = vmatmul.mubr.bf16.vlgmr.msra.gmra.mrb[8].mxu0 %v734_v19 }
  0x68   : > { %1974 = vmatpush3.bf16.msra.mxu0 %v2110_v20  ;;  %1970 = vmatmul.mubr.bf16.vlgmr.msra.gmra.mrb[8].mxu1 %v863_v21 }
  0x69   : > { %1994 = vmatpush3.bf16.msra.mxu1 %v2111_v23  ;;  %1975 = vmatprep.subr.bf16.mxu0 %v2158_v1 }
  0x6a   : > { %1995 = vmatprep.subr.bf16.mxu1 %v2158_v1  ;;  %1989 = vmatprep.mubr.msk.bf16.mxu0 %vm2159_vm0, %v2158_v1 }
  0x6b   : > { %2009 = vmatprep.mubr.msk.bf16.mxu1 %vm2159_vm0, %v2158_v1 }
  0x6c   : > { %1976 = vmatpush3.bf16.msra.mxu0 %v2112_v24 }
  0x6d   : > { %1996 = vmatpush3.bf16.msra.mxu1 %v2113_v25  ;;  %1977 = vmatprep.subr.bf16.mxu0 %v2158_v1 }
  0x6e   : > { %1997 = vmatprep.subr.bf16.mxu1 %v2158_v1 }
  0x70   : > { %1978 = vmatpush3.bf16.msra.mxu0 %v2114_v26 }
  0x71   : > { %1998 = vmatpush3.bf16.msra.mxu1 %v2115_v28  ;;  %1979 = vmatprep.subr.bf16.mxu0 %v2158_v1 }
  0x72   : > { %1999 = vmatprep.subr.bf16.mxu1 %v2158_v1 }
  0x74   : > { %1980 = vmatpush3.bf16.msra.mxu0 %v2116_v31 }
  0x75   : > { %2000 = vmatpush3.bf16.msra.mxu1 %v2117_v34  ;;  %1981 = vmatprep.subr.bf16.mxu0 %v2158_v1 }
  0x76   : > { %2001 = vmatprep.subr.bf16.mxu1 %v2158_v1 }
  0x78   : > { %1982 = vmatpush3.bf16.msra.mxu0 %v2118_v36 }
  0x79   : > { %2002 = vmatpush3.bf16.msra.mxu1 %v2119_v41  ;;  %1983 = vmatprep.subr.bf16.mxu0 %v2158_v1 }
  0x7a   : > { %2003 = vmatprep.subr.bf16.mxu1 %v2158_v1 }
  0x7c   : > { %1984 = vmatpush3.bf16.msra.mxu0 %v2120_v45 }
  0x7d   : > { %2004 = vmatpush3.bf16.msra.mxu1 %v2121_v48  ;;  %1985 = vmatprep.subr.bf16.mxu0 %v2158_v1 }
  0x7e   : > { %2005 = vmatprep.subr.bf16.mxu1 %v2158_v1 }
  0x80   : > { %1986 = vmatpush3.bf16.msra.mxu0 %v2122_v51 }
  0x81   : > { %2006 = vmatpush3.bf16.msra.mxu1 %v2123_v53  ;;  %1987 = vmatprep.subr.bf16.mxu0 %v2158_v1 }
  0x82   : > { %2007 = vmatprep.subr.bf16.mxu1 %v2158_v1 }
  0x84   : > { %1988 = vmatpush3.bf16.msra.mxu0 %v2124_v55 }
  0x85   : > { %2008 = vmatpush3.bf16.msra.mxu1 %v2125_v57  ;;  %2013 = vmatprep.subr.bf16.mxu0 %v2158_v1  ;;  %v2161_v57 = vmov 1983009808  }
  0x87   : > { %1990 = vmatmul.mubr.bf16.vlgmr.msra.gmra.mrb[12].mxu0 %v1039_v58  ;;  %v1441_v58 = vunpack.c.l.s4 %v2161_v57 }
  0x88   : > { %2014 = vmatpush3.bf16.msra.mxu0 %v2126_v59  ;;  %2010 = vmatmul.mubr.bf16.vlgmr.msra.gmra.mrb[12].mxu1 %v1179_v60 }
  0x89   : > { %2015 = vmatprep.subr.bf16.mxu0 %v2158_v1  ;;  %2029 = vmatprep.mubr.msk.bf16.mxu0 %vm2159_vm0, %v2158_v1  ;;  %v1442_v59 = vunpack.c.0.s8 %v1441_v58 }
  0x8b   : > { %v1445_v3 = vsub.s32 %v1442_v59, %v2255_v13 }
  0x8c   : > { %2016 = vmatpush3.bf16.msra.mxu0 %v2127_v61  ;;  %v1769_v61 = vld [vmem:[%s2589_s2] ss:$0 sm:$0xff] }
  0x8d   : > { %2017 = vmatprep.subr.bf16.mxu0 %v2158_v1 }
  0x90   : > { %2018 = vmatpush3.bf16.msra.mxu0 %v2128_v62 }
  0x91   : > { %2019 = vmatprep.subr.bf16.mxu0 %v2158_v1 }
  0x94   : > { %2020 = vmatpush3.bf16.msra.mxu0 %v2129_v2 }
  0x95   : > { %2021 = vmatprep.subr.bf16.mxu0 %v2158_v1 }
  0x98   : > { %2022 = vmatpush3.bf16.msra.mxu0 %v2130_v5 }
  0x99   : > { %2023 = vmatprep.subr.bf16.mxu0 %v2158_v1 }
  0x9c   : > { %2024 = vmatpush3.bf16.msra.mxu0 %v2131_v10 }
  0x9d   : > { %2025 = vmatprep.subr.bf16.mxu0 %v2158_v1 }
  0xa0   : > { %2026 = vmatpush3.bf16.msra.mxu0 %v2132_v15 }
  0xa1   : > { %2027 = vmatprep.subr.bf16.mxu0 %v2158_v1 }
  0xa4   : > { %2028 = vmatpush3.bf16.msra.mxu0 %v2133_v17 }
  0xa7   : > { %2030 = vmatmul.mubr.bf16.vlgmr.msra.gmra.mrb[16].mxu0 %v1339_v18 }
  0xfa   : > { %v332_v19 = vpop.f32.mrb[0].mxu0 }
  0xfb   : > { %v1871_v20 = vpop.f32.mrb[1].mxu0  ;;  %v437_v21 = vpop.f32.mrb[0].mxu1 }
  0xfc   : > { %v438_v23 = vadd.f32 %v437_v21, %v332_v19  ;;  %v335_v24 = vpop.f32.mrb[2].mxu0  ;;  %v1891_v25 = vpop.f32.mrb[1].mxu1 }
  0xfd   : > { %v1872_v26 = vpop.f32.mrb[3].mxu0  ;;  %v440_v27 = vpop.f32.mrb[2].mxu1 }
  0xfe   : > { %v1892_v28 = vpop.f32.mrb[3].mxu1 }
 0x11a   : > { %v565_v29 = vpop.f32.mrb[4].mxu0 }
 0x11b   : > { %v571_v30 = vadd.f32 %v565_v29, %v438_v23  ;;  %v1911_v31 = vpop.f32.mrb[5].mxu0  ;;  %v695_v32 = vpop.f32.mrb[4].mxu1 }
 0x11c   : > { %v568_v33 = vpop.f32.mrb[6].mxu0  ;;  %v1931_v34 = vpop.f32.mrb[5].mxu1 }
 0x11d   : > { %v701_v1 = vadd.f32 %v695_v32, %v571_v30  ;;  %v1912_v35 = vpop.f32.mrb[7].mxu0  ;;  %v698_v22 = vpop.f32.mrb[6].mxu1 }
 0x11e   : > { %v1932_v36 = vpop.f32.mrb[7].mxu1 }
 0x13a   : > { %v818_v37 = vpop.f32.mrb[8].mxu0 }
 0x13b   : > { %v824_v38 = vadd.f32 %v818_v37, %v701_v1  ;;  %v1951_v39 = vpop.f32.mrb[9].mxu0  ;;  %v947_v40 = vpop.f32.mrb[8].mxu1 }
 0x13c   : > { %v821_v41 = vpop.f32.mrb[10].mxu0  ;;  %v1971_v42 = vpop.f32.mrb[9].mxu1 }
 0x13d   : > { %v953_v43 = vadd.f32 %v947_v40, %v824_v38  ;;  %v1952_v44 = vpop.f32.mrb[11].mxu0  ;;  %v950_v45 = vpop.f32.mrb[10].mxu1 }
 0x13e   : > { %v1972_v46 = vpop.f32.mrb[11].mxu1 }
 0x15a   : > { %v1123_v47 = vpop.f32.mrb[12].mxu0 }
 0x15b   : > { %v1129_v48 = vadd.f32 %v1123_v47, %v953_v43  ;;  %v1991_v49 = vpop.f32.mrb[13].mxu0  ;;  %v1263_v50 = vpop.f32.mrb[12].mxu1 }
 0x15c   : > { %v1126_v51 = vpop.f32.mrb[14].mxu0  ;;  %v2011_v52 = vpop.f32.mrb[13].mxu1 }
 0x15d   : > { %v1269_v53 = vadd.f32 %v1263_v50, %v1129_v48  ;;  %v1992_v54 = vpop.f32.mrb[15].mxu0  ;;  %v1266_v55 = vpop.f32.mrb[14].mxu1 }
 0x15e   : > { %v2012_v56 = vpop.f32.mrb[15].mxu1 }
 0x17a   : > { %v1423_v60 = vpop.f32.mrb[16].mxu0 }
 0x17b   : > { %v1429_v62 = vadd.f32 %v1423_v60, %v1269_v53  ;;  %v2031_v63 = vpop.f32.mrb[17].mxu0 }
 0x17c   : > { %v1426_v0 = vpop.f32.mrb[18].mxu0 }
 0x17d   : > { %v1437_v2 = vadd.f32 %v1769_v61, %v1429_v62  ;;  %v2032_v4 = vpop.f32.mrb[19].mxu0 }
 0x17f   : > { %v1438_v5 = vmax.f32 %v1437_v2, 0.0 }
 0x181   : > { %v1446_v6 = vrot.slane %v1438_v5, %v1445_v3 }
 0x183   : > { %v1447_v7 = vcombine.high %v1446_v6, %v1446_v6  ;;  %v1450_v8 = vpack.c.bf16 %v1446_v6, %v1446_v6 }
 0x185   : > { %v1451_v9 = vpack.c.bf16 %v1447_v7, %v1447_v7  ;;  %1452 = vst [vmem:[%s190_s8] sm:$0x1] %v1450_v8 }
 0x187   : > { %1453 = vst [vmem:[%s190_s8 + $0x1] sm:$0x1] %v1451_v9 }
 0x188 PF: > { %s13_s14 = sadd.s32 1, %s2156_s14   ;;  %s2593_s12 = smov %s2152_s13 }
 0x189   : > { %p10_p5 = scmp.ge.s32.totalorder %s13_s14, 6   ;;  %s2594_s13 = smov %s2596_s15 }
 0x18b   :  { %12 = sbr.rel (!%p10_p5) target bundleno = 2 (0x2), region = 74 }

// kernel: resnet_loss.39
= control target key start
LH: loop header
LB: loop body
LE: loop exit
PB: predicated region body
PF: predicated region fallthrough
CT: control target
= control target key end

     0   :  { %s495_s12 = smov 0   ;;  %s497_s13 = smov 0   ;;  %s559_s0 = inlined_call_operand.vmem [shape: bf16[4,1,128], index: 0, kind: input, shape index: {}]   ;;  %s560_s1 = inlined_call_operand.vmem [shape: bf16[128,128], index: 1, kind: input, shape index: {}]   ;;  %s561_s2 = inlined_call_operand.vmem [shape: f32[1,128], index: 2, kind: input, shape index: {}]   ;;  %s562_s3 = inlined_call_operand.vmem [shape: bf16[4,1,128], index: 3, kind: output, shape index: {}]  }
   0x1   :  { %s499_s14 = smov 0  }
   0x2 LB: > { %s25_s15 = sadd.s32 1, %s467_s13  ;;  %p375_p0 = scmp.ge.s32.totalorder %s471_s14, 1  ;;  %s471_s14 = sphi %s499_s14, %s13_s14   ;;  %s467_s13 = sphi %s497_s13, %s564_s13   ;;  %s463_s12 = sphi %s495_s12, %s563_s12  }
   0x3   : > { %p27_p1 = scmp.ge.s32.totalorder %s25_s15, 4  ;;  %p154_p2 = scmp.lt.s32.totalorder %s471_s14, 5 }
   0x5   : > { %s566_s15 = smov (%p27_p1, %s25_s15), 0  ;;  %p155_p3 = pnand %p375_p0, %p154_p2 }
   0x6   : > { %v441_v0 = vld [vmem:[%s560_s1] sm:$0xff] (!%p155_p3)   ;;  %v473_v1 = vmov (!%p155_p3), 0.0   ;;  %v442_v2 = vld [vmem:[%s560_s1 + $0x8] sm:$0xff] (!%p155_p3)   ;;  %vm474_vm0 = vmmov (!%p155_p3), 0   ;;  %v443_v3 = vld [vmem:[%s560_s1 + $0x10] sm:$0xff] (!%p155_p3)   ;;  %p180_p4 = scmp.lt.s32.totalorder (!%p155_p3), %s463_s12, 3 }
   0x7   : > { %158 = sbr.rel (%p155_p3) target bundleno = 257 (0x101), region = 32  ;;  %395 = vmatprep.subr.bf16.mxu0 (!%p155_p3), %v473_v1  ;;  %411 = vmatprep.mubr.msk.bf16.mxu0 (!%p155_p3), %vm474_vm0, %v473_v1  ;;  %v444_v4 = vld [vmem:[%s560_s1 + $0x18] sm:$0xff] (!%p155_p3)   ;;  %v445_v5 = vld [vmem:[%s560_s1 + $0x20] sm:$0xff] (!%p155_p3)   ;;  %v446_v6 = vld [vmem:[%s560_s1 + $0x28] sm:$0xff] (!%p155_p3)   ;;  %vm300_vm1 = vcmask (!%p155_p3), 1040384  }
   0x8   : > { %396 = vmatpush3.bf16.msra.mxu0 (!%p155_p3), %v441_v0  ;;  %v447_v7 = vld [vmem:[%s560_s1 + $0x30] sm:$0xff] (!%p155_p3)   ;;  %v448_v8 = vld [vmem:[%s560_s1 + $0x38] sm:$0xff] (!%p155_p3)   ;;  %v210_v10 = vld [vmem:[%s561_s2] sm:$0x1] (!%p155_p3)  ;;  %vm301_vm2 = vsmask.f32 (!%p155_p3), 256 }
   0x9   : > { %397 = vmatprep.subr.bf16.mxu0 (!%p155_p3), %v473_v1  ;;  %vm302_vm3 = vmand (!%p155_p3), %vm300_vm1, %vm301_vm2 }
   0xc   : > { %398 = vmatpush3.bf16.msra.mxu0 (!%p155_p3), %v442_v2 }
   0xd   : > { %399 = vmatprep.subr.bf16.mxu0 (!%p155_p3), %v473_v1 }
   0xe   : > { %s568_s12 = smov (!%p180_p4, %s463_s12), 3 }
   0xf   : > { %s185_s7 = scalar_lea.vmem %s559_s0, %s568_s12  ;;  %s191_s16 = scalar_lea.vmem %s562_s3, %s568_s12 }
  0x10   : > { %400 = vmatpush3.bf16.msra.mxu0 %v443_v3  ;;  %v193_v9 = vld [vmem:[%s185_s7] sm:$0x1] }
  0x11   : > { %401 = vmatprep.subr.bf16.mxu0 %v473_v1  ;;  %v303_v14 = vld [vmem:[%s191_s16] sm:$0x1] }
  0x14   : > { %402 = vmatpush3.bf16.msra.mxu0 %v444_v4 }
  0x15   : > { %403 = vmatprep.subr.bf16.mxu0 %v473_v1 }
  0x18   : > { %404 = vmatpush3.bf16.msra.mxu0 %v445_v5 }
  0x19   : > { %405 = vmatprep.subr.bf16.mxu0 %v473_v1 }
  0x1c   : > { %406 = vmatpush3.bf16.msra.mxu0 %v446_v6 }
  0x1d   : > { %407 = vmatprep.subr.bf16.mxu0 %v473_v1 }
  0x20   : > { %408 = vmatpush3.bf16.msra.mxu0 %v447_v7 }
  0x21   : > { %409 = vmatprep.subr.bf16.mxu0 %v473_v1 }
  0x24   : > { %410 = vmatpush3.bf16.msra.mxu0 %v448_v8 }
  0x27   : > { %412 = vmatmul.mubr.bf16.vlgmr.msra.gmra.mrb[0].mxu0 %v193_v9 }
  0xfa   : > { %v293_v11 = vpop.f32.mrb[0].mxu0 }
  0xfb   : > { %v294_v12 = vadd.f32 %v293_v11, %v210_v10  ;;  %v413_v13 = vpop.f32.mrb[1].mxu0 }
  0xfc   : > { %v296_v15 = vpop.f32.mrb[2].mxu0 }
  0xfd   : > { %v299_v16 = vpack.c.bf16 %v294_v12, %v294_v12  ;;  %v414_v17 = vpop.f32.mrb[3].mxu0 }
  0xff   : > { %v304_v18 = vsel %vm302_vm3, %v299_v16, %v303_v14 }
 0x100   : > { %305 = vst [vmem:[%s191_s16] sm:$0x1] %v304_v18 }
 0x101 PF: > { %s13_s14 = sadd.s32 1, %s471_s14   ;;  %s563_s12 = smov %s467_s13 }
 0x102   : > { %p10_p5 = scmp.ge.s32.totalorder %s13_s14, 6   ;;  %s564_s13 = smov %s566_s15 }
 0x104   :  { %12 = sbr.rel (!%p10_p5) target bundleno = 2 (0x2), region = 62 }

// kernel: resnet_loss.40
= control target key start
LH: loop header
LB: loop body
LE: loop exit
PB: predicated region body
PF: predicated region fallthrough
CT: control target
= control target key end

     0   :  { %s568_s15 = smov 0   ;;  %s570_s16 = smov 0   ;;  %s635_s0 = inlined_call_operand.vmem [shape: bf16[4,1,128], index: 0, kind: input, shape index: {}]   ;;  %s636_s1 = inlined_call_operand.vmem [shape: bf16[128,128], index: 1, kind: input, shape index: {}]   ;;  %s637_s2 = inlined_call_operand.vmem [shape: f32[1,128], index: 2, kind: input, shape index: {}]   ;;  %s638_s3 = inlined_call_operand.vmem [shape: bf16[4,1,128], index: 3, kind: input, shape index: {}]   ;;  %s639_s4 = inlined_call_operand.vmem [shape: bf16[4,1,128], index: 4, kind: output, shape index: {}]  }
   0x1   :  { %s572_s17 = smov 0  }
   0x2 LB: > { %s26_s18 = sadd.s32 1, %s535_s16  ;;  %p443_p0 = scmp.ge.s32.totalorder %s539_s17, 1  ;;  %s539_s17 = sphi %s572_s17, %s14_s17   ;;  %s535_s16 = sphi %s570_s16, %s641_s16   ;;  %s531_s15 = sphi %s568_s15, %s640_s15  }
   0x3   : > { %p28_p1 = scmp.ge.s32.totalorder %s26_s18, 4  ;;  %p192_p2 = scmp.lt.s32.totalorder %s539_s17, 5 }
   0x5   : > { %s643_s18 = smov (%p28_p1, %s26_s18), 0  ;;  %p193_p3 = pnand %p443_p0, %p192_p2 }
   0x6   : > { %v509_v0 = vld [vmem:[%s636_s1] sm:$0xff] (!%p193_p3)   ;;  %v541_v1 = vmov (!%p193_p3), 0.0   ;;  %v510_v2 = vld [vmem:[%s636_s1 + $0x8] sm:$0xff] (!%p193_p3)   ;;  %vm542_vm0 = vmmov (!%p193_p3), 0   ;;  %v511_v3 = vld [vmem:[%s636_s1 + $0x10] sm:$0xff] (!%p193_p3)   ;;  %p226_p4 = scmp.lt.s32.totalorder (!%p193_p3), %s531_s15, 3 }
   0x7   : > { %196 = sbr.rel (%p193_p3) target bundleno = 261 (0x105), region = 36  ;;  %463 = vmatprep.subr.bf16.mxu0 (!%p193_p3), %v541_v1  ;;  %479 = vmatprep.mubr.msk.bf16.mxu0 (!%p193_p3), %vm542_vm0, %v541_v1  ;;  %v512_v4 = vld [vmem:[%s636_s1 + $0x18] sm:$0xff] (!%p193_p3)   ;;  %v513_v5 = vld [vmem:[%s636_s1 + $0x20] sm:$0xff] (!%p193_p3)   ;;  %v514_v6 = vld [vmem:[%s636_s1 + $0x28] sm:$0xff] (!%p193_p3)   ;;  %vm356_vm1 = vcmask (!%p193_p3), 1040384  }
   0x8   : > { %464 = vmatpush3.bf16.msra.mxu0 (!%p193_p3), %v509_v0  ;;  %v515_v7 = vld [vmem:[%s636_s1 + $0x30] sm:$0xff] (!%p193_p3)   ;;  %v516_v8 = vld [vmem:[%s636_s1 + $0x38] sm:$0xff] (!%p193_p3)   ;;  %v262_v11 = vld [vmem:[%s637_s2] sm:$0x1] (!%p193_p3)  ;;  %vm357_vm2 = vsmask.f32 (!%p193_p3), 256 }
   0x9   : > { %465 = vmatprep.subr.bf16.mxu0 (!%p193_p3), %v541_v1  ;;  %vm358_vm3 = vmand (!%p193_p3), %vm356_vm1, %vm357_vm2 }
   0xc   : > { %466 = vmatpush3.bf16.msra.mxu0 (!%p193_p3), %v510_v2 }
   0xd   : > { %467 = vmatprep.subr.bf16.mxu0 (!%p193_p3), %v541_v1 }
   0xe   : > { %s645_s15 = smov (!%p226_p4, %s531_s15), 3 }
   0xf   : > { %s231_s11 = scalar_lea.vmem %s635_s0, %s645_s15  ;;  %s237_s14 = scalar_lea.vmem %s638_s3, %s645_s15 }
  0x10   : > { %468 = vmatpush3.bf16.msra.mxu0 %v511_v3  ;;  %v245_v9 = vld [vmem:[%s231_s11] sm:$0x1]  ;;  %s243_s23 = scalar_lea.vmem %s639_s4, %s645_s15 }
  0x11   : > { %469 = vmatprep.subr.bf16.mxu0 %v541_v1  ;;  %v351_v10 = vld [vmem:[%s237_s14] sm:$0x1] }
  0x12   : > { %v352_v12 = vunpack.c.l.bf16 %v351_v10  ;;  %v359_v20 = vld [vmem:[%s243_s23] sm:$0x1] }
  0x14   : > { %470 = vmatpush3.bf16.msra.mxu0 %v512_v4 }
  0x15   : > { %471 = vmatprep.subr.bf16.mxu0 %v541_v1 }
  0x18   : > { %472 = vmatpush3.bf16.msra.mxu0 %v513_v5 }
  0x19   : > { %473 = vmatprep.subr.bf16.mxu0 %v541_v1 }
  0x1c   : > { %474 = vmatpush3.bf16.msra.mxu0 %v514_v6 }
  0x1d   : > { %475 = vmatprep.subr.bf16.mxu0 %v541_v1 }
  0x20   : > { %476 = vmatpush3.bf16.msra.mxu0 %v515_v7 }
  0x21   : > { %477 = vmatprep.subr.bf16.mxu0 %v541_v1 }
  0x24   : > { %478 = vmatpush3.bf16.msra.mxu0 %v516_v8 }
  0x27   : > { %480 = vmatmul.mubr.bf16.vlgmr.msra.gmra.mrb[0].mxu0 %v245_v9 }
  0xfa   : > { %v345_v13 = vpop.f32.mrb[0].mxu0 }
  0xfb   : > { %v346_v14 = vadd.f32 %v345_v13, %v262_v11  ;;  %v481_v15 = vpop.f32.mrb[1].mxu0 }
  0xfc   : > { %v348_v16 = vpop.f32.mrb[2].mxu0 }
  0xfd   : > { %v353_v17 = vadd.f32 %v352_v12, %v346_v14  ;;  %v482_v18 = vpop.f32.mrb[3].mxu0 }
  0xff   : > { %v354_v19 = vmax.f32 %v353_v17, 0.0 }
 0x101   : > { %v355_v21 = vpack.c.bf16 %v354_v19, %v354_v19 }
 0x103   : > { %v360_v22 = vsel %vm358_vm3, %v355_v21, %v359_v20 }
 0x104   : > { %361 = vst [vmem:[%s243_s23] sm:$0x1] %v360_v22 }
 0x105 PF: > { %s14_s17 = sadd.s32 1, %s539_s17   ;;  %s640_s15 = smov %s535_s16 }
 0x106   : > { %p11_p5 = scmp.ge.s32.totalorder %s14_s17, 6   ;;  %s641_s16 = smov %s643_s18 }
 0x108   :  { %13 = sbr.rel (!%p11_p5) target bundleno = 2 (0x2), region = 69 }

// kernel: resnet_loss.38
= control target key start
LH: loop header
LB: loop body
LE: loop exit
PB: predicated region body
PF: predicated region fallthrough
CT: control target
= control target key end

     0   :  { %s1910_s12 = smov 0   ;;  %s1912_s13 = smov 0   ;;  %s2277_s0 = inlined_call_operand.vmem [shape: bf16[4,4,2,2,128], index: 0, kind: input, shape index: {}]   ;;  %s2278_s1 = inlined_call_operand.vmem [shape: bf16[3,3,128,128], index: 1, kind: input, shape index: {}]   ;;  %s2279_s2 = inlined_call_operand.vmem [shape: f32[1,128], index: 2, kind: input, shape index: {}]   ;;  %s2280_s3 = inlined_call_operand.vmem [shape: bf16[4,1,1,128], index: 3, kind: output, shape index: {}]  }
   0x1   :  { %s1914_s14 = smov 0  }
   0x2 LB: > { %s25_s15 = sadd.s32 1, %s1881_s13  ;;  %p1293_p0 = scmp.ge.s32.totalorder %s1885_s14, 1  ;;  %s1885_s14 = sphi %s1914_s14, %s13_s14   ;;  %s1881_s13 = sphi %s1912_s13, %s2282_s13   ;;  %s1877_s12 = sphi %s1910_s12, %s2281_s12  }
   0x3   : > { %p27_p1 = scmp.ge.s32.totalorder %s25_s15, 4  ;;  %p150_p2 = scmp.lt.s32.totalorder %s1885_s14, 5 }
   0x5   : > { %s2284_s15 = smov (%p27_p1, %s25_s15), 0  ;;  %p151_p3 = pnand %p1293_p0, %p150_p2 }
   0x6   : > { %v1791_v0 = vld [vmem:[%s2278_s1 + $0x180] sm:$0xff] (!%p151_p3)   ;;  %v1887_v1 = vmov (!%p151_p3), 0.0   ;;  %v1793_v3 = vld [vmem:[%s2278_s1 + $0x188] sm:$0xff] (!%p151_p3)   ;;  %vm1888_vm0 = vmmov (!%p151_p3), 0   ;;  %v1795_v5 = vld [vmem:[%s2278_s1 + $0x190] sm:$0xff] (!%p151_p3)   ;;  %p174_p4 = scmp.lt.s32.totalorder (!%p151_p3), %s1877_s12, 3  ;;  %v852_v63 = vlaneseq (!%p151_p3) }
   0x7   : > { %154 = sbr.rel (%p151_p3) target bundleno = 389 (0x185), region = 32  ;;  %1584 = vmatprep.subr.bf16.mxu0 (!%p151_p3), %v1887_v1  ;;  %1604 = vmatprep.subr.bf16.mxu1 (!%p151_p3), %v1887_v1  ;;  %v1792_v2 = vld [vmem:[%s2278_s1] sm:$0xff] (!%p151_p3)   ;;  %v1794_v4 = vld [vmem:[%s2278_s1 + $0x8] sm:$0xff] (!%p151_p3)   ;;  %v1796_v6 = vld [vmem:[%s2278_s1 + $0x10] sm:$0xff] (!%p151_p3)   ;;  %v1889_v61 = vmov (!%p151_p3), 1966171168  }
   0x8   : > { %1585 = vmatpush3.bf16.msra.mxu0 (!%p151_p3), %v1791_v0  ;;  %1600 = vmatprep.mubr.msk.bf16.mxu0 (!%p151_p3), %vm1888_vm0, %v1887_v1  ;;  %v1797_v7 = vld [vmem:[%s2278_s1 + $0x198] sm:$0xff] (!%p151_p3)   ;;  %v1799_v9 = vld [vmem:[%s2278_s1 + $0x1a0] sm:$0xff] (!%p151_p3)   ;;  %v1801_v11 = vld [vmem:[%s2278_s1 + $0x1a8] sm:$0xff] (!%p151_p3)   ;;  %v850_v62 = vunpack.c.l.s4 (!%p151_p3), %v1889_v61  ;;  %vm1211_vm1 = vcmask (!%p151_p3), 1040384   ;;  %vm1212_vm2 = vsmask.f32 (!%p151_p3), 256 }
   0x9   : > { %1605 = vmatpush3.bf16.msra.mxu1 (!%p151_p3), %v1792_v2  ;;  %1586 = vmatprep.subr.bf16.mxu0 (!%p151_p3), %v1887_v1  ;;  %v1798_v8 = vld [vmem:[%s2278_s1 + $0x18] sm:$0xff] (!%p151_p3)   ;;  %v1800_v10 = vld [vmem:[%s2278_s1 + $0x20] sm:$0xff] (!%p151_p3)   ;;  %v1802_v12 = vld [vmem:[%s2278_s1 + $0x28] sm:$0xff] (!%p151_p3)  }
   0xa   : > { %1606 = vmatprep.subr.bf16.mxu1 (!%p151_p3), %v1887_v1  ;;  %1620 = vmatprep.mubr.msk.bf16.mxu1 (!%p151_p3), %vm1888_vm0, %v1887_v1  ;;  %v1803_v13 = vld [vmem:[%s2278_s1 + $0x1b0] sm:$0xff] (!%p151_p3)   ;;  %v1805_v15 = vld [vmem:[%s2278_s1 + $0x1b8] sm:$0xff] (!%p151_p3)   ;;  %v1807_v19 = vld [vmem:[%s2278_s1 + $0xc0] sm:$0xff] (!%p151_p3)  }
   0xb   : > { %v1804_v14 = vld [vmem:[%s2278_s1 + $0x30] sm:$0xff] (!%p151_p3)   ;;  %v1806_v16 = vld [vmem:[%s2278_s1 + $0x38] sm:$0xff] (!%p151_p3)   ;;  %v1808_v20 = vld [vmem:[%s2278_s1 + $0x40] sm:$0xff] (!%p151_p3)  }
   0xc   : > { %1587 = vmatpush3.bf16.msra.mxu0 (!%p151_p3), %v1793_v3  ;;  %v1809_v21 = vld [vmem:[%s2278_s1 + $0xc8] sm:$0xff] (!%p151_p3)   ;;  %v1811_v23 = vld [vmem:[%s2278_s1 + $0xd0] sm:$0xff] (!%p151_p3)   ;;  %v1813_v25 = vld [vmem:[%s2278_s1 + $0xd8] sm:$0xff] (!%p151_p3)   ;;  %v851_v3 = vunpack.c.0.s8 (!%p151_p3), %v850_v62 }
   0xd   : > { %1607 = vmatpush3.bf16.msra.mxu1 (!%p151_p3), %v1794_v4  ;;  %1588 = vmatprep.subr.bf16.mxu0 (!%p151_p3), %v1887_v1  ;;  %v1810_v22 = vld [vmem:[%s2278_s1 + $0x48] sm:$0xff] (!%p151_p3)   ;;  %v1812_v24 = vld [vmem:[%s2278_s1 + $0x50] sm:$0xff] (!%p151_p3)   ;;  %v1814_v26 = vld [vmem:[%s2278_s1 + $0x58] sm:$0xff] (!%p151_p3)   ;;  %v853_v4 = vshrl.u32 (!%p151_p3), %v852_v63, 7 }
   0xe   : > { %1608 = vmatprep.subr.bf16.mxu1 %v1887_v1  ;;  %s2286_s12 = smov (!%p174_p4, %s1877_s12), 3  ;;  %v1815_v27 = vld [vmem:[%s2278_s1 + $0xe0] sm:$0xff]   ;;  %v1817_v29 = vld [vmem:[%s2278_s1 + $0xe8] sm:$0xff]   ;;  %v1819_v31 = vld [vmem:[%s2278_s1 + $0xf0] sm:$0xff]  }
   0xf   : > { %s1294_s19 = sshll.u32 %s2286_s12, 3  ;;  %v1816_v28 = vld [vmem:[%s2278_s1 + $0x60] sm:$0xff]   ;;  %v1818_v30 = vld [vmem:[%s2278_s1 + $0x68] sm:$0xff]   ;;  %v1820_v32 = vld [vmem:[%s2278_s1 + $0x70] sm:$0xff]   ;;  %s183_s7 = scalar_lea.vmem %s2280_s3, %s2286_s12 }
  0x10   : > { %1589 = vmatpush3.bf16.msra.mxu0 %v1795_v5  ;;  %s1998_s24 = scalar_lea.vmem %s2277_s0, %s1294_s19  ;;  %v1821_v33 = vld [vmem:[%s2278_s1 + $0xf8] sm:$0xff]   ;;  %v1823_v36 = vld [vmem:[%s2278_s1 + $0x1c0] sm:$0xff]   ;;  %v1825_v39 = vld [vmem:[%s2278_s1 + $0x1c8] sm:$0xff]  }
  0x11   : > { %1609 = vmatpush3.bf16.msra.mxu1 %v1796_v6  ;;  %1590 = vmatprep.subr.bf16.mxu0 %v1887_v1  ;;  %v2009_v17 = vld [vmem:[%s1998_s24 + $0x1] sm:$0x1]  ;;  %v2012_v18 = vld [vmem:[%s1998_s24] sm:$0x1]  ;;  %v1822_v34 = vld [vmem:[%s2278_s1 + $0x78] sm:$0xff]  }
  0x12   : > { %1610 = vmatprep.subr.bf16.mxu1 %v1887_v1  ;;  %v1327_v35 = vld [vmem:[%s1998_s24 + $0x4] sm:$0x1]  ;;  %v1352_v37 = vld [vmem:[%s1998_s24 + $0x2] sm:$0x1]  ;;  %v1826_v40 = vld [vmem:[%s2278_s1 + $0x108] sm:$0xff]  }
  0x13   : > { %v1824_v38 = vld [vmem:[%s2278_s1 + $0x100] sm:$0xff]   ;;  %v1827_v41 = vld [vmem:[%s2278_s1 + $0x1d0] sm:$0xff]   ;;  %v1829_v43 = vld [vmem:[%s2278_s1 + $0x1d8] sm:$0xff]  }
  0x14   : > { %1591 = vmatpush3.bf16.msra.mxu0 %v1797_v7  ;;  %v1828_v42 = vld [vmem:[%s2278_s1 + $0x110] sm:$0xff]   ;;  %v1830_v44 = vld [vmem:[%s2278_s1 + $0x118] sm:$0xff]   ;;  %v1831_v45 = vld [vmem:[%s2278_s1 + $0x1e0] sm:$0xff]   ;;  %v854_v7 = vsub.s32 %v851_v3, %v853_v4 }
  0x15   : > { %1611 = vmatpush3.bf16.msra.mxu1 %v1798_v8  ;;  %1592 = vmatprep.subr.bf16.mxu0 %v1887_v1  ;;  %v1832_v46 = vld [vmem:[%s2278_s1 + $0x120] sm:$0xff]   ;;  %v1833_v47 = vld [vmem:[%s2278_s1 + $0x1e8] sm:$0xff]   ;;  %v1835_v49 = vld [vmem:[%s2278_s1 + $0x1f0] sm:$0xff]  }
  0x16   : > { %1612 = vmatprep.subr.bf16.mxu1 %v1887_v1  ;;  %v1834_v48 = vld [vmem:[%s2278_s1 + $0x128] sm:$0xff]   ;;  %v1836_v50 = vld [vmem:[%s2278_s1 + $0x130] sm:$0xff]   ;;  %v1837_v51 = vld [vmem:[%s2278_s1 + $0x1f8] sm:$0xff]  }
  0x17   : > { %v1838_v52 = vld [vmem:[%s2278_s1 + $0x138] sm:$0xff]   ;;  %v1353_v53 = vld [vmem:[%s1998_s24 + $0x3] sm:$0x1]  ;;  %v1402_v55 = vld [vmem:[%s1998_s24 + $0x6] sm:$0x1] }
  0x18   : > { %1593 = vmatpush3.bf16.msra.mxu0 %v1799_v9  ;;  %v1839_v54 = vld [vmem:[%s2278_s1 + $0x80] sm:$0xff]   ;;  %v1841_v57 = vld [vmem:[%s2278_s1 + $0x88] sm:$0xff]   ;;  %v1843_v59 = vld [vmem:[%s2278_s1 + $0x90] sm:$0xff]  }
  0x19   : > { %1613 = vmatpush3.bf16.msra.mxu1 %v1800_v10  ;;  %1594 = vmatprep.subr.bf16.mxu0 %v1887_v1  ;;  %v1840_v56 = vld [vmem:[%s2278_s1 + $0x200] sm:$0xff]   ;;  %v1842_v58 = vld [vmem:[%s2278_s1 + $0x208] sm:$0xff]   ;;  %v1844_v60 = vld [vmem:[%s2278_s1 + $0x210] sm:$0xff]   ;;  %v855_v10 = vrot.slane %v2012_v18, %v854_v7 }
  0x1a   : > { %1614 = vmatprep.subr.bf16.mxu1 %v1887_v1  ;;  %v1845_v0 = vld [vmem:[%s2278_s1 + $0x98] sm:$0xff]   ;;  %v1847_v5 = vld [vmem:[%s2278_s1 + $0xa0] sm:$0xff]   ;;  %v1849_v8 = vld [vmem:[%s2278_s1 + $0xa8] sm:$0xff]  }
  0x1b   : > { %v1846_v2 = vld [vmem:[%s2278_s1 + $0x218] sm:$0xff]   ;;  %v1848_v6 = vld [vmem:[%s2278_s1 + $0x220] sm:$0xff]   ;;  %v1850_v9 = vld [vmem:[%s2278_s1 + $0x228] sm:$0xff]  }
  0x1c   : > { %1595 = vmatpush3.bf16.msra.mxu0 %v1801_v11  ;;  %v980_v11 = vrot.slane %v2009_v17, %v854_v7  ;;  %vm1213_vm3 = vmand %vm1211_vm1, %vm1212_vm2 }
  0x1d   : > { %1615 = vmatpush3.bf16.msra.mxu1 %v1802_v12  ;;  %1596 = vmatprep.subr.bf16.mxu0 %v1887_v1  ;;  %v1851_v12 = vld [vmem:[%s2278_s1 + $0xb0] sm:$0xff]  }
  0x1e   : > { %1616 = vmatprep.subr.bf16.mxu1 %v1887_v1 }
  0x20   : > { %1597 = vmatpush3.bf16.msra.mxu0 %v1803_v13  ;;  %v1852_v13 = vld [vmem:[%s2278_s1 + $0x230] sm:$0xff]  }
  0x21   : > { %1617 = vmatpush3.bf16.msra.mxu1 %v1804_v14  ;;  %1598 = vmatprep.subr.bf16.mxu0 %v1887_v1  ;;  %v862_v14 = vrot.slane %v855_v10, %v854_v7 }
  0x22   : > { %1618 = vmatprep.subr.bf16.mxu1 %v1887_v1 }
  0x24   : > { %1599 = vmatpush3.bf16.msra.mxu0 %v1805_v15  ;;  %v987_v15 = vrot.slane %v980_v11, %v854_v7 }
  0x25   : > { %1619 = vmatpush3.bf16.msra.mxu1 %v1806_v16  ;;  %1624 = vmatprep.subr.bf16.mxu0 %v1887_v1  ;;  %v1853_v16 = vld [vmem:[%s2278_s1 + $0xb8] sm:$0xff]  }
  0x26   : > { %1644 = vmatprep.subr.bf16.mxu1 %v1887_v1 }
  0x27   : > { %1601 = vmatmul.mubr.bf16.vlgmr.msra.gmra.mrb[0].mxu0 %v2009_v17  ;;  %v1854_v17 = vld [vmem:[%s2278_s1 + $0x238] sm:$0xff]  }
  0x28   : > { %1621 = vmatmul.mubr.bf16.vlgmr.msra.gmra.mrb[0].mxu1 %v2012_v18  ;;  %1625 = vmatpush3.bf16.msra.mxu0 %v1807_v19  ;;  %v864_v18 = vshrl.u32 %v862_v14, 16  ;;  %v989_v19 = vshrl.u32 %v987_v15, 16  ;;  %v1214_v14 = vld [vmem:[%s183_s7] sm:$0x1] }
  0x29   : > { %1645 = vmatpush3.bf16.msra.mxu1 %v1808_v20  ;;  %1626 = vmatprep.subr.bf16.mxu0 %v1887_v1  ;;  %v1855_v20 = vld [vmem:[%s2278_s1 + $0x140] sm:$0xff]  }
  0x2a   : > { %1646 = vmatprep.subr.bf16.mxu1 %v1887_v1  ;;  %1640 = vmatprep.mubr.msk.bf16.mxu0 %vm1888_vm0, %v1887_v1 }
  0x2b   : > { %1660 = vmatprep.mubr.msk.bf16.mxu1 %vm1888_vm0, %v1887_v1 }
  0x2c   : > { %1627 = vmatpush3.bf16.msra.mxu0 %v1809_v21  ;;  %v1856_v21 = vld [vmem:[%s2278_s1 + $0x148] sm:$0xff]  }
  0x2d   : > { %1647 = vmatpush3.bf16.msra.mxu1 %v1810_v22  ;;  %1628 = vmatprep.subr.bf16.mxu0 %v1887_v1  ;;  %v1857_v22 = vld [vmem:[%s2278_s1 + $0x150] sm:$0xff]  }
  0x2e   : > { %1648 = vmatprep.subr.bf16.mxu1 %v1887_v1 }
  0x30   : > { %1629 = vmatpush3.bf16.msra.mxu0 %v1811_v23  ;;  %v1858_v23 = vld [vmem:[%s2278_s1 + $0x158] sm:$0xff]  }
  0x31   : > { %1649 = vmatpush3.bf16.msra.mxu1 %v1812_v24  ;;  %1630 = vmatprep.subr.bf16.mxu0 %v1887_v1  ;;  %v1859_v24 = vld [vmem:[%s2278_s1 + $0x160] sm:$0xff]  }
  0x32   : > { %1650 = vmatprep.subr.bf16.mxu1 %v1887_v1 }
  0x34   : > { %1631 = vmatpush3.bf16.msra.mxu0 %v1813_v25  ;;  %v1860_v25 = vld [vmem:[%s2278_s1 + $0x168] sm:$0xff]  }
  0x35   : > { %1651 = vmatpush3.bf16.msra.mxu1 %v1814_v26  ;;  %1632 = vmatprep.subr.bf16.mxu0 %v1887_v1  ;;  %v1861_v26 = vld [vmem:[%s2278_s1 + $0x170] sm:$0xff]  }
  0x36   : > { %1652 = vmatprep.subr.bf16.mxu1 %v1887_v1 }
  0x38   : > { %1633 = vmatpush3.bf16.msra.mxu0 %v1815_v27  ;;  %v1492_v27 = vld.sshfl [vmem:[%s1998_s24 + $0x4] sm:$0x1 pattern:$0x75316420] }
  0x39   : > { %1653 = vmatpush3.bf16.msra.mxu1 %v1816_v28  ;;  %1634 = vmatprep.subr.bf16.mxu0 %v1887_v1  ;;  %v1113_v28 = vrot.slane %v1492_v27, %v854_v7  ;;  %v1207_v7 = vld [vmem:[%s2279_s2] sm:$0x1] }
  0x3a   : > { %1654 = vmatprep.subr.bf16.mxu1 %v1887_v1 }
  0x3c   : > { %1635 = vmatpush3.bf16.msra.mxu0 %v1817_v29  ;;  %v1862_v29 = vld [vmem:[%s2278_s1 + $0x178] sm:$0xff]  }
  0x3d   : > { %1655 = vmatpush3.bf16.msra.mxu1 %v1818_v30  ;;  %1636 = vmatprep.subr.bf16.mxu0 %v1887_v1  ;;  %v1115_v30 = vshrl.u32 %v1113_v28, 16 }
  0x3e   : > { %1656 = vmatprep.subr.bf16.mxu1 %v1887_v1 }
  0x40   : > { %1637 = vmatpush3.bf16.msra.mxu0 %v1819_v31 }
  0x41   : > { %1657 = vmatpush3.bf16.msra.mxu1 %v1820_v32  ;;  %1638 = vmatprep.subr.bf16.mxu0 %v1887_v1 }
  0x42   : > { %1658 = vmatprep.subr.bf16.mxu1 %v1887_v1 }
  0x44   : > { %1639 = vmatpush3.bf16.msra.mxu0 %v1821_v33 }
  0x45   : > { %1659 = vmatpush3.bf16.msra.mxu1 %v1822_v34  ;;  %1664 = vmatprep.subr.bf16.mxu0 %v1887_v1 }
  0x46   : > { %1684 = vmatprep.subr.bf16.mxu1 %v1887_v1 }
  0x47   : > { %1641 = vmatmul.mubr.bf16.vlgmr.msra.gmra.mrb[4].mxu0 %v1327_v35 }
  0x48   : > { %1665 = vmatpush3.bf16.msra.mxu0 %v1823_v36  ;;  %1661 = vmatmul.mubr.bf16.vlgmr.msra.gmra.mrb[4].mxu1 %v1352_v37 }
  0x49   : > { %1685 = vmatpush3.bf16.msra.mxu1 %v1824_v38  ;;  %1666 = vmatprep.subr.bf16.mxu0 %v1887_v1 }
  0x4a   : > { %1686 = vmatprep.subr.bf16.mxu1 %v1887_v1  ;;  %1680 = vmatprep.mubr.msk.bf16.mxu0 %vm1888_vm0, %v1887_v1 }
  0x4b   : > { %1700 = vmatprep.mubr.msk.bf16.mxu1 %vm1888_vm0, %v1887_v1 }
  0x4c   : > { %1667 = vmatpush3.bf16.msra.mxu0 %v1825_v39 }
  0x4d   : > { %1687 = vmatpush3.bf16.msra.mxu1 %v1826_v40  ;;  %1668 = vmatprep.subr.bf16.mxu0 %v1887_v1 }
  0x4e   : > { %1688 = vmatprep.subr.bf16.mxu1 %v1887_v1 }
  0x50   : > { %1669 = vmatpush3.bf16.msra.mxu0 %v1827_v41 }
  0x51   : > { %1689 = vmatpush3.bf16.msra.mxu1 %v1828_v42  ;;  %1670 = vmatprep.subr.bf16.mxu0 %v1887_v1 }
  0x52   : > { %1690 = vmatprep.subr.bf16.mxu1 %v1887_v1 }
  0x54   : > { %1671 = vmatpush3.bf16.msra.mxu0 %v1829_v43 }
  0x55   : > { %1691 = vmatpush3.bf16.msra.mxu1 %v1830_v44  ;;  %1672 = vmatprep.subr.bf16.mxu0 %v1887_v1 }
  0x56   : > { %1692 = vmatprep.subr.bf16.mxu1 %v1887_v1 }
  0x58   : > { %1673 = vmatpush3.bf16.msra.mxu0 %v1831_v45 }
  0x59   : > { %1693 = vmatpush3.bf16.msra.mxu1 %v1832_v46  ;;  %1674 = vmatprep.subr.bf16.mxu0 %v1887_v1 }
  0x5a   : > { %1694 = vmatprep.subr.bf16.mxu1 %v1887_v1 }
  0x5c   : > { %1675 = vmatpush3.bf16.msra.mxu0 %v1833_v47 }
  0x5d   : > { %1695 = vmatpush3.bf16.msra.mxu1 %v1834_v48  ;;  %1676 = vmatprep.subr.bf16.mxu0 %v1887_v1 }
  0x5e   : > { %1696 = vmatprep.subr.bf16.mxu1 %v1887_v1 }
  0x60   : > { %1677 = vmatpush3.bf16.msra.mxu0 %v1835_v49 }
  0x61   : > { %1697 = vmatpush3.bf16.msra.mxu1 %v1836_v50  ;;  %1678 = vmatprep.subr.bf16.mxu0 %v1887_v1 }
  0x62   : > { %1698 = vmatprep.subr.bf16.mxu1 %v1887_v1 }
  0x64   : > { %1679 = vmatpush3.bf16.msra.mxu0 %v1837_v51 }
  0x65   : > { %1699 = vmatpush3.bf16.msra.mxu1 %v1838_v52  ;;  %1704 = vmatprep.subr.bf16.mxu0 %v1887_v1 }
  0x66   : > { %1724 = vmatprep.subr.bf16.mxu1 %v1887_v1 }
  0x67   : > { %1681 = vmatmul.mubr.bf16.vlgmr.msra.gmra.mrb[8].mxu0 %v1353_v53 }
  0x68   : > { %1705 = vmatpush3.bf16.msra.mxu0 %v1839_v54  ;;  %1701 = vmatmul.mubr.bf16.vlgmr.msra.gmra.mrb[8].mxu1 %v1402_v55 }
  0x69   : > { %1725 = vmatpush3.bf16.msra.mxu1 %v1840_v56  ;;  %1706 = vmatprep.subr.bf16.mxu0 %v1887_v1 }
  0x6a   : > { %1726 = vmatprep.subr.bf16.mxu1 %v1887_v1  ;;  %1720 = vmatprep.mubr.msk.bf16.mxu0 %vm1888_vm0, %v1887_v1 }
  0x6b   : > { %1740 = vmatprep.mubr.msk.bf16.mxu1 %vm1888_vm0, %v1887_v1 }
  0x6c   : > { %1707 = vmatpush3.bf16.msra.mxu0 %v1841_v57 }
  0x6d   : > { %1727 = vmatpush3.bf16.msra.mxu1 %v1842_v58  ;;  %1708 = vmatprep.subr.bf16.mxu0 %v1887_v1 }
  0x6e   : > { %1728 = vmatprep.subr.bf16.mxu1 %v1887_v1 }
  0x70   : > { %1709 = vmatpush3.bf16.msra.mxu0 %v1843_v59 }
  0x71   : > { %1729 = vmatpush3.bf16.msra.mxu1 %v1844_v60  ;;  %1710 = vmatprep.subr.bf16.mxu0 %v1887_v1 }
  0x72   : > { %1730 = vmatprep.subr.bf16.mxu1 %v1887_v1 }
  0x74   : > { %1711 = vmatpush3.bf16.msra.mxu0 %v1845_v0 }
  0x75   : > { %1731 = vmatpush3.bf16.msra.mxu1 %v1846_v2  ;;  %1712 = vmatprep.subr.bf16.mxu0 %v1887_v1 }
  0x76   : > { %1732 = vmatprep.subr.bf16.mxu1 %v1887_v1 }
  0x78   : > { %1713 = vmatpush3.bf16.msra.mxu0 %v1847_v5 }
  0x79   : > { %1733 = vmatpush3.bf16.msra.mxu1 %v1848_v6  ;;  %1714 = vmatprep.subr.bf16.mxu0 %v1887_v1 }
  0x7a   : > { %1734 = vmatprep.subr.bf16.mxu1 %v1887_v1 }
  0x7c   : > { %1715 = vmatpush3.bf16.msra.mxu0 %v1849_v8 }
  0x7d   : > { %1735 = vmatpush3.bf16.msra.mxu1 %v1850_v9  ;;  %1716 = vmatprep.subr.bf16.mxu0 %v1887_v1 }
  0x7e   : > { %1736 = vmatprep.subr.bf16.mxu1 %v1887_v1 }
  0x80   : > { %1717 = vmatpush3.bf16.msra.mxu0 %v1851_v12 }
  0x81   : > { %1737 = vmatpush3.bf16.msra.mxu1 %v1852_v13  ;;  %1718 = vmatprep.subr.bf16.mxu0 %v1887_v1 }
  0x82   : > { %1738 = vmatprep.subr.bf16.mxu1 %v1887_v1 }
  0x84   : > { %1719 = vmatpush3.bf16.msra.mxu0 %v1853_v16 }
  0x85   : > { %1739 = vmatpush3.bf16.msra.mxu1 %v1854_v17  ;;  %1744 = vmatprep.subr.bf16.mxu0 %v1887_v1 }
  0x87   : > { %1721 = vmatmul.mubr.bf16.vlgmr.msra.gmra.mrb[12].mxu0 %v864_v18 }
  0x88   : > { %1745 = vmatpush3.bf16.msra.mxu0 %v1855_v20  ;;  %1741 = vmatmul.mubr.bf16.vlgmr.msra.gmra.mrb[12].mxu1 %v989_v19 }
  0x89   : > { %1746 = vmatprep.subr.bf16.mxu0 %v1887_v1  ;;  %1760 = vmatprep.mubr.msk.bf16.mxu0 %vm1888_vm0, %v1887_v1 }
  0x8c   : > { %1747 = vmatpush3.bf16.msra.mxu0 %v1856_v21 }
  0x8d   : > { %1748 = vmatprep.subr.bf16.mxu0 %v1887_v1 }
  0x90   : > { %1749 = vmatpush3.bf16.msra.mxu0 %v1857_v22 }
  0x91   : > { %1750 = vmatprep.subr.bf16.mxu0 %v1887_v1 }
  0x94   : > { %1751 = vmatpush3.bf16.msra.mxu0 %v1858_v23 }
  0x95   : > { %1752 = vmatprep.subr.bf16.mxu0 %v1887_v1 }
  0x98   : > { %1753 = vmatpush3.bf16.msra.mxu0 %v1859_v24 }
  0x99   : > { %1754 = vmatprep.subr.bf16.mxu0 %v1887_v1 }
  0x9c   : > { %1755 = vmatpush3.bf16.msra.mxu0 %v1860_v25 }
  0x9d   : > { %1756 = vmatprep.subr.bf16.mxu0 %v1887_v1 }
  0xa0   : > { %1757 = vmatpush3.bf16.msra.mxu0 %v1861_v26 }
  0xa1   : > { %1758 = vmatprep.subr.bf16.mxu0 %v1887_v1 }
  0xa4   : > { %1759 = vmatpush3.bf16.msra.mxu0 %v1862_v29 }
  0xa7   : > { %1761 = vmatmul.mubr.bf16.vlgmr.msra.gmra.mrb[16].mxu0 %v1115_v30 }
  0xfa   : > { %v303_v31 = vpop.f32.mrb[0].mxu0 }
  0xfb   : > { %v1602_v32 = vpop.f32.mrb[1].mxu0  ;;  %v391_v33 = vpop.f32.mrb[0].mxu1 }
  0xfc   : > { %v392_v34 = vadd.f32 %v391_v33, %v303_v31  ;;  %v306_v35 = vpop.f32.mrb[2].mxu0  ;;  %v1622_v36 = vpop.f32.mrb[1].mxu1 }
  0xfd   : > { %v1603_v37 = vpop.f32.mrb[3].mxu0  ;;  %v394_v38 = vpop.f32.mrb[2].mxu1 }
  0xfe   : > { %v1623_v39 = vpop.f32.mrb[3].mxu1 }
 0x11a   : > { %v499_v40 = vpop.f32.mrb[4].mxu0 }
 0x11b   : > { %v505_v41 = vadd.f32 %v499_v40, %v392_v34  ;;  %v1642_v42 = vpop.f32.mrb[5].mxu0  ;;  %v609_v43 = vpop.f32.mrb[4].mxu1 }
 0x11c   : > { %v502_v44 = vpop.f32.mrb[6].mxu0  ;;  %v1662_v45 = vpop.f32.mrb[5].mxu1 }
 0x11d   : > { %v615_v46 = vadd.f32 %v609_v43, %v505_v41  ;;  %v1643_v1 = vpop.f32.mrb[7].mxu0  ;;  %v612_v47 = vpop.f32.mrb[6].mxu1 }
 0x11e   : > { %v1663_v48 = vpop.f32.mrb[7].mxu1 }
 0x13a   : > { %v715_v49 = vpop.f32.mrb[8].mxu0 }
 0x13b   : > { %v721_v50 = vadd.f32 %v715_v49, %v615_v46  ;;  %v1682_v51 = vpop.f32.mrb[9].mxu0  ;;  %v824_v52 = vpop.f32.mrb[8].mxu1 }
 0x13c   : > { %v718_v53 = vpop.f32.mrb[10].mxu0  ;;  %v1702_v54 = vpop.f32.mrb[9].mxu1 }
 0x13d   : > { %v830_v55 = vadd.f32 %v824_v52, %v721_v50  ;;  %v1683_v56 = vpop.f32.mrb[11].mxu0  ;;  %v827_v57 = vpop.f32.mrb[10].mxu1 }
 0x13e   : > { %v1703_v58 = vpop.f32.mrb[11].mxu1 }
 0x15a   : > { %v949_v59 = vpop.f32.mrb[12].mxu0 }
 0x15b   : > { %v955_v60 = vadd.f32 %v949_v59, %v830_v55  ;;  %v1722_v61 = vpop.f32.mrb[13].mxu0  ;;  %v1074_v62 = vpop.f32.mrb[12].mxu1 }
 0x15c   : > { %v952_v63 = vpop.f32.mrb[14].mxu0  ;;  %v1742_v0 = vpop.f32.mrb[13].mxu1 }
 0x15d   : > { %v1080_v2 = vadd.f32 %v1074_v62, %v955_v60  ;;  %v1723_v3 = vpop.f32.mrb[15].mxu0  ;;  %v1077_v4 = vpop.f32.mrb[14].mxu1 }
 0x15e   : > { %v1743_v5 = vpop.f32.mrb[15].mxu1 }
 0x17a   : > { %v1200_v6 = vpop.f32.mrb[16].mxu0 }
 0x17b   : > { %v1206_v8 = vadd.f32 %v1200_v6, %v1080_v2  ;;  %v1762_v9 = vpop.f32.mrb[17].mxu0 }
 0x17c   : > { %v1203_v10 = vpop.f32.mrb[18].mxu0 }
 0x17d   : > { %v1208_v11 = vadd.f32 %v1207_v7, %v1206_v8  ;;  %v1763_v12 = vpop.f32.mrb[19].mxu0 }
 0x17f   : > { %v1209_v13 = vmax.f32 %v1208_v11, 0.0 }
 0x181   : > { %v1210_v15 = vpack.c.bf16 %v1209_v13, %v1209_v13 }
 0x183   : > { %v1215_v16 = vsel %vm1213_vm3, %v1210_v15, %v1214_v14 }
 0x184   : > { %1216 = vst [vmem:[%s183_s7] sm:$0x1] %v1215_v16 }
 0x185 PF: > { %s13_s14 = sadd.s32 1, %s1885_s14   ;;  %s2281_s12 = smov %s1881_s13 }
 0x186   : > { %p10_p5 = scmp.ge.s32.totalorder %s13_s14, 6   ;;  %s2282_s13 = smov %s2284_s15 }
 0x188   :  { %12 = sbr.rel (!%p10_p5) target bundleno = 2 (0x2), region = 74 }

// kernel: resnet_loss.45
= control target key start
LH: loop header
LB: loop body
LE: loop exit
PB: predicated region body
PF: predicated region fallthrough
CT: control target
= control target key end

     0   :  { %s368_s9 = smov 0   ;;  %s370_s10 = smov 0   ;;  %s404_s0 = inlined_call_operand.vmem [shape: bf16[2,1,128], index: 0, kind: input, shape index: {}]   ;;  %s405_s1 = inlined_call_operand.vmem [shape: bf16[2,1,128], index: 1, kind: input, shape index: {}]   ;;  %s406_s2 = inlined_call_operand.vmem [shape: f32[2,1,8,128], index: 2, kind: output, shape index: {}]  }
   0x1   :  { %s372_s11 = smov 0  }
   0x2 LB: > { %s24_s12 = sadd.s32 1, %s347_s10  ;;  %p299_p0 = scmp.ge.s32.totalorder %s351_s11, 1  ;;  %s351_s11 = sphi %s372_s11, %s12_s11   ;;  %s347_s10 = sphi %s370_s10, %s408_s10   ;;  %s343_s9 = sphi %s368_s9, %s407_s9  }
   0x3   : > { %p26_p1 = scmp.ge.s32.totalorder %s24_s12, 2  ;;  %p142_p2 = scmp.lt.s32.totalorder %s351_s11, 3 }
   0x5   : > { %s410_s12 = smov (%p26_p1, %s24_s12), 0  ;;  %p143_p3 = pnand %p299_p0, %p142_p2 }
   0x6   : > { %p173_p4 = scmp.lt.s32.totalorder (!%p143_p3), %s343_s9, 1  ;;  %vm198_vm0 = vcmask (!%p143_p3), 1040384  }
   0x7   : > { %146 = sbr.rel (%p143_p3) target bundleno = 231 (0xe7), region = 28 }
   0xe   : > { %s412_s9 = smov (!%p173_p4, %s343_s9), 1 }
   0xf   : > { %s178_s15 = scalar_lea.vmem %s404_s0, %s412_s9  ;;  %s184_s18 = scalar_lea.vmem %s405_s1, %s412_s9 }
  0x10   : > { %v192_v0 = vld [vmem:[%s178_s15] sm:$0x1]  ;;  %s300_s19 = sshll.u32 %s412_s9, 3 }
  0x11   : > { %v194_v1 = vld [vmem:[%s184_s18] sm:$0x1]  ;;  %v193_v2 = vunpack.c.l.bf16 %v192_v0  ;;  %s191_s22 = scalar_lea.vmem %s406_s2, %s300_s19 }
  0x12   : > { %v195_v3 = vunpack.c.l.bf16 %v194_v1 }
  0x14   : > { %v196_v4 = vsub.f32 %v193_v2, %v195_v3 }
  0x16   : > { %v197_v5 = vand.u32 2147483647, %v196_v4 }
  0x18   : > { %v199_v6 = vsel %vm198_vm0, %v197_v5, 0.0 }
  0x19   : > { %200 = vadd.xlane.f32.xlu0 %v199_v6 }
  0xa6   : > { %v201_v7 = vpop.xlane.xlu0 %200 }
  0xa7   : > { %v202_v8 = vrot.slane %v201_v7, 4 }
  0xa9   : > { %v203_v9 = vadd.f32 %v202_v8, %v201_v7 }
  0xab   : > { %v204_v10 = vrot.slane %v203_v9, 2 }
  0xad   : > { %v205_v11 = vadd.f32 %v204_v10, %v203_v9 }
  0xaf   : > { %v206_v12 = vrot.slane %v205_v11, 1 }
  0xb1   : > { %v207_v13 = vadd.f32 %v206_v12, %v205_v11 }
  0xb3   : > { %303 = vpush %v207_v13 }
  0xe4   : > { %s304_s23 = spop %303 }
  0xe5   : > { %v209_v14 = vstv %s304_s23 }
  0xe6   : > { %211 = vst [vmem:[%s191_s22] sm:$0xff] %v209_v14 }
  0xe7 PF: > { %s12_s11 = sadd.s32 1, %s351_s11   ;;  %s407_s9 = smov %s347_s10 }
  0xe8   : > { %p9_p5 = scmp.ge.s32.totalorder %s12_s11, 4   ;;  %s408_s10 = smov %s410_s12 }
  0xea   :  { %11 = sbr.rel (!%p9_p5) target bundleno = 2 (0x2), region = 61 }

// kernel: resnet_loss.44
= control target key start
LH: loop header
LB: loop body
LE: loop exit
PB: predicated region body
PF: predicated region fallthrough
CT: control target
= control target key end

     0   :  { %s382_s9 = smov 0   ;;  %s384_s10 = smov 0   ;;  %s418_s0 = inlined_call_operand.vmem [shape: bf16[2,4,128], index: 0, kind: input, shape index: {}]   ;;  %s419_s1 = inlined_call_operand.vmem [shape: bf16[2,4,128], index: 1, kind: input, shape index: {}]   ;;  %s420_s2 = inlined_call_operand.vmem [shape: f32[2,1,8,128], index: 2, kind: output, shape index: {}]  }
   0x1   :  { %s386_s11 = smov 0  }
   0x2 LB: > { %s24_s12 = sadd.s32 1, %s361_s10  ;;  %p311_p0 = scmp.ge.s32.totalorder %s365_s11, 1  ;;  %s365_s11 = sphi %s386_s11, %s12_s11   ;;  %s361_s10 = sphi %s384_s10, %s422_s10   ;;  %s357_s9 = sphi %s382_s9, %s421_s9  }
   0x3   : > { %p26_p1 = scmp.ge.s32.totalorder %s24_s12, 2  ;;  %p144_p2 = scmp.lt.s32.totalorder %s365_s11, 3 }
   0x5   : > { %s424_s12 = smov (%p26_p1, %s24_s12), 0  ;;  %p145_p3 = pnand %p311_p0, %p144_p2 }
   0x6   : > { %p177_p4 = scmp.lt.s32.totalorder (!%p145_p3), %s357_s9, 1  ;;  %vm204_vm0 = vcmask (!%p145_p3), 1043456  }
   0x7   : > { %148 = sbr.rel (%p145_p3) target bundleno = 232 (0xe8), region = 28 }
   0xe   : > { %s426_s9 = smov (!%p177_p4, %s357_s9), 1 }
   0xf   : > { %s312_s13 = sshll.u32 %s426_s9, 1  ;;  %s314_s20 = sshll.u32 %s426_s9, 3 }
  0x10   : > { %s183_s16 = scalar_lea.vmem %s418_s0, %s312_s13  ;;  %s190_s19 = scalar_lea.vmem %s419_s1, %s312_s13 }
  0x11   : > { %v198_v0 = vld [vmem:[%s183_s16] sm:$0x3]  ;;  %s197_s23 = scalar_lea.vmem %s420_s2, %s314_s20 }
  0x12   : > { %v200_v1 = vld [vmem:[%s190_s19] sm:$0x3]  ;;  %v199_v2 = vunpack.c.l.bf16 %v198_v0 }
  0x13   : > { %v201_v3 = vunpack.c.l.bf16 %v200_v1 }
  0x15   : > { %v202_v4 = vsub.f32 %v199_v2, %v201_v3 }
  0x17   : > { %v203_v5 = vand.u32 2147483647, %v202_v4 }
  0x19   : > { %v205_v6 = vsel %vm204_vm0, %v203_v5, 0.0 }
  0x1a   : > { %206 = vadd.xlane.f32.xlu0 %v205_v6 }
  0xa7   : > { %v207_v7 = vpop.xlane.xlu0 %206 }
  0xa8   : > { %v208_v8 = vrot.slane %v207_v7, 4 }
  0xaa   : > { %v209_v9 = vadd.f32 %v208_v8, %v207_v7 }
  0xac   : > { %v210_v10 = vrot.slane %v209_v9, 2 }
  0xae   : > { %v211_v11 = vadd.f32 %v210_v10, %v209_v9 }
  0xb0   : > { %v212_v12 = vrot.slane %v211_v11, 1 }
  0xb2   : > { %v213_v13 = vadd.f32 %v212_v12, %v211_v11 }
  0xb4   : > { %317 = vpush %v213_v13 }
  0xe5   : > { %s318_s24 = spop %317 }
  0xe6   : > { %v215_v14 = vstv %s318_s24 }
  0xe7   : > { %217 = vst [vmem:[%s197_s23] sm:$0xff] %v215_v14 }
  0xe8 PF: > { %s12_s11 = sadd.s32 1, %s365_s11   ;;  %s421_s9 = smov %s361_s10 }
  0xe9   : > { %p9_p5 = scmp.ge.s32.totalorder %s12_s11, 4   ;;  %s422_s10 = smov %s424_s12 }
  0xeb   :  { %11 = sbr.rel (!%p9_p5) target bundleno = 2 (0x2), region = 61 }

// kernel: resnet_loss.43
= control target key start
LH: loop header
LB: loop body
LE: loop exit
PB: predicated region body
PF: predicated region fallthrough
CT: control target
= control target key end

     0   :  { %s421_s9 = smov 0   ;;  %s423_s10 = smov 0   ;;  %s457_s0 = inlined_call_operand.vmem [shape: bf16[2,16,128], index: 0, kind: input, shape index: {}]   ;;  %s458_s1 = inlined_call_operand.vmem [shape: bf16[2,16,128], index: 1, kind: input, shape index: {}]   ;;  %s459_s2 = inlined_call_operand.vmem [shape: f32[2,1,8,128], index: 2, kind: output, shape index: {}]  }
   0x1   :  { %s425_s11 = smov 0  }
   0x2 LB: > { %s24_s12 = sadd.s32 1, %s400_s10  ;;  %p338_p0 = scmp.ge.s32.totalorder %s404_s11, 1  ;;  %s404_s11 = sphi %s425_s11, %s12_s11   ;;  %s400_s10 = sphi %s423_s10, %s461_s10   ;;  %s396_s9 = sphi %s421_s9, %s460_s9  }
   0x3   : > { %p26_p1 = scmp.ge.s32.totalorder %s24_s12, 2  ;;  %p150_p2 = scmp.lt.s32.totalorder %s404_s11, 3 }
   0x5   : > { %s463_s12 = smov (%p26_p1, %s24_s12), 0  ;;  %p151_p3 = pnand %p338_p0, %p150_p2 }
   0x6   : > { %p188_p4 = scmp.lt.s32.totalorder (!%p151_p3), %s396_s9, 1 }
   0x7   : > { %154 = sbr.rel (%p151_p3) target bundleno = 233 (0xe9), region = 28 }
   0xe   : > { %s465_s9 = smov (!%p188_p4, %s396_s9), 1 }
   0xf   : > { %s346_s13 = sshll.u32 %s465_s9, 3 }
  0x10   : > { %s195_s16 = scalar_lea.vmem %s457_s0, %s346_s13  ;;  %s205_s19 = scalar_lea.vmem %s458_s1, %s346_s13 }
  0x11   : > { %v349_v0 = vld [vmem:[%s195_s16] sm:$0xff]   ;;  %s213_s22 = scalar_lea.vmem %s459_s2, %s346_s13 }
  0x12   : > { %v353_v1 = vld [vmem:[%s205_s19] sm:$0xff]   ;;  %v350_v2 = vunpack.c.l.bf16 %v349_v0  ;;  %v351_v3 = vunpack.c.h.bf16 %v349_v0 }
  0x13   : > { %v354_v4 = vunpack.c.l.bf16 %v353_v1  ;;  %v355_v5 = vunpack.c.h.bf16 %v353_v1 }
  0x15   : > { %v222_v6 = vsub.f32 %v350_v2, %v354_v4  ;;  %v223_v7 = vsub.f32 %v351_v3, %v355_v5 }
  0x17   : > { %v224_v8 = vand.u32 2147483647, %v222_v6  ;;  %v225_v9 = vand.u32 2147483647, %v223_v7 }
  0x19   : > { %v226_v10 = vadd.f32 %v225_v9, %v224_v8 }
  0x1b   : > { %227 = vadd.xlane.f32.xlu0 %v226_v10 }
  0xa8   : > { %v228_v11 = vpop.xlane.xlu0 %227 }
  0xa9   : > { %v229_v12 = vrot.slane %v228_v11, 4 }
  0xab   : > { %v230_v13 = vadd.f32 %v229_v12, %v228_v11 }
  0xad   : > { %v231_v14 = vrot.slane %v230_v13, 2 }
  0xaf   : > { %v232_v15 = vadd.f32 %v231_v14, %v230_v13 }
  0xb1   : > { %v233_v16 = vrot.slane %v232_v15, 1 }
  0xb3   : > { %v234_v17 = vadd.f32 %v233_v16, %v232_v15 }
  0xb5   : > { %356 = vpush %v234_v17 }
  0xe6   : > { %s357_s23 = spop %356 }
  0xe7   : > { %v236_v18 = vstv %s357_s23 }
  0xe8   : > { %238 = vst [vmem:[%s213_s22] sm:$0xff] %v236_v18 }
  0xe9 PF: > { %s12_s11 = sadd.s32 1, %s404_s11   ;;  %s460_s9 = smov %s400_s10 }
  0xea   : > { %p9_p5 = scmp.ge.s32.totalorder %s12_s11, 4   ;;  %s461_s10 = smov %s463_s12 }
  0xec   :  { %11 = sbr.rel (!%p9_p5) target bundleno = 2 (0x2), region = 61 }

// kernel: resnet_loss.42
= control target key start
LH: loop header
LB: loop body
LE: loop exit
PB: predicated region body
PF: predicated region fallthrough
CT: control target
= control target key end

     0   :  { %s493_s9 = smov 0   ;;  %s495_s10 = smov 0   ;;  %s533_s0 = inlined_call_operand.vmem [shape: bf16[2,64,128], index: 0, kind: input, shape index: {}]   ;;  %s534_s1 = inlined_call_operand.vmem [shape: bf16[2,64,128], index: 1, kind: input, shape index: {}]   ;;  %s535_s2 = inlined_call_operand.vmem [shape: f32[2,1,8,128], index: 2, kind: output, shape index: {}]  }
   0x1   :  { %s497_s11 = smov 0  }
   0x2 LB: > { %s24_s12 = sadd.s32 1, %s472_s10  ;;  %p380_p0 = scmp.ge.s32.totalorder %s476_s11, 1  ;;  %s476_s11 = sphi %s497_s11, %s12_s11   ;;  %s472_s10 = sphi %s495_s10, %s537_s10   ;;  %s468_s9 = sphi %s493_s9, %s536_s9  }
   0x3   : > { %p26_p1 = scmp.ge.s32.totalorder %s24_s12, 2  ;;  %p150_p2 = scmp.lt.s32.totalorder %s476_s11, 3 }
   0x5   : > { %s539_s12 = smov (%p26_p1, %s24_s12), 0  ;;  %p151_p3 = pnand %p380_p0, %p150_p2 }
   0x6   : > { %p188_p4 = scmp.lt.s32.totalorder (!%p151_p3), %s468_s9, 1 }
   0x7   : > { %154 = sbr.rel (%p151_p3) target bundleno = 245 (0xf5), region = 28 }
   0xe   : > { %s541_s9 = smov (!%p188_p4, %s468_s9), 1 }
   0xf   : > { %s388_s13 = sshll.u32 %s541_s9, 5  ;;  %s385_s20 = sshll.u32 %s541_s9, 3 }
  0x10   : > { %s195_s16 = scalar_lea.vmem %s533_s0, %s388_s13  ;;  %s205_s19 = scalar_lea.vmem %s534_s1, %s388_s13 }
  0x11   : > { %v391_v0 = vld [vmem:[%s195_s16] sm:$0xff]   ;;  %v422_v1 = vld [vmem:[%s195_s16 + $0x8] sm:$0xff]   ;;  %v423_v2 = vld [vmem:[%s195_s16 + $0x10] sm:$0xff]   ;;  %s213_s23 = scalar_lea.vmem %s535_s2, %s385_s20 }
  0x12   : > { %v392_v3 = vunpack.c.l.bf16 %v391_v0  ;;  %v393_v4 = vunpack.c.h.bf16 %v391_v0  ;;  %v396_v5 = vunpack.c.l.bf16 %v422_v1  ;;  %v397_v6 = vunpack.c.h.bf16 %v422_v1  ;;  %v407_v7 = vld [vmem:[%s205_s19] sm:$0xff]   ;;  %v425_v8 = vld [vmem:[%s205_s19 + $0x8] sm:$0xff]   ;;  %v426_v10 = vld [vmem:[%s205_s19 + $0x10] sm:$0xff]  }
  0x13   : > { %v400_v9 = vunpack.c.l.bf16 %v423_v2  ;;  %v424_v11 = vld [vmem:[%s195_s16 + $0x18] sm:$0xff]   ;;  %v408_v12 = vunpack.c.l.bf16 %v407_v7  ;;  %v409_v13 = vunpack.c.h.bf16 %v407_v7  ;;  %v412_v14 = vunpack.c.l.bf16 %v425_v8 }
  0x14   : > { %v413_v15 = vunpack.c.h.bf16 %v425_v8  ;;  %v427_v16 = vld [vmem:[%s205_s19 + $0x18] sm:$0xff]   ;;  %v401_v17 = vunpack.c.h.bf16 %v423_v2  ;;  %v416_v18 = vunpack.c.l.bf16 %v426_v10  ;;  %v417_v19 = vunpack.c.h.bf16 %v426_v10 }
  0x15   : > { %v246_v20 = vsub.f32 %v392_v3, %v408_v12  ;;  %v247_v21 = vsub.f32 %v393_v4, %v409_v13  ;;  %v248_v22 = vsub.f32 %v396_v5, %v412_v14  ;;  %v404_v24 = vunpack.c.l.bf16 %v424_v11 }
  0x16   : > { %v249_v23 = vsub.f32 %v397_v6, %v413_v15  ;;  %v420_v25 = vunpack.c.l.bf16 %v427_v16  ;;  %v250_v26 = vsub.f32 %v400_v9, %v416_v18  ;;  %v405_v30 = vunpack.c.h.bf16 %v424_v11 }
  0x17   : > { %v254_v27 = vand.u32 2147483647, %v246_v20  ;;  %v255_v28 = vand.u32 2147483647, %v247_v21  ;;  %v256_v29 = vand.u32 2147483647, %v248_v22  ;;  %v421_v31 = vunpack.c.h.bf16 %v427_v16 }
  0x18   : > { %v251_v32 = vsub.f32 %v401_v17, %v417_v19  ;;  %v257_v33 = vand.u32 2147483647, %v249_v23  ;;  %v252_v35 = vsub.f32 %v404_v24, %v420_v25  ;;  %v258_v36 = vand.u32 2147483647, %v250_v26 }
  0x19   : > { %v262_v34 = vadd.f32 %v255_v28, %v254_v27  ;;  %v253_v38 = vsub.f32 %v405_v30, %v421_v31 }
  0x1a   : > { %v259_v39 = vand.u32 2147483647, %v251_v32  ;;  %v260_v41 = vand.u32 2147483647, %v252_v35 }
  0x1b   : > { %v263_v37 = vadd.f32 %v262_v34, %v256_v29  ;;  %v261_v43 = vand.u32 2147483647, %v253_v38 }
  0x1d   : > { %v264_v40 = vadd.f32 %v263_v37, %v257_v33 }
  0x1f   : > { %v265_v42 = vadd.f32 %v264_v40, %v258_v36 }
  0x21   : > { %v266_v44 = vadd.f32 %v265_v42, %v259_v39 }
  0x23   : > { %v267_v45 = vadd.f32 %v266_v44, %v260_v41 }
  0x25   : > { %v268_v46 = vadd.f32 %v267_v45, %v261_v43 }
  0x27   : > { %269 = vadd.xlane.f32.xlu0 %v268_v46 }
  0xb4   : > { %v270_v47 = vpop.xlane.xlu0 %269 }
  0xb5   : > { %v271_v48 = vrot.slane %v270_v47, 4 }
  0xb7   : > { %v272_v49 = vadd.f32 %v271_v48, %v270_v47 }
  0xb9   : > { %v273_v50 = vrot.slane %v272_v49, 2 }
  0xbb   : > { %v274_v51 = vadd.f32 %v273_v50, %v272_v49 }
  0xbd   : > { %v275_v52 = vrot.slane %v274_v51, 1 }
  0xbf   : > { %v276_v53 = vadd.f32 %v275_v52, %v274_v51 }
  0xc1   : > { %428 = vpush %v276_v53 }
  0xf2   : > { %s429_s24 = spop %428 }
  0xf3   : > { %v278_v54 = vstv %s429_s24 }
  0xf4   : > { %280 = vst [vmem:[%s213_s23] sm:$0xff] %v278_v54 }
  0xf5 PF: > { %s12_s11 = sadd.s32 1, %s476_s11   ;;  %s536_s9 = smov %s472_s10 }
  0xf6   : > { %p9_p5 = scmp.ge.s32.totalorder %s12_s11, 4   ;;  %s537_s10 = smov %s539_s12 }
  0xf8   :  { %11 = sbr.rel (!%p9_p5) target bundleno = 2 (0x2), region = 61 }

// kernel: resnet_loss.41
= control target key start
LH: loop header
LB: loop body
LE: loop exit
PB: predicated region body
PF: predicated region fallthrough
CT: control target
= control target key end

     0   :  { %s781_s9 = smov 0   ;;  %s783_s10 = smov 0   ;;  %s857_s0 = inlined_call_operand.vmem [shape: bf16[2,256,128], index: 0, kind: input, shape index: {}]   ;;  %s858_s1 = inlined_call_operand.vmem [shape: bf16[2,256,128], index: 1, kind: input, shape index: {}]   ;;  %s859_s2 = inlined_call_operand.vmem [shape: f32[2,1,8,128], index: 2, kind: output, shape index: {}]  }
   0x1   :  { %s785_s11 = smov 0  }
   0x2 LB: > { %s24_s12 = sadd.s32 1, %s760_s10  ;;  %p548_p0 = scmp.ge.s32.totalorder %s764_s11, 1  ;;  %s764_s11 = sphi %s785_s11, %s12_s11   ;;  %s760_s10 = sphi %s783_s10, %s861_s10   ;;  %s756_s9 = sphi %s781_s9, %s860_s9  }
   0x3   : > { %p26_p1 = scmp.ge.s32.totalorder %s24_s12, 2  ;;  %p150_p2 = scmp.lt.s32.totalorder %s764_s11, 3 }
   0x5   : > { %s863_s12 = smov (%p26_p1, %s24_s12), 0  ;;  %p151_p3 = pnand %p548_p0, %p150_p2 }
   0x6   : > { %p188_p4 = scmp.lt.s32.totalorder (!%p151_p3), %s756_s9, 1 }
   0x7   : > { %154 = sbr.rel (%p151_p3) target bundleno = 293 (0x125), region = 28 }
   0xe   : > { %s865_s9 = smov (!%p188_p4, %s756_s9), 1 }
   0xf   : > { %s556_s13 = sshll.u32 %s865_s9, 7  ;;  %s553_s20 = sshll.u32 %s865_s9, 3 }
  0x10   : > { %s805_s16 = scalar_lea.vmem %s857_s0, %s556_s13  ;;  %s810_s19 = scalar_lea.vmem %s858_s1, %s556_s13 }
  0x11   : > { %v559_v0 = vld [vmem:[%s805_s16] sm:$0xff]   ;;  %v686_v1 = vld [vmem:[%s805_s16 + $0x8] sm:$0xff]   ;;  %v687_v7 = vld [vmem:[%s805_s16 + $0x10] sm:$0xff]   ;;  %s213_s23 = scalar_lea.vmem %s859_s2, %s553_s20 }
  0x12   : > { %v623_v2 = vld [vmem:[%s810_s19] sm:$0xff]   ;;  %v701_v3 = vld [vmem:[%s810_s19 + $0x8] sm:$0xff]   ;;  %v560_v4 = vunpack.c.l.bf16 %v559_v0  ;;  %v561_v5 = vunpack.c.h.bf16 %v559_v0  ;;  %v564_v6 = vunpack.c.l.bf16 %v686_v1  ;;  %v702_v11 = vld [vmem:[%s810_s19 + $0x10] sm:$0xff]   ;;  %v565_v12 = vunpack.c.h.bf16 %v686_v1 }
  0x13   : > { %v624_v8 = vunpack.c.l.bf16 %v623_v2  ;;  %v625_v9 = vunpack.c.h.bf16 %v623_v2  ;;  %v628_v10 = vunpack.c.l.bf16 %v701_v3  ;;  %v629_v13 = vunpack.c.h.bf16 %v701_v3  ;;  %v688_v15 = vld [vmem:[%s805_s16 + $0x18] sm:$0xff]   ;;  %v689_v25 = vld [vmem:[%s805_s16 + $0x20] sm:$0xff]   ;;  %v690_v38 = vld [vmem:[%s805_s16 + $0x28] sm:$0xff]  }
  0x14   : > { %v568_v14 = vunpack.c.l.bf16 %v687_v7  ;;  %v632_v16 = vunpack.c.l.bf16 %v702_v11  ;;  %v703_v17 = vld [vmem:[%s810_s19 + $0x18] sm:$0xff]   ;;  %v569_v21 = vunpack.c.h.bf16 %v687_v7  ;;  %v633_v22 = vunpack.c.h.bf16 %v702_v11  ;;  %v704_v32 = vld [vmem:[%s810_s19 + $0x20] sm:$0xff]   ;;  %v705_v44 = vld [vmem:[%s810_s19 + $0x28] sm:$0xff]  }
  0x15   : > { %v342_v18 = vsub.f32 %v560_v4, %v624_v8  ;;  %v343_v19 = vsub.f32 %v561_v5, %v625_v9  ;;  %v344_v20 = vsub.f32 %v564_v6, %v628_v10  ;;  %v345_v23 = vsub.f32 %v565_v12, %v629_v13  ;;  %v691_v50 = vld [vmem:[%s805_s16 + $0x30] sm:$0xff]   ;;  %v692_v62 = vld [vmem:[%s805_s16 + $0x38] sm:$0xff]   ;;  %v693_v10 = vld [vmem:[%s805_s16 + $0x40] sm:$0xff]  }
  0x16   : > { %v572_v24 = vunpack.c.l.bf16 %v688_v15  ;;  %v636_v26 = vunpack.c.l.bf16 %v703_v17  ;;  %v346_v27 = vsub.f32 %v568_v14, %v632_v16  ;;  %v573_v31 = vunpack.c.h.bf16 %v688_v15  ;;  %v706_v56 = vld [vmem:[%s810_s19 + $0x30] sm:$0xff]   ;;  %v707_v4 = vld [vmem:[%s810_s19 + $0x38] sm:$0xff]   ;;  %v708_v16 = vld [vmem:[%s810_s19 + $0x40] sm:$0xff]  }
  0x17   : > { %v374_v28 = vand.u32 2147483647, %v342_v18  ;;  %v375_v29 = vand.u32 2147483647, %v343_v19  ;;  %v376_v30 = vand.u32 2147483647, %v344_v20  ;;  %v637_v33 = vunpack.c.h.bf16 %v703_v17 }
  0x18   : > { %v347_v34 = vsub.f32 %v569_v21, %v633_v22  ;;  %v377_v35 = vand.u32 2147483647, %v345_v23  ;;  %v576_v37 = vunpack.c.l.bf16 %v689_v25  ;;  %v640_v39 = vunpack.c.l.bf16 %v704_v32  ;;  %v694_v22 = vld [vmem:[%s805_s16 + $0x48] sm:$0xff]  }
  0x19   : > { %v406_v36 = vadd.f32 %v375_v29, %v374_v28  ;;  %v348_v40 = vsub.f32 %v572_v24, %v636_v26  ;;  %v378_v41 = vand.u32 2147483647, %v346_v27  ;;  %v577_v43 = vunpack.c.h.bf16 %v689_v25  ;;  %v709_v28 = vld [vmem:[%s810_s19 + $0x48] sm:$0xff]  }
  0x1a   : > { %v641_v45 = vunpack.c.h.bf16 %v704_v32  ;;  %v349_v46 = vsub.f32 %v573_v31, %v637_v33  ;;  %v379_v47 = vand.u32 2147483647, %v347_v34  ;;  %v580_v49 = vunpack.c.l.bf16 %v690_v38  ;;  %v695_v34 = vld [vmem:[%s805_s16 + $0x50] sm:$0xff]  }
  0x1b   : > { %v407_v42 = vadd.f32 %v406_v36, %v376_v30  ;;  %v644_v51 = vunpack.c.l.bf16 %v705_v44  ;;  %v350_v52 = vsub.f32 %v576_v37, %v640_v39  ;;  %v380_v53 = vand.u32 2147483647, %v348_v40  ;;  %v710_v40 = vld [vmem:[%s810_s19 + $0x50] sm:$0xff]  }
  0x1c   : > { %v581_v55 = vunpack.c.h.bf16 %v690_v38  ;;  %v645_v57 = vunpack.c.h.bf16 %v705_v44  ;;  %v351_v58 = vsub.f32 %v577_v43, %v641_v45  ;;  %v381_v59 = vand.u32 2147483647, %v349_v46  ;;  %v696_v46 = vld [vmem:[%s805_s16 + $0x58] sm:$0xff]  }
  0x1d   : > { %v408_v48 = vadd.f32 %v407_v42, %v377_v35  ;;  %v584_v61 = vunpack.c.l.bf16 %v691_v50  ;;  %v648_v63 = vunpack.c.l.bf16 %v706_v56  ;;  %v352_v0 = vsub.f32 %v580_v49, %v644_v51 }
  0x1e   : > { %v382_v1 = vand.u32 2147483647, %v350_v52  ;;  %v585_v3 = vunpack.c.h.bf16 %v691_v50  ;;  %v649_v5 = vunpack.c.h.bf16 %v706_v56  ;;  %v353_v6 = vsub.f32 %v581_v55, %v645_v57  ;;  %v711_v52 = vld [vmem:[%s810_s19 + $0x58] sm:$0xff]  }
  0x1f   : > { %v409_v54 = vadd.f32 %v408_v48, %v378_v41  ;;  %v383_v7 = vand.u32 2147483647, %v351_v58  ;;  %v588_v9 = vunpack.c.l.bf16 %v692_v62  ;;  %v652_v11 = vunpack.c.l.bf16 %v707_v4  ;;  %v697_v58 = vld [vmem:[%s805_s16 + $0x60] sm:$0xff]  }
  0x20   : > { %v354_v12 = vsub.f32 %v584_v61, %v648_v63  ;;  %v384_v13 = vand.u32 2147483647, %v352_v0  ;;  %v589_v15 = vunpack.c.h.bf16 %v692_v62  ;;  %v653_v17 = vunpack.c.h.bf16 %v707_v4  ;;  %v712_v0 = vld [vmem:[%s810_s19 + $0x60] sm:$0xff]  }
  0x21   : > { %v410_v60 = vadd.f32 %v409_v54, %v379_v47  ;;  %v355_v18 = vsub.f32 %v585_v3, %v649_v5  ;;  %v385_v19 = vand.u32 2147483647, %v353_v6  ;;  %v592_v21 = vunpack.c.l.bf16 %v693_v10  ;;  %v698_v6 = vld [vmem:[%s805_s16 + $0x68] sm:$0xff]  }
  0x22   : > { %v656_v23 = vunpack.c.l.bf16 %v708_v16  ;;  %v356_v24 = vsub.f32 %v588_v9, %v652_v11  ;;  %v386_v25 = vand.u32 2147483647, %v354_v12  ;;  %v593_v27 = vunpack.c.h.bf16 %v693_v10  ;;  %v713_v12 = vld [vmem:[%s810_s19 + $0x68] sm:$0xff]  }
  0x23   : > { %v411_v2 = vadd.f32 %v410_v60, %v380_v53  ;;  %v657_v29 = vunpack.c.h.bf16 %v708_v16  ;;  %v357_v30 = vsub.f32 %v589_v15, %v653_v17  ;;  %v387_v31 = vand.u32 2147483647, %v355_v18  ;;  %v699_v18 = vld [vmem:[%s805_s16 + $0x70] sm:$0xff]  }
  0x24   : > { %v596_v33 = vunpack.c.l.bf16 %v694_v22  ;;  %v660_v35 = vunpack.c.l.bf16 %v709_v28  ;;  %v358_v36 = vsub.f32 %v592_v21, %v656_v23  ;;  %v388_v37 = vand.u32 2147483647, %v356_v24  ;;  %v714_v24 = vld [vmem:[%s810_s19 + $0x70] sm:$0xff]  }
  0x25   : > { %v412_v8 = vadd.f32 %v411_v2, %v381_v59  ;;  %v597_v39 = vunpack.c.h.bf16 %v694_v22  ;;  %v661_v41 = vunpack.c.h.bf16 %v709_v28  ;;  %v359_v42 = vsub.f32 %v593_v27, %v657_v29 }
  0x26   : > { %v389_v43 = vand.u32 2147483647, %v357_v30  ;;  %v600_v45 = vunpack.c.l.bf16 %v695_v34  ;;  %v664_v47 = vunpack.c.l.bf16 %v710_v40  ;;  %v360_v48 = vsub.f32 %v596_v33, %v660_v35  ;;  %v700_v30 = vld [vmem:[%s805_s16 + $0x78] sm:$0xff]  }
  0x27   : > { %v413_v14 = vadd.f32 %v412_v8, %v382_v1  ;;  %v390_v49 = vand.u32 2147483647, %v358_v36  ;;  %v601_v51 = vunpack.c.h.bf16 %v695_v34  ;;  %v665_v53 = vunpack.c.h.bf16 %v710_v40  ;;  %v715_v36 = vld [vmem:[%s810_s19 + $0x78] sm:$0xff]  }
  0x28   : > { %v361_v54 = vsub.f32 %v597_v39, %v661_v41  ;;  %v391_v55 = vand.u32 2147483647, %v359_v42  ;;  %v604_v57 = vunpack.c.l.bf16 %v696_v46  ;;  %v668_v59 = vunpack.c.l.bf16 %v711_v52 }
  0x29   : > { %v414_v20 = vadd.f32 %v413_v14, %v383_v7  ;;  %v362_v60 = vsub.f32 %v600_v45, %v664_v47  ;;  %v392_v61 = vand.u32 2147483647, %v360_v48  ;;  %v605_v63 = vunpack.c.h.bf16 %v696_v46 }
  0x2a   : > { %v669_v1 = vunpack.c.h.bf16 %v711_v52  ;;  %v363_v2 = vsub.f32 %v601_v51, %v665_v53  ;;  %v393_v3 = vand.u32 2147483647, %v361_v54  ;;  %v608_v5 = vunpack.c.l.bf16 %v697_v58 }
  0x2b   : > { %v415_v26 = vadd.f32 %v414_v20, %v384_v13  ;;  %v672_v7 = vunpack.c.l.bf16 %v712_v0  ;;  %v364_v8 = vsub.f32 %v604_v57, %v668_v59  ;;  %v394_v9 = vand.u32 2147483647, %v362_v60 }
  0x2c   : > { %v609_v11 = vunpack.c.h.bf16 %v697_v58  ;;  %v673_v13 = vunpack.c.h.bf16 %v712_v0  ;;  %v365_v14 = vsub.f32 %v605_v63, %v669_v1  ;;  %v395_v15 = vand.u32 2147483647, %v363_v2 }
  0x2d   : > { %v416_v32 = vadd.f32 %v415_v26, %v385_v19  ;;  %v612_v17 = vunpack.c.l.bf16 %v698_v6  ;;  %v676_v19 = vunpack.c.l.bf16 %v713_v12  ;;  %v366_v20 = vsub.f32 %v608_v5, %v672_v7 }
  0x2e   : > { %v396_v21 = vand.u32 2147483647, %v364_v8  ;;  %v613_v23 = vunpack.c.h.bf16 %v698_v6  ;;  %v367_v26 = vsub.f32 %v609_v11, %v673_v13  ;;  %v397_v27 = vand.u32 2147483647, %v365_v14 }
  0x2f   : > { %v417_v38 = vadd.f32 %v416_v32, %v386_v25  ;;  %v677_v25 = vunpack.c.h.bf16 %v713_v12  ;;  %v616_v29 = vunpack.c.l.bf16 %v699_v18  ;;  %v368_v32 = vsub.f32 %v612_v17, %v676_v19 }
  0x30   : > { %v398_v33 = vand.u32 2147483647, %v366_v20  ;;  %v617_v35 = vunpack.c.h.bf16 %v699_v18  ;;  %v399_v39 = vand.u32 2147483647, %v367_v26  ;;  %v620_v41 = vunpack.c.l.bf16 %v700_v30 }
  0x31   : > { %v418_v44 = vadd.f32 %v417_v38, %v387_v31  ;;  %v680_v31 = vunpack.c.l.bf16 %v714_v24  ;;  %v369_v38 = vsub.f32 %v613_v23, %v677_v25  ;;  %v684_v42 = vunpack.c.l.bf16 %v715_v36 }
  0x32   : > { %v621_v46 = vunpack.c.h.bf16 %v700_v30  ;;  %v685_v47 = vunpack.c.h.bf16 %v715_v36 }
  0x33   : > { %v419_v50 = vadd.f32 %v418_v44, %v388_v37  ;;  %v681_v37 = vunpack.c.h.bf16 %v714_v24  ;;  %v400_v44 = vand.u32 2147483647, %v368_v32  ;;  %v372_v51 = vsub.f32 %v620_v41, %v684_v42 }
  0x34   : > { %v373_v54 = vsub.f32 %v621_v46, %v685_v47 }
  0x35   : > { %v420_v56 = vadd.f32 %v419_v50, %v389_v43  ;;  %v370_v43 = vsub.f32 %v616_v29, %v680_v31  ;;  %v371_v48 = vsub.f32 %v617_v35, %v681_v37  ;;  %v404_v57 = vand.u32 2147483647, %v372_v51 }
  0x36   : > { %v405_v59 = vand.u32 2147483647, %v373_v54 }
  0x37   : > { %v421_v62 = vadd.f32 %v420_v56, %v390_v49  ;;  %v401_v49 = vand.u32 2147483647, %v369_v38  ;;  %v402_v52 = vand.u32 2147483647, %v370_v43 }
  0x39   : > { %v422_v4 = vadd.f32 %v421_v62, %v391_v55  ;;  %v403_v55 = vand.u32 2147483647, %v371_v48 }
  0x3b   : > { %v423_v10 = vadd.f32 %v422_v4, %v392_v61 }
  0x3d   : > { %v424_v16 = vadd.f32 %v423_v10, %v393_v3 }
  0x3f   : > { %v425_v22 = vadd.f32 %v424_v16, %v394_v9 }
  0x41   : > { %v426_v28 = vadd.f32 %v425_v22, %v395_v15 }
  0x43   : > { %v427_v34 = vadd.f32 %v426_v28, %v396_v21 }
  0x45   : > { %v428_v40 = vadd.f32 %v427_v34, %v397_v27 }
  0x47   : > { %v429_v45 = vadd.f32 %v428_v40, %v398_v33 }
  0x49   : > { %v430_v50 = vadd.f32 %v429_v45, %v399_v39 }
  0x4b   : > { %v431_v53 = vadd.f32 %v430_v50, %v400_v44 }
  0x4d   : > { %v432_v56 = vadd.f32 %v431_v53, %v401_v49 }
  0x4f   : > { %v433_v58 = vadd.f32 %v432_v56, %v402_v52 }
  0x51   : > { %v434_v60 = vadd.f32 %v433_v58, %v403_v55 }
  0x53   : > { %v435_v61 = vadd.f32 %v434_v60, %v404_v57 }
  0x55   : > { %v436_v62 = vadd.f32 %v435_v61, %v405_v59 }
  0x57   : > { %437 = vadd.xlane.f32.xlu0 %v436_v62 }
  0xe4   : > { %v438_v63 = vpop.xlane.xlu0 %437 }
  0xe5   : > { %v439_v0 = vrot.slane %v438_v63, 4 }
  0xe7   : > { %v440_v1 = vadd.f32 %v439_v0, %v438_v63 }
  0xe9   : > { %v441_v2 = vrot.slane %v440_v1, 2 }
  0xeb   : > { %v442_v3 = vadd.f32 %v441_v2, %v440_v1 }
  0xed   : > { %v443_v4 = vrot.slane %v442_v3, 1 }
  0xef   : > { %v444_v5 = vadd.f32 %v443_v4, %v442_v3 }
  0xf1   : > { %716 = vpush %v444_v5 }
 0x122   : > { %s717_s24 = spop %716 }
 0x123   : > { %v446_v6 = vstv %s717_s24 }
 0x124   : > { %448 = vst [vmem:[%s213_s23] sm:$0xff] %v446_v6 }
 0x125 PF: > { %s12_s11 = sadd.s32 1, %s764_s11   ;;  %s860_s9 = smov %s760_s10 }
 0x126   : > { %p9_p5 = scmp.ge.s32.totalorder %s12_s11, 4   ;;  %s861_s10 = smov %s863_s12 }
 0x128   :  { %11 = sbr.rel (!%p9_p5) target bundleno = 2 (0x2), region = 61 }

</bundles_post_ra>
